<compile_context>
chip_gen: v7x
topology: tpu7x:2x2x1
jax: 0.10.0
libtpu: 0.0.40
codegen_flags: <defaults>
</compile_context>

<pallas_src>
import functools

import jax
import jax.numpy as jnp
from jax.experimental import pallas as pl
from jax.experimental.pallas import tpu as pltpu

_LANE = 128
_VMEM_LIMIT = 32 * 1024 * 1024        # scoped-VMEM request valid on v5e/v6e/v7x
_VMEM_TILE_BUDGET = 20 * 1024 * 1024  # per-grid-step tile budget (headroom kept)


# ----------------------------------------------------------------------------
# Kernels
# ----------------------------------------------------------------------------
def _conv_pool_relu_body(x_ref, w_ref, b_ref, v_scr, bt, He, We, Cin, Cout):
    """3x3 'same' conv (in-kernel im2col) + bias + 2x2 max-pool + ReLU.

    x_ref : (bt, H+2, W+2, Cin) zero-padded bf16 input tile
    w_ref : (9*Cin, Cout) bf16 weights (BN scale folded), tap t = dy*3+dx
    b_ref : (1, Cout) f32 bias (conv bias * scale + beta)
    v_scr : (bt*Hp, We, Cout) f32 scratch for the vertical-pool result
    returns (bt*Hp, Wp, Cout) f32 pooled+ReLU activations
    """
    Hp, Wp = He // 2, We // 2
    M = bt * He * We
    acc = jnp.zeros((M, Cout), jnp.float32)
    # Nine shifted taps accumulated on the MXU; the padded tile is read from
    # HBM exactly once per grid step (no wrapper-side 9x im2col).
    for t in range(9):
        dy, dx = t // 3, t % 3
        tap = x_ref[:, dy:dy + He, dx:dx + We, :].reshape(M, Cin)
        acc = acc + jnp.dot(tap, w_ref[t * Cin:(t + 1) * Cin, :],
                            preferred_element_type=jnp.float32)
    y = (acc + b_ref[...]).reshape(bt * Hp, 2, We, Cout)
    # Vertical 2x pool (VPU), then horizontal 2x pool via sublane-strided reads.
    v_scr[...] = jnp.maximum(y[:, 0], y[:, 1])
    pooled = jnp.maximum(v_scr[:, pl.ds(0, Wp, stride=2), :],
                         v_scr[:, pl.ds(1, Wp, stride=2), :])
    return jnp.maximum(pooled, 0.0)


def conv_block_kernel(x_ref, w_ref, b_ref, o_ref, v_scr, *, bt, He, We, Cin, Cout):
    Hp, Wp = He // 2, We // 2
    act = _conv_pool_relu_body(x_ref, w_ref, b_ref, v_scr, bt, He, We, Cin, Cout)
    # Lane-dense store: minor dim Wp*Cout instead of Cout=32.
    o_ref[...] = act.reshape(bt * Hp, Wp * Cout).astype(o_ref.dtype)


def conv_block_linear_kernel(x_ref, w_ref, b_ref, wl_ref, bl_ref,
                             o_ref, logits_ref, v_scr, *, bt, He, We, Cin, Cout):
    """Last block: conv+BN+pool+ReLU fused with the final Linear."""
    Hp, Wp = He // 2, We // 2
    act = _conv_pool_relu_body(x_ref, w_ref, b_ref, v_scr, bt, He, We, Cin, Cout)
    o_ref[...] = act.reshape(bt * Hp, Wp * Cout).astype(o_ref.dtype)
    # wl_ref rows were pre-permuted to NHWC-flat order (wrapper side).
    h = act.reshape(bt, Hp * Wp * Cout).astype(jnp.bfloat16)
    logits_ref[...] = (jnp.dot(h, wl_ref[...], preferred_element_type=jnp.float32)
                       + bl_ref[...])


# ----------------------------------------------------------------------------
# Sizing helpers
# ----------------------------------------------------------------------------
def _round_up(x, m):
    return (x + m - 1) // m * m


def _vmem_bytes_per_image(H, W, Cin_p, Cout):
    """Rough lane-padded per-image VMEM footprint of one conv-block grid step."""
    He, We = 2 * (H // 2), 2 * (W // 2)
    Hp, Wp = H // 2, W // 2
    xpad = (H + 2) * (W + 2) * _round_up(Cin_p, _LANE) * 2 * 2   # bf16 in, 2 bufs
    taps = 2 * He * We * _LANE * 2                               # live bf16 tap temps
    acc = He * We * _LANE * 4                                    # f32 accumulator
    vscr = Hp * We * _round_up(Cout, _LANE) * 4                  # f32 pool scratch
    out = _round_up(Hp, 8) * _round_up(Wp * Cout, _LANE) * 2 * 2 # out, 2 bufs
    return xpad + taps + acc + vscr + out


def _pick_bt(B, Hp, bytes_per_image, need_mult8=False, prefer_multi_step=False):
    """Largest batch tile under the VMEM budget that satisfies TPU layout rules.

    Layout rules: the out block's second-minor dim (bt*Hp, and bt for the
    logits block when need_mult8) must be a multiple of 8 unless it equals the
    full array dim (bt == B).
    """
    def legal(bt):
        if B % bt:
            return False
        if bt == B:
            return True
        if need_mult8 and bt % 8:
            return False
        return (bt * Hp) % 8 == 0

    cands = [bt for bt in range(1, B + 1) if legal(bt)]
    fitting = [bt for bt in cands if bt * bytes_per_image <= _VMEM_TILE_BUDGET]
    pool = fitting if fitting else [min(cands)]
    if prefer_multi_step:
        multi = [bt for bt in pool if B // bt >= 2]
        if multi:
            return max(multi)
    return max(pool)


def _prep_conv_inputs(x_nhwc, w9, bias):
    """Zero-pad ('same' spatial + channels to a multiple of 8), bf16 weights."""
    B, H, W, Cin = x_nhwc.shape
    Cout = w9.shape[-1]
    Cin_p = _round_up(Cin, 8)
    xpad = jnp.pad(x_nhwc.astype(jnp.bfloat16),
                   ((0, 0), (1, 1), (1, 1), (0, Cin_p - Cin)))
    wmat = jnp.pad(w9, ((0, 0), (0, Cin_p - Cin), (0, 0))
                   ).reshape(9 * Cin_p, Cout).astype(jnp.bfloat16)
    bias2 = bias.reshape(1, Cout).astype(jnp.float32)
    return xpad, wmat, bias2, Cin_p


# ----------------------------------------------------------------------------
# Wrappers (layout plumbing + pallas_call plumbing)
# ----------------------------------------------------------------------------
def conv_bn_pool_relu(x_nhwc, w9, bias):
    """Conv3x3('same') + BN(eval, folded) + MaxPool2x2 + ReLU -> bf16 NHWC."""
    B, H, W, _ = x_nhwc.shape
    Cout = w9.shape[-1]
    He, We = 2 * (H // 2), 2 * (W // 2)
    Hp, Wp = H // 2, W // 2
    xpad, wmat, bias2, Cin_p = _prep_conv_inputs(x_nhwc, w9, bias)
    bt = _pick_bt(B, Hp, _vmem_bytes_per_image(H, W, Cin_p, Cout))
    kernel = functools.partial(conv_block_kernel, bt=bt, He=He, We=We,
                               Cin=Cin_p, Cout=Cout)
    out = pl.pallas_call(
        kernel,
        out_shape=jax.ShapeDtypeStruct((B * Hp, Wp * Cout), jnp.bfloat16),
        grid_spec=pltpu.PrefetchScalarGridSpec(
            num_scalar_prefetch=0,
            grid=(B // bt,),
            in_specs=[
                pl.BlockSpec((bt, H + 2, W + 2, Cin_p), lambda b: (b, 0, 0, 0)),
                pl.BlockSpec((9 * Cin_p, Cout), lambda b: (0, 0)),
                pl.BlockSpec((1, Cout), lambda b: (0, 0)),
            ],
            out_specs=pl.BlockSpec((bt * Hp, Wp * Cout), lambda b: (b, 0)),
            scratch_shapes=[pltpu.VMEM((bt * Hp, We, Cout), jnp.float32)],
        ),
        compiler_params=pltpu.CompilerParams(
            dimension_semantics=("parallel",),
            vmem_limit_bytes=_VMEM_LIMIT),
    )(xpad, wmat, bias2)
    return out.reshape(B, Hp, Wp, Cout)     # free row-major reshape in HBM


def conv_bn_pool_relu_linear(x_nhwc, w9, bias, wl, bl):
    """Last conv block fused with the final Linear -> (pooled_nhwc_f32, logits)."""
    B, H, W, _ = x_nhwc.shape
    Cout = w9.shape[-1]
    He, We = 2 * (H // 2), 2 * (W // 2)
    Hp, Wp = H // 2, W // 2
    nc = wl.shape[1]
    F = Hp * Wp * Cout
    assert wl.shape[0] == F
    xpad, wmat, bias2, Cin_p = _prep_conv_inputs(x_nhwc, w9, bias)
    # Permute Linear weight rows from NCHW-flat (torch Flatten order) to
    # NHWC-flat order so the kernel consumes pooled activations directly.
    wl_perm = (wl.reshape(Cout, Hp, Wp, nc).transpose(1, 2, 0, 3)
               .reshape(F, nc).astype(jnp.bfloat16))
    bl2 = bl.reshape(1, nc).astype(jnp.float32)
    bt = _pick_bt(B, Hp, _vmem_bytes_per_image(H, W, Cin_p, Cout),
                  need_mult8=True, prefer_multi_step=True)
    kernel = functools.partial(conv_block_linear_kernel, bt=bt, He=He, We=We,
                               Cin=Cin_p, Cout=Cout)
    pooled, logits = pl.pallas_call(
        kernel,
        out_shape=(jax.ShapeDtypeStruct((B * Hp, Wp * Cout), jnp.float32),
                   jax.ShapeDtypeStruct((B, nc), jnp.float32)),
        grid_spec=pltpu.PrefetchScalarGridSpec(
            num_scalar_prefetch=0,
            grid=(B // bt,),
            in_specs=[
                pl.BlockSpec((bt, H + 2, W + 2, Cin_p), lambda b: (b, 0, 0, 0)),
                pl.BlockSpec((9 * Cin_p, Cout), lambda b: (0, 0)),
                pl.BlockSpec((1, Cout), lambda b: (0, 0)),
                pl.BlockSpec((F, nc), lambda b: (0, 0)),   # resident Linear weight
                pl.BlockSpec((1, nc), lambda b: (0, 0)),
            ],
            out_specs=(pl.BlockSpec((bt * Hp, Wp * Cout), lambda b: (b, 0)),
                       pl.BlockSpec((bt, nc), lambda b: (b, 0))),
            scratch_shapes=[pltpu.VMEM((bt * Hp, We, Cout), jnp.float32)],
        ),
        compiler_params=pltpu.CompilerParams(
            dimension_semantics=("parallel",),
            vmem_limit_bytes=_VMEM_LIMIT),
    )(xpad, wmat, bias2, wl_perm, bl2)
    return pooled.reshape(B, Hp, Wp, Cout), logits


# ----------------------------------------------------------------------------
# Full forward:  (logits, h)  — same contract as CNN_celeba.forward
# ----------------------------------------------------------------------------
def cnn_celeba_forward(x_nchw, params):
    x = jnp.transpose(x_nchw, (0, 2, 3, 1))                 # NCHW -> NHWC
    blocks = params["blocks"]
    for (w9, bias) in blocks[:-1]:
        x = conv_bn_pool_relu(x, w9, bias)
    w9, bias = blocks[-1]
    pooled, logits = conv_bn_pool_relu_linear(x, w9, bias,
                                              params["wl"], params["bl"])
    B = pooled.shape[0]
    # torch.nn.Flatten flattens the NCHW tensor channel-major:
    h = jnp.transpose(pooled, (0, 3, 1, 2)).reshape(B, -1)
    return logits, h


# ----------------------------------------------------------------------------
# Parameter construction (deterministic, synthetic) + pure-JAX reference.
# ----------------------------------------------------------------------------
def make_params(key, image_size, num_class):
    eps = 1e-5
    blocks = []
    cin = 3
    for _ in range(4):
        cout = 32
        key, kw, kb, kg, kbeta = jax.random.split(key, 5)
        w = 0.05 * jax.random.normal(kw, (cout, cin, 3, 3), jnp.float32)   # OIHW
        b = 0.05 * jax.random.normal(kb, (cout,), jnp.float32)
        gamma = 1.0 + 0.1 * jax.random.normal(kg, (cout,), jnp.float32)
        beta = 0.1 * jax.random.normal(kbeta, (cout,), jnp.float32)
        # eval-mode BN (running_mean=0, running_var=1) folded into the conv:
        s = gamma / jnp.sqrt(1.0 + eps)
        w9 = jnp.transpose(w, (2, 3, 1, 0)).reshape(9, cin, cout) * s      # tap = dy*3+dx
        bias_total = b * s + beta
        blocks.append((w9, bias_total))
        cin = cout
    F = 32 * (image_size // 16) * (image_size // 16)
    key, kwl, kbl = jax.random.split(key, 3)
    wl = 0.05 * jax.random.normal(kwl, (F, num_class), jnp.float32)
    bl = 0.05 * jax.random.normal(kbl, (num_class,), jnp.float32)
    return {"blocks": blocks, "wl": wl, "bl": bl}


def reference_forward(x_nchw, params):
    # Mirrors the kernel numerics: bf16 MXU inputs (BN scale folded into the
    # weights), f32 accumulation, f32 bias/pool/ReLU, bf16 inter-block
    # activations, f32 last-block activations.
    x = jnp.transpose(x_nchw, (0, 2, 3, 1)).astype(jnp.float32)
    blocks = params["blocks"]
    for bi, (w9, bias) in enumerate(blocks):
        cin, cout = w9.shape[1], w9.shape[2]
        w_hwio = w9.reshape(3, 3, cin, cout)
        y = jax.lax.conv_general_dilated(
            x.astype(jnp.bfloat16), w_hwio.astype(jnp.bfloat16),
            window_strides=(1, 1), padding="SAME",
            dimension_numbers=("NHWC", "HWIO", "NHWC"),
            preferred_element_type=jnp.float32)
        y = y + bias.reshape(1, 1, 1, cout)
        y = jax.lax.reduce_window(y, -jnp.inf, jax.lax.max,
                                  (1, 2, 2, 1), (1, 2, 2, 1), "VALID")
        y = jnp.maximum(y, 0.0)
        x = y if bi == len(blocks) - 1 else y.astype(jnp.bfloat16)
    h = jnp.transpose(x, (0, 3, 1, 2)).reshape(x.shape[0], -1)
    logits = jnp.dot(h.astype(jnp.bfloat16), params["wl"].astype(jnp.bfloat16),
                     preferred_element_type=jnp.float32) + params["bl"]
    return logits, h


if __name__ == "__main__":
    B, image_size, num_class = 2, 16, 2       # small demo shapes
    key = jax.random.PRNGKey(0)
    key, kx = jax.random.split(key)
    params = make_params(key, image_size, num_class)
    x = jax.random.normal(kx, (B, 3, image_size, image_size), jnp.float32)

    logits, h = jax.jit(cnn_celeba_forward)(x, params)
    jax.block_until_ready((logits, h))

    ref_logits, ref_h = reference_forward(x, params)
    F = 32 * (image_size // 16) ** 2
    assert logits.shape == (B, num_class) and h.shape == (B, F)
    assert jnp.allclose(logits, ref_logits, atol=2e-3, rtol=2e-3)
    assert jnp.allclose(h, ref_h, atol=2e-3, rtol=2e-3)

    print("KERNEL_OK")
</pallas_src>

<mosaic_0001>
module attributes {stable_mosaic.version = 11 : i64} {
  func.func @conv_block_kernel(%arg0: i32, %arg1: memref<2x18x18x8xbf16, #tpu.memory_space<vmem>>, %arg2: memref<72x32xbf16, #tpu.memory_space<vmem>>, %arg3: memref<1x32xf32, #tpu.memory_space<vmem>>, %arg4: memref<16x256xbf16, #tpu.memory_space<vmem>>, %arg5: memref<16x16x32xf32, #tpu.memory_space<vmem>>) attributes {dimension_semantics = [#tpu.dimension_semantics<parallel>], iteration_bounds = array<i64: 1>, scalar_prefetch = 0 : i64, scratch_operands = 1 : i64, tpu.core_type = #tpu.core_type<tc>, window_params = [{transform_indices = @transform_0, window_bounds = array<i64: 2, 18, 18, 8>}, {pipeline_mode = #tpu.pipeline_mode<synchronous>, transform_indices = @transform_1, window_bounds = array<i64: 72, 32>}, {pipeline_mode = #tpu.pipeline_mode<synchronous>, transform_indices = @transform_2, window_bounds = array<i64: 1, 32>}, {transform_indices = @transform_3, window_bounds = array<i64: 16, 256>}]} {
    %cst = arith.constant 0.000000e+00 : f32
    %0 = vector.broadcast %cst : f32 to vector<512x32xf32>
    %c0 = arith.constant 0 : index
    %c0_0 = arith.constant 0 : index
    %c0_1 = arith.constant 0 : index
    %c0_2 = arith.constant 0 : index
    %1 = vector.load %arg1[%c0, %c0_0, %c0_1, %c0_2] : memref<2x18x18x8xbf16, #tpu.memory_space<vmem>>, vector<2x16x16x8xbf16>
    %2 = vector.shape_cast %1 : vector<2x16x16x8xbf16> to vector<512x8xbf16>
    %c0_3 = arith.constant 0 : index
    %c0_4 = arith.constant 0 : index
    %3 = vector.load %arg2[%c0_3, %c0_4] : memref<72x32xbf16, #tpu.memory_space<vmem>>, vector<8x32xbf16>
    %cst_5 = arith.constant dense<0.000000e+00> : vector<512x32xf32>
    %4 = tpu.matmul %2, %3, %cst_5 {dimension_numbers = #tpu.dot_dimension_numbers<[1], [0], [0], [1], [0, 0, 1, 1], [], []>} : vector<512x8xbf16>, vector<8x32xbf16>, vector<512x32xf32> -> vector<512x32xf32>
    %5 = arith.addf %0, %4 : vector<512x32xf32>
    %c0_6 = arith.constant 0 : index
    %c0_7 = arith.constant 0 : index
    %c1 = arith.constant 1 : index
    %c0_8 = arith.constant 0 : index
    %6 = vector.load %arg1[%c0_6, %c0_7, %c1, %c0_8] : memref<2x18x18x8xbf16, #tpu.memory_space<vmem>>, vector<2x16x16x8xbf16>
    %7 = vector.shape_cast %6 : vector<2x16x16x8xbf16> to vector<512x8xbf16>
    %c8 = arith.constant 8 : index
    %c0_9 = arith.constant 0 : index
    %8 = vector.load %arg2[%c8, %c0_9] : memref<72x32xbf16, #tpu.memory_space<vmem>>, vector<8x32xbf16>
    %cst_10 = arith.constant dense<0.000000e+00> : vector<512x32xf32>
    %9 = tpu.matmul %7, %8, %cst_10 {dimension_numbers = #tpu.dot_dimension_numbers<[1], [0], [0], [1], [0, 0, 1, 1], [], []>} : vector<512x8xbf16>, vector<8x32xbf16>, vector<512x32xf32> -> vector<512x32xf32>
    %10 = arith.addf %5, %9 : vector<512x32xf32>
    %c0_11 = arith.constant 0 : index
    %c0_12 = arith.constant 0 : index
    %c2 = arith.constant 2 : index
    %c0_13 = arith.constant 0 : index
    %11 = vector.load %arg1[%c0_11, %c0_12, %c2, %c0_13] : memref<2x18x18x8xbf16, #tpu.memory_space<vmem>>, vector<2x16x16x8xbf16>
    %12 = vector.shape_cast %11 : vector<2x16x16x8xbf16> to vector<512x8xbf16>
    %c16 = arith.constant 16 : index
    %c0_14 = arith.constant 0 : index
    %13 = vector.load %arg2[%c16, %c0_14] : memref<72x32xbf16, #tpu.memory_space<vmem>>, vector<8x32xbf16>
    %cst_15 = arith.constant dense<0.000000e+00> : vector<512x32xf32>
    %14 = tpu.matmul %12, %13, %cst_15 {dimension_numbers = #tpu.dot_dimension_numbers<[1], [0], [0], [1], [0, 0, 1, 1], [], []>} : vector<512x8xbf16>, vector<8x32xbf16>, vector<512x32xf32> -> vector<512x32xf32>
    %15 = arith.addf %10, %14 : vector<512x32xf32>
    %c0_16 = arith.constant 0 : index
    %c1_17 = arith.constant 1 : index
    %c0_18 = arith.constant 0 : index
    %c0_19 = arith.constant 0 : index
    %16 = vector.load %arg1[%c0_16, %c1_17, %c0_18, %c0_19] : memref<2x18x18x8xbf16, #tpu.memory_space<vmem>>, vector<2x16x16x8xbf16>
    %17 = vector.shape_cast %16 : vector<2x16x16x8xbf16> to vector<512x8xbf16>
    %c24 = arith.constant 24 : index
    %c0_20 = arith.constant 0 : index
    %18 = vector.load %arg2[%c24, %c0_20] : memref<72x32xbf16, #tpu.memory_space<vmem>>, vector<8x32xbf16>
    %cst_21 = arith.constant dense<0.000000e+00> : vector<512x32xf32>
    %19 = tpu.matmul %17, %18, %cst_21 {dimension_numbers = #tpu.dot_dimension_numbers<[1], [0], [0], [1], [0, 0, 1, 1], [], []>} : vector<512x8xbf16>, vector<8x32xbf16>, vector<512x32xf32> -> vector<512x32xf32>
    %20 = arith.addf %15, %19 : vector<512x32xf32>
    %c0_22 = arith.constant 0 : index
    %c1_23 = arith.constant 1 : index
    %c1_24 = arith.constant 1 : index
    %c0_25 = arith.constant 0 : index
    %21 = vector.load %arg1[%c0_22, %c1_23, %c1_24, %c0_25] : memref<2x18x18x8xbf16, #tpu.memory_space<vmem>>, vector<2x16x16x8xbf16>
    %22 = vector.shape_cast %21 : vector<2x16x16x8xbf16> to vector<512x8xbf16>
    %c32 = arith.constant 32 : index
    %c0_26 = arith.constant 0 : index
    %23 = vector.load %arg2[%c32, %c0_26] : memref<72x32xbf16, #tpu.memory_space<vmem>>, vector<8x32xbf16>
    %cst_27 = arith.constant dense<0.000000e+00> : vector<512x32xf32>
    %24 = tpu.matmul %22, %23, %cst_27 {dimension_numbers = #tpu.dot_dimension_numbers<[1], [0], [0], [1], [0, 0, 1, 1], [], []>} : vector<512x8xbf16>, vector<8x32xbf16>, vector<512x32xf32> -> vector<512x32xf32>
    %25 = arith.addf %20, %24 : vector<512x32xf32>
    %c0_28 = arith.constant 0 : index
    %c1_29 = arith.constant 1 : index
    %c2_30 = arith.constant 2 : index
    %c0_31 = arith.constant 0 : index
    %26 = vector.load %arg1[%c0_28, %c1_29, %c2_30, %c0_31] : memref<2x18x18x8xbf16, #tpu.memory_space<vmem>>, vector<2x16x16x8xbf16>
    %27 = vector.shape_cast %26 : vector<2x16x16x8xbf16> to vector<512x8xbf16>
    %c40 = arith.constant 40 : index
    %c0_32 = arith.constant 0 : index
    %28 = vector.load %arg2[%c40, %c0_32] : memref<72x32xbf16, #tpu.memory_space<vmem>>, vector<8x32xbf16>
    %cst_33 = arith.constant dense<0.000000e+00> : vector<512x32xf32>
    %29 = tpu.matmul %27, %28, %cst_33 {dimension_numbers = #tpu.dot_dimension_numbers<[1], [0], [0], [1], [0, 0, 1, 1], [], []>} : vector<512x8xbf16>, vector<8x32xbf16>, vector<512x32xf32> -> vector<512x32xf32>
    %30 = arith.addf %25, %29 : vector<512x32xf32>
    %c0_34 = arith.constant 0 : index
    %c2_35 = arith.constant 2 : index
    %c0_36 = arith.constant 0 : index
    %c0_37 = arith.constant 0 : index
    %31 = vector.load %arg1[%c0_34, %c2_35, %c0_36, %c0_37] : memref<2x18x18x8xbf16, #tpu.memory_space<vmem>>, vector<2x16x16x8xbf16>
    %32 = vector.shape_cast %31 : vector<2x16x16x8xbf16> to vector<512x8xbf16>
    %c48 = arith.constant 48 : index
    %c0_38 = arith.constant 0 : index
    %33 = vector.load %arg2[%c48, %c0_38] : memref<72x32xbf16, #tpu.memory_space<vmem>>, vector<8x32xbf16>
    %cst_39 = arith.constant dense<0.000000e+00> : vector<512x32xf32>
    %34 = tpu.matmul %32, %33, %cst_39 {dimension_numbers = #tpu.dot_dimension_numbers<[1], [0], [0], [1], [0, 0, 1, 1], [], []>} : vector<512x8xbf16>, vector<8x32xbf16>, vector<512x32xf32> -> vector<512x32xf32>
    %35 = arith.addf %30, %34 : vector<512x32xf32>
    %c0_40 = arith.constant 0 : index
    %c2_41 = arith.constant 2 : index
    %c1_42 = arith.constant 1 : index
    %c0_43 = arith.constant 0 : index
    %36 = vector.load %arg1[%c0_40, %c2_41, %c1_42, %c0_43] : memref<2x18x18x8xbf16, #tpu.memory_space<vmem>>, vector<2x16x16x8xbf16>
    %37 = vector.shape_cast %36 : vector<2x16x16x8xbf16> to vector<512x8xbf16>
    %c56 = arith.constant 56 : index
    %c0_44 = arith.constant 0 : index
    %38 = vector.load %arg2[%c56, %c0_44] : memref<72x32xbf16, #tpu.memory_space<vmem>>, vector<8x32xbf16>
    %cst_45 = arith.constant dense<0.000000e+00> : vector<512x32xf32>
    %39 = tpu.matmul %37, %38, %cst_45 {dimension_numbers = #tpu.dot_dimension_numbers<[1], [0], [0], [1], [0, 0, 1, 1], [], []>} : vector<512x8xbf16>, vector<8x32xbf16>, vector<512x32xf32> -> vector<512x32xf32>
    %40 = arith.addf %35, %39 : vector<512x32xf32>
    %c0_46 = arith.constant 0 : index
    %c2_47 = arith.constant 2 : index
    %c2_48 = arith.constant 2 : index
    %c0_49 = arith.constant 0 : index
    %41 = vector.load %arg1[%c0_46, %c2_47, %c2_48, %c0_49] : memref<2x18x18x8xbf16, #tpu.memory_space<vmem>>, vector<2x16x16x8xbf16>
    %42 = vector.shape_cast %41 : vector<2x16x16x8xbf16> to vector<512x8xbf16>
    %c64 = arith.constant 64 : index
    %c0_50 = arith.constant 0 : index
    %43 = vector.load %arg2[%c64, %c0_50] : memref<72x32xbf16, #tpu.memory_space<vmem>>, vector<8x32xbf16>
    %cst_51 = arith.constant dense<0.000000e+00> : vector<512x32xf32>
    %44 = tpu.matmul %42, %43, %cst_51 {dimension_numbers = #tpu.dot_dimension_numbers<[1], [0], [0], [1], [0, 0, 1, 1], [], []>} : vector<512x8xbf16>, vector<8x32xbf16>, vector<512x32xf32> -> vector<512x32xf32>
    %45 = arith.addf %40, %44 : vector<512x32xf32>
    %c0_52 = arith.constant 0 : index
    %c0_53 = arith.constant 0 : index
    %46 = vector.load %arg3[%c0_52, %c0_53] : memref<1x32xf32, #tpu.memory_space<vmem>>, vector<1x32xf32>
    %47 = vector.broadcast %46 : vector<1x32xf32> to vector<512x32xf32>
    %48 = arith.addf %45, %47 : vector<512x32xf32>
    %49 = vector.shape_cast %48 : vector<512x32xf32> to vector<16x2x16x32xf32>
    %50 = vector.extract_strided_slice %49 {offsets = [0, 0, 0, 0], sizes = [16, 1, 16, 32], strides = [1, 1, 1, 1]} : vector<16x2x16x32xf32> to vector<16x1x16x32xf32>
    %51 = vector.shape_cast %50 : vector<16x1x16x32xf32> to vector<16x16x32xf32>
    %52 = vector.extract_strided_slice %49 {offsets = [0, 1, 0, 0], sizes = [16, 1, 16, 32], strides = [1, 1, 1, 1]} : vector<16x2x16x32xf32> to vector<16x1x16x32xf32>
    %53 = vector.shape_cast %52 : vector<16x1x16x32xf32> to vector<16x16x32xf32>
    %54 = arith.maximumf %51, %53 : vector<16x16x32xf32>
    %c0_54 = arith.constant 0 : index
    %c0_55 = arith.constant 0 : index
    %c0_56 = arith.constant 0 : index
    %55 = vector.load %arg5[%c0_54, %c0_55, %c0_56] : memref<16x16x32xf32, #tpu.memory_space<vmem>>, vector<16x16x32xf32>
    tpu.vector_store %arg5[%c0_54, %c0_55, %c0_56], %54 {strides = array<i32>} : memref<16x16x32xf32, #tpu.memory_space<vmem>>, vector<16x16x32xf32>,
    %c0_57 = arith.constant 0 : index
    %c0_58 = arith.constant 0 : index
    %c0_59 = arith.constant 0 : index
    %56 = tpu.strided_load %arg5[%c0_57, %c0_58, %c0_59] {strides = array<i32: 1, 2, 1>} : memref<16x16x32xf32, #tpu.memory_space<vmem>>, vector<16x8x32xf32>
    %c0_60 = arith.constant 0 : index
    %c1_61 = arith.constant 1 : index
    %c0_62 = arith.constant 0 : index
    %57 = tpu.strided_load %arg5[%c0_60, %c1_61, %c0_62] {strides = array<i32: 1, 2, 1>} : memref<16x16x32xf32, #tpu.memory_space<vmem>>, vector<16x8x32xf32>
    %58 = arith.maximumf %56, %57 : vector<16x8x32xf32>
    %cst_63 = arith.constant 0.000000e+00 : f32
    %59 = vector.broadcast %cst_63 : f32 to vector<16x8x32xf32>
    %60 = arith.maximumf %58, %59 : vector<16x8x32xf32>
    %61 = vector.shape_cast %60 : vector<16x8x32xf32> to vector<16x256xf32>
    %62 = arith.truncf %61 : vector<16x256xf32> to vector<16x256xbf16>
    %c0_64 = arith.constant 0 : index
    %c0_65 = arith.constant 0 : index
    %63 = vector.load %arg4[%c0_64, %c0_65] : memref<16x256xbf16, #tpu.memory_space<vmem>>, vector<16x256xbf16>
    tpu.vector_store %arg4[%c0_64, %c0_65], %62 {strides = array<i32>} : memref<16x256xbf16, #tpu.memory_space<vmem>>, vector<16x256xbf16>,
    return
  }
  func.func @transform_0(%arg0: i32) -> (i32, i32, i32, i32) {
    %c0_i32 = arith.constant 0 : i32
    %c0_i32_0 = arith.constant 0 : i32
    %c0_i32_1 = arith.constant 0 : i32
    %c0_i32_2 = arith.constant 0 : i32
    return %arg0, %c0_i32, %c0_i32_0, %c0_i32_1 : i32, i32, i32, i32
  }
  func.func @transform_1(%arg0: i32) -> (i32, i32) {
    %c0_i32 = arith.constant 0 : i32
    %c0_i32_0 = arith.constant 0 : i32
    %c0_i32_1 = arith.constant 0 : i32
    return %c0_i32, %c0_i32_0 : i32, i32
  }
  func.func @transform_2(%arg0: i32) -> (i32, i32) {
    %c0_i32 = arith.constant 0 : i32
    %c0_i32_0 = arith.constant 0 : i32
    %c0_i32_1 = arith.constant 0 : i32
    return %c0_i32, %c0_i32_0 : i32, i32
  }
  func.func @transform_3(%arg0: i32) -> (i32, i32) {
    %c0_i32 = arith.constant 0 : i32
    %c0_i32_0 = arith.constant 0 : i32
    return %arg0, %c0_i32 : i32, i32
  }
}

module attributes {stable_mosaic.version = 11 : i64} {
  func.func @conv_block_kernel(%arg0: i32, %arg1: memref<2x6x6x32xbf16, #tpu.memory_space<vmem>>, %arg2: memref<288x32xbf16, #tpu.memory_space<vmem>>, %arg3: memref<1x32xf32, #tpu.memory_space<vmem>>, %arg4: memref<4x64xbf16, #tpu.memory_space<vmem>>, %arg5: memref<4x4x32xf32, #tpu.memory_space<vmem>>) attributes {dimension_semantics = [#tpu.dimension_semantics<parallel>], iteration_bounds = array<i64: 1>, scalar_prefetch = 0 : i64, scratch_operands = 1 : i64, tpu.core_type = #tpu.core_type<tc>, window_params = [{transform_indices = @transform_0, window_bounds = array<i64: 2, 6, 6, 32>}, {pipeline_mode = #tpu.pipeline_mode<synchronous>, transform_indices = @transform_1, window_bounds = array<i64: 288, 32>}, {pipeline_mode = #tpu.pipeline_mode<synchronous>, transform_indices = @transform_2, window_bounds = array<i64: 1, 32>}, {transform_indices = @transform_3, window_bounds = array<i64: 4, 64>}]} {
    %cst = arith.constant 0.000000e+00 : f32
    %0 = vector.broadcast %cst : f32 to vector<32x32xf32>
    %c0 = arith.constant 0 : index
    %c0_0 = arith.constant 0 : index
    %c0_1 = arith.constant 0 : index
    %c0_2 = arith.constant 0 : index
    %1 = vector.load %arg1[%c0, %c0_0, %c0_1, %c0_2] : memref<2x6x6x32xbf16, #tpu.memory_space<vmem>>, vector<2x4x4x32xbf16>
    %2 = vector.shape_cast %1 : vector<2x4x4x32xbf16> to vector<32x32xbf16>
    %c0_3 = arith.constant 0 : index
    %c0_4 = arith.constant 0 : index
    %3 = vector.load %arg2[%c0_3, %c0_4] : memref<288x32xbf16, #tpu.memory_space<vmem>>, vector<32x32xbf16>
    %cst_5 = arith.constant dense<0.000000e+00> : vector<32x32xf32>
    %4 = tpu.matmul %2, %3, %cst_5 {dimension_numbers = #tpu.dot_dimension_numbers<[1], [0], [0], [1], [0, 0, 1, 1], [], []>} : vector<32x32xbf16>, vector<32x32xbf16>, vector<32x32xf32> -> vector<32x32xf32>
    %5 = arith.addf %0, %4 : vector<32x32xf32>
    %c0_6 = arith.constant 0 : index
    %c0_7 = arith.constant 0 : index
    %c1 = arith.constant 1 : index
    %c0_8 = arith.constant 0 : index
    %6 = vector.load %arg1[%c0_6, %c0_7, %c1, %c0_8] : memref<2x6x6x32xbf16, #tpu.memory_space<vmem>>, vector<2x4x4x32xbf16>
    %7 = vector.shape_cast %6 : vector<2x4x4x32xbf16> to vector<32x32xbf16>
    %c32 = arith.constant 32 : index
    %c0_9 = arith.constant 0 : index
    %8 = vector.load %arg2[%c32, %c0_9] : memref<288x32xbf16, #tpu.memory_space<vmem>>, vector<32x32xbf16>
    %cst_10 = arith.constant dense<0.000000e+00> : vector<32x32xf32>
    %9 = tpu.matmul %7, %8, %cst_10 {dimension_numbers = #tpu.dot_dimension_numbers<[1], [0], [0], [1], [0, 0, 1, 1], [], []>} : vector<32x32xbf16>, vector<32x32xbf16>, vector<32x32xf32> -> vector<32x32xf32>
    %10 = arith.addf %5, %9 : vector<32x32xf32>
    %c0_11 = arith.constant 0 : index
    %c0_12 = arith.constant 0 : index
    %c2 = arith.constant 2 : index
    %c0_13 = arith.constant 0 : index
    %11 = vector.load %arg1[%c0_11, %c0_12, %c2, %c0_13] : memref<2x6x6x32xbf16, #tpu.memory_space<vmem>>, vector<2x4x4x32xbf16>
    %12 = vector.shape_cast %11 : vector<2x4x4x32xbf16> to vector<32x32xbf16>
    %c64 = arith.constant 64 : index
    %c0_14 = arith.constant 0 : index
    %13 = vector.load %arg2[%c64, %c0_14] : memref<288x32xbf16, #tpu.memory_space<vmem>>, vector<32x32xbf16>
    %cst_15 = arith.constant dense<0.000000e+00> : vector<32x32xf32>
    %14 = tpu.matmul %12, %13, %cst_15 {dimension_numbers = #tpu.dot_dimension_numbers<[1], [0], [0], [1], [0, 0, 1, 1], [], []>} : vector<32x32xbf16>, vector<32x32xbf16>, vector<32x32xf32> -> vector<32x32xf32>
    %15 = arith.addf %10, %14 : vector<32x32xf32>
    %c0_16 = arith.constant 0 : index
    %c1_17 = arith.constant 1 : index
    %c0_18 = arith.constant 0 : index
    %c0_19 = arith.constant 0 : index
    %16 = vector.load %arg1[%c0_16, %c1_17, %c0_18, %c0_19] : memref<2x6x6x32xbf16, #tpu.memory_space<vmem>>, vector<2x4x4x32xbf16>
    %17 = vector.shape_cast %16 : vector<2x4x4x32xbf16> to vector<32x32xbf16>
    %c96 = arith.constant 96 : index
    %c0_20 = arith.constant 0 : index
    %18 = vector.load %arg2[%c96, %c0_20] : memref<288x32xbf16, #tpu.memory_space<vmem>>, vector<32x32xbf16>
    %cst_21 = arith.constant dense<0.000000e+00> : vector<32x32xf32>
    %19 = tpu.matmul %17, %18, %cst_21 {dimension_numbers = #tpu.dot_dimension_numbers<[1], [0], [0], [1], [0, 0, 1, 1], [], []>} : vector<32x32xbf16>, vector<32x32xbf16>, vector<32x32xf32> -> vector<32x32xf32>
    %20 = arith.addf %15, %19 : vector<32x32xf32>
    %c0_22 = arith.constant 0 : index
    %c1_23 = arith.constant 1 : index
    %c1_24 = arith.constant 1 : index
    %c0_25 = arith.constant 0 : index
    %21 = vector.load %arg1[%c0_22, %c1_23, %c1_24, %c0_25] : memref<2x6x6x32xbf16, #tpu.memory_space<vmem>>, vector<2x4x4x32xbf16>
    %22 = vector.shape_cast %21 : vector<2x4x4x32xbf16> to vector<32x32xbf16>
    %c128 = arith.constant 128 : index
    %c0_26 = arith.constant 0 : index
    %23 = vector.load %arg2[%c128, %c0_26] : memref<288x32xbf16, #tpu.memory_space<vmem>>, vector<32x32xbf16>
    %cst_27 = arith.constant dense<0.000000e+00> : vector<32x32xf32>
    %24 = tpu.matmul %22, %23, %cst_27 {dimension_numbers = #tpu.dot_dimension_numbers<[1], [0], [0], [1], [0, 0, 1, 1], [], []>} : vector<32x32xbf16>, vector<32x32xbf16>, vector<32x32xf32> -> vector<32x32xf32>
    %25 = arith.addf %20, %24 : vector<32x32xf32>
    %c0_28 = arith.constant 0 : index
    %c1_29 = arith.constant 1 : index
    %c2_30 = arith.constant 2 : index
    %c0_31 = arith.constant 0 : index
    %26 = vector.load %arg1[%c0_28, %c1_29, %c2_30, %c0_31] : memref<2x6x6x32xbf16, #tpu.memory_space<vmem>>, vector<2x4x4x32xbf16>
    %27 = vector.shape_cast %26 : vector<2x4x4x32xbf16> to vector<32x32xbf16>
    %c160 = arith.constant 160 : index
    %c0_32 = arith.constant 0 : index
    %28 = vector.load %arg2[%c160, %c0_32] : memref<288x32xbf16, #tpu.memory_space<vmem>>, vector<32x32xbf16>
    %cst_33 = arith.constant dense<0.000000e+00> : vector<32x32xf32>
    %29 = tpu.matmul %27, %28, %cst_33 {dimension_numbers = #tpu.dot_dimension_numbers<[1], [0], [0], [1], [0, 0, 1, 1], [], []>} : vector<32x32xbf16>, vector<32x32xbf16>, vector<32x32xf32> -> vector<32x32xf32>
    %30 = arith.addf %25, %29 : vector<32x32xf32>
    %c0_34 = arith.constant 0 : index
    %c2_35 = arith.constant 2 : index
    %c0_36 = arith.constant 0 : index
    %c0_37 = arith.constant 0 : index
    %31 = vector.load %arg1[%c0_34, %c2_35, %c0_36, %c0_37] : memref<2x6x6x32xbf16, #tpu.memory_space<vmem>>, vector<2x4x4x32xbf16>
    %32 = vector.shape_cast %31 : vector<2x4x4x32xbf16> to vector<32x32xbf16>
    %c192 = arith.constant 192 : index
    %c0_38 = arith.constant 0 : index
    %33 = vector.load %arg2[%c192, %c0_38] : memref<288x32xbf16, #tpu.memory_space<vmem>>, vector<32x32xbf16>
    %cst_39 = arith.constant dense<0.000000e+00> : vector<32x32xf32>
    %34 = tpu.matmul %32, %33, %cst_39 {dimension_numbers = #tpu.dot_dimension_numbers<[1], [0], [0], [1], [0, 0, 1, 1], [], []>} : vector<32x32xbf16>, vector<32x32xbf16>, vector<32x32xf32> -> vector<32x32xf32>
    %35 = arith.addf %30, %34 : vector<32x32xf32>
    %c0_40 = arith.constant 0 : index
    %c2_41 = arith.constant 2 : index
    %c1_42 = arith.constant 1 : index
    %c0_43 = arith.constant 0 : index
    %36 = vector.load %arg1[%c0_40, %c2_41, %c1_42, %c0_43] : memref<2x6x6x32xbf16, #tpu.memory_space<vmem>>, vector<2x4x4x32xbf16>
    %37 = vector.shape_cast %36 : vector<2x4x4x32xbf16> to vector<32x32xbf16>
    %c224 = arith.constant 224 : index
    %c0_44 = arith.constant 0 : index
    %38 = vector.load %arg2[%c224, %c0_44] : memref<288x32xbf16, #tpu.memory_space<vmem>>, vector<32x32xbf16>
    %cst_45 = arith.constant dense<0.000000e+00> : vector<32x32xf32>
    %39 = tpu.matmul %37, %38, %cst_45 {dimension_numbers = #tpu.dot_dimension_numbers<[1], [0], [0], [1], [0, 0, 1, 1], [], []>} : vector<32x32xbf16>, vector<32x32xbf16>, vector<32x32xf32> -> vector<32x32xf32>
    %40 = arith.addf %35, %39 : vector<32x32xf32>
    %c0_46 = arith.constant 0 : index
    %c2_47 = arith.constant 2 : index
    %c2_48 = arith.constant 2 : index
    %c0_49 = arith.constant 0 : index
    %41 = vector.load %arg1[%c0_46, %c2_47, %c2_48, %c0_49] : memref<2x6x6x32xbf16, #tpu.memory_space<vmem>>, vector<2x4x4x32xbf16>
    %42 = vector.shape_cast %41 : vector<2x4x4x32xbf16> to vector<32x32xbf16>
    %c256 = arith.constant 256 : index
    %c0_50 = arith.constant 0 : index
    %43 = vector.load %arg2[%c256, %c0_50] : memref<288x32xbf16, #tpu.memory_space<vmem>>, vector<32x32xbf16>
    %cst_51 = arith.constant dense<0.000000e+00> : vector<32x32xf32>
    %44 = tpu.matmul %42, %43, %cst_51 {dimension_numbers = #tpu.dot_dimension_numbers<[1], [0], [0], [1], [0, 0, 1, 1], [], []>} : vector<32x32xbf16>, vector<32x32xbf16>, vector<32x32xf32> -> vector<32x32xf32>
    %45 = arith.addf %40, %44 : vector<32x32xf32>
    %c0_52 = arith.constant 0 : index
    %c0_53 = arith.constant 0 : index
    %46 = vector.load %arg3[%c0_52, %c0_53] : memref<1x32xf32, #tpu.memory_space<vmem>>, vector<1x32xf32>
    %47 = vector.broadcast %46 : vector<1x32xf32> to vector<32x32xf32>
    %48 = arith.addf %45, %47 : vector<32x32xf32>
    %49 = vector.shape_cast %48 : vector<32x32xf32> to vector<4x2x4x32xf32>
    %50 = vector.extract_strided_slice %49 {offsets = [0, 0, 0, 0], sizes = [4, 1, 4, 32], strides = [1, 1, 1, 1]} : vector<4x2x4x32xf32> to vector<4x1x4x32xf32>
    %51 = vector.shape_cast %50 : vector<4x1x4x32xf32> to vector<4x4x32xf32>
    %52 = vector.extract_strided_slice %49 {offsets = [0, 1, 0, 0], sizes = [4, 1, 4, 32], strides = [1, 1, 1, 1]} : vector<4x2x4x32xf32> to vector<4x1x4x32xf32>
    %53 = vector.shape_cast %52 : vector<4x1x4x32xf32> to vector<4x4x32xf32>
    %54 = arith.maximumf %51, %53 : vector<4x4x32xf32>
    %c0_54 = arith.constant 0 : index
    %c0_55 = arith.constant 0 : index
    %c0_56 = arith.constant 0 : index
    %55 = vector.load %arg5[%c0_54, %c0_55, %c0_56] : memref<4x4x32xf32, #tpu.memory_space<vmem>>, vector<4x4x32xf32>
    tpu.vector_store %arg5[%c0_54, %c0_55, %c0_56], %54 {strides = array<i32>} : memref<4x4x32xf32, #tpu.memory_space<vmem>>, vector<4x4x32xf32>,
    %c0_57 = arith.constant 0 : index
    %c0_58 = arith.constant 0 : index
    %c0_59 = arith.constant 0 : index
    %56 = tpu.strided_load %arg5[%c0_57, %c0_58, %c0_59] {strides = array<i32: 1, 2, 1>} : memref<4x4x32xf32, #tpu.memory_space<vmem>>, vector<4x2x32xf32>
    %c0_60 = arith.constant 0 : index
    %c1_61 = arith.constant 1 : index
    %c0_62 = arith.constant 0 : index
    %57 = tpu.strided_load %arg5[%c0_60, %c1_61, %c0_62] {strides = array<i32: 1, 2, 1>} : memref<4x4x32xf32, #tpu.memory_space<vmem>>, vector<4x2x32xf32>
    %58 = arith.maximumf %56, %57 : vector<4x2x32xf32>
    %cst_63 = arith.constant 0.000000e+00 : f32
    %59 = vector.broadcast %cst_63 : f32 to vector<4x2x32xf32>
    %60 = arith.maximumf %58, %59 : vector<4x2x32xf32>
    %61 = vector.shape_cast %60 : vector<4x2x32xf32> to vector<4x64xf32>
    %62 = arith.truncf %61 : vector<4x64xf32> to vector<4x64xbf16>
    %c0_64 = arith.constant 0 : index
    %c0_65 = arith.constant 0 : index
    %63 = vector.load %arg4[%c0_64, %c0_65] : memref<4x64xbf16, #tpu.memory_space<vmem>>, vector<4x64xbf16>
    tpu.vector_store %arg4[%c0_64, %c0_65], %62 {strides = array<i32>} : memref<4x64xbf16, #tpu.memory_space<vmem>>, vector<4x64xbf16>,
    return
  }
  func.func @transform_0(%arg0: i32) -> (i32, i32, i32, i32) {
    %c0_i32 = arith.constant 0 : i32
    %c0_i32_0 = arith.constant 0 : i32
    %c0_i32_1 = arith.constant 0 : i32
    %c0_i32_2 = arith.constant 0 : i32
    return %arg0, %c0_i32, %c0_i32_0, %c0_i32_1 : i32, i32, i32, i32
  }
  func.func @transform_1(%arg0: i32) -> (i32, i32) {
    %c0_i32 = arith.constant 0 : i32
    %c0_i32_0 = arith.constant 0 : i32
    %c0_i32_1 = arith.constant 0 : i32
    return %c0_i32, %c0_i32_0 : i32, i32
  }
  func.func @transform_2(%arg0: i32) -> (i32, i32) {
    %c0_i32 = arith.constant 0 : i32
    %c0_i32_0 = arith.constant 0 : i32
    %c0_i32_1 = arith.constant 0 : i32
    return %c0_i32, %c0_i32_0 : i32, i32
  }
  func.func @transform_3(%arg0: i32) -> (i32, i32) {
    %c0_i32 = arith.constant 0 : i32
    %c0_i32_0 = arith.constant 0 : i32
    return %arg0, %c0_i32 : i32, i32
  }
}

module attributes {stable_mosaic.version = 11 : i64} {
  func.func @conv_block_kernel(%arg0: i32, %arg1: memref<2x10x10x32xbf16, #tpu.memory_space<vmem>>, %arg2: memref<288x32xbf16, #tpu.memory_space<vmem>>, %arg3: memref<1x32xf32, #tpu.memory_space<vmem>>, %arg4: memref<8x128xbf16, #tpu.memory_space<vmem>>, %arg5: memref<8x8x32xf32, #tpu.memory_space<vmem>>) attributes {dimension_semantics = [#tpu.dimension_semantics<parallel>], iteration_bounds = array<i64: 1>, scalar_prefetch = 0 : i64, scratch_operands = 1 : i64, tpu.core_type = #tpu.core_type<tc>, window_params = [{transform_indices = @transform_0, window_bounds = array<i64: 2, 10, 10, 32>}, {pipeline_mode = #tpu.pipeline_mode<synchronous>, transform_indices = @transform_1, window_bounds = array<i64: 288, 32>}, {pipeline_mode = #tpu.pipeline_mode<synchronous>, transform_indices = @transform_2, window_bounds = array<i64: 1, 32>}, {transform_indices = @transform_3, window_bounds = array<i64: 8, 128>}]} {
    %cst = arith.constant 0.000000e+00 : f32
    %0 = vector.broadcast %cst : f32 to vector<128x32xf32>
    %c0 = arith.constant 0 : index
    %c0_0 = arith.constant 0 : index
    %c0_1 = arith.constant 0 : index
    %c0_2 = arith.constant 0 : index
    %1 = vector.load %arg1[%c0, %c0_0, %c0_1, %c0_2] : memref<2x10x10x32xbf16, #tpu.memory_space<vmem>>, vector<2x8x8x32xbf16>
    %2 = vector.shape_cast %1 : vector<2x8x8x32xbf16> to vector<128x32xbf16>
    %c0_3 = arith.constant 0 : index
    %c0_4 = arith.constant 0 : index
    %3 = vector.load %arg2[%c0_3, %c0_4] : memref<288x32xbf16, #tpu.memory_space<vmem>>, vector<32x32xbf16>
    %cst_5 = arith.constant dense<0.000000e+00> : vector<128x32xf32>
    %4 = tpu.matmul %2, %3, %cst_5 {dimension_numbers = #tpu.dot_dimension_numbers<[1], [0], [0], [1], [0, 0, 1, 1], [], []>} : vector<128x32xbf16>, vector<32x32xbf16>, vector<128x32xf32> -> vector<128x32xf32>
    %5 = arith.addf %0, %4 : vector<128x32xf32>
    %c0_6 = arith.constant 0 : index
    %c0_7 = arith.constant 0 : index
    %c1 = arith.constant 1 : index
    %c0_8 = arith.constant 0 : index
    %6 = vector.load %arg1[%c0_6, %c0_7, %c1, %c0_8] : memref<2x10x10x32xbf16, #tpu.memory_space<vmem>>, vector<2x8x8x32xbf16>
    %7 = vector.shape_cast %6 : vector<2x8x8x32xbf16> to vector<128x32xbf16>
    %c32 = arith.constant 32 : index
    %c0_9 = arith.constant 0 : index
    %8 = vector.load %arg2[%c32, %c0_9] : memref<288x32xbf16, #tpu.memory_space<vmem>>, vector<32x32xbf16>
    %cst_10 = arith.constant dense<0.000000e+00> : vector<128x32xf32>
    %9 = tpu.matmul %7, %8, %cst_10 {dimension_numbers = #tpu.dot_dimension_numbers<[1], [0], [0], [1], [0, 0, 1, 1], [], []>} : vector<128x32xbf16>, vector<32x32xbf16>, vector<128x32xf32> -> vector<128x32xf32>
    %10 = arith.addf %5, %9 : vector<128x32xf32>
    %c0_11 = arith.constant 0 : index
    %c0_12 = arith.constant 0 : index
    %c2 = arith.constant 2 : index
    %c0_13 = arith.constant 0 : index
    %11 = vector.load %arg1[%c0_11, %c0_12, %c2, %c0_13] : memref<2x10x10x32xbf16, #tpu.memory_space<vmem>>, vector<2x8x8x32xbf16>
    %12 = vector.shape_cast %11 : vector<2x8x8x32xbf16> to vector<128x32xbf16>
    %c64 = arith.constant 64 : index
    %c0_14 = arith.constant 0 : index
    %13 = vector.load %arg2[%c64, %c0_14] : memref<288x32xbf16, #tpu.memory_space<vmem>>, vector<32x32xbf16>
    %cst_15 = arith.constant dense<0.000000e+00> : vector<128x32xf32>
    %14 = tpu.matmul %12, %13, %cst_15 {dimension_numbers = #tpu.dot_dimension_numbers<[1], [0], [0], [1], [0, 0, 1, 1], [], []>} : vector<128x32xbf16>, vector<32x32xbf16>, vector<128x32xf32> -> vector<128x32xf32>
    %15 = arith.addf %10, %14 : vector<128x32xf32>
    %c0_16 = arith.constant 0 : index
    %c1_17 = arith.constant 1 : index
    %c0_18 = arith.constant 0 : index
    %c0_19 = arith.constant 0 : index
    %16 = vector.load %arg1[%c0_16, %c1_17, %c0_18, %c0_19] : memref<2x10x10x32xbf16, #tpu.memory_space<vmem>>, vector<2x8x8x32xbf16>
    %17 = vector.shape_cast %16 : vector<2x8x8x32xbf16> to vector<128x32xbf16>
    %c96 = arith.constant 96 : index
    %c0_20 = arith.constant 0 : index
    %18 = vector.load %arg2[%c96, %c0_20] : memref<288x32xbf16, #tpu.memory_space<vmem>>, vector<32x32xbf16>
    %cst_21 = arith.constant dense<0.000000e+00> : vector<128x32xf32>
    %19 = tpu.matmul %17, %18, %cst_21 {dimension_numbers = #tpu.dot_dimension_numbers<[1], [0], [0], [1], [0, 0, 1, 1], [], []>} : vector<128x32xbf16>, vector<32x32xbf16>, vector<128x32xf32> -> vector<128x32xf32>
    %20 = arith.addf %15, %19 : vector<128x32xf32>
    %c0_22 = arith.constant 0 : index
    %c1_23 = arith.constant 1 : index
    %c1_24 = arith.constant 1 : index
    %c0_25 = arith.constant 0 : index
    %21 = vector.load %arg1[%c0_22, %c1_23, %c1_24, %c0_25] : memref<2x10x10x32xbf16, #tpu.memory_space<vmem>>, vector<2x8x8x32xbf16>
    %22 = vector.shape_cast %21 : vector<2x8x8x32xbf16> to vector<128x32xbf16>
    %c128 = arith.constant 128 : index
    %c0_26 = arith.constant 0 : index
    %23 = vector.load %arg2[%c128, %c0_26] : memref<288x32xbf16, #tpu.memory_space<vmem>>, vector<32x32xbf16>
    %cst_27 = arith.constant dense<0.000000e+00> : vector<128x32xf32>
    %24 = tpu.matmul %22, %23, %cst_27 {dimension_numbers = #tpu.dot_dimension_numbers<[1], [0], [0], [1], [0, 0, 1, 1], [], []>} : vector<128x32xbf16>, vector<32x32xbf16>, vector<128x32xf32> -> vector<128x32xf32>
    %25 = arith.addf %20, %24 : vector<128x32xf32>
    %c0_28 = arith.constant 0 : index
    %c1_29 = arith.constant 1 : index
    %c2_30 = arith.constant 2 : index
    %c0_31 = arith.constant 0 : index
    %26 = vector.load %arg1[%c0_28, %c1_29, %c2_30, %c0_31] : memref<2x10x10x32xbf16, #tpu.memory_space<vmem>>, vector<2x8x8x32xbf16>
    %27 = vector.shape_cast %26 : vector<2x8x8x32xbf16> to vector<128x32xbf16>
    %c160 = arith.constant 160 : index
    %c0_32 = arith.constant 0 : index
    %28 = vector.load %arg2[%c160, %c0_32] : memref<288x32xbf16, #tpu.memory_space<vmem>>, vector<32x32xbf16>
    %cst_33 = arith.constant dense<0.000000e+00> : vector<128x32xf32>
    %29 = tpu.matmul %27, %28, %cst_33 {dimension_numbers = #tpu.dot_dimension_numbers<[1], [0], [0], [1], [0, 0, 1, 1], [], []>} : vector<128x32xbf16>, vector<32x32xbf16>, vector<128x32xf32> -> vector<128x32xf32>
    %30 = arith.addf %25, %29 : vector<128x32xf32>
    %c0_34 = arith.constant 0 : index
    %c2_35 = arith.constant 2 : index
    %c0_36 = arith.constant 0 : index
    %c0_37 = arith.constant 0 : index
    %31 = vector.load %arg1[%c0_34, %c2_35, %c0_36, %c0_37] : memref<2x10x10x32xbf16, #tpu.memory_space<vmem>>, vector<2x8x8x32xbf16>
    %32 = vector.shape_cast %31 : vector<2x8x8x32xbf16> to vector<128x32xbf16>
    %c192 = arith.constant 192 : index
    %c0_38 = arith.constant 0 : index
    %33 = vector.load %arg2[%c192, %c0_38] : memref<288x32xbf16, #tpu.memory_space<vmem>>, vector<32x32xbf16>
    %cst_39 = arith.constant dense<0.000000e+00> : vector<128x32xf32>
    %34 = tpu.matmul %32, %33, %cst_39 {dimension_numbers = #tpu.dot_dimension_numbers<[1], [0], [0], [1], [0, 0, 1, 1], [], []>} : vector<128x32xbf16>, vector<32x32xbf16>, vector<128x32xf32> -> vector<128x32xf32>
    %35 = arith.addf %30, %34 : vector<128x32xf32>
    %c0_40 = arith.constant 0 : index
    %c2_41 = arith.constant 2 : index
    %c1_42 = arith.constant 1 : index
    %c0_43 = arith.constant 0 : index
    %36 = vector.load %arg1[%c0_40, %c2_41, %c1_42, %c0_43] : memref<2x10x10x32xbf16, #tpu.memory_space<vmem>>, vector<2x8x8x32xbf16>
    %37 = vector.shape_cast %36 : vector<2x8x8x32xbf16> to vector<128x32xbf16>
    %c224 = arith.constant 224 : index
    %c0_44 = arith.constant 0 : index
    %38 = vector.load %arg2[%c224, %c0_44] : memref<288x32xbf16, #tpu.memory_space<vmem>>, vector<32x32xbf16>
    %cst_45 = arith.constant dense<0.000000e+00> : vector<128x32xf32>
    %39 = tpu.matmul %37, %38, %cst_45 {dimension_numbers = #tpu.dot_dimension_numbers<[1], [0], [0], [1], [0, 0, 1, 1], [], []>} : vector<128x32xbf16>, vector<32x32xbf16>, vector<128x32xf32> -> vector<128x32xf32>
    %40 = arith.addf %35, %39 : vector<128x32xf32>
    %c0_46 = arith.constant 0 : index
    %c2_47 = arith.constant 2 : index
    %c2_48 = arith.constant 2 : index
    %c0_49 = arith.constant 0 : index
    %41 = vector.load %arg1[%c0_46, %c2_47, %c2_48, %c0_49] : memref<2x10x10x32xbf16, #tpu.memory_space<vmem>>, vector<2x8x8x32xbf16>
    %42 = vector.shape_cast %41 : vector<2x8x8x32xbf16> to vector<128x32xbf16>
    %c256 = arith.constant 256 : index
    %c0_50 = arith.constant 0 : index
    %43 = vector.load %arg2[%c256, %c0_50] : memref<288x32xbf16, #tpu.memory_space<vmem>>, vector<32x32xbf16>
    %cst_51 = arith.constant dense<0.000000e+00> : vector<128x32xf32>
    %44 = tpu.matmul %42, %43, %cst_51 {dimension_numbers = #tpu.dot_dimension_numbers<[1], [0], [0], [1], [0, 0, 1, 1], [], []>} : vector<128x32xbf16>, vector<32x32xbf16>, vector<128x32xf32> -> vector<128x32xf32>
    %45 = arith.addf %40, %44 : vector<128x32xf32>
    %c0_52 = arith.constant 0 : index
    %c0_53 = arith.constant 0 : index
    %46 = vector.load %arg3[%c0_52, %c0_53] : memref<1x32xf32, #tpu.memory_space<vmem>>, vector<1x32xf32>
    %47 = vector.broadcast %46 : vector<1x32xf32> to vector<128x32xf32>
    %48 = arith.addf %45, %47 : vector<128x32xf32>
    %49 = vector.shape_cast %48 : vector<128x32xf32> to vector<8x2x8x32xf32>
    %50 = vector.extract_strided_slice %49 {offsets = [0, 0, 0, 0], sizes = [8, 1, 8, 32], strides = [1, 1, 1, 1]} : vector<8x2x8x32xf32> to vector<8x1x8x32xf32>
    %51 = vector.shape_cast %50 : vector<8x1x8x32xf32> to vector<8x8x32xf32>
    %52 = vector.extract_strided_slice %49 {offsets = [0, 1, 0, 0], sizes = [8, 1, 8, 32], strides = [1, 1, 1, 1]} : vector<8x2x8x32xf32> to vector<8x1x8x32xf32>
    %53 = vector.shape_cast %52 : vector<8x1x8x32xf32> to vector<8x8x32xf32>
    %54 = arith.maximumf %51, %53 : vector<8x8x32xf32>
    %c0_54 = arith.constant 0 : index
    %c0_55 = arith.constant 0 : index
    %c0_56 = arith.constant 0 : index
    %55 = vector.load %arg5[%c0_54, %c0_55, %c0_56] : memref<8x8x32xf32, #tpu.memory_space<vmem>>, vector<8x8x32xf32>
    tpu.vector_store %arg5[%c0_54, %c0_55, %c0_56], %54 {strides = array<i32>} : memref<8x8x32xf32, #tpu.memory_space<vmem>>, vector<8x8x32xf32>,
    %c0_57 = arith.constant 0 : index
    %c0_58 = arith.constant 0 : index
    %c0_59 = arith.constant 0 : index
    %56 = tpu.strided_load %arg5[%c0_57, %c0_58, %c0_59] {strides = array<i32: 1, 2, 1>} : memref<8x8x32xf32, #tpu.memory_space<vmem>>, vector<8x4x32xf32>
    %c0_60 = arith.constant 0 : index
    %c1_61 = arith.constant 1 : index
    %c0_62 = arith.constant 0 : index
    %57 = tpu.strided_load %arg5[%c0_60, %c1_61, %c0_62] {strides = array<i32: 1, 2, 1>} : memref<8x8x32xf32, #tpu.memory_space<vmem>>, vector<8x4x32xf32>
    %58 = arith.maximumf %56, %57 : vector<8x4x32xf32>
    %cst_63 = arith.constant 0.000000e+00 : f32
    %59 = vector.broadcast %cst_63 : f32 to vector<8x4x32xf32>
    %60 = arith.maximumf %58, %59 : vector<8x4x32xf32>
    %61 = vector.shape_cast %60 : vector<8x4x32xf32> to vector<8x128xf32>
    %62 = arith.truncf %61 : vector<8x128xf32> to vector<8x128xbf16>
    %c0_64 = arith.constant 0 : index
    %c0_65 = arith.constant 0 : index
    %63 = vector.load %arg4[%c0_64, %c0_65] : memref<8x128xbf16, #tpu.memory_space<vmem>>, vector<8x128xbf16>
    tpu.vector_store %arg4[%c0_64, %c0_65], %62 {strides = array<i32>} : memref<8x128xbf16, #tpu.memory_space<vmem>>, vector<8x128xbf16>,
    return
  }
  func.func @transform_0(%arg0: i32) -> (i32, i32, i32, i32) {
    %c0_i32 = arith.constant 0 : i32
    %c0_i32_0 = arith.constant 0 : i32
    %c0_i32_1 = arith.constant 0 : i32
    %c0_i32_2 = arith.constant 0 : i32
    return %arg0, %c0_i32, %c0_i32_0, %c0_i32_1 : i32, i32, i32, i32
  }
  func.func @transform_1(%arg0: i32) -> (i32, i32) {
    %c0_i32 = arith.constant 0 : i32
    %c0_i32_0 = arith.constant 0 : i32
    %c0_i32_1 = arith.constant 0 : i32
    return %c0_i32, %c0_i32_0 : i32, i32
  }
  func.func @transform_2(%arg0: i32) -> (i32, i32) {
    %c0_i32 = arith.constant 0 : i32
    %c0_i32_0 = arith.constant 0 : i32
    %c0_i32_1 = arith.constant 0 : i32
    return %c0_i32, %c0_i32_0 : i32, i32
  }
  func.func @transform_3(%arg0: i32) -> (i32, i32) {
    %c0_i32 = arith.constant 0 : i32
    %c0_i32_0 = arith.constant 0 : i32
    return %arg0, %c0_i32 : i32, i32
  }
}

module attributes {stable_mosaic.version = 11 : i64} {
  func.func @conv_block_linear_kernel(%arg0: i32, %arg1: memref<2x4x4x32xbf16, #tpu.memory_space<vmem>>, %arg2: memref<288x32xbf16, #tpu.memory_space<vmem>>, %arg3: memref<1x32xf32, #tpu.memory_space<vmem>>, %arg4: memref<32x2xbf16, #tpu.memory_space<vmem>>, %arg5: memref<1x2xf32, #tpu.memory_space<vmem>>, %arg6: memref<2x32xf32, #tpu.memory_space<vmem>>, %arg7: memref<2x2xf32, #tpu.memory_space<vmem>>, %arg8: memref<2x2x32xf32, #tpu.memory_space<vmem>>) attributes {dimension_semantics = [#tpu.dimension_semantics<parallel>], iteration_bounds = array<i64: 1>, scalar_prefetch = 0 : i64, scratch_operands = 1 : i64, tpu.core_type = #tpu.core_type<tc>, window_params = [{transform_indices = @transform_0, window_bounds = array<i64: 2, 4, 4, 32>}, {pipeline_mode = #tpu.pipeline_mode<synchronous>, transform_indices = @transform_1, window_bounds = array<i64: 288, 32>}, {pipeline_mode = #tpu.pipeline_mode<synchronous>, transform_indices = @transform_2, window_bounds = array<i64: 1, 32>}, {pipeline_mode = #tpu.pipeline_mode<synchronous>, transform_indices = @transform_3, window_bounds = array<i64: 32, 2>}, {pipeline_mode = #tpu.pipeline_mode<synchronous>, transform_indices = @transform_4, window_bounds = array<i64: 1, 2>}, {transform_indices = @transform_5, window_bounds = array<i64: 2, 32>}, {transform_indices = @transform_6, window_bounds = array<i64: 2, 2>}]} {
    %cst = arith.constant 0.000000e+00 : f32
    %0 = vector.broadcast %cst : f32 to vector<8x32xf32>
    %c0 = arith.constant 0 : index
    %c0_0 = arith.constant 0 : index
    %c0_1 = arith.constant 0 : index
    %c0_2 = arith.constant 0 : index
    %1 = vector.load %arg1[%c0, %c0_0, %c0_1, %c0_2] : memref<2x4x4x32xbf16, #tpu.memory_space<vmem>>, vector<2x2x2x32xbf16>
    %2 = vector.shape_cast %1 : vector<2x2x2x32xbf16> to vector<8x32xbf16>
    %c0_3 = arith.constant 0 : index
    %c0_4 = arith.constant 0 : index
    %3 = vector.load %arg2[%c0_3, %c0_4] : memref<288x32xbf16, #tpu.memory_space<vmem>>, vector<32x32xbf16>
    %cst_5 = arith.constant dense<0.000000e+00> : vector<8x32xf32>
    %4 = tpu.matmul %2, %3, %cst_5 {dimension_numbers = #tpu.dot_dimension_numbers<[1], [0], [0], [1], [0, 0, 1, 1], [], []>} : vector<8x32xbf16>, vector<32x32xbf16>, vector<8x32xf32> -> vector<8x32xf32>
    %5 = arith.addf %0, %4 : vector<8x32xf32>
    %c0_6 = arith.constant 0 : index
    %c0_7 = arith.constant 0 : index
    %c1 = arith.constant 1 : index
    %c0_8 = arith.constant 0 : index
    %6 = vector.load %arg1[%c0_6, %c0_7, %c1, %c0_8] : memref<2x4x4x32xbf16, #tpu.memory_space<vmem>>, vector<2x2x2x32xbf16>
    %7 = vector.shape_cast %6 : vector<2x2x2x32xbf16> to vector<8x32xbf16>
    %c32 = arith.constant 32 : index
    %c0_9 = arith.constant 0 : index
    %8 = vector.load %arg2[%c32, %c0_9] : memref<288x32xbf16, #tpu.memory_space<vmem>>, vector<32x32xbf16>
    %cst_10 = arith.constant dense<0.000000e+00> : vector<8x32xf32>
    %9 = tpu.matmul %7, %8, %cst_10 {dimension_numbers = #tpu.dot_dimension_numbers<[1], [0], [0], [1], [0, 0, 1, 1], [], []>} : vector<8x32xbf16>, vector<32x32xbf16>, vector<8x32xf32> -> vector<8x32xf32>
    %10 = arith.addf %5, %9 : vector<8x32xf32>
    %c0_11 = arith.constant 0 : index
    %c0_12 = arith.constant 0 : index
    %c2 = arith.constant 2 : index
    %c0_13 = arith.constant 0 : index
    %11 = vector.load %arg1[%c0_11, %c0_12, %c2, %c0_13] : memref<2x4x4x32xbf16, #tpu.memory_space<vmem>>, vector<2x2x2x32xbf16>
    %12 = vector.shape_cast %11 : vector<2x2x2x32xbf16> to vector<8x32xbf16>
    %c64 = arith.constant 64 : index
    %c0_14 = arith.constant 0 : index
    %13 = vector.load %arg2[%c64, %c0_14] : memref<288x32xbf16, #tpu.memory_space<vmem>>, vector<32x32xbf16>
    %cst_15 = arith.constant dense<0.000000e+00> : vector<8x32xf32>
    %14 = tpu.matmul %12, %13, %cst_15 {dimension_numbers = #tpu.dot_dimension_numbers<[1], [0], [0], [1], [0, 0, 1, 1], [], []>} : vector<8x32xbf16>, vector<32x32xbf16>, vector<8x32xf32> -> vector<8x32xf32>
    %15 = arith.addf %10, %14 : vector<8x32xf32>
    %c0_16 = arith.constant 0 : index
    %c1_17 = arith.constant 1 : index
    %c0_18 = arith.constant 0 : index
    %c0_19 = arith.constant 0 : index
    %16 = vector.load %arg1[%c0_16, %c1_17, %c0_18, %c0_19] : memref<2x4x4x32xbf16, #tpu.memory_space<vmem>>, vector<2x2x2x32xbf16>
    %17 = vector.shape_cast %16 : vector<2x2x2x32xbf16> to vector<8x32xbf16>
    %c96 = arith.constant 96 : index
    %c0_20 = arith.constant 0 : index
    %18 = vector.load %arg2[%c96, %c0_20] : memref<288x32xbf16, #tpu.memory_space<vmem>>, vector<32x32xbf16>
    %cst_21 = arith.constant dense<0.000000e+00> : vector<8x32xf32>
    %19 = tpu.matmul %17, %18, %cst_21 {dimension_numbers = #tpu.dot_dimension_numbers<[1], [0], [0], [1], [0, 0, 1, 1], [], []>} : vector<8x32xbf16>, vector<32x32xbf16>, vector<8x32xf32> -> vector<8x32xf32>
    %20 = arith.addf %15, %19 : vector<8x32xf32>
    %c0_22 = arith.constant 0 : index
    %c1_23 = arith.constant 1 : index
    %c1_24 = arith.constant 1 : index
    %c0_25 = arith.constant 0 : index
    %21 = vector.load %arg1[%c0_22, %c1_23, %c1_24, %c0_25] : memref<2x4x4x32xbf16, #tpu.memory_space<vmem>>, vector<2x2x2x32xbf16>
    %22 = vector.shape_cast %21 : vector<2x2x2x32xbf16> to vector<8x32xbf16>
    %c128 = arith.constant 128 : index
    %c0_26 = arith.constant 0 : index
    %23 = vector.load %arg2[%c128, %c0_26] : memref<288x32xbf16, #tpu.memory_space<vmem>>, vector<32x32xbf16>
    %cst_27 = arith.constant dense<0.000000e+00> : vector<8x32xf32>
    %24 = tpu.matmul %22, %23, %cst_27 {dimension_numbers = #tpu.dot_dimension_numbers<[1], [0], [0], [1], [0, 0, 1, 1], [], []>} : vector<8x32xbf16>, vector<32x32xbf16>, vector<8x32xf32> -> vector<8x32xf32>
    %25 = arith.addf %20, %24 : vector<8x32xf32>
    %c0_28 = arith.constant 0 : index
    %c1_29 = arith.constant 1 : index
    %c2_30 = arith.constant 2 : index
    %c0_31 = arith.constant 0 : index
    %26 = vector.load %arg1[%c0_28, %c1_29, %c2_30, %c0_31] : memref<2x4x4x32xbf16, #tpu.memory_space<vmem>>, vector<2x2x2x32xbf16>
    %27 = vector.shape_cast %26 : vector<2x2x2x32xbf16> to vector<8x32xbf16>
    %c160 = arith.constant 160 : index
    %c0_32 = arith.constant 0 : index
    %28 = vector.load %arg2[%c160, %c0_32] : memref<288x32xbf16, #tpu.memory_space<vmem>>, vector<32x32xbf16>
    %cst_33 = arith.constant dense<0.000000e+00> : vector<8x32xf32>
    %29 = tpu.matmul %27, %28, %cst_33 {dimension_numbers = #tpu.dot_dimension_numbers<[1], [0], [0], [1], [0, 0, 1, 1], [], []>} : vector<8x32xbf16>, vector<32x32xbf16>, vector<8x32xf32> -> vector<8x32xf32>
    %30 = arith.addf %25, %29 : vector<8x32xf32>
    %c0_34 = arith.constant 0 : index
    %c2_35 = arith.constant 2 : index
    %c0_36 = arith.constant 0 : index
    %c0_37 = arith.constant 0 : index
    %31 = vector.load %arg1[%c0_34, %c2_35, %c0_36, %c0_37] : memref<2x4x4x32xbf16, #tpu.memory_space<vmem>>, vector<2x2x2x32xbf16>
    %32 = vector.shape_cast %31 : vector<2x2x2x32xbf16> to vector<8x32xbf16>
    %c192 = arith.constant 192 : index
    %c0_38 = arith.constant 0 : index
    %33 = vector.load %arg2[%c192, %c0_38] : memref<288x32xbf16, #tpu.memory_space<vmem>>, vector<32x32xbf16>
    %cst_39 = arith.constant dense<0.000000e+00> : vector<8x32xf32>
    %34 = tpu.matmul %32, %33, %cst_39 {dimension_numbers = #tpu.dot_dimension_numbers<[1], [0], [0], [1], [0, 0, 1, 1], [], []>} : vector<8x32xbf16>, vector<32x32xbf16>, vector<8x32xf32> -> vector<8x32xf32>
    %35 = arith.addf %30, %34 : vector<8x32xf32>
    %c0_40 = arith.constant 0 : index
    %c2_41 = arith.constant 2 : index
    %c1_42 = arith.constant 1 : index
    %c0_43 = arith.constant 0 : index
    %36 = vector.load %arg1[%c0_40, %c2_41, %c1_42, %c0_43] : memref<2x4x4x32xbf16, #tpu.memory_space<vmem>>, vector<2x2x2x32xbf16>
    %37 = vector.shape_cast %36 : vector<2x2x2x32xbf16> to vector<8x32xbf16>
    %c224 = arith.constant 224 : index
    %c0_44 = arith.constant 0 : index
    %38 = vector.load %arg2[%c224, %c0_44] : memref<288x32xbf16, #tpu.memory_space<vmem>>, vector<32x32xbf16>
    %cst_45 = arith.constant dense<0.000000e+00> : vector<8x32xf32>
    %39 = tpu.matmul %37, %38, %cst_45 {dimension_numbers = #tpu.dot_dimension_numbers<[1], [0], [0], [1], [0, 0, 1, 1], [], []>} : vector<8x32xbf16>, vector<32x32xbf16>, vector<8x32xf32> -> vector<8x32xf32>
    %40 = arith.addf %35, %39 : vector<8x32xf32>
    %c0_46 = arith.constant 0 : index
    %c2_47 = arith.constant 2 : index
    %c2_48 = arith.constant 2 : index
    %c0_49 = arith.constant 0 : index
    %41 = vector.load %arg1[%c0_46, %c2_47, %c2_48, %c0_49] : memref<2x4x4x32xbf16, #tpu.memory_space<vmem>>, vector<2x2x2x32xbf16>
    %42 = vector.shape_cast %41 : vector<2x2x2x32xbf16> to vector<8x32xbf16>
    %c256 = arith.constant 256 : index
    %c0_50 = arith.constant 0 : index
    %43 = vector.load %arg2[%c256, %c0_50] : memref<288x32xbf16, #tpu.memory_space<vmem>>, vector<32x32xbf16>
    %cst_51 = arith.constant dense<0.000000e+00> : vector<8x32xf32>
    %44 = tpu.matmul %42, %43, %cst_51 {dimension_numbers = #tpu.dot_dimension_numbers<[1], [0], [0], [1], [0, 0, 1, 1], [], []>} : vector<8x32xbf16>, vector<32x32xbf16>, vector<8x32xf32> -> vector<8x32xf32>
    %45 = arith.addf %40, %44 : vector<8x32xf32>
    %c0_52 = arith.constant 0 : index
    %c0_53 = arith.constant 0 : index
    %46 = vector.load %arg3[%c0_52, %c0_53] : memref<1x32xf32, #tpu.memory_space<vmem>>, vector<1x32xf32>
    %47 = vector.broadcast %46 : vector<1x32xf32> to vector<8x32xf32>
    %48 = arith.addf %45, %47 : vector<8x32xf32>
    %49 = vector.shape_cast %48 : vector<8x32xf32> to vector<2x2x2x32xf32>
    %50 = vector.extract_strided_slice %49 {offsets = [0, 0, 0, 0], sizes = [2, 1, 2, 32], strides = [1, 1, 1, 1]} : vector<2x2x2x32xf32> to vector<2x1x2x32xf32>
    %51 = vector.shape_cast %50 : vector<2x1x2x32xf32> to vector<2x2x32xf32>
    %52 = vector.extract_strided_slice %49 {offsets = [0, 1, 0, 0], sizes = [2, 1, 2, 32], strides = [1, 1, 1, 1]} : vector<2x2x2x32xf32> to vector<2x1x2x32xf32>
    %53 = vector.shape_cast %52 : vector<2x1x2x32xf32> to vector<2x2x32xf32>
    %54 = arith.maximumf %51, %53 : vector<2x2x32xf32>
    %c0_54 = arith.constant 0 : index
    %c0_55 = arith.constant 0 : index
    %c0_56 = arith.constant 0 : index
    %55 = vector.load %arg8[%c0_54, %c0_55, %c0_56] : memref<2x2x32xf32, #tpu.memory_space<vmem>>, vector<2x2x32xf32>
    tpu.vector_store %arg8[%c0_54, %c0_55, %c0_56], %54 {strides = array<i32>} : memref<2x2x32xf32, #tpu.memory_space<vmem>>, vector<2x2x32xf32>,
    %c0_57 = arith.constant 0 : index
    %c0_58 = arith.constant 0 : index
    %c0_59 = arith.constant 0 : index
    %56 = tpu.strided_load %arg8[%c0_57, %c0_58, %c0_59] {strides = array<i32: 1, 2, 1>} : memref<2x2x32xf32, #tpu.memory_space<vmem>>, vector<2x1x32xf32>
    %c0_60 = arith.constant 0 : index
    %c1_61 = arith.constant 1 : index
    %c0_62 = arith.constant 0 : index
    %57 = tpu.strided_load %arg8[%c0_60, %c1_61, %c0_62] {strides = array<i32: 1, 2, 1>} : memref<2x2x32xf32, #tpu.memory_space<vmem>>, vector<2x1x32xf32>
    %58 = arith.maximumf %56, %57 : vector<2x1x32xf32>
    %cst_63 = arith.constant 0.000000e+00 : f32
    %59 = vector.broadcast %cst_63 : f32 to vector<2x1x32xf32>
    %60 = arith.maximumf %58, %59 : vector<2x1x32xf32>
    %61 = vector.shape_cast %60 : vector<2x1x32xf32> to vector<2x32xf32>
    %c0_64 = arith.constant 0 : index
    %c0_65 = arith.constant 0 : index
    %62 = vector.load %arg6[%c0_64, %c0_65] : memref<2x32xf32, #tpu.memory_space<vmem>>, vector<2x32xf32>
    tpu.vector_store %arg6[%c0_64, %c0_65], %61 {strides = array<i32>} : memref<2x32xf32, #tpu.memory_space<vmem>>, vector<2x32xf32>,
    %63 = vector.shape_cast %60 : vector<2x1x32xf32> to vector<2x32xf32>
    %64 = arith.truncf %63 : vector<2x32xf32> to vector<2x32xbf16>
    %c0_66 = arith.constant 0 : index
    %c0_67 = arith.constant 0 : index
    %65 = vector.load %arg4[%c0_66, %c0_67] : memref<32x2xbf16, #tpu.memory_space<vmem>>, vector<32x2xbf16>
    %cst_68 = arith.constant dense<0.000000e+00> : vector<2x2xf32>
    %66 = tpu.matmul %64, %65, %cst_68 {dimension_numbers = #tpu.dot_dimension_numbers<[1], [0], [0], [1], [0, 0, 1, 1], [], []>} : vector<2x32xbf16>, vector<32x2xbf16>, vector<2x2xf32> -> vector<2x2xf32>
    %c0_69 = arith.constant 0 : index
    %c0_70 = arith.constant 0 : index
    %67 = vector.load %arg5[%c0_69, %c0_70] : memref<1x2xf32, #tpu.memory_space<vmem>>, vector<1x2xf32>
    %68 = vector.broadcast %67 : vector<1x2xf32> to vector<2x2xf32>
    %69 = arith.addf %66, %68 : vector<2x2xf32>
    %c0_71 = arith.constant 0 : index
    %c0_72 = arith.constant 0 : index
    %70 = vector.load %arg7[%c0_71, %c0_72] : memref<2x2xf32, #tpu.memory_space<vmem>>, vector<2x2xf32>
    tpu.vector_store %arg7[%c0_71, %c0_72], %69 {strides = array<i32>} : memref<2x2xf32, #tpu.memory_space<vmem>>, vector<2x2xf32>,
    return
  }
  func.func @transform_0(%arg0: i32) -> (i32, i32, i32, i32) {
    %c0_i32 = arith.constant 0 : i32
    %c0_i32_0 = arith.constant 0 : i32
    %c0_i32_1 = arith.constant 0 : i32
    %c0_i32_2 = arith.constant 0 : i32
    return %arg0, %c0_i32, %c0_i32_0, %c0_i32_1 : i32, i32, i32, i32
  }
  func.func @transform_1(%arg0: i32) -> (i32, i32) {
    %c0_i32 = arith.constant 0 : i32
    %c0_i32_0 = arith.constant 0 : i32
    %c0_i32_1 = arith.constant 0 : i32
    return %c0_i32, %c0_i32_0 : i32, i32
  }
  func.func @transform_2(%arg0: i32) -> (i32, i32) {
    %c0_i32 = arith.constant 0 : i32
    %c0_i32_0 = arith.constant 0 : i32
    %c0_i32_1 = arith.constant 0 : i32
    return %c0_i32, %c0_i32_0 : i32, i32
  }
  func.func @transform_3(%arg0: i32) -> (i32, i32) {
    %c0_i32 = arith.constant 0 : i32
    %c0_i32_0 = arith.constant 0 : i32
    %c0_i32_1 = arith.constant 0 : i32
    return %c0_i32, %c0_i32_0 : i32, i32
  }
  func.func @transform_4(%arg0: i32) -> (i32, i32) {
    %c0_i32 = arith.constant 0 : i32
    %c0_i32_0 = arith.constant 0 : i32
    %c0_i32_1 = arith.constant 0 : i32
    return %c0_i32, %c0_i32_0 : i32, i32
  }
  func.func @transform_5(%arg0: i32) -> (i32, i32) {
    %c0_i32 = arith.constant 0 : i32
    %c0_i32_0 = arith.constant 0 : i32
    return %arg0, %c0_i32 : i32, i32
  }
  func.func @transform_6(%arg0: i32) -> (i32, i32) {
    %c0_i32 = arith.constant 0 : i32
    %c0_i32_0 = arith.constant 0 : i32
    return %arg0, %c0_i32 : i32, i32
  }
}

</mosaic_0001>

<bundles_post_ra>
// kernel: cnn_celeba_forward.7
= control target key start
LH: loop header
LB: loop body
LE: loop exit
PB: predicated region body
PF: predicated region fallthrough
CT: control target
= control target key end

     0   :  { %12 = vsyncpa [#allocation4], 0  ;;  %v1609_v1 = vmov 0.0   ;;  %vm1610_vm0 = vmmov 0   ;;  %vm73_vm1 = vsmask.f32 256  ;;  %v133_v12 = vlaneseq  ;;  %s1954_s0 = inlined_call_operand.vmem [shape: bf16[2,4,4,32], index: 0, kind: input, shape index: {}]   ;;  %s1955_s1 = inlined_call_operand.vmem [shape: bf16[288,32], index: 1, kind: input, shape index: {}]   ;;  %s1956_s2 = inlined_call_operand.vmem [shape: f32[1,32], index: 2, kind: input, shape index: {}]   ;;  %s1957_s3 = inlined_call_operand.vmem [shape: bf16[32,2], index: 3, kind: input, shape index: {}]   ;;  %s1958_s4 = inlined_call_operand.vmem [shape: f32[1,2], index: 4, kind: input, shape index: {}]   ;;  %s1959_s5 = inlined_call_operand.hbm [shape: f32[2,32], index: 5, kind: output, shape index: {0}]   ;;  %s1960_s6 = inlined_call_operand.hbm [shape: f32[2,2], index: 6, kind: output, shape index: {1}]  }
   0x1   :  { %v1541_v0 = vld [vmem:[%s1955_s1 + $0x10] sm:$0xff]   ;;  %1455 = vmatprep.subr.bf16.mxu0 %v1609_v1  ;;  %1463 = vmatprep.subr.bf16.mxu1 %v1609_v1  ;;  %v1542_v2 = vld [vmem:[%s1955_s1] sm:$0xff]   ;;  %v1543_v3 = vld [vmem:[%s1955_s1 + $0x18] sm:$0xff]   ;;  %vm74_vm2 = vsmask.f32 1284 }
   0x2   :  { %1456 = vmatpush3.bf16.msra.mxu0 %v1541_v0  ;;  %1459 = vmatprep.mubr.msk.bf16.mxu0 %vm1610_vm0, %v1609_v1  ;;  %v1544_v4 = vld [vmem:[%s1955_s1 + $0x8] sm:$0xff]   ;;  %v1327_v5 = vld.sshfl [vmem:[%s1954_s0] sm:$0x11 pattern:$0x75316420]  ;;  %vm75_vm3 = vmor %vm73_vm1, %vm74_vm2  ;;  %v1694_v27 = vshrl.u32 %v133_v12, 7 }
   0x3   :  { %1464 = vmatpush3.bf16.msra.mxu1 %v1542_v2  ;;  %1457 = vmatprep.subr.bf16.mxu0 %v1609_v1  ;;  %v1328_v6 = vld.sshfl [vmem:[%s1954_s0 + $0x2] sm:$0x11 pattern:$0x75316420]  ;;  %v48_v7 = vcombine.high %v1327_v5, %v1327_v5  ;;  %vm76_vm4 = vsmask.f32 2312 }
   0x4   :  { %1465 = vmatprep.subr.bf16.mxu1 %v1609_v1  ;;  %1467 = vmatprep.mubr.msk.bf16.mxu1 %vm1610_vm0, %v1609_v1  ;;  %v1329_v8 = vld.sshfl [vmem:[%s1954_s0 + $0x8] sm:$0x11 pattern:$0x75316420]  ;;  %v56_v9 = vcombine.high %v1328_v6, %v1328_v6  ;;  %vm77_vm5 = vmor %vm75_vm3, %vm76_vm4  ;;  %vm78_vm6 = vsmask.f32 3340 }
   0x5   :  { %v1330_v10 = vld.sshfl [vmem:[%s1954_s0 + $0xa] sm:$0x11 pattern:$0x75316420]  ;;  %v64_v11 = vcombine.high %v1329_v8, %v1329_v8  ;;  %vm79_vm7 = vmor %vm77_vm5, %vm78_vm6  ;;  %vm80_vm8 = vsmask.f32 4368 }
   0x6   :  { %1458 = vmatpush3.bf16.msra.mxu0 %v1543_v3  ;;  %v72_v13 = vcombine.high %v1330_v10, %v1330_v10  ;;  %vm82_vm9 = vsmask.f32 5396  ;;  %vm84_vm10 = vsmask.f32 6424  ;;  %vm81_vm11 = vmor %vm79_vm7, %vm80_vm8  ;;  %vm86_vm12 = vsmask.f32 7452 }
   0x7   :  { %1466 = vmatpush3.bf16.msra.mxu1 %v1544_v4  ;;  %1471 = vmatprep.subr.bf16.mxu0 %v1609_v1  ;;  %v89_v14 = vshrl.u32 %v1327_v5, 16  ;;  %v94_v15 = vshll.u32 %v48_v7, 16  ;;  %v98_v16 = vshrl.u32 %v1328_v6, 16  ;;  %vm83_vm13 = vmor %vm81_vm11, %vm82_vm9  ;;  %v103_v17 = vshll.u32 %v56_v9, 16  ;;  %v25_v21 = vld [vmem:[%s1954_s0] sm:$0x1] }
   0x8   :  { %1479 = vmatprep.subr.bf16.mxu1 %v1609_v1  ;;  %v107_v18 = vshrl.u32 %v1329_v8, 16  ;;  %v112_v19 = vshll.u32 %v64_v11, 16  ;;  %v116_v20 = vshrl.u32 %v1330_v10, 16  ;;  %vm85_vm14 = vmor %vm83_vm13, %vm84_vm10  ;;  %v121_v22 = vshll.u32 %v72_v13, 16  ;;  %v26_v23 = vld [vmem:[%s1954_s0 + $0x2] sm:$0x1] }
   0x9   :  { %vm1690_vm15 = vmor %vm85_vm14, %vm86_vm12  ;;  %v1611_v25 = vmov 1966171168   ;;  %v27_v28 = vld [vmem:[%s1954_s0 + $0x8] sm:$0x1]  ;;  %v28_v29 = vld [vmem:[%s1954_s0 + $0xa] sm:$0x1]  ;;  %v212_v30 = vcombine.low %v25_v21, %v26_v23 }
   0xa   :  { %v131_v26 = vunpack.c.l.s4 %v1611_v25  ;;  %v96_v31 = vsel %vm1690_vm15, %v89_v14, %v94_v15  ;;  %v1706_v32 = vsel %vm1690_vm15, %v98_v16, %v103_v17  ;;  %v114_v33 = vsel %vm1690_vm15, %v107_v18, %v112_v19  ;;  %v1341_v40 = vld.sshfl [vmem:[%s1954_s0] sm:$0x10 pattern:$0x75316420]  ;;  %v1350_v50 = vld [vmem:[%s1954_s0 + $0x2] sm:$0x1] }
   0xb   :  { %v1712_v34 = vsel %vm1690_vm15, %v116_v20, %v121_v22  ;;  %v128_v35 = vcombine.low %v96_v31, %v1706_v32  ;;  %v213_v38 = vcombine.low %v27_v28, %v28_v29  ;;  %v1342_v41 = vld.sshfl [vmem:[%s1954_s0 + $0x2] sm:$0x10 pattern:$0x75316420]  ;;  %v1351_v54 = vld [vmem:[%s1954_s0 + $0x4] sm:$0x1] }
   0xc   :  { %v129_v36 = vcombine.low %v114_v33, %v1712_v34  ;;  %v132_v37 = vunpack.c.0.s8 %v131_v26  ;;  %v1343_v46 = vld.sshfl [vmem:[%s1954_s0 + $0x8] sm:$0x10 pattern:$0x75316420]  ;;  %v1545_v47 = vld [vmem:[%s1955_s1 + $0x20] sm:$0xff]   ;;  %v1345_v49 = vcombine.high %v1341_v40, %v1342_v41  ;;  %vm164_vm1 = vcmask 261120  }
   0xd   :  { %v1344_v48 = vld.sshfl [vmem:[%s1954_s0 + $0xa] sm:$0x10 pattern:$0x75316420]  ;;  %v1352_v55 = vld [vmem:[%s1954_s0 + $0xa] sm:$0x1]  ;;  %v428_v59 = vcombine.low %v1350_v50, %v1351_v54 }
   0xe   :  { %v1717_v39 = vsub.s32 %v132_v37, %v1694_v27  ;;  %v1346_v53 = vcombine.high %v1343_v46, %v1344_v48  ;;  %v1353_v56 = vld [vmem:[%s1954_s0 + $0xc] sm:$0x1]  ;;  %v1546_v57 = vld [vmem:[%s1955_s1 + $0x30] sm:$0xff]   ;;  %v1548_v6 = vld [vmem:[%s1955_s1 + $0x38] sm:$0xff]  }
   0xf   :  { %v429_v60 = vcombine.low %v1352_v55, %v1353_v56  ;;  %v1547_v0 = vld [vmem:[%s1955_s1 + $0x28] sm:$0xff]   ;;  %v1362_v5 = vld.sshfl [vmem:[%s1954_s0 + $0x4] sm:$0x11 pattern:$0x75316420]  ;;  %v1550_v18 = vld [vmem:[%s1955_s1 + $0x50] sm:$0xff]  }
  0x10   :  { %v136_v42 = vrot.slane %v128_v35, %v1717_v39  ;;  %v143_v43 = vrot.slane %v129_v36, %v1717_v39  ;;  %v220_v44 = vrot.slane %v212_v30, %v1717_v39  ;;  %v227_v45 = vrot.slane %v213_v38, %v1717_v39  ;;  %v1364_v8 = vld.sshfl [vmem:[%s1954_s0 + $0xc] sm:$0x11 pattern:$0x75316420]  ;;  %v1549_v13 = vld [vmem:[%s1955_s1 + $0x40] sm:$0xff]  }
  0x11   :  { %v343_v58 = vrot.slane %v1345_v49, %v1717_v39  ;;  %v350_v63 = vrot.slane %v1346_v53, %v1717_v39  ;;  %v436_v2 = vrot.slane %v428_v59, %v1717_v39  ;;  %v443_v3 = vrot.slane %v429_v60, %v1717_v39  ;;  %v1785_v15 = vld.sshfl [vmem:[%s1954_s0 + $0x4] sm:$0x10 pattern:$0x75316420]  ;;  %v1385_v29 = vld [vmem:[%s1954_s0 + $0x4] sm:$0x1] }
  0x12   :  { %v144_v51 = vcombine.low %v136_v42, %v143_v43  ;;  %v228_v52 = vcombine.low %v220_v44, %v227_v45  ;;  %v531_v9 = vcombine.high %v1362_v5, %v1362_v5  ;;  %v558_v10 = vshrl.u32 %v1362_v5, 16  ;;  %v1795_v20 = vld.sshfl [vmem:[%s1954_s0 + $0xc] sm:$0x10 pattern:$0x75316420] }
  0x13   :  { %v351_v4 = vcombine.low %v343_v58, %v350_v63  ;;  %v444_v7 = vcombine.low %v436_v2, %v443_v3  ;;  %v547_v11 = vcombine.high %v1364_v8, %v1364_v8  ;;  %v576_v12 = vshrl.u32 %v1364_v8, 16  ;;  %v1551_v30 = vld [vmem:[%s1955_s1 + $0x48] sm:$0xff]   ;;  %v1386_v35 = vld [vmem:[%s1954_s0 + $0x6] sm:$0x1] }
  0x14   :  { %v151_v61 = vrot.slane %v144_v51, %v1717_v39  ;;  %v235_v62 = vrot.slane %v228_v52, %v1717_v39  ;;  %v563_v14 = vshll.u32 %v531_v9, 16  ;;  %v1380_v21 = vcombine.high %v1342_v41, %v1785_v15  ;;  %v1388_v36 = vld [vmem:[%s1954_s0 + $0xe] sm:$0x1]  ;;  %v1553_v52 = vld [vmem:[%s1955_s1 + $0x60] sm:$0xff]  }
  0x15   :  { %v358_v16 = vrot.slane %v351_v4, %v1717_v39  ;;  %v451_v17 = vrot.slane %v444_v7, %v1717_v39  ;;  %v581_v19 = vshll.u32 %v547_v11, 16  ;;  %v1381_v23 = vcombine.high %v1344_v48, %v1795_v20  ;;  %v1397_v43 = vld.sshfl [vmem:[%s1954_s0 + $0x6] sm:$0x11 pattern:$0x75316420] }
  0x16   :  { %1460 = vmatmul.mubr.msk.bf16.vlgmr.msra.gmra.mrb[0].mxu0 %vm164_vm1, %v151_v61  ;;  %1468 = vmatmul.mubr.msk.bf16.vlgmr.msra.gmra.mrb[0].mxu1 %vm164_vm1, %v235_v62  ;;  %v1800_v22 = vsel %vm1690_vm15, %v558_v10, %v563_v14  ;;  %v720_v28 = vrot.slane %v1380_v21, %v1717_v39  ;;  %v805_v38 = vcombine.low %v1385_v29, %v1386_v35  ;;  %v1399_v45 = vld.sshfl [vmem:[%s1954_s0 + $0xe] sm:$0x11 pattern:$0x75316420] }
  0x17   :  { %1472 = vmatpush3.bf16.msra.mxu0 %v1545_v47  ;;  %1480 = vmatpush3.bf16.msra.mxu1 %v1546_v57  ;;  %v1807_v25 = vsel %vm1690_vm15, %v576_v12, %v581_v19  ;;  %v588_v26 = vcombine.low %v1706_v32, %v1800_v22  ;;  %v727_v33 = vrot.slane %v1381_v23, %v1717_v39  ;;  %v1387_v32 = vld [vmem:[%s1954_s0 + $0xc] sm:$0x1]  ;;  %v935_v47 = vshrl.u32 %v1397_v43, 16  ;;  %v1554_v57 = vld [vmem:[%s1955_s1 + $0x70] sm:$0xff]  }
  0x18   :  { %1473 = vmatprep.subr.bf16.mxu0 %v1609_v1  ;;  %1481 = vmatprep.subr.bf16.mxu1 %v1609_v1  ;;  %v589_v31 = vcombine.low %v1712_v34, %v1807_v25  ;;  %v1552_v34 = vld [vmem:[%s1955_s1 + $0x58] sm:$0xff]   ;;  %v806_v40 = vcombine.low %v1387_v32, %v1388_v36  ;;  %v813_v44 = vrot.slane %v805_v38, %v1717_v39  ;;  %v953_v51 = vshrl.u32 %v1399_v45, 16  ;;  %v1412_v55 = vld.sshfl [vmem:[%s1954_s0 + $0x6] sm:$0x10 pattern:$0x75316420] }
  0x19   :  { %1475 = vmatprep.mubr.msk.bf16.mxu0 %vm1610_vm0, %v1609_v1  ;;  %1483 = vmatprep.mubr.msk.bf16.mxu1 %vm1610_vm0, %v1609_v1  ;;  %v596_v37 = vrot.slane %v588_v26, %v1717_v39  ;;  %v728_v42 = vcombine.low %v720_v28, %v727_v33  ;;  %v908_v46 = vcombine.high %v1397_v43, %v1397_v43  ;;  %v1414_v59 = vld.sshfl [vmem:[%s1954_s0 + $0xe] sm:$0x10 pattern:$0x75316420] }
  0x1a   :  { %v603_v41 = vrot.slane %v589_v31, %v1717_v39  ;;  %v820_v49 = vrot.slane %v806_v40, %v1717_v39  ;;  %v924_v50 = vcombine.high %v1399_v45, %v1399_v45 }
  0x1b   :  { %1474 = vmatpush3.bf16.msra.mxu0 %v1547_v0  ;;  %1482 = vmatpush3.bf16.msra.mxu1 %v1548_v6  ;;  %v735_v53 = vrot.slane %v728_v42, %v1717_v39  ;;  %v940_v54 = vshll.u32 %v908_v46, 16 }
  0x1c   :  { %1487 = vmatprep.subr.bf16.mxu0 %v1609_v1  ;;  %1495 = vmatprep.subr.bf16.mxu1 %v1609_v1  ;;  %v604_v48 = vcombine.low %v596_v37, %v603_v41  ;;  %v958_v58 = vshll.u32 %v924_v50, 16  ;;  %v821_v61 = vcombine.low %v813_v44, %v820_v49 }
  0x1d   :  { %v942_v60 = vsel %vm1690_vm15, %v935_v47, %v940_v54 }
  0x1e   :  { %1476 = vmatmul.mubr.msk.bf16.vlgmr.msra.gmra.mrb[4].mxu0 %vm164_vm1, %v358_v16  ;;  %1484 = vmatmul.mubr.msk.bf16.vlgmr.msra.gmra.mrb[4].mxu1 %vm164_vm1, %v451_v17  ;;  %v611_v56 = vrot.slane %v604_v48, %v1717_v39  ;;  %v960_v62 = vsel %vm1690_vm15, %v953_v51, %v958_v58  ;;  %v965_v63 = vcombine.low %v1800_v22, %v942_v60 }
  0x1f   :  { %1488 = vmatpush3.bf16.msra.mxu0 %v1549_v13  ;;  %1496 = vmatpush3.bf16.msra.mxu1 %v1550_v18 }
  0x20   :  { %1489 = vmatprep.subr.bf16.mxu0 %v1609_v1  ;;  %1497 = vmatprep.subr.bf16.mxu1 %v1609_v1 }
  0x21   :  { %1491 = vmatprep.mubr.msk.bf16.mxu0 %vm1610_vm0, %v1609_v1  ;;  %1499 = vmatprep.mubr.msk.bf16.mxu1 %vm1610_vm0, %v1609_v1 }
  0x23   :  { %1490 = vmatpush3.bf16.msra.mxu0 %v1551_v30  ;;  %1498 = vmatpush3.bf16.msra.mxu1 %v1552_v34 }
  0x24   :  { %1503 = vmatprep.subr.bf16.mxu0 %v1609_v1  ;;  %1511 = vmatprep.subr.bf16.mxu1 %v1609_v1 }
  0x25   :  { %13 = vsyncpa [#allocation6], 0  ;;  %v966_v0 = vcombine.low %v1807_v25, %v960_v62  ;;  %v1415_v2 = vcombine.high %v1785_v15, %v1412_v55  ;;  %v1416_v3 = vcombine.high %v1795_v20, %v1414_v59  ;;  %v1555_v24 = vld [vmem:[%s1955_s1 + $0x68] sm:$0xff]   ;;  %v1556_v4 = vld [vmem:[%s1955_s1 + $0x78] sm:$0xff]   ;;  %v973_v5 = vrot.slane %v965_v63, %v1717_v39 }
  0x26   :  { %1492 = vmatmul.mubr.msk.bf16.vlgmr.msra.gmra.mrb[8].mxu0 %vm164_vm1, %v611_v56  ;;  %1500 = vmatmul.mubr.msk.bf16.vlgmr.msra.gmra.mrb[8].mxu1 %vm164_vm1, %v735_v53  ;;  %v828_v7 = vrot.slane %v821_v61, %v1717_v39  ;;  %v1557_v11 = vld [vmem:[%s1955_s1 + $0x80] sm:$0xff]   ;;  %v1558_v14 = vld [vmem:[%s1955_s1 + $0x88] sm:$0xff]   ;;  %v1612_v53 = vmov 1983009808   ;;  %vm1218_vm2 = vcmask 1041409  }
  0x27   :  { %1504 = vmatpush3.bf16.msra.mxu0 %v1553_v52  ;;  %1512 = vmatpush3.bf16.msra.mxu1 %v1554_v57  ;;  %v980_v6 = vrot.slane %v966_v0, %v1717_v39  ;;  %v1097_v9 = vrot.slane %v1415_v2, %v1717_v39  ;;  %v1104_v10 = vrot.slane %v1416_v3, %v1717_v39  ;;  %v1559_v16 = vld [vmem:[%s1957_s3] sm:$0xff]   ;;  %v1560_v17 = vld [vmem:[%s1957_s3 + $0x8] sm:$0xff]   ;;  %v1180_v54 = vunpack.c.l.s4 %v1612_v53 }
  0x28   :  { %1505 = vmatprep.subr.bf16.mxu0 %v1609_v1  ;;  %1513 = vmatprep.subr.bf16.mxu1 %v1609_v1  ;;  %v1420_v62 = vld [vmem:[%s1956_s2] ss:$0 sm:$0xff]  ;;  %s1613_s2 = smov [#allocation3]  }
  0x29   :  { %1507 = vmatprep.mubr.msk.bf16.mxu0 %vm1610_vm0, %v1609_v1  ;;  %1515 = vmatprep.mubr.msk.bf16.mxu1 %vm1610_vm0, %v1609_v1  ;;  %v981_v8 = vcombine.low %v973_v5, %v980_v6  ;;  %v1105_v13 = vcombine.low %v1097_v9, %v1104_v10  ;;  %v1181_v60 = vunpack.c.0.s8 %v1180_v54  ;;  %s1305_s20 = sshll.u32 %s1613_s2, 4  ;;  %s1306_s20 = int_to_ptr.vmem [resolvable:$true] %s1305_s20 }
  0x2a   :  { %s1561_s21 = scalar_lea.vmem %s1306_s20, 32  ;;  %p1566_p1 = scmp.lt.s32.totalorder %s1306_s20, %s1306_s20 }
  0x2b   :  { %1506 = vmatpush3.bf16.msra.mxu0 %v1555_v24  ;;  %1514 = vmatpush3.bf16.msra.mxu1 %v1556_v4  ;;  %v988_v12 = vrot.slane %v981_v8, %v1717_v39  ;;  %v1112_v15 = vrot.slane %v1105_v13, %v1717_v39  ;;  %v1184_v0 = vsub.s32 %v1181_v60, %v1694_v27  ;;  %p1562_p0 = scmp.ne.s32.totalorder %s1306_s20, %s1561_s21  ;;  %p1567_p2 = scmp.lt.s32.totalorder %s1561_s21, %s1561_s21 }
  0x2c   :  { %1519 = vmatprep.subr.bf16.mxu0 %v1609_v1  ;;  %1527 = vmatprep.subr.bf16.mxu1 %v1609_v1 }
  0x2d   :  { %p1568_p3 = por %p1567_p2, %p1566_p1 }
  0x2e   :  { %1508 = vmatmul.mubr.msk.bf16.vlgmr.msra.gmra.mrb[12].mxu0 %vm164_vm1, %v828_v7  ;;  %1516 = vmatmul.mubr.msk.bf16.vlgmr.msra.gmra.mrb[12].mxu1 %vm164_vm1, %v988_v12 }
  0x2f   :  { %1520 = vmatpush3.bf16.msra.mxu0 %v1557_v11  ;;  %1523 = vmatprep.mubr.msk.bf16.mxu0 %vm1610_vm0, %v1609_v1  ;;  %p1569_p4 = pnand %p1568_p3, %p1562_p0 }
  0x30   :  { %1521 = vmatprep.subr.bf16.mxu0 %v1609_v1  ;;  %1531 = vmatprep.mubr.msk.bf16.mxu1 %vm1610_vm0, %v1609_v1  ;;  %vm1201_vm0 = vcmask 254976  }
  0x31   :  { %1528 = vmatpush3.bf16.msra.mxu1 %v1559_v16 }
  0x32   :  { %1529 = vmatprep.subr.bf16.mxu1 %v1609_v1 }
  0x33   :  { %1522 = vmatpush3.bf16.msra.mxu0 %v1558_v14 }
  0x35   :  { %1530 = vmatpush3.bf16.msra.mxu1 %v1560_v17 }
  0x36   :  { %1524 = vmatmul.mubr.msk.bf16.vlgmr.msra.gmra.mrb[16].mxu0 %vm164_vm1, %v1112_v15 }
  0xe9   :  { %v202_v18 = vpop.f32.mrb[0].mxu0  ;;  %v285_v19 = vpop.f32.mrb[0].mxu1 }
  0xea   :  { %v286_v20 = vadd.f32 %v285_v19, %v202_v18  ;;  %v1461_v21 = vpop.f32.mrb[1].mxu0  ;;  %v1469_v39 = vpop.f32.mrb[1].mxu1 }
  0xeb   :  { %v205_v22 = vpop.f32.mrb[2].mxu0  ;;  %v288_v23 = vpop.f32.mrb[2].mxu1 }
  0xec   :  { %v1462_v25 = vpop.f32.mrb[3].mxu0  ;;  %v1470_v26 = vpop.f32.mrb[3].mxu1 }
  0xf1   :  { %v408_v28 = vpop.f32.mrb[4].mxu0  ;;  %v501_v29 = vpop.f32.mrb[4].mxu1 }
  0xf2   :  { %v414_v30 = vadd.f32 %v408_v28, %v286_v20  ;;  %v1477_v31 = vpop.f32.mrb[5].mxu0  ;;  %v1485_v33 = vpop.f32.mrb[5].mxu1 }
  0xf3   :  { %v411_v35 = vpop.f32.mrb[6].mxu0  ;;  %v504_v32 = vpop.f32.mrb[6].mxu1 }
  0xf4   :  { %v507_v36 = vadd.f32 %v501_v29, %v414_v30  ;;  %v1478_v34 = vpop.f32.mrb[7].mxu0  ;;  %v1486_v1 = vpop.f32.mrb[7].mxu1 }
  0xf9   :  { %v661_v37 = vpop.f32.mrb[8].mxu0  ;;  %v785_v38 = vpop.f32.mrb[8].mxu1 }
  0xfa   :  { %v667_v40 = vadd.f32 %v661_v37, %v507_v36  ;;  %v1493_v41 = vpop.f32.mrb[9].mxu0  ;;  %v1501_v42 = vpop.f32.mrb[9].mxu1 }
  0xfb   :  { %v664_v43 = vpop.f32.mrb[10].mxu0  ;;  %v788_v44 = vpop.f32.mrb[10].mxu1 }
  0xfc   :  { %v791_v45 = vadd.f32 %v785_v38, %v667_v40  ;;  %v1494_v46 = vpop.f32.mrb[11].mxu0  ;;  %v1502_v47 = vpop.f32.mrb[11].mxu1 }
 0x101   :  { %v878_v48 = vpop.f32.mrb[12].mxu0  ;;  %v1038_v49 = vpop.f32.mrb[12].mxu1 }
 0x102   :  { %v884_v50 = vadd.f32 %v878_v48, %v791_v45  ;;  %v1509_v51 = vpop.f32.mrb[13].mxu0  ;;  %v1517_v52 = vpop.f32.mrb[13].mxu1 }
 0x103   :  { %v881_v55 = vpop.f32.mrb[14].mxu0  ;;  %v1041_v56 = vpop.f32.mrb[14].mxu1 }
 0x104   :  { %v1044_v57 = vadd.f32 %v1038_v49, %v884_v50  ;;  %v1510_v58 = vpop.f32.mrb[15].mxu0  ;;  %v1518_v59 = vpop.f32.mrb[15].mxu1 }
 0x109   :  { %v1162_v61 = vpop.f32.mrb[16].mxu0 }
 0x10a   :  { %v1168_v63 = vadd.f32 %v1162_v61, %v1044_v57  ;;  %v1525_v2 = vpop.f32.mrb[17].mxu0 }
 0x10b   :  { %v1165_v3 = vpop.f32.mrb[18].mxu0 }
 0x10c   :  { %v1176_v24 = vadd.f32 %v1420_v62, %v1168_v63  ;;  %v1526_v4 = vpop.f32.mrb[19].mxu0 }
 0x10e   :  { %v1178_v5 = vcombine.high %v1176_v24, %v1176_v24  ;;  %v1185_v6 = vrot.slane %v1176_v24, %v1184_v0 }
 0x110   :  { %v1192_v7 = vrot.slane %v1178_v5, %v1184_v0  ;;  %v1193_v8 = vcombine.high %v1185_v6, %v1185_v6 }
 0x112   :  { %v1194_v9 = vcombine.high %v1192_v7, %v1192_v7  ;;  %v1199_v10 = vmax.f32 %v1185_v6, %v1193_v8 }
 0x114   :  { %v1200_v11 = vmax.f32 %v1192_v7, %v1194_v9  ;;  %1202 = vst.msk [vmem:[#allocation2] sm:$0x3] %vm1201_vm0, %v1199_v10 }
 0x116   :  { %1203 = vst.msk [vmem:[#allocation2 + $0x2] sm:$0x3] %vm1201_vm0, %v1200_v11 }
 0x11b   :  { %v1204_v12 = vld [vmem:[#allocation2] ss:$2 sm:$0x1]  ;;  %v1208_v13 = vld [vmem:[#allocation2 + $0x1] ss:$2 sm:$0x1] }
 0x11c   :  { %v1211_v14 = vmax.f32 %v1204_v12, %v1208_v13 }
 0x11d   :  { %v1206_v27 = vld [vmem:[#allocation2 + $0x2] ss:$2 sm:$0x1]  ;;  %v1210_v15 = vld [vmem:[#allocation2 + $0x3] ss:$2 sm:$0x1] }
 0x11e   :  { %v1212_v16 = vmax.f32 %v1206_v27, %v1210_v15  ;;  %v1213_v17 = vmax.f32 %v1211_v14, 0.0 }
 0x120   :  { %v1214_v18 = vmax.f32 %v1212_v16, 0.0  ;;  %v1222_v19 = vpack.c.bf16 %v1213_v17, %v1213_v17 }
 0x122   :  { %v1223_v20 = vpack.c.bf16 %v1214_v18, %v1214_v18  ;;  %v1217_v21 = vrot.slane %v1214_v18, 7  ;;  %v1237_v23 = vunpack.c.l.b16 %v1222_v19 }
 0x124   :  { %v1238_v39 = vunpack.c.l.b16 %v1223_v20  ;;  %v1219_v22 = vsel %vm1218_vm2, %v1217_v21, %v1213_v17 }
 0x125   :  { %1221 = vst.msk [vmem:[#allocation3] sm:$0x3] %vm1201_vm0, %v1219_v22 }
 0x126   :  { %v1239_v25 = vrot.slane %v1238_v39, 7 }
 0x128   :  { %v1240_v26 = vsel %vm1218_vm2, %v1239_v25, %v1237_v23 }
 0x129   :  { %v1241_v28 = vpack.c.b16 %v1240_v26, %v1240_v26 }
 0x12b   :  { %1532 = vmatmul.mubr.msk.bf16.vlgmr.msra.gmra.mrb[16].mxu1 %vm164_vm1, %v1241_v28 }
 0x12c   :  { %1572 = shalt.err (!%p1569_p4)
}
 0x12d   :  { %s1573_s24 = scalar_lea.hbm %s1959_s5, 32 }
 0x12e   :  { %p1574_p5 = scmp.ne.s32.totalorder %s1959_s5, %s1573_s24  ;;  %p1577_p6 = scmp.lt.u32.totalorder %s1573_s24, %s1959_s5 }
 0x130   :  { %p1579_p7 = pnand %p1577_p6, %p1574_p5 }
 0x132   :  { %1582 = shalt.err (!%p1579_p7)
}
 0x133   :  { %1308 = dma.vmem_to_hbm [thread:$0]  %s1306_s20, 32, %s1959_s5, [#allocation4]   ;;  %v1421_v29 = vld [vmem:[%s1958_s4] ss:$0 sm:$0xff]  ;;  %vm1297_vm3 = vcmask 9216  }
 0x134   :  { %s1614_s0 = smov [#allocation5]  }
 0x135   :  { %s1315_s9 = sshll.u32 %s1614_s0, 4  ;;  %s1316_s9 = int_to_ptr.vmem [resolvable:$true] %s1315_s9 }
 0x136   :  { %s1583_s10 = scalar_lea.vmem %s1316_s9, 32  ;;  %p1588_p9 = scmp.lt.s32.totalorder %s1316_s9, %s1316_s9 }
 0x137   :  { %p1584_p8 = scmp.ne.s32.totalorder %s1316_s9, %s1583_s10  ;;  %p1589_p10 = scmp.lt.s32.totalorder %s1583_s10, %s1583_s10 }
 0x139   :  { %p1590_p11 = por %p1589_p10, %p1588_p9 }
 0x13b   :  { %p1591_p12 = pnand %p1590_p11, %p1584_p8 }
 0x1fe   :  { %v1291_v30 = vpop.f32.mrb[16].mxu1 }
 0x1ff   :  { %v1292_v31 = vadd.f32 %v1421_v29, %v1291_v30  ;;  %v1533_v33 = vpop.f32.mrb[17].mxu1 }
 0x200   :  { %v1294_v35 = vpop.f32.mrb[18].mxu1 }
 0x201   :  { %v1534_v32 = vpop.f32.mrb[19].mxu1  ;;  %1298 = vst.msk [vmem:[#allocation5] sm:$0x3] %vm1297_vm3, %v1292_v31 }
 0x202   :  { %1594 = shalt.err (!%p1591_p12)
}
 0x203   :  { %s1595_s4 = scalar_lea.hbm %s1960_s6, 32 }
 0x204   :  { %p1596_p13 = scmp.ne.s32.totalorder %s1960_s6, %s1595_s4  ;;  %p1599_p0 = scmp.lt.u32.totalorder %s1595_s4, %s1960_s6 }
 0x206   :  { %p1601_p1 = pnand %p1599_p0, %p1596_p13 }
 0x208   :  { %1604 = shalt.err (!%p1601_p1)
}
 0x209   :  { %1318 = dma.vmem_to_hbm [thread:$0]  %s1316_s9, 32, %s1960_s6, [#allocation6]  }
 0x20a   :  { %1605 = dma.done.wait [#allocation4], 32  }
 0x20b   :  { %1606 = vsyncadd [#allocation4], 4294967264 }
 0x20c   :  { %1607 = dma.done.wait [#allocation6], 32  }
 0x20d   :  { %1608 = vsyncadd [#allocation6], 4294967264 }
 0x20e   :  { %1325 = vsyncpa [#allocation4], 1 }
 0x20f   :  { %1326 = vsyncpa [#allocation6], 1 }

// kernel: cnn_celeba_forward.6
= control target key start
LH: loop header
LB: loop body
LE: loop exit
PB: predicated region body
PF: predicated region fallthrough
CT: control target
= control target key end

     0   :  { %vm107_vm0 = vsmask.f32 1280  ;;  %vm108_vm1 = vsmask.f32 3336  ;;  %vm110_vm2 = vsmask.f32 5392  ;;  %v235_v18 = vlaneseq  ;;  %s2771_s1 = inlined_call_operand.vmem [shape: bf16[288,32], index: 1, kind: input, shape index: {}]   ;;  %s2772_s0 = inlined_call_operand.vmem [shape: bf16[2,6,6,32], index: 0, kind: input, shape index: {}]   ;;  %s2773_s2 = inlined_call_operand.vmem [shape: f32[1,32], index: 2, kind: input, shape index: {}]   ;;  %s2774_s3 = inlined_call_operand.vmem [shape: bf16[4,64], index: 3, kind: output, shape index: {}]  }
   0x1   :  { %v2358_v0 = vld [vmem:[%s2771_s1 + $0x40] sm:$0xff]   ;;  %v2359_v1 = vld [vmem:[%s2771_s1 + $0x10] sm:$0xff]   ;;  %v2360_v2 = vld [vmem:[%s2771_s1 + $0x48] sm:$0xff]   ;;  %vm112_vm4 = vsmask.f32 7448  ;;  %vm276_vm7 = vcmask 261120  }
   0x2   :  { %2282 = vmatprep.subr.bf16.mxu0 %v2358_v0  ;;  %2250 = vmatprep.subr.bf16.mxu1 %v2359_v1  ;;  %v2361_v3 = vld [vmem:[%s2771_s1 + $0x18] sm:$0xff]   ;;  %v2057_v4 = vld.sshfl [vmem:[%s2772_s0] sm:$0x13 pattern:$0x76325410]  ;;  %vm109_vm3 = vmor %vm107_vm0, %vm108_vm1  ;;  %v2476_v49 = vshrl.u32 %v235_v18, 7 }
   0x3   :  { %2283 = vmatpush3.bf16.msra.mxu0 %v2358_v0  ;;  %2251 = vmatpush3.bf16.msra.mxu1 %v2359_v1  ;;  %v2058_v5 = vld.sshfl [vmem:[%s2772_s0 + $0x4] sm:$0x13 pattern:$0x76325410]  ;;  %v50_v6 = vcombine.high %v2057_v4, %v2057_v4  ;;  %v115_v7 = vshrl.u32 %v2057_v4, 16  ;;  %v118_v8 = vshll.u32 %v2057_v4, 16  ;;  %vm2449_vm5 = vmor %vm109_vm3, %vm110_vm2 }
   0x4   :  { %2284 = vmatprep.subr.bf16.mxu0 %v2360_v2  ;;  %2252 = vmatprep.subr.bf16.mxu1 %v2361_v3  ;;  %v2059_v9 = vld.sshfl [vmem:[%s2772_s0 + $0x8] sm:$0x13 pattern:$0x76325410]  ;;  %v58_v10 = vcombine.high %v2058_v5, %v2058_v5  ;;  %v129_v11 = vshrl.u32 %v2058_v5, 16  ;;  %v132_v12 = vshll.u32 %v2058_v5, 16  ;;  %vm2466_vm6 = vmor %vm2449_vm5, %vm112_vm4 }
   0x5   :  { %v2060_v13 = vld.sshfl [vmem:[%s2772_s0 + $0xc] sm:$0x13 pattern:$0x76325410]  ;;  %v66_v14 = vcombine.high %v2059_v9, %v2059_v9  ;;  %v117_v16 = vrot.slane %v115_v7, 6  ;;  %v120_v17 = vrot.slane %v118_v8, 7 }
   0x6   :  { %v74_v19 = vcombine.high %v2060_v13, %v2060_v13  ;;  %v124_v20 = vshll.u32 %v50_v6, 16  ;;  %v131_v21 = vrot.slane %v129_v11, 6  ;;  %v134_v22 = vrot.slane %v132_v12, 7  ;;  %v2456_v23 = vld [vmem:[%s2771_s1 + $0x50] sm:$0xff]   ;;  %v2461_v28 = vld [vmem:[%s2771_s1] sm:$0xff]  }
   0x7   :  { %2285 = vmatpush3.bf16.msra.mxu0 %v2360_v2  ;;  %2253 = vmatpush3.bf16.msra.mxu1 %v2361_v3  ;;  %v121_v24 = vor.u32 %v120_v17, %v117_v16  ;;  %v138_v25 = vshll.u32 %v58_v10, 16  ;;  %v143_v26 = vshrl.u32 %v2059_v9, 16  ;;  %v146_v27 = vshll.u32 %v2059_v9, 16 }
   0x8   :  { %v126_v30 = vrot.slane %v124_v20, 7  ;;  %v135_v31 = vor.u32 %v134_v22, %v131_v21  ;;  %v152_v32 = vshll.u32 %v66_v14, 16  ;;  %v157_v33 = vshrl.u32 %v2060_v13, 16  ;;  %2290 = vmatprep.subr.bf16.mxu0 %v2456_v23  ;;  %2258 = vmatprep.subr.bf16.mxu1 %v2461_v28 }
   0x9   :  { %v122_v34 = vrot.slane %v121_v24, 2  ;;  %v140_v35 = vrot.slane %v138_v25, 7  ;;  %v145_v36 = vrot.slane %v143_v26, 6  ;;  %v148_v37 = vrot.slane %v146_v27, 7 }
   0xa   :  { %v136_v38 = vrot.slane %v135_v31, 2  ;;  %v154_v39 = vrot.slane %v152_v32, 7  ;;  %v159_v40 = vrot.slane %v157_v33, 6  ;;  %v160_v41 = vshll.u32 %v2060_v13, 16 }
   0xb   :  { %v127_v42 = vsel %vm2466_vm6, %v122_v34, %v126_v30  ;;  %v149_v43 = vor.u32 %v148_v37, %v145_v36  ;;  %v166_v44 = vshll.u32 %v74_v19, 16  ;;  %v2400_v47 = vmov 1983009808  }
   0xc   :  { %v141_v45 = vsel %vm2466_vm6, %v136_v38, %v140_v35  ;;  %v162_v46 = vrot.slane %v160_v41, 7  ;;  %v233_v48 = vunpack.c.l.s4 %v2400_v47  ;;  %v2116_v50 = vld.sshfl [vmem:[%s2772_s0 + $0x10] sm:$0x13 pattern:$0x76325410]  ;;  %vm521_vm8 = vcmask 1040384  }
   0xd   :  { %v150_v51 = vrot.slane %v149_v43, 2  ;;  %v168_v52 = vrot.slane %v166_v44, 7  ;;  %v230_v53 = vcombine.low %v127_v42, %v141_v45  ;;  %v842_v54 = vcombine.high %v2116_v50, %v2116_v50  ;;  %v2061_v55 = vld.sshfl [vmem:[%s2772_s0 + $0x18] sm:$0x13 pattern:$0x76325410] }
   0xe   :  { %v163_v56 = vor.u32 %v162_v46, %v159_v40  ;;  %v234_v57 = vunpack.c.0.s8 %v233_v48  ;;  %v918_v58 = vshrl.u32 %v2116_v50, 16  ;;  %v921_v59 = vshll.u32 %v2116_v50, 16  ;;  %v2062_v60 = vld.sshfl [vmem:[%s2772_s0 + $0x1c] sm:$0x13 pattern:$0x76325410] }
   0xf   :  { %v155_v61 = vsel %vm2466_vm6, %v150_v51, %v154_v39  ;;  %v927_v62 = vshll.u32 %v842_v54, 16  ;;  %v2063_v63 = vld.sshfl [vmem:[%s2772_s0 + $0x20] sm:$0x13 pattern:$0x76325410]  ;;  %v82_v0 = vcombine.high %v2061_v55, %v2061_v55  ;;  %v90_v1 = vcombine.high %v2062_v60, %v2062_v60 }
  0x10   :  { %v164_v2 = vrot.slane %v163_v56, 2  ;;  %v2493_v3 = vsub.s32 %v234_v57, %v2476_v49  ;;  %v920_v4 = vrot.slane %v918_v58, 6  ;;  %v923_v5 = vrot.slane %v921_v59, 7 }
  0x11   :  { %v929_v6 = vrot.slane %v927_v62, 7  ;;  %v991_v7 = vcombine.low %v141_v45, %v155_v61  ;;  %v2064_v8 = vld.sshfl [vmem:[%s2772_s0 + $0x24] sm:$0x13 pattern:$0x76325410]  ;;  %v98_v9 = vcombine.high %v2063_v63, %v2063_v63  ;;  %v171_v10 = vshrl.u32 %v2061_v55, 16 }
  0x12   :  { %vm522_vm9 = vcmask 1042434   ;;  %v169_v11 = vsel %vm2466_vm6, %v164_v2, %v168_v52  ;;  %v238_v12 = vrot.slane %v230_v53, %v2493_v3  ;;  %v924_v13 = vor.u32 %v923_v5, %v920_v4  ;;  %v2120_v42 = vld.sshfl [vmem:[%s2772_s0 + $0x28] sm:$0x13 pattern:$0x76325410] }
  0x13   :  { %v106_v14 = vcombine.high %v2064_v8, %v2064_v8  ;;  %v231_v15 = vcombine.low %v155_v61, %v169_v11  ;;  %v999_v16 = vrot.slane %v991_v7, %v2493_v3  ;;  %v173_v17 = vrot.slane %v171_v10, 6  ;;  %v2517_v43 = vld.sshfl [vmem:[%s2772_s0] sm:$0xf pattern:$0x76325410]  ;;  %vm2532_vm11 = vmor %vm521_vm8, %vm522_vm9 }
  0x14   :  { %v174_v18 = vshll.u32 %v2061_v55, 16  ;;  %v925_v19 = vrot.slane %v924_v13, 2  ;;  %v180_v20 = vshll.u32 %v82_v0, 16  ;;  %v185_v21 = vshrl.u32 %v2062_v60, 16 }
  0x15   :  { %v188_v22 = vshll.u32 %v2062_v60, 16  ;;  %vm524_vm10 = vcmask 1044484   ;;  %v2503_v24 = vrot.slane %v231_v15, %v2493_v3  ;;  %v194_v26 = vshll.u32 %v90_v1, 16 }
  0x16   :  { %v176_v25 = vrot.slane %v174_v18, 7  ;;  %v199_v27 = vshrl.u32 %v2063_v63, 16  ;;  %v2507_v30 = vsel %vm2466_vm6, %v925_v19, %v929_v6  ;;  %v182_v31 = vrot.slane %v180_v20, 7  ;;  %vm525_vm12 = vmor %vm2532_vm11, %vm524_vm10 }
  0x17   :  { %v187_v32 = vrot.slane %v185_v21, 6  ;;  %v190_v33 = vrot.slane %v188_v22, 7  ;;  %v246_v34 = vcombine.low %v238_v12, %v2503_v24  ;;  %v992_v35 = vcombine.low %v169_v11, %v2507_v30  ;;  %v2522_v44 = vld.sshfl [vmem:[%s2772_s0 + $0x8] sm:$0xf pattern:$0x76325410] }
  0x18   :  { %v177_v36 = vor.u32 %v176_v25, %v173_v17  ;;  %v196_v37 = vrot.slane %v194_v26, 7  ;;  %v201_v39 = vrot.slane %v199_v27, 6  ;;  %v202_v40 = vshll.u32 %v2063_v63, 16 }
  0x19   :  { %v191_v38 = vor.u32 %v190_v33, %v187_v32  ;;  %v208_v41 = vshll.u32 %v98_v9, 16  ;;  %2254 = vmatprep.mubr.msk.bf16.mxu1 %vm276_vm7, %v246_v34  ;;  %v1006_v45 = vrot.slane %v992_v35, %v2493_v3  ;;  %v213_v47 = vshrl.u32 %v2064_v8, 16  ;;  %v2133_v63 = vld.sshfl [vmem:[%s2772_s0 + $0x4] sm:$0x12 pattern:$0x76325410] }
  0x1a   :  { %v178_v46 = vrot.slane %v177_v36, 2  ;;  %v216_v48 = vshll.u32 %v2064_v8, 16  ;;  %v204_v51 = vrot.slane %v202_v40, 7  ;;  %v222_v53 = vshll.u32 %v106_v14, 16 }
  0x1b   :  { %v192_v50 = vrot.slane %v191_v38, 2  ;;  %v210_v52 = vrot.slane %v208_v41, 7  ;;  %v1007_v54 = vcombine.low %v999_v16, %v1006_v45  ;;  %v215_v56 = vrot.slane %v213_v47, 6 }
  0x1c   :  { %v183_v55 = vsel %vm2466_vm6, %v178_v46, %v182_v31  ;;  %v218_v57 = vrot.slane %v216_v48, 7  ;;  %v205_v59 = vor.u32 %v204_v51, %v201_v39  ;;  %v224_v60 = vrot.slane %v222_v53, 7  ;;  %v2134_v5 = vld.sshfl [vmem:[%s2772_s0 + $0x8] sm:$0x12 pattern:$0x76325410] }
  0x1d   :  { %v197_v58 = vsel %vm2466_vm6, %v192_v50, %v196_v37  ;;  %v874_v61 = vcombine.high %v2120_v42, %v2120_v42  ;;  %2286 = vmatprep.mubr.msk.bf16.mxu0 %vm276_vm7, %v1007_v54  ;;  %v974_v2 = vshrl.u32 %v2120_v42, 16  ;;  %v977_v4 = vshll.u32 %v2120_v42, 16  ;;  %v2135_v6 = vld.sshfl [vmem:[%s2772_s0 + $0xc] sm:$0x12 pattern:$0x76325410] }
  0x1e   :  { %v219_v0 = vor.u32 %v218_v57, %v215_v56  ;;  %v247_v1 = vcombine.low %v183_v55, %v197_v58  ;;  %v206_v7 = vrot.slane %v205_v59, 2  ;;  %v2136_v9 = vld.sshfl [vmem:[%s2772_s0 + $0x10] sm:$0x12 pattern:$0x76325410]  ;;  %v356_v16 = vcombine.low %v2517_v43, %v2522_v44  ;;  %v2365_v51 = vld [vmem:[%s2771_s1 + $0x8] sm:$0xff]  }
  0x1f   :  { %v983_v8 = vshll.u32 %v874_v61, 16  ;;  %v976_v12 = vrot.slane %v974_v2, 6  ;;  %v979_v13 = vrot.slane %v977_v4, 7  ;;  %vm526_vm13 = vcmask 1046534   ;;  %v2364_v2 = vld [vmem:[%s2771_s1 + $0x58] sm:$0xff]  }
  0x20   :  { %v220_v10 = vrot.slane %v219_v0, 2  ;;  %v255_v11 = vrot.slane %v247_v1, %v2493_v3  ;;  %v211_v14 = vsel %vm2466_vm6, %v206_v7, %v210_v52  ;;  %v1119_v20 = vcombine.high %v2133_v63, %v2133_v63  ;;  %vm2559_vm14 = vmor %vm525_vm12, %vm526_vm13  ;;  %v2566_v31 = vld.sshfl [vmem:[%s2772_s0 + $0x18] sm:$0xf pattern:$0x76325410] }
  0x21   :  { %v985_v15 = vrot.slane %v983_v8, 7  ;;  %v980_v18 = vor.u32 %v979_v13, %v976_v12  ;;  %v1008_v19 = vcombine.low %v197_v58, %v211_v14  ;;  %v1127_v25 = vcombine.high %v2134_v5, %v2134_v5  ;;  %v2572_v36 = vld.sshfl [vmem:[%s2772_s0 + $0x20] sm:$0xf pattern:$0x76325410] }
  0x22   :  { %v225_v17 = vsel %vm2466_vm6, %v220_v10, %v224_v60  ;;  %v1135_v26 = vcombine.high %v2135_v6, %v2135_v6  ;;  %v1143_v27 = vcombine.high %v2136_v9, %v2136_v9  ;;  %v2141_v34 = vrot.slane %v2133_v63, 9  ;;  %v2137_v37 = vld.sshfl [vmem:[%s2772_s0 + $0x1c] sm:$0x12 pattern:$0x76325410] }
  0x23   :  { %v248_v21 = vcombine.low %v211_v14, %v225_v17  ;;  %v981_v32 = vrot.slane %v980_v18, 2  ;;  %v1016_v33 = vrot.slane %v1008_v19, %v2493_v3  ;;  %v1178_v35 = vrot.slane %v1119_v20, 7  ;;  %v2138_v38 = vld.sshfl [vmem:[%s2772_s0 + $0x20] sm:$0x12 pattern:$0x76325410] }
  0x24   :  { %v2142_v40 = vrot.slane %v2134_v5, 9  ;;  %v1182_v41 = vrot.slane %v1127_v25, 7  ;;  %v2143_v42 = vrot.slane %v2135_v6, 9  ;;  %v1186_v45 = vrot.slane %v1135_v26, 7  ;;  %v2368_v18 = vld [vmem:[%s2771_s1 + $0x60] sm:$0xff]  }
  0x25   :  { %v2581_v39 = vrot.slane %v248_v21, %v2493_v3  ;;  %v2585_v43 = vsel %vm2466_vm6, %v981_v32, %v985_v15  ;;  %v2589_v44 = vsel %vm2559_vm14, %v2141_v34, %v1178_v35  ;;  %v2144_v46 = vrot.slane %v2136_v9, 9  ;;  %v2139_v47 = vld.sshfl [vmem:[%s2772_s0 + $0x24] sm:$0x12 pattern:$0x76325410] }
  0x26   :  { %v1009_v50 = vcombine.low %v225_v17, %v2585_v43  ;;  %v1183_v52 = vsel %vm2559_vm14, %v2142_v40, %v1182_v41  ;;  %v1190_v53 = vrot.slane %v1143_v27, 7  ;;  %v2140_v54 = vld.sshfl [vmem:[%s2772_s0 + $0x28] sm:$0x12 pattern:$0x76325410]  ;;  %v1187_v55 = vsel %vm2559_vm14, %v2143_v42, %v1186_v45 }
  0x27   :  { %v263_v48 = vcombine.low %v255_v11, %v2581_v39  ;;  %v1212_v56 = vcombine.low %v2589_v44, %v1183_v52  ;;  %v1151_v59 = vcombine.high %v2137_v37, %v2137_v37  ;;  %v1159_v60 = vcombine.high %v2138_v38, %v2138_v38  ;;  %v2073_v61 = vld.sshfl [vmem:[%s2772_s0] sm:$0x12 pattern:$0x76325410]  ;;  %v2373_v45 = vld [vmem:[%s2771_s1 + $0x28] sm:$0xff]  }
  0x28   :  { %v1023_v57 = vrot.slane %v1009_v50, %v2493_v3  ;;  %v2611_v58 = vsel %vm2559_vm14, %v2144_v46, %v1190_v53  ;;  %v2145_v0 = vrot.slane %v2137_v37, 9  ;;  %v1167_v4 = vcombine.high %v2139_v47, %v2139_v47  ;;  %v2630_v11 = vld.sshfl [vmem:[%s2772_s0 + $0x8] sm:$0xf pattern:$0x76325410] }
  0x29   :  { %2255 = vmatmul.mubr.msk.bf16.vlgmr.msra.gmra.mrb[0].mxu1 %vm276_vm7, %v263_v48  ;;  %v1213_v62 = vcombine.low %v1187_v55, %v2611_v58  ;;  %v1220_v63 = vrot.slane %v1212_v56, %v2493_v3  ;;  %v1175_v5 = vcombine.high %v2140_v54, %v2140_v54  ;;  %v1194_v6 = vrot.slane %v1151_v59, 7  ;;  %v2077_v27 = vld.sshfl [vmem:[%s2772_s0 + $0x18] sm:$0x12 pattern:$0x76325410]  ;;  %v2372_v56 = vld [vmem:[%s2771_s1 + $0x68] sm:$0xff]  }
  0x2a   :  { %2259 = vmatpush3.bf16.msra.mxu1 %v2461_v28  ;;  %2262 = vmatprep.mubr.msk.bf16.mxu1 %vm276_vm7, %v356_v16  ;;  %v1024_v1 = vcombine.low %v1016_v33, %v1023_v57  ;;  %v2371_v28 = vld [vmem:[%s2771_s1 + $0x20] sm:$0xff]   ;;  %v2146_v8 = vrot.slane %v2138_v38, 9  ;;  %v1198_v9 = vrot.slane %v1159_v60, 7  ;;  %v2147_v10 = vrot.slane %v2139_v47, 9 }
  0x2b   :  { %2260 = vmatprep.subr.bf16.mxu1 %v2365_v51  ;;  %v1227_v7 = vrot.slane %v1213_v62, %v2493_v3  ;;  %v1195_v12 = vsel %vm2559_vm14, %v2145_v0, %v1194_v6  ;;  %v1202_v13 = vrot.slane %v1167_v4, 7  ;;  %v2148_v14 = vrot.slane %v2140_v54, 9  ;;  %v2393_v16 = vld.sshfl [vmem:[%s2772_s0 + $0x10] sm:$0xf pattern:$0x76325410] }
  0x2c   :  { %2287 = vmatmul.mubr.msk.bf16.vlgmr.msra.gmra.mrb[0].mxu0 %vm276_vm7, %v1024_v1  ;;  %v1206_v15 = vrot.slane %v1175_v5, 7  ;;  %v1199_v19 = vsel %vm2559_vm14, %v2146_v8, %v1198_v9  ;;  %v464_v20 = vcombine.high %v2073_v61, %v2073_v61  ;;  %v2081_v21 = vrot.slane %v2073_v61, 9  ;;  %v2395_v54 = vld.sshfl [vmem:[%s2772_s0 + $0xc] sm:$0xf pattern:$0x76325410] }
  0x2d   :  { %2291 = vmatpush3.bf16.msra.mxu0 %v2456_v23  ;;  %v1228_v17 = vcombine.low %v1220_v63, %v1227_v7  ;;  %v1203_v25 = vsel %vm2559_vm14, %v2147_v10, %v1202_v13  ;;  %v1229_v23 = vcombine.low %v1195_v12, %v1199_v19  ;;  %v565_v34 = vcombine.low %v1183_v52, %v1187_v55  ;;  %v2394_v52 = vld.sshfl [vmem:[%s2772_s0 + $0x4] sm:$0xf pattern:$0x76325410]  ;;  %v2379_v63 = vld [vmem:[%s2771_s1 + $0x30] sm:$0xff]  }
  0x2e   :  { %2261 = vmatpush3.bf16.msra.mxu1 %v2365_v51  ;;  %2292 = vmatprep.subr.bf16.mxu0 %v2364_v2  ;;  %v2648_v26 = vsel %vm2559_vm14, %v2148_v14, %v1206_v15  ;;  %v530_v33 = vrot.slane %v464_v20, 7  ;;  %v373_v35 = vcombine.low %v2566_v31, %v2572_v36  ;;  %v496_v38 = vcombine.high %v2077_v27, %v2077_v27  ;;  %v2176_v55 = vld.sshfl [vmem:[%s2772_s0 + $0x14] sm:$0x13 pattern:$0x76325410] }
  0x2f   :  { %2266 = vmatprep.subr.bf16.mxu1 %v2371_v28  ;;  %2294 = vmatprep.mubr.msk.bf16.mxu0 %vm276_vm7, %v1228_v17  ;;  %v1230_v32 = vcombine.low %v1203_v25, %v2648_v26  ;;  %v1237_v37 = vrot.slane %v1229_v23, %v2493_v3  ;;  %v2085_v40 = vrot.slane %v2077_v27, 9  ;;  %v2666_v47 = vrot.slane %v565_v34, %v2493_v3  ;;  %v2397_v60 = vld.sshfl [vmem:[%s2772_s0 + $0x28] sm:$0xf pattern:$0x76325410] }
  0x30   :  { %v531_v42 = vsel %vm2559_vm14, %v2081_v21, %v530_v33  ;;  %v546_v31 = vrot.slane %v496_v38, 7  ;;  %v582_v51 = vcombine.low %v1199_v19, %v1203_v25  ;;  %v1354_v59 = vcombine.low %v2630_v11, %v2393_v16  ;;  %v2180_v7 = vld.sshfl [vmem:[%s2772_s0 + $0x2c] sm:$0x13 pattern:$0x76325410]  ;;  %v2381_v19 = vld [vmem:[%s2771_s1 + $0x38] sm:$0xff]  }
  0x31   :  { %2293 = vmatpush3.bf16.msra.mxu0 %v2364_v2  ;;  %v1244_v41 = vrot.slane %v1230_v32, %v2493_v3  ;;  %v564_v46 = vcombine.low %v531_v42, %v2589_v44  ;;  %v2396_v44 = vld.sshfl [vmem:[%s2772_s0 + $0x20] sm:$0xf pattern:$0x76325410]  ;;  %v1490_v61 = vcombine.high %v2176_v55, %v2176_v55  ;;  %v1566_v62 = vshrl.u32 %v2176_v55, 16 }
  0x32   :  { %2298 = vmatprep.subr.bf16.mxu0 %v2368_v18  ;;  %v547_v50 = vsel %vm2559_vm14, %v2085_v40, %v546_v31  ;;  %v1569_v0 = vshll.u32 %v2176_v55, 16  ;;  %v2699_v2 = vrot.slane %v582_v51, %v2493_v3  ;;  %v1522_v10 = vcombine.high %v2180_v7, %v2180_v7  ;;  %v2196_v14 = vld.sshfl [vmem:[%s2772_s0 + $0x14] sm:$0x12 pattern:$0x76325410]  ;;  %v2380_v40 = vld [vmem:[%s2771_s1 + $0x78] sm:$0xff]  }
  0x33   :  { %v1245_v36 = vcombine.low %v1237_v37, %v1244_v41  ;;  %v572_v48 = vrot.slane %v564_v46, %v2493_v3  ;;  %v581_v53 = vcombine.low %v547_v50, %v1195_v12  ;;  %v1568_v4 = vrot.slane %v1566_v62, 6  ;;  %v2398_v34 = vld.sshfl [vmem:[%s2772_s0 + $0x1c] sm:$0xf pattern:$0x76325410]  ;;  %v2387_v55 = vld [vmem:[%s2771_s1 + $0x88] sm:$0xff]  }
  0x34   :  { %v1575_v5 = vshll.u32 %v1490_v61, 16  ;;  %v1571_v6 = vrot.slane %v1569_v0, 7  ;;  %v1622_v12 = vshrl.u32 %v2180_v7, 16  ;;  %v1625_v13 = vshll.u32 %v2180_v7, 16  ;;  %v2384_v51 = vld [vmem:[%s2771_s1 + $0x80] sm:$0xff]  }
  0x35   :  { %2263 = vmatmul.mubr.msk.bf16.vlgmr.msra.gmra.mrb[0].mxu1 %vm276_vm7, %v373_v35  ;;  %v580_v57 = vcombine.low %v572_v48, %v2666_v47  ;;  %v589_v1 = vrot.slane %v581_v53, %v2493_v3  ;;  %v706_v15 = vcombine.low %v2394_v52, %v2395_v54  ;;  %v1631_v17 = vshll.u32 %v1522_v10, 16  ;;  %v2399_v35 = vld.sshfl [vmem:[%s2772_s0 + $0x24] sm:$0xf pattern:$0x76325410] }
  0x36   :  { %2267 = vmatpush3.bf16.msra.mxu1 %v2371_v28  ;;  %v2376_v28 = vld [vmem:[%s2771_s1 + $0x70] sm:$0xff]   ;;  %v1572_v8 = vor.u32 %v1571_v6, %v1568_v4  ;;  %v1577_v9 = vrot.slane %v1575_v5, 7  ;;  %v1624_v20 = vrot.slane %v1622_v12, 6  ;;  %v1627_v21 = vrot.slane %v1625_v13, 7 }
  0x37   :  { %2268 = vmatprep.subr.bf16.mxu1 %v2373_v45  ;;  %2270 = vmatprep.mubr.msk.bf16.mxu1 %vm276_vm7, %v580_v57  ;;  %v597_v11 = vcombine.low %v589_v1, %v2699_v2  ;;  %v2204_v25 = vrot.slane %v2196_v14, 9  ;;  %v1371_v32 = vcombine.low %v2396_v44, %v2397_v60  ;;  %v1633_v38 = vrot.slane %v1631_v17, 7 }
  0x38   :  { %2295 = vmatmul.mubr.msk.bf16.vlgmr.msra.gmra.mrb[0].mxu0 %vm276_vm7, %v1245_v36  ;;  %v1573_v16 = vrot.slane %v1572_v8, 2  ;;  %v1628_v37 = vor.u32 %v1627_v21, %v1624_v20  ;;  %v723_v52 = vcombine.low %v2398_v34, %v2399_v35  ;;  %vm1992_vm15 = vcmask 257024  }
  0x39   :  { %2299 = vmatpush3.bf16.msra.mxu0 %v2368_v18  ;;  %2302 = vmatprep.mubr.msk.bf16.mxu0 %vm276_vm7, %v1354_v59  ;;  %v1791_v18 = vcombine.high %v2196_v14, %v2196_v14  ;;  %vm2051_vm0 = vcmask 517120  }
  0x3a   :  { %2269 = vmatpush3.bf16.msra.mxu1 %v2373_v45  ;;  %2300 = vmatprep.subr.bf16.mxu0 %v2372_v56  ;;  %v1578_v23 = vsel %vm2466_vm6, %v1573_v16, %v1577_v9  ;;  %v1629_v41 = vrot.slane %v1628_v37, 2  ;;  %v2200_v45 = vld.sshfl [vmem:[%s2772_s0 + $0x2c] sm:$0x12 pattern:$0x76325410] }
  0x3b   :  { %2274 = vmatprep.subr.bf16.mxu1 %v2379_v63  ;;  %v1838_v27 = vrot.slane %v1791_v18, 7  ;;  %v1640_v33 = vcombine.low %v2507_v30, %v1578_v23  ;;  %v1823_v50 = vcombine.high %v2200_v45, %v2200_v45  ;;  %v2208_v53 = vrot.slane %v2200_v45, 9 }
  0x3c   :  { %v1634_v31 = vsel %vm2466_vm6, %v1629_v41, %v1633_v38 }
  0x3d   :  { %2301 = vmatpush3.bf16.msra.mxu0 %v2372_v56  ;;  %v1654_v30 = vrot.slane %v1640_v33, %v2493_v3  ;;  %v1839_v42 = vsel %vm2559_vm14, %v2204_v25, %v1838_v27  ;;  %v1657_v36 = vcombine.low %v2585_v43, %v1634_v31  ;;  %v1854_v44 = vrot.slane %v1823_v50, 7 }
  0x3e   :  { %2306 = vmatprep.subr.bf16.mxu0 %v2376_v28  ;;  %v1861_v48 = vcombine.low %v2611_v58, %v1839_v42 }
  0x3f   :  { %v1655_v46 = vcombine.low %v2503_v24, %v1654_v30  ;;  %v1671_v24 = vrot.slane %v1657_v36, %v2493_v3  ;;  %v1855_v54 = vsel %vm2559_vm14, %v2208_v53, %v1854_v44 }
  0x40   :  { %v1875_v29 = vrot.slane %v1861_v48, %v2493_v3  ;;  %v1878_v56 = vcombine.low %v2648_v26, %v1855_v54  ;;  %v2213_v26 = vld [vmem:[%s2773_s2] ss:$0 sm:$0xff]  ;;  %s2403_s2 = smov 32  }
  0x41   :  { %2271 = vmatmul.mubr.msk.bf16.vlgmr.msra.gmra.mrb[0].mxu1 %vm276_vm7, %v597_v11  ;;  %v1672_v43 = vcombine.low %v2581_v39, %v1671_v24  ;;  %v2402_v24 = vmov 0.0  }
  0x42   :  { %2275 = vmatpush3.bf16.msra.mxu1 %v2379_v63  ;;  %2278 = vmatprep.mubr.msk.bf16.mxu1 %vm276_vm7, %v706_v15  ;;  %v1876_v58 = vcombine.low %v2666_v47, %v1875_v29  ;;  %v1892_v57 = vrot.slane %v1878_v56, %v2493_v3 }
  0x43   :  { %2276 = vmatprep.subr.bf16.mxu1 %v2381_v19 }
  0x44   :  { %2303 = vmatmul.mubr.msk.bf16.vlgmr.msra.gmra.mrb[0].mxu0 %vm276_vm7, %v1371_v32  ;;  %v1893_v39 = vcombine.low %v2699_v2, %v1892_v57  ;;  %v2401_v32 = vmov 1934713408  }
  0x45   :  { %2307 = vmatpush3.bf16.msra.mxu0 %v2376_v28  ;;  %2310 = vmatprep.mubr.msk.bf16.mxu0 %vm276_vm7, %v1655_v46  ;;  %v2038_v33 = vunpack.c.l.s4 %v2401_v32 }
  0x46   :  { %2277 = vmatpush3.bf16.msra.mxu1 %v2381_v19  ;;  %2308 = vmatprep.subr.bf16.mxu0 %v2380_v40 }
  0x47   :  { %v2039_v46 = vunpack.c.0.s8 %v2038_v33 }
  0x49   :  { %2309 = vmatpush3.bf16.msra.mxu0 %v2380_v40  ;;  %v2042_v50 = vsub.s32 %v2039_v46, %v2476_v49 }
  0x4a   :  { %2314 = vmatprep.subr.bf16.mxu0 %v2384_v51 }
  0x4d   :  { %2279 = vmatmul.mubr.msk.bf16.vlgmr.msra.gmra.mrb[0].mxu1 %vm276_vm7, %v723_v52 }
  0x50   :  { %2311 = vmatmul.mubr.msk.bf16.vlgmr.msra.gmra.mrb[0].mxu0 %vm276_vm7, %v1672_v43 }
  0x51   :  { %2315 = vmatpush3.bf16.msra.mxu0 %v2384_v51  ;;  %2318 = vmatprep.mubr.msk.bf16.mxu0 %vm276_vm7, %v1876_v58 }
  0x52   :  { %2316 = vmatprep.subr.bf16.mxu0 %v2387_v55 }
  0x55   :  { %2317 = vmatpush3.bf16.msra.mxu0 %v2387_v55 }
  0x5c   :  { %2319 = vmatmul.mubr.msk.bf16.vlgmr.msra.gmra.mrb[0].mxu0 %vm276_vm7, %v1893_v39 }
 0x120   :  { %v2280_v22 = vpop.f32.mrb[0].mxu1 }
 0x121   :  { %v776_v47 = vpop.f32.mrb[1].mxu1 }
 0x122   :  { %v2281_v59 = vpop.f32.mrb[2].mxu1 }
 0x123   :  { %v779_v60 = vpop.f32.mrb[3].mxu1 }
 0x12f   :  { %v2320_v61 = vpop.f32.mrb[0].mxu0 }
 0x130   :  { %v2322_v62 = vadd.f32 %v2320_v61, %v2280_v22  ;;  %v1946_v63 = vpop.f32.mrb[1].mxu0 }
 0x131   :  { %v2323_v0 = vadd.f32 %v1946_v63, %v776_v47  ;;  %v2321_v1 = vpop.f32.mrb[2].mxu0 }
 0x132   :  { %v1974_v4 = vadd.f32 %v2322_v62, %v2213_v26  ;;  %v2324_v5 = vadd.f32 %v2321_v1, %v2281_v59  ;;  %v1949_v6 = vpop.f32.mrb[3].mxu0 }
 0x133   :  { %v1972_v28 = vadd.f32 %v2323_v0, %v2213_v26  ;;  %v2325_v2 = vadd.f32 %v1949_v6, %v779_v60 }
 0x134   :  { %v1982_v7 = vcombine.high %v1974_v4, %v1974_v4  ;;  %v1975_v8 = vadd.f32 %v2324_v5, %v2213_v26 }
 0x135   :  { %v1980_v9 = vcombine.high %v1972_v28, %v1972_v28  ;;  %v1973_v10 = vadd.f32 %v2325_v2, %v2213_v26 }
 0x136   :  { %v1990_v11 = vmax.f32 %v1974_v4, %v1982_v7  ;;  %v1983_v12 = vcombine.high %v1975_v8, %v1975_v8 }
 0x137   :  { %v1988_v13 = vmax.f32 %v1972_v28, %v1980_v9  ;;  %v1981_v14 = vcombine.high %v1973_v10, %v1973_v10 }
 0x138   :  { %1995 = vst.msk [vmem:[#allocation2 + $0x8] sm:$0xf] %vm1992_vm15, %v1990_v11  ;;  %v1991_v15 = vmax.f32 %v1975_v8, %v1983_v12 }
 0x139   :  { %1993 = vst.msk [vmem:[#allocation2] sm:$0xf] %vm1992_vm15, %v1988_v13  ;;  %v1989_v16 = vmax.f32 %v1973_v10, %v1981_v14 }
 0x13a   :  { %1996 = vst.msk [vmem:[#allocation2 + $0xc] sm:$0xf] %vm1992_vm15, %v1991_v15 }
 0x13b   :  { %1994 = vst.msk [vmem:[#allocation2 + $0x4] sm:$0xf] %vm1992_vm15, %v1989_v16 }
 0x13f   :  { %v2001_v17 = vld [vmem:[#allocation2 + $0x8] ss:$2 sm:$0x3]  ;;  %v2009_v18 = vld [vmem:[#allocation2 + $0x9] ss:$2 sm:$0x3] }
 0x140   :  { %v1997_v19 = vld [vmem:[#allocation2] ss:$2 sm:$0x3]  ;;  %v2005_v20 = vld [vmem:[#allocation2 + $0x1] ss:$2 sm:$0x3]  ;;  %v2014_v21 = vmax.f32 %v2001_v17, %v2009_v18 }
 0x141   :  { %v2003_v25 = vld [vmem:[#allocation2 + $0xc] ss:$2 sm:$0x3]  ;;  %v2011_v23 = vld [vmem:[#allocation2 + $0xd] ss:$2 sm:$0x3]  ;;  %v2012_v27 = vmax.f32 %v1997_v19, %v2005_v20 }
 0x142   :  { %v1999_v34 = vld [vmem:[#allocation2 + $0x4] ss:$2 sm:$0x3]  ;;  %v2007_v35 = vld [vmem:[#allocation2 + $0x5] ss:$2 sm:$0x3]  ;;  %v2015_v37 = vmax.f32 %v2003_v25, %v2011_v23 }
 0x143   :  { %v2013_v38 = vmax.f32 %v1999_v34, %v2007_v35  ;;  %v2016_v40 = vmax.f32 %v2012_v27, 0.0  ;;  %v2018_v30 = vmax.f32 %v2014_v21, 0.0 }
 0x144   :  { %v2019_v41 = vmax.f32 %v2015_v37, 0.0 }
 0x145   :  { %v2017_v42 = vmax.f32 %v2013_v38, 0.0  ;;  %v2020_v45 = vcombine.low %v2016_v40, %v2018_v30 }
 0x147   :  { %v2028_v31 = vcombine.low %v2017_v42, %v2019_v41  ;;  %v2027_v36 = vrot.slane %v2020_v45, %v2493_v3 }
 0x149   :  { %v2035_v48 = vrot.slane %v2028_v31, %v2493_v3 }
 0x14b   :  { %v2036_v51 = vcombine.low %v2027_v36, %v2035_v48 }
 0x14d   :  { %v2043_v52 = vrot.slane %v2036_v51, %v2042_v50 }
 0x14f   :  { %v2044_v29 = vcombine.high %v2043_v52, %v2402_v24 }
 0x151   :  { %2046 = vrot.lane.b32.xlu0 %v2044_v29, %s2403_s2 }
 0x1c3   :  { %v2047_v53 = vpop.permute.xlu0 %2046 }
 0x1c4   :  { %v2049_v44 = vsel %vm276_vm7, %v2043_v52, %v2047_v53 }
 0x1c5   :  { %v2050_v43 = vpack.c.bf16 %v2049_v44, %v2049_v44 }
 0x1c7   :  { %2052 = vst.msk [vmem:[%s2774_s3] sm:$0x3] %vm2051_vm0, %v2050_v43 }

// kernel: cnn_celeba_forward.5
= control target key start
LH: loop header
LB: loop body
LE: loop exit
PB: predicated region body
PF: predicated region fallthrough
CT: control target
= control target key end

     0   :  { %vm51_vm0 = vsmask.f32 3328  ;;  %vm52_vm1 = vsmask.f32 7440  ;;  %vm318_vm3 = vcmask 261120   ;;  %vm661_vm4 = vcmask 1042432   ;;  %s5036_s1 = inlined_call_operand.vmem [shape: bf16[288,32], index: 1, kind: input, shape index: {}]   ;;  %s5037_s0 = inlined_call_operand.vmem [shape: bf16[2,10,10,32], index: 0, kind: input, shape index: {}]   ;;  %s5038_s2 = inlined_call_operand.vmem [shape: f32[1,32], index: 2, kind: input, shape index: {}]   ;;  %s5039_s3 = inlined_call_operand.vmem [shape: bf16[8,128], index: 3, kind: output, shape index: {}]  }
   0x1   :  { %v3692_v0 = vld [vmem:[%s5036_s1 + $0x10] sm:$0xff]   ;;  %v3693_v1 = vld [vmem:[%s5036_s1 + $0x40] sm:$0xff]   ;;  %v3694_v2 = vld [vmem:[%s5036_s1 + $0x18] sm:$0xff]   ;;  %vm662_vm5 = vcmask 1046532   ;;  %s3744_s30 = smov 32   ;;  %s3745_s4 = smov 64  }
   0x2   :  { %3375 = vmatprep.subr.bf16.mxu1 %v3692_v0  ;;  %3455 = vmatprep.subr.bf16.mxu0 %v3693_v1  ;;  %v3695_v3 = vld [vmem:[%s5036_s1 + $0x48] sm:$0xff]   ;;  %v3781_v4 = vld [vmem:[%s5037_s0] sm:$0xf]  ;;  %v3791_v6 = vld [vmem:[%s5037_s0 + $0x4] sm:$0x1]  ;;  %vm2936_vm7 = vcmask 523264  }
   0x3   :  { %3376 = vmatpush3.bf16.msra.mxu1 %v3692_v0  ;;  %3456 = vmatpush3.bf16.msra.mxu0 %v3693_v1  ;;  %v3786_v5 = vld [vmem:[%s5037_s0 + $0x8] sm:$0xf]  ;;  %v3796_v7 = vld [vmem:[%s5037_s0 + $0xc] sm:$0x1]  ;;  %v55_v8 = vshrl.u32 %v3781_v4, 16  ;;  %v58_v9 = vshll.u32 %v3781_v4, 16  ;;  %vm3834_vm2 = vmor %vm51_vm0, %vm52_vm1 }
   0x4   :  { %3377 = vmatprep.subr.bf16.mxu1 %v3694_v2  ;;  %3457 = vmatprep.subr.bf16.mxu0 %v3695_v3  ;;  %v64_v10 = vshll.u32 %v3791_v6, 16  ;;  %v69_v11 = vshrl.u32 %v3786_v5, 16  ;;  %v72_v12 = vshll.u32 %v3786_v5, 16  ;;  %v78_v13 = vshll.u32 %v3796_v7, 16  ;;  %v3807_v20 = vld [vmem:[%s5036_s1] sm:$0xff]   ;;  %v3815_v22 = vld [vmem:[%s5036_s1 + $0x50] sm:$0xff]   ;;  %vm4073_vm6 = vmor %vm661_vm4, %vm662_vm5 }
   0x5   :  { %v57_v14 = vrot.slane %v55_v8, 4  ;;  %v60_v15 = vrot.slane %v58_v9, 5  ;;  %v3050_v21 = vld [vmem:[%s5037_s0 + $0x8] sm:$0xf]  ;;  %v2964_v23 = vcombine.low %v3781_v4, %v3786_v5  ;;  %v3822_v25 = vld [vmem:[%s5037_s0 + $0xc] sm:$0x1] }
   0x6   :  { %v66_v16 = vrot.slane %v64_v10, 5  ;;  %v71_v17 = vrot.slane %v69_v11, 4  ;;  %v74_v18 = vrot.slane %v72_v12, 5  ;;  %v80_v19 = vrot.slane %v78_v13, 5  ;;  %v3052_v26 = vld [vmem:[%s5037_s0 + $0x10] sm:$0xf] }
   0x7   :  { %3378 = vmatpush3.bf16.msra.mxu1 %v3694_v2  ;;  %3458 = vmatpush3.bf16.msra.mxu0 %v3695_v3  ;;  %v61_v24 = vor.u32 %v60_v15, %v57_v14  ;;  %v3830_v27 = vld [vmem:[%s5037_s0 + $0x14] sm:$0x1]  ;;  %v1148_v30 = vshrl.u32 %v3050_v21, 16  ;;  %v1151_v31 = vshll.u32 %v3050_v21, 16  ;;  %v1157_v32 = vshll.u32 %v3822_v25, 16 }
   0x8   :  { %v75_v29 = vor.u32 %v74_v18, %v71_v17  ;;  %3395 = vmatprep.subr.bf16.mxu1 %v3807_v20  ;;  %3475 = vmatprep.subr.bf16.mxu0 %v3815_v22  ;;  %v1162_v34 = vshrl.u32 %v3052_v26, 16  ;;  %v1165_v35 = vshll.u32 %v3052_v26, 16  ;;  %v1171_v36 = vshll.u32 %v3830_v27, 16  ;;  %v3845_v40 = vld [vmem:[%s5037_s0 + $0x10] sm:$0xf] }
   0x9   :  { %v62_v33 = vrot.slane %v61_v24, 4  ;;  %v1150_v38 = vrot.slane %v1148_v30, 4  ;;  %v1153_v39 = vrot.slane %v1151_v31, 5  ;;  %v1159_v42 = vrot.slane %v1157_v32, 5  ;;  %v3852_v45 = vld [vmem:[%s5037_s0 + $0x18] sm:$0xf] }
   0xa   :  { %v76_v37 = vrot.slane %v75_v29, 4  ;;  %v1164_v43 = vrot.slane %v1162_v34, 4  ;;  %v1167_v44 = vrot.slane %v1165_v35, 5  ;;  %v1173_v48 = vrot.slane %v1171_v36, 5  ;;  %v3860_v50 = vld [vmem:[%s5037_s0 + $0x14] sm:$0x1] }
   0xb   :  { %v67_v41 = vsel %vm3834_vm2, %v62_v33, %v66_v16  ;;  %v1154_v47 = vor.u32 %v1153_v39, %v1150_v38  ;;  %v1598_v49 = vrot.slane %v3822_v25, 5  ;;  %v3865_v51 = vld [vmem:[%s5037_s0 + $0x1c] sm:$0x1]  ;;  %v83_v54 = vshrl.u32 %v3845_v40, 16  ;;  %v3054_v0 = vld [vmem:[%s5037_s0 + $0x18] sm:$0xf] }
   0xc   :  { %v81_v46 = vsel %vm3834_vm2, %v76_v37, %v80_v19  ;;  %v1168_v53 = vor.u32 %v1167_v44, %v1164_v43  ;;  %v86_v55 = vshll.u32 %v3845_v40, 16  ;;  %v92_v57 = vshll.u32 %v3860_v50, 16  ;;  %v3882_v8 = vld [vmem:[%s5037_s0 + $0x1c] sm:$0x1]  ;;  %v3056_v9 = vld [vmem:[%s5037_s0 + $0x20] sm:$0xf] }
   0xd   :  { %v2946_v52 = vcombine.low %v67_v41, %v81_v46  ;;  %v1155_v56 = vrot.slane %v1154_v47, 4  ;;  %v97_v58 = vshrl.u32 %v3852_v45, 16  ;;  %v100_v59 = vshll.u32 %v3852_v45, 16  ;;  %v3893_v14 = vld [vmem:[%s5037_s0 + $0x24] sm:$0x1] }
   0xe   :  { %v1169_v60 = vrot.slane %v1168_v53, 4  ;;  %v85_v61 = vrot.slane %v83_v54, 4  ;;  %v88_v62 = vrot.slane %v86_v55, 5  ;;  %v106_v63 = vshll.u32 %v3865_v51, 16  ;;  %v3898_v19 = vld [vmem:[%s5037_s0 + $0x20] sm:$0xf] }
   0xf   :  { %3379 = vmatprep.mubr.msk.bf16.mxu1 %vm318_vm3, %v2946_v52  ;;  %v1160_v1 = vsel %vm3834_vm2, %v1155_v56, %v1159_v42  ;;  %v99_v2 = vrot.slane %v97_v58, 4  ;;  %v102_v3 = vrot.slane %v100_v59, 5  ;;  %v1602_v11 = vrot.slane %v3830_v27, 5  ;;  %v3904_v30 = vld [vmem:[%s5037_s0 + $0x28] sm:$0xf] }
  0x10   :  { %v1174_v10 = vsel %vm3834_vm2, %v1169_v60, %v1173_v48  ;;  %v89_v12 = vor.u32 %v88_v62, %v85_v61  ;;  %v94_v13 = vrot.slane %v92_v57, 5  ;;  %v108_v17 = vrot.slane %v106_v63, 5  ;;  %v3911_v35 = vld [vmem:[%s5037_s0 + $0x24] sm:$0x1]  ;;  %v3918_v41 = vld [vmem:[%s5037_s0 + $0x2c] sm:$0x1] }
  0x11   :  { %v3082_v15 = vcombine.low %v1160_v1, %v1174_v10  ;;  %v103_v16 = vor.u32 %v102_v3, %v99_v2  ;;  %v1176_v18 = vshrl.u32 %v3054_v0, 16  ;;  %v1179_v24 = vshll.u32 %v3054_v0, 16  ;;  %v3699_v54 = vld [vmem:[%s5036_s1 + $0x8] sm:$0xff]   ;;  %v3060_v10 = vld [vmem:[%s5037_s0 + $0x30] sm:$0xf] }
  0x12   :  { %v90_v21 = vrot.slane %v89_v12, 4  ;;  %v1185_v26 = vshll.u32 %v3882_v8, 16  ;;  %v1190_v29 = vshrl.u32 %v3056_v9, 16  ;;  %v1193_v33 = vshll.u32 %v3056_v9, 16  ;;  %v3058_v59 = vld [vmem:[%s5037_s0 + $0x28] sm:$0xf] }
  0x13   :  { %3459 = vmatprep.mubr.msk.bf16.mxu0 %vm318_vm3, %v3082_v15  ;;  %v104_v31 = vrot.slane %v103_v16, 4  ;;  %v1178_v32 = vrot.slane %v1176_v18, 4  ;;  %v1199_v34 = vshll.u32 %v3893_v14, 16  ;;  %v1181_v37 = vrot.slane %v1179_v24, 5  ;;  %v3940_v0 = vld [vmem:[%s5037_s0 + $0x2c] sm:$0x1] }
  0x14   :  { %v95_v36 = vsel %vm3834_vm2, %v90_v21, %v94_v13  ;;  %v1187_v38 = vrot.slane %v1185_v26, 5  ;;  %v1192_v39 = vrot.slane %v1190_v29, 4  ;;  %v1195_v43 = vrot.slane %v1193_v33, 5  ;;  %v3958_v21 = vld [vmem:[%s5037_s0 + $0x34] sm:$0x1] }
  0x15   :  { %v109_v42 = vsel %vm3834_vm2, %v104_v31, %v108_v17  ;;  %v1201_v44 = vrot.slane %v1199_v34, 5  ;;  %v1606_v46 = vrot.slane %v3882_v8, 5  ;;  %v1182_v48 = vor.u32 %v1181_v37, %v1178_v32  ;;  %v3951_v17 = vld [vmem:[%s5036_s1 + $0x20] sm:$0xff]   ;;  %v3964_v29 = vld [vmem:[%s5037_s0 + $0x30] sm:$0xf] }
  0x16   :  { %v2947_v47 = vcombine.low %v95_v36, %v109_v42  ;;  %v1610_v52 = vrot.slane %v3893_v14, 5  ;;  %v111_v53 = vshrl.u32 %v3898_v19, 16  ;;  %v1196_v55 = vor.u32 %v1195_v43, %v1192_v39  ;;  %v3698_v36 = vld [vmem:[%s5036_s1 + $0x58] sm:$0xff]   ;;  %v3103_v27 = vld [vmem:[%s5037_s0 + $0x20] sm:$0xe] }
  0x17   :  { %v114_v56 = vshll.u32 %v3898_v19, 16  ;;  %v120_v57 = vshll.u32 %v3911_v35, 16  ;;  %v125_v58 = vshrl.u32 %v3904_v30, 16  ;;  %v1183_v60 = vrot.slane %v1182_v48, 4  ;;  %v3972_v43 = vld [vmem:[%s5037_s0 + $0x38] sm:$0xf] }
  0x18   :  { %3380 = vmatmul.mubr.msk.bf16.vlgmr.msra.gmra.mrb[0].mxu1 %vm318_vm3, %v2947_v47  ;;  %v113_v61 = vrot.slane %v111_v53, 4  ;;  %v128_v62 = vshll.u32 %v3904_v30, 16  ;;  %v134_v63 = vshll.u32 %v3918_v41, 16  ;;  %v1197_v1 = vrot.slane %v1196_v55, 4  ;;  %v3984_v55 = vld [vmem:[%s5037_s0 + $0x3c] sm:$0x1] }
  0x19   :  { %3396 = vmatpush3.bf16.msra.mxu1 %v3807_v20  ;;  %v116_v2 = vrot.slane %v114_v56, 5  ;;  %v122_v3 = vrot.slane %v120_v57, 5  ;;  %v127_v9 = vrot.slane %v125_v58, 4  ;;  %v1188_v12 = vsel %vm3834_vm2, %v1183_v60, %v1187_v38  ;;  %v3062_v60 = vld [vmem:[%s5037_s0 + $0x38] sm:$0xf] }
  0x1a   :  { %v130_v13 = vrot.slane %v128_v62, 5  ;;  %v136_v15 = vrot.slane %v134_v63, 5  ;;  %v1204_v16 = vshrl.u32 %v3058_v59, 16  ;;  %3397 = vmatprep.subr.bf16.mxu1 %v3699_v54  ;;  %v1202_v20 = vsel %vm3834_vm2, %v1197_v1, %v1201_v44  ;;  %v3977_v44 = vld [vmem:[%s5037_s0 + $0x34] sm:$0x1] }
  0x1b   :  { %v117_v18 = vor.u32 %v116_v2, %v113_v61  ;;  %v1207_v24 = vshll.u32 %v3058_v59, 16  ;;  %v1213_v26 = vshll.u32 %v3940_v0, 16  ;;  %v3083_v31 = vcombine.low %v1188_v12, %v1202_v20  ;;  %v4006_v12 = vld [vmem:[%s5037_s0 + $0x3c] sm:$0x1]  ;;  %v3104_v14 = vld [vmem:[%s5037_s0 + $0x28] sm:$0xe] }
  0x1c   :  { %v131_v32 = vor.u32 %v130_v13, %v127_v9  ;;  %v1206_v33 = vrot.slane %v1204_v16, 4  ;;  %v1218_v34 = vshrl.u32 %v3060_v10, 16  ;;  %v1221_v42 = vshll.u32 %v3060_v10, 16  ;;  %v614_v4 = vld [vmem:[%s5037_s0 + $0x8] sm:$0xe] }
  0x1d   :  { %v118_v37 = vrot.slane %v117_v18, 4  ;;  %v1209_v38 = vrot.slane %v1207_v24, 5  ;;  %v1215_v39 = vrot.slane %v1213_v26, 5  ;;  %3398 = vmatpush3.bf16.msra.mxu1 %v3699_v54  ;;  %3460 = vmatmul.mubr.msk.bf16.vlgmr.msra.gmra.mrb[0].mxu0 %vm318_vm3, %v3083_v31  ;;  %v1227_v53 = vshll.u32 %v3958_v21, 16  ;;  %v3064_v31 = vld [vmem:[%s5037_s0 + $0x40] sm:$0xf] }
  0x1e   :  { %v132_v47 = vrot.slane %v131_v32, 4  ;;  %v1220_v48 = vrot.slane %v1218_v34, 4  ;;  %v139_v56 = vshrl.u32 %v3964_v29, 16  ;;  %3415 = vmatprep.subr.bf16.mxu1 %v3951_v17  ;;  %3476 = vmatpush3.bf16.msra.mxu0 %v3815_v22  ;;  %v1223_v58 = vrot.slane %v1221_v42, 5  ;;  %v4001_v22 = vld [vmem:[%s5036_s1 + $0x60] sm:$0xff]  }
  0x1f   :  { %v123_v54 = vsel %vm3834_vm2, %v118_v37, %v122_v3  ;;  %v1210_v57 = vor.u32 %v1209_v38, %v1206_v33  ;;  %v142_v59 = vshll.u32 %v3964_v29, 16  ;;  %v1229_v62 = vrot.slane %v1227_v53, 5  ;;  %3477 = vmatprep.subr.bf16.mxu0 %v3698_v36  ;;  %v4020_v38 = vld [vmem:[%s5037_s0 + $0x44] sm:$0x1]  ;;  %v5006_v28 = vld [vmem:[%s5038_s2] ss:$0 sm:$0xff] }
  0x20   :  { %v137_v61 = vsel %vm3834_vm2, %v132_v47, %v136_v15  ;;  %v141_v63 = vrot.slane %v139_v56, 4  ;;  %v148_v1 = vshll.u32 %v3977_v44, 16  ;;  %v1224_v9 = vor.u32 %v1223_v58, %v1220_v48  ;;  %s3743_s2 = smov 96  }
  0x21   :  { %v2948_v2 = vcombine.low %v123_v54, %v137_v61  ;;  %v1211_v3 = vrot.slane %v1210_v57, 4  ;;  %v144_v10 = vrot.slane %v142_v59, 5  ;;  %v153_v15 = vshrl.u32 %v3972_v43, 16  ;;  %v4034_v59 = vld [vmem:[%s5037_s0 + $0x54] sm:$0x1] }
  0x22   :  { %v150_v13 = vrot.slane %v148_v1, 5  ;;  %v156_v16 = vshll.u32 %v3972_v43, 16  ;;  %v162_v20 = vshll.u32 %v3984_v55, 16  ;;  %v1225_v24 = vrot.slane %v1224_v9, 4  ;;  %3478 = vmatpush3.bf16.msra.mxu0 %v3698_v36  ;;  %v4029_v36 = vld [vmem:[%s5037_s0 + $0x50] sm:$0xf] }
  0x23   :  { %3383 = vmatprep.mubr.msk.bf16.mxu1 %vm318_vm3, %v2948_v2  ;;  %v1216_v18 = vsel %vm3834_vm2, %v1211_v3, %v1215_v39  ;;  %v145_v26 = vor.u32 %v144_v10, %v141_v63  ;;  %v1232_v32 = vshrl.u32 %v3062_v60, 16  ;;  %v155_v33 = vrot.slane %v153_v15, 4  ;;  %3495 = vmatprep.subr.bf16.mxu0 %v4001_v22  ;;  %v4042_v1 = vld [vmem:[%s5037_s0 + $0x58] sm:$0xf]  ;;  %v4048_v10 = vld [vmem:[%s5037_s0 + $0x5c] sm:$0x1] }
  0x24   :  { %v158_v34 = vrot.slane %v156_v16, 5  ;;  %v164_v37 = vrot.slane %v162_v20, 5  ;;  %v1235_v42 = vshll.u32 %v3062_v60, 16  ;;  %v1230_v39 = vsel %vm3834_vm2, %v1225_v24, %v1229_v62  ;;  %v3100_v24 = vld [vmem:[%s5037_s0 + $0x8] sm:$0xe] }
  0x25   :  { %v146_v47 = vrot.slane %v145_v26, 4  ;;  %v1234_v48 = vrot.slane %v1232_v32, 4  ;;  %v1241_v53 = vshll.u32 %v4006_v12, 16  ;;  %v3084_v56 = vcombine.low %v1216_v18, %v1230_v39 }
  0x26   :  { %v159_v54 = vor.u32 %v158_v34, %v155_v33  ;;  %v1237_v57 = vrot.slane %v1235_v42, 5  ;;  %v1246_v58 = vshrl.u32 %v3064_v31, 16  ;;  %v1249_v62 = vshll.u32 %v3064_v31, 16  ;;  %v3101_v34 = vld [vmem:[%s5037_s0 + $0x10] sm:$0xe] }
  0x27   :  { %v151_v60 = vsel %vm3834_vm2, %v146_v47, %v150_v13  ;;  %v1243_v61 = vrot.slane %v1241_v53, 5  ;;  %v1255_v63 = vshll.u32 %v4020_v38, 16  ;;  %3463 = vmatprep.mubr.msk.bf16.mxu0 %vm318_vm3, %v3084_v56  ;;  %v167_v13 = vshrl.u32 %v4029_v36, 16  ;;  %v4065_v53 = vld [vmem:[%s5037_s0 + $0x60] sm:$0xf] }
  0x28   :  { %v160_v2 = vrot.slane %v159_v54, 4  ;;  %v1238_v3 = vor.u32 %v1237_v57, %v1234_v48  ;;  %v1248_v9 = vrot.slane %v1246_v58, 4  ;;  %v1251_v15 = vrot.slane %v1249_v62, 5 }
  0x29   :  { %v1257_v16 = vrot.slane %v1255_v63, 5  ;;  %v170_v20 = vshll.u32 %v4029_v36, 16  ;;  %v176_v18 = vshll.u32 %v4034_v59, 16  ;;  %v169_v32 = vrot.slane %v167_v13, 4  ;;  %v4086_v13 = vld [vmem:[%s5037_s0 + $0x64] sm:$0x1] }
  0x2a   :  { %v165_v26 = vsel %vm3834_vm2, %v160_v2, %v164_v37  ;;  %v1239_v31 = vrot.slane %v1238_v3, 4  ;;  %v181_v33 = vshrl.u32 %v4042_v1, 16  ;;  %v1252_v39 = vor.u32 %v1251_v15, %v1248_v9 }
  0x2b   :  { %v2949_v42 = vcombine.low %v151_v60, %v165_v26  ;;  %v172_v47 = vrot.slane %v170_v20, 5  ;;  %v178_v48 = vrot.slane %v176_v18, 5  ;;  %v184_v54 = vshll.u32 %v4042_v1, 16 }
  0x2c   :  { %v1244_v37 = vsel %vm3834_vm2, %v1239_v31, %v1243_v61  ;;  %v183_v56 = vrot.slane %v181_v33, 4  ;;  %v190_v57 = vshll.u32 %v4048_v10, 16  ;;  %v1253_v60 = vrot.slane %v1252_v39, 4  ;;  %v4081_v61 = vld [vmem:[%s5037_s0 + $0x68] sm:$0xf] }
  0x2d   :  { %3384 = vmatmul.mubr.msk.bf16.gmra.mrb[4].mxu1 %vm318_vm3, %v2949_v42  ;;  %v173_v62 = vor.u32 %v172_v47, %v169_v32  ;;  %v3116_v63 = vrot.slane %v3100_v24, 9  ;;  %v3117_v2 = vrot.slane %v3101_v34, 9  ;;  %v186_v3 = vrot.slane %v184_v54, 5  ;;  %v4103_v32 = vld [vmem:[%s5037_s0 + $0x6c] sm:$0x1] }
  0x2e   :  { %v192_v9 = vrot.slane %v190_v57, 5  ;;  %v195_v15 = vshrl.u32 %v4065_v53, 16  ;;  %v198_v20 = vshll.u32 %v4065_v53, 16  ;;  %v1258_v18 = vsel %vm3834_vm2, %v1253_v60, %v1257_v16  ;;  %v3102_v16 = vld [vmem:[%s5037_s0 + $0x18] sm:$0xe] }
  0x2f   :  { %v174_v24 = vrot.slane %v173_v62, 4  ;;  %v1599_v26 = vsel %vm4073_vm6, %v3116_v63, %v1598_v49  ;;  %v1603_v31 = vsel %vm4073_vm6, %v3117_v2, %v1602_v11  ;;  %v3085_v33 = vcombine.low %v1244_v37, %v1258_v18  ;;  %v4114_v49 = vld [vmem:[%s5037_s0 + $0x70] sm:$0xf] }
  0x30   :  { %v187_v34 = vor.u32 %v186_v3, %v183_v56  ;;  %v3132_v25 = vcombine.low %v1599_v26, %v1603_v31  ;;  %v197_v42 = vrot.slane %v195_v15, 4  ;;  %v200_v39 = vrot.slane %v198_v20, 5  ;;  %v4138_v26 = vld [vmem:[%s5037_s0 + $0x78] sm:$0xf] }
  0x31   :  { %v179_v11 = vsel %vm3834_vm2, %v174_v24, %v178_v48  ;;  %v204_v47 = vshll.u32 %v4086_v13, 16  ;;  %v209_v37 = vshrl.u32 %v4081_v61, 16  ;;  %3464 = vmatmul.mubr.msk.bf16.gmra.mrb[4].mxu0 %vm318_vm3, %v3085_v33  ;;  %v212_v54 = vshll.u32 %v4081_v61, 16  ;;  %v4127_v48 = vld [vmem:[%s5037_s0 + $0x74] sm:$0x1] }
  0x32   :  { %v188_v56 = vrot.slane %v187_v34, 4  ;;  %v218_v57 = vshll.u32 %v4103_v32, 16  ;;  %v3118_v60 = vrot.slane %v3102_v16, 9  ;;  %3479 = vmatprep.mubr.msk.bf16.mxu0 %vm318_vm3, %v3132_v25  ;;  %v201_v62 = vor.u32 %v200_v39, %v197_v42 }
  0x33   :  { %v206_v63 = vrot.slane %v204_v47, 5  ;;  %v211_v2 = vrot.slane %v209_v37, 4  ;;  %v3119_v3 = vrot.slane %v3103_v27, 9  ;;  %v214_v20 = vrot.slane %v212_v54, 5  ;;  %v3105_v47 = vld [vmem:[%s5037_s0 + $0x30] sm:$0xe] }
  0x34   :  { %v193_v15 = vsel %vm3834_vm2, %v188_v56, %v192_v9  ;;  %v220_v18 = vrot.slane %v218_v57, 5  ;;  %v1607_v24 = vsel %vm4073_vm6, %v3118_v60, %v1606_v46  ;;  %v202_v16 = vrot.slane %v201_v62, 4  ;;  %v4147_v9 = vld [vmem:[%s5037_s0 + $0x7c] sm:$0x1]  ;;  %v3703_v37 = vld [vmem:[%s5036_s1 + $0x68] sm:$0xff]  }
  0x35   :  { %v2950_v31 = vcombine.low %v179_v11, %v193_v15  ;;  %v1611_v33 = vsel %vm4073_vm6, %v3119_v3, %v1610_v52  ;;  %v223_v8 = vshrl.u32 %v4114_v49, 16  ;;  %v215_v46 = vor.u32 %v214_v20, %v211_v2  ;;  %v4170_v62 = vld [vmem:[%s5037_s0 + $0x80] sm:$0xf]  ;;  %v4176_v20 = vld [vmem:[%s5037_s0 + $0x84] sm:$0x1] }
  0x36   :  { %v3133_v34 = vcombine.low %v1607_v24, %v1611_v33  ;;  %v226_v25 = vshll.u32 %v4114_v49, 16  ;;  %v232_v42 = vshll.u32 %v4127_v48, 16  ;;  %v207_v52 = vsel %vm3834_vm2, %v202_v16, %v206_v63 }
  0x37   :  { %3387 = vmatprep.mubr.msk.bf16.mxu1 %vm318_vm3, %v2950_v31  ;;  %v225_v27 = vrot.slane %v223_v8, 4  ;;  %v237_v11 = vshrl.u32 %v4138_v26, 16  ;;  %v240_v39 = vshll.u32 %v4138_v26, 16  ;;  %v216_v56 = vrot.slane %v215_v46, 4  ;;  %v4184_v8 = vld [vmem:[%s5037_s0 + $0x88] sm:$0xf] }
  0x38   :  { %v228_v54 = vrot.slane %v226_v25, 5  ;;  %v234_v57 = vrot.slane %v232_v42, 5  ;;  %v246_v60 = vshll.u32 %v4147_v9, 16  ;;  %v3120_v3 = vrot.slane %v3104_v14, 9  ;;  %v4201_v14 = vld [vmem:[%s5036_s1 + $0x70] sm:$0xff]  }
  0x39   :  { %v239_v63 = vrot.slane %v237_v11, 4  ;;  %v242_v2 = vrot.slane %v240_v39, 5  ;;  %v1614_v15 = vrot.slane %v3940_v0, 5  ;;  %v221_v24 = vsel %vm3834_vm2, %v216_v56, %v220_v18  ;;  %3480 = vmatmul.mubr.msk.bf16.vlgmr.msra.gmra.mrb[0].mxu0 %vm318_vm3, %v3133_v34  ;;  %v4193_v18 = vld [vmem:[%s5037_s0 + $0x8c] sm:$0x1] }
  0x3a   :  { %v229_v31 = vor.u32 %v228_v54, %v225_v27  ;;  %v248_v16 = vrot.slane %v246_v60, 5  ;;  %v3121_v33 = vrot.slane %v3105_v47, 9  ;;  %v2951_v46 = vcombine.low %v207_v52, %v221_v24  ;;  %3496 = vmatpush3.bf16.msra.mxu0 %v4001_v22  ;;  %v3106_v34 = vld [vmem:[%s5037_s0 + $0x38] sm:$0xe]  ;;  %v3107_v11 = vld [vmem:[%s5037_s0 + $0x40] sm:$0xe] }
  0x3b   :  { %v243_v0 = vor.u32 %v242_v2, %v239_v63  ;;  %v1615_v25 = vsel %vm4073_vm6, %v3120_v3, %v1614_v15  ;;  %v1618_v42 = vrot.slane %v3958_v21, 5  ;;  %v251_v52 = vshrl.u32 %v4170_v62, 16  ;;  %3497 = vmatprep.subr.bf16.mxu0 %v3703_v37  ;;  %v3067_v60 = vld [vmem:[%s5037_s0 + $0x5c] sm:$0x1]  ;;  %v3108_v24 = vld [vmem:[%s5037_s0 + $0x58] sm:$0xe] }
  0x3c   :  { %v230_v22 = vrot.slane %v229_v31, 4  ;;  %v254_v27 = vshll.u32 %v4170_v62, 16  ;;  %v260_v21 = vshll.u32 %v4176_v20, 16  ;;  %3388 = vmatmul.mubr.msk.bf16.gmra.mrb[8].mxu1 %vm318_vm3, %v2951_v46  ;;  %v265_v56 = vshrl.u32 %v4184_v8, 16  ;;  %v3109_v31 = vld [vmem:[%s5037_s0 + $0x60] sm:$0xe] }
  0x3d   :  { %v244_v39 = vrot.slane %v243_v0, 4  ;;  %v1619_v47 = vsel %vm4073_vm6, %v3121_v33, %v1618_v42  ;;  %v268_v54 = vshll.u32 %v4184_v8, 16  ;;  %v253_v3 = vrot.slane %v251_v52, 4 }
  0x3e   :  { %v235_v63 = vsel %vm3834_vm2, %v230_v22, %v234_v57  ;;  %v3134_v2 = vcombine.low %v1615_v25, %v1619_v47  ;;  %v256_v15 = vrot.slane %v254_v27, 5  ;;  %v262_v46 = vrot.slane %v260_v21, 5  ;;  %v4230_v57 = vld [vmem:[%s5037_s0 + $0x64] sm:$0x1]  ;;  %3498 = vmatpush3.bf16.msra.mxu0 %v3703_v37  ;;  %v3110_v37 = vld [vmem:[%s5037_s0 + $0x68] sm:$0xe] }
  0x3f   :  { %v249_v33 = vsel %vm3834_vm2, %v244_v39, %v248_v16  ;;  %v267_v0 = vrot.slane %v265_v56, 4  ;;  %v270_v42 = vrot.slane %v268_v54, 5  ;;  %v274_v52 = vshll.u32 %v4193_v18, 16  ;;  %3515 = vmatprep.subr.bf16.mxu0 %v4201_v14  ;;  %v4240_v56 = vld [vmem:[%s5037_s0 + $0x6c] sm:$0x1] }
  0x40   :  { %v2952_v25 = vcombine.low %v235_v63, %v249_v33  ;;  %3483 = vmatprep.mubr.msk.bf16.mxu0 %vm318_vm3, %v3134_v2  ;;  %v257_v22 = vor.u32 %v256_v15, %v253_v3  ;;  %v3122_v27 = vrot.slane %v3106_v34, 9  ;;  %v1622_v16 = vrot.slane %v4006_v12, 5  ;;  %v3111_v12 = vld [vmem:[%s5037_s0 + $0x70] sm:$0xe]  ;;  %v4256_v33 = vld [vmem:[%s5037_s0 + $0x74] sm:$0x1] }
  0x41   :  { %v271_v47 = vor.u32 %v270_v42, %v267_v0  ;;  %v3123_v21 = vrot.slane %v3107_v11, 9  ;;  %v1626_v39 = vrot.slane %v4020_v38, 5  ;;  %v276_v54 = vrot.slane %v274_v52, 5 }
  0x42   :  { %3391 = vmatprep.mubr.msk.bf16.mxu1 %vm318_vm3, %v2952_v25  ;;  %v258_v34 = vrot.slane %v257_v22, 4  ;;  %v3124_v63 = vrot.slane %v3108_v24, 9  ;;  %v1630_v2 = vrot.slane %v3067_v60, 5  ;;  %v1623_v11 = vsel %vm4073_vm6, %v3122_v27, %v1622_v16  ;;  %v3112_v60 = vld [vmem:[%s5037_s0 + $0x78] sm:$0xe] }
  0x43   :  { %v272_v38 = vrot.slane %v271_v47, 4  ;;  %v1627_v3 = vsel %vm4073_vm6, %v3123_v21, %v1626_v39  ;;  %v3125_v15 = vrot.slane %v3109_v31, 9  ;;  %v1634_v25 = vrot.slane %v4230_v57, 5  ;;  %v3075_v31 = vld [vmem:[%s5037_s0 + $0x7c] sm:$0x1] }
  0x44   :  { %v263_v24 = vsel %vm3834_vm2, %v258_v34, %v262_v46  ;;  %v3135_v0 = vcombine.low %v1623_v11, %v1627_v3  ;;  %v1631_v42 = vsel %vm4073_vm6, %v3124_v63, %v1630_v2  ;;  %v3077_v22 = vld [vmem:[%s5037_s0 + $0x84] sm:$0x1]  ;;  %v2965_v46 = vcombine.low %v3845_v40, %v3852_v45  ;;  %v3113_v27 = vld [vmem:[%s5037_s0 + $0x80] sm:$0xe]  ;;  %v3079_v47 = vld [vmem:[%s5037_s0 + $0x8c] sm:$0x1] }
  0x45   :  { %v277_v52 = vsel %vm3834_vm2, %v272_v38, %v276_v54  ;;  %v1635_v21 = vsel %vm4073_vm6, %v3125_v15, %v1634_v25  ;;  %v3126_v39 = vrot.slane %v3110_v37, 9  ;;  %v1638_v34 = vrot.slane %v4240_v56, 5  ;;  %v3114_v40 = vld [vmem:[%s5037_s0 + $0x88] sm:$0xe]  ;;  %v3115_v2 = vld [vmem:[%s5037_s0 + $0x90] sm:$0xe] }
  0x46   :  { %v2953_v16 = vcombine.low %v263_v24, %v277_v52  ;;  %3484 = vmatmul.mubr.msk.bf16.gmra.mrb[4].mxu0 %vm318_vm3, %v3135_v0  ;;  %v666_v45 = vrot.slane %v3791_v6, 5  ;;  %v3136_v54 = vcombine.low %v1631_v42, %v1635_v21  ;;  %v3127_v63 = vrot.slane %v3111_v12, 9  ;;  %v3081_v3 = vld [vmem:[%s5037_s0 + $0x94] sm:$0x1]  ;;  %v3708_v21 = vld [vmem:[%s5036_s1 + $0x28] sm:$0xff]  }
  0x47   :  { %v1639_v38 = vsel %vm4073_vm6, %v3126_v39, %v1638_v34  ;;  %v1642_v37 = vrot.slane %v4256_v33, 5  ;;  %v3128_v11 = vrot.slane %v3112_v60, 9  ;;  %v670_v6 = vrot.slane %v3796_v7, 5  ;;  %v613_v60 = vld [vmem:[%s5037_s0] sm:$0xe] }
  0x48   :  { %3392 = vmatmul.mubr.msk.bf16.gmra.mrb[12].mxu1 %vm318_vm3, %v2953_v16  ;;  %3487 = vmatprep.mubr.msk.bf16.mxu0 %vm318_vm3, %v3136_v54  ;;  %v1646_v12 = vrot.slane %v3075_v31, 5  ;;  %v3129_v15 = vrot.slane %v3113_v27, 9  ;;  %v1650_v24 = vrot.slane %v3077_v22, 5  ;;  %v3130_v42 = vrot.slane %v3114_v40, 9 }
  0x49   :  { %3399 = vmatprep.mubr.msk.bf16.mxu1 %vm318_vm3, %v2964_v23  ;;  %v1643_v0 = vsel %vm4073_vm6, %v3127_v63, %v1642_v37  ;;  %v1654_v25 = vrot.slane %v3079_v47, 5  ;;  %v3131_v7 = vrot.slane %v3115_v2, 9  ;;  %v1658_v22 = vrot.slane %v3081_v3, 5  ;;  %v618_v37 = vld [vmem:[%s5037_s0 + $0x28] sm:$0xe] }
  0x4a   :  { %v3137_v5 = vcombine.low %v1639_v38, %v1643_v0  ;;  %v1647_v23 = vsel %vm4073_vm6, %v3128_v11, %v1646_v12  ;;  %v1651_v31 = vsel %vm4073_vm6, %v3129_v15, %v1650_v24  ;;  %v674_v52 = vrot.slane %v3860_v50, 5  ;;  %v615_v50 = vld [vmem:[%s5037_s0 + $0x10] sm:$0xe] }
  0x4b   :  { %v678_v27 = vrot.slane %v3865_v51, 5  ;;  %v3138_v16 = vcombine.low %v1647_v23, %v1651_v31  ;;  %v2966_v47 = vcombine.low %v3898_v19, %v3904_v30  ;;  %v2982_v39 = vrot.slane %v613_v60, 9  ;;  %v616_v51 = vld [vmem:[%s5037_s0 + $0x18] sm:$0xe]  ;;  %v619_v0 = vld [vmem:[%s5037_s0 + $0x30] sm:$0xe] }
  0x4c   :  { %v1655_v34 = vsel %vm4073_vm6, %v3130_v42, %v1654_v25  ;;  %v2983_v40 = vrot.slane %v614_v4, 9  ;;  %v682_v19 = vrot.slane %v3911_v35, 5  ;;  %v1659_v30 = vsel %vm4073_vm6, %v3131_v7, %v1658_v22  ;;  %v617_v35 = vld [vmem:[%s5037_s0 + $0x20] sm:$0xe]  ;;  %v3709_v12 = vld [vmem:[%s5037_s0 + $0x10] ss:$8 sps:$4 sm:$0xff]  }
  0x4d   :  { %v4340_v54 = vsel %vm4073_vm6, %v2982_v39, %v666_v45  ;;  %v2984_v63 = vrot.slane %v615_v50, 9  ;;  %v2985_v2 = vrot.slane %v616_v51, 9  ;;  %v2987_v24 = vrot.slane %v618_v37, 9  ;;  %v620_v25 = vld [vmem:[%s5037_s0 + $0x38] sm:$0xe] }
  0x4e   :  { %3488 = vmatmul.mubr.msk.bf16.gmra.mrb[8].mxu0 %vm318_vm3, %v3137_v5  ;;  %v4345_v38 = vsel %vm4073_vm6, %v2983_v40, %v670_v6  ;;  %v2986_v6 = vrot.slane %v617_v35, 9  ;;  %v686_v60 = vrot.slane %v3918_v41, 5  ;;  %v2988_v7 = vrot.slane %v619_v0, 9  ;;  %v3186_v40 = vld [vmem:[%s5037_s0 + $0x18] sm:$0xf] }
  0x4f   :  { %3491 = vmatprep.mubr.msk.bf16.mxu0 %vm318_vm3, %v3138_v16  ;;  %v2998_v45 = vcombine.low %v4340_v54, %v4345_v38  ;;  %v4364_v11 = vsel %vm4073_vm6, %v2984_v63, %v674_v52  ;;  %v4368_v3 = vsel %vm4073_vm6, %v2985_v2, %v678_v27  ;;  %v690_v4 = vrot.slane %v3977_v44, 5  ;;  %v3719_v35 = vld [vmem:[%s5036_s1 + $0x78] sm:$0xff]  }
  0x50   :  { %3400 = vmatmul.mubr.msk.bf16.vlgmr.msra.gmra.mrb[0].mxu1 %vm318_vm3, %v2965_v46  ;;  %v4360_v46 = vld [vmem:[%s5036_s1 + $0x30] sm:$0xff]   ;;  %v2999_v15 = vcombine.low %v4364_v11, %v4368_v3  ;;  %v4381_v42 = vsel %vm4073_vm6, %v2986_v6, %v682_v19  ;;  %v694_v5 = vrot.slane %v3984_v55, 5  ;;  %v2967_v41 = vcombine.low %v3964_v29, %v3972_v43  ;;  %v622_v43 = vld [vmem:[%s5037_s0 + $0x58] sm:$0xe]  ;;  %v4642_v11 = vld [vmem:[%s5037_s0 + $0x64] sm:$0x1] }
  0x51   :  { %3416 = vmatpush3.bf16.msra.mxu1 %v3951_v17  ;;  %3403 = vmatprep.mubr.msk.bf16.mxu1 %vm318_vm3, %v2966_v47  ;;  %v3139_v17 = vcombine.low %v1655_v34, %v1659_v30  ;;  %v4392_v23 = vsel %vm4073_vm6, %v2987_v24, %v686_v60  ;;  %v2989_v31 = vrot.slane %v620_v25, 9  ;;  %v698_v22 = vrot.slane %v4034_v59, 5  ;;  %v621_v29 = vld [vmem:[%s5037_s0 + $0x50] sm:$0xe]  ;;  %v4437_v34 = vld [vmem:[%s5037_s0 + $0x14] sm:$0x1] }
  0x52   :  { %3417 = vmatprep.subr.bf16.mxu1 %v3708_v21  ;;  %v2968_v52 = vcombine.low %v4029_v36, %v4042_v1  ;;  %v3000_v27 = vcombine.low %v4381_v42, %v4392_v23  ;;  %v4401_v44 = vsel %vm4073_vm6, %v2988_v7, %v690_v4  ;;  %v2990_v36 = vrot.slane %v621_v29, 9  ;;  %v3184_v47 = vld [vmem:[%s5037_s0 + $0x10] sm:$0xf]  ;;  %v4448_v30 = vld [vmem:[%s5037_s0 + $0x1c] sm:$0x1] }
  0x53   :  { %v4413_v55 = vsel %vm4073_vm6, %v2989_v31, %v694_v5  ;;  %v2991_v59 = vrot.slane %v622_v43, 9  ;;  %v702_v1 = vrot.slane %v4048_v10, 5  ;;  %v2080_v50 = vshrl.u32 %v3184_v47, 16  ;;  %v623_v60 = vld [vmem:[%s5037_s0 + $0x60] sm:$0xe] }
  0x54   :  { %v3001_v16 = vcombine.low %v4401_v44, %v4413_v55  ;;  %v4428_v39 = vsel %vm4073_vm6, %v2990_v36, %v698_v22  ;;  %v2083_v51 = vshll.u32 %v3184_v47, 16  ;;  %v2094_v63 = vshrl.u32 %v3186_v40, 16  ;;  %v624_v4 = vld [vmem:[%s5037_s0 + $0x68] sm:$0xe]  ;;  %v625_v29 = vld [vmem:[%s5037_s0 + $0x70] sm:$0xe] }
  0x55   :  { %3418 = vmatpush3.bf16.msra.mxu1 %v3708_v21  ;;  %v3712_v21 = vld [vmem:[%s5037_s0 + $0x20] ss:$8 sps:$4 sm:$0xff]   ;;  %v4432_v10 = vsel %vm4073_vm6, %v2991_v59, %v702_v1  ;;  %v2097_v2 = vshll.u32 %v3186_v40, 16  ;;  %v2082_v37 = vrot.slane %v2080_v50, 4  ;;  %v2089_v24 = vshll.u32 %v4437_v34, 16 }
  0x56   :  { %3492 = vmatmul.mubr.msk.bf16.gmra.mrb[12].mxu0 %vm318_vm3, %v3139_v17  ;;  %3435 = vmatprep.subr.bf16.mxu1 %v4360_v46  ;;  %v3002_v19 = vcombine.low %v4428_v39, %v4432_v10  ;;  %v2085_v6 = vrot.slane %v2083_v51, 5  ;;  %v706_v17 = vrot.slane %v4086_v13, 5  ;;  %v710_v0 = vrot.slane %v4103_v32, 5  ;;  %v3716_v43 = vld [vmem:[%s5037_s0 + $0x40] ss:$8 sps:$4 sm:$0xff]  }
  0x57   :  { %3499 = vmatprep.mubr.msk.bf16.mxu0 %vm318_vm3, %v3709_v12  ;;  %v3714_v12 = vld [vmem:[%s5037_s0 + $0x30] ss:$8 sps:$4 sm:$0xff]   ;;  %v2969_v25 = vcombine.low %v4065_v53, %v4081_v61  ;;  %v2970_v7 = vcombine.low %v4114_v49, %v4138_v26  ;;  %v2103_v13 = vshll.u32 %v4448_v30, 16  ;;  %v2992_v5 = vrot.slane %v623_v60, 9  ;;  %v3190_v49 = vld [vmem:[%s5037_s0 + $0x28] sm:$0xf] }
  0x58   :  { %3404 = vmatmul.mubr.msk.bf16.gmra.mrb[4].mxu1 %vm318_vm3, %v2967_v41  ;;  %v3188_v41 = vld [vmem:[%s5037_s0 + $0x20] sm:$0xf]  ;;  %v2086_v31 = vor.u32 %v2085_v6, %v2082_v37  ;;  %v2096_v22 = vrot.slane %v2094_v63, 4  ;;  %v2099_v32 = vrot.slane %v2097_v2, 5  ;;  %v4506_v1 = vld [vmem:[%s5037_s0 + $0x24] sm:$0x1] }
  0x59   :  { %3407 = vmatprep.mubr.msk.bf16.mxu1 %vm318_vm3, %v2968_v52  ;;  %v2993_v52 = vrot.slane %v624_v4, 9  ;;  %v4476_v53 = vsel %vm4073_vm6, %v2992_v5, %v706_v17  ;;  %v2108_v26 = vshrl.u32 %v3188_v41, 16  ;;  %v4499_v36 = vld [vmem:[%s5036_s1 + $0x80] sm:$0xff]   ;;  %v2111_v47 = vshll.u32 %v3188_v41, 16  ;;  %v3192_v51 = vld [vmem:[%s5037_s0 + $0x30] sm:$0xf] }
  0x5a   :  { %v2100_v40 = vor.u32 %v2099_v32, %v2096_v22  ;;  %v4516_v50 = vrot.slane %v2103_v13, 5  ;;  %v2122_v63 = vshrl.u32 %v3190_v49, 16  ;;  %v2125_v2 = vshll.u32 %v3190_v49, 16  ;;  %v3194_v17 = vld [vmem:[%s5037_s0 + $0x38] sm:$0xf] }
  0x5b   :  { %v4482_v61 = vsel %vm4073_vm6, %v2993_v52, %v710_v0  ;;  %v2994_v37 = vrot.slane %v625_v29, 9  ;;  %v714_v6 = vrot.slane %v4127_v48, 5  ;;  %v2117_v60 = vshll.u32 %v4506_v1, 16  ;;  %v4534_v48 = vld [vmem:[%s5037_s0 + $0x2c] sm:$0x1] }
  0x5c   :  { %v3003_v59 = vcombine.low %v4476_v53, %v4482_v61  ;;  %v2136_v4 = vshrl.u32 %v3192_v51, 16  ;;  %v2101_v5 = vrot.slane %v2100_v40, 4  ;;  %v627_v22 = vld [vmem:[%s5037_s0 + $0x80] sm:$0xe]  ;;  %v2124_v52 = vrot.slane %v2122_v63, 4 }
  0x5d   :  { %v4538_v13 = vsel %vm4073_vm6, %v2994_v37, %v714_v6  ;;  %v2127_v49 = vrot.slane %v2125_v2, 5  ;;  %v628_v29 = vld [vmem:[%s5037_s0 + $0x88] sm:$0xe]  ;;  %v2996_v63 = vrot.slane %v627_v22, 9  ;;  %v722_v2 = vrot.slane %v4176_v20, 5 }
  0x5e   :  { %3500 = vmatmul.mubr.msk.bf16.vlgmr.msra.gmra.mrb[0].mxu0 %vm318_vm3, %v3712_v21  ;;  %v4514_v21 = vrot.slane %v2089_v24, 5  ;;  %v2110_v24 = vrot.slane %v2108_v26, 4  ;;  %v2131_v37 = vshll.u32 %v4534_v48, 16  ;;  %v4578_v6 = vld [vmem:[%s5037_s0 + $0x3c] sm:$0x1]  ;;  %v2106_v54 = vsel %vm3834_vm2, %v2101_v5, %v4516_v50 }
  0x5f   :  { %3516 = vmatpush3.bf16.msra.mxu0 %v4201_v14  ;;  %3503 = vmatprep.mubr.msk.bf16.mxu0 %vm318_vm3, %v3714_v12  ;;  %v2971_v14 = vcombine.low %v4170_v62, %v4184_v8  ;;  %v626_v62 = vld [vmem:[%s5037_s0 + $0x78] sm:$0xe]  ;;  %v4512_v8 = vrot.slane %v2086_v31, 4  ;;  %v3718_v12 = vld [vmem:[%s5037_s0 + $0x60] ss:$8 sps:$4 sm:$0xff]   ;;  %v2150_v31 = vshrl.u32 %v3194_v17, 16  ;;  %v2128_v38 = vor.u32 %v2127_v49, %v2124_v52 }
  0x60   :  { %3408 = vmatmul.mubr.msk.bf16.gmra.mrb[8].mxu1 %vm318_vm3, %v2969_v25  ;;  %3517 = vmatprep.subr.bf16.mxu0 %v3719_v35  ;;  %v2995_v0 = vrot.slane %v626_v62, 9  ;;  %v718_v25 = vrot.slane %v4147_v9, 5  ;;  %v4547_v9 = vld [vmem:[%s5037_s0 + $0x34] sm:$0x1]  ;;  %v2138_v62 = vrot.slane %v2136_v4, 4  ;;  %v2159_v22 = vshll.u32 %v4578_v6, 16 }
  0x61   :  { %3411 = vmatprep.mubr.msk.bf16.mxu1 %vm318_vm3, %v2970_v7  ;;  %v2113_v7 = vrot.slane %v2111_v47, 5  ;;  %v2092_v32 = vsel %vm3834_vm2, %v4512_v8, %v4514_v21  ;;  %v3196_v47 = vld [vmem:[%s5037_s0 + $0x40] sm:$0xf]  ;;  %v2153_v8 = vshll.u32 %v3194_v17, 16  ;;  %v3720_v20 = vld [vmem:[%s5037_s0 + $0x70] ss:$8 sps:$4 sm:$0xff]  }
  0x62   :  { %v4542_v41 = vsel %vm4073_vm6, %v2995_v0, %v718_v25  ;;  %v2164_v50 = vshrl.u32 %v3196_v47, 16  ;;  %v3200_v4 = vld [vmem:[%s5037_s0 + $0x60] sm:$0xf]  ;;  %v4616_v49 = vld [vmem:[%s5037_s0 + $0x44] sm:$0x1]  ;;  %vm2938_vm8 = vcmask 785408  }
  0x63   :  { %3518 = vmatpush3.bf16.msra.mxu0 %v3719_v35  ;;  %v2139_v35 = vshll.u32 %v3192_v51, 16  ;;  %v3004_v26 = vcombine.low %v4538_v13, %v4542_v41  ;;  %v2114_v21 = vor.u32 %v2113_v7, %v2110_v24  ;;  %v2152_v51 = vrot.slane %v2150_v31, 4  ;;  %v3212_v39 = vld [vmem:[%s5037_s0 + $0x90] sm:$0xf] }
  0x64   :  { %3535 = vmatprep.subr.bf16.mxu0 %v4499_v36  ;;  %v2155_v17 = vrot.slane %v2153_v8, 5  ;;  %v4590_v24 = vsel %vm4073_vm6, %v2996_v63, %v722_v2  ;;  %v2167_v7 = vshll.u32 %v3196_v47, 16  ;;  %v2166_v47 = vrot.slane %v2164_v50, 4 }
  0x65   :  { %v2141_v40 = vrot.slane %v2139_v35, 5  ;;  %v3723_v35 = vld [vmem:[%s5036_s1 + $0x38] sm:$0xff]   ;;  %v4608_v5 = vrot.slane %v2114_v21, 4  ;;  %v3202_v21 = vld [vmem:[%s5037_s0 + $0x68] sm:$0xf]  ;;  %v2129_v63 = vrot.slane %v2128_v38, 4 }
  0x66   :  { %3504 = vmatmul.mubr.msk.bf16.gmra.mrb[4].mxu0 %vm318_vm3, %v3716_v43  ;;  %v4566_v43 = vrot.slane %v2117_v60, 5  ;;  %v3198_v60 = vld [vmem:[%s5037_s0 + $0x48] sm:$0xf]  ;;  %v2156_v31 = vor.u32 %v2155_v17, %v2152_v51  ;;  %v2192_v51 = vshrl.u32 %v3200_v4, 16  ;;  %v2161_v38 = vrot.slane %v2159_v22, 5 }
  0x67   :  { %3507 = vmatprep.mubr.msk.bf16.mxu0 %vm318_vm3, %v3718_v12  ;;  %v2997_v12 = vrot.slane %v628_v29, 9  ;;  %v2142_v0 = vor.u32 %v2141_v40, %v2138_v62  ;;  %v2133_v29 = vrot.slane %v2131_v37, 5  ;;  %v2169_v62 = vrot.slane %v2167_v7, 5  ;;  %v3722_v37 = vld [vmem:[%s5037_s0 + $0x90] ss:$8 sps:$4 sm:$0xff]  }
  0x68   :  { %3412 = vmatmul.mubr.msk.bf16.gmra.mrb[12].mxu1 %vm318_vm3, %v2971_v14  ;;  %v726_v14 = vrot.slane %v4193_v18, 5  ;;  %v3721_v18 = vld [vmem:[%s5037_s0 + $0x80] ss:$8 sps:$4 sm:$0xff]   ;;  %v2178_v40 = vshrl.u32 %v3198_v60, 16  ;;  %v2181_v8 = vshll.u32 %v3198_v60, 16  ;;  %v2157_v60 = vrot.slane %v2156_v31, 4 }
  0x69   :  { %3419 = vmatprep.mubr.msk.bf16.mxu1 %vm318_vm3, %v2998_v45  ;;  %v2145_v45 = vshll.u32 %v4547_v9, 16  ;;  %v2143_v2 = vrot.slane %v2142_v0, 4  ;;  %v2170_v3 = vor.u32 %v2169_v62, %v2166_v47  ;;  %v2194_v0 = vrot.slane %v2192_v51, 4  ;;  %v4666_v31 = vld [vmem:[%s5037_s0 + $0x6c] sm:$0x1] }
  0x6a   :  { %v4600_v25 = vsel %vm4073_vm6, %v2997_v12, %v726_v14  ;;  %v2195_v12 = vshll.u32 %v3200_v4, 16  ;;  %v3216_v14 = vcombine.low %v2092_v32, %v2106_v54  ;;  %v2180_v32 = vrot.slane %v2178_v40, 4  ;;  %v3204_v54 = vld [vmem:[%s5037_s0 + $0x70] sm:$0xf] }
  0x6b   :  { %v3005_v52 = vcombine.low %v4590_v24, %v4600_v25  ;;  %v2147_v17 = vrot.slane %v2145_v45, 5  ;;  %v4637_v45 = vld [vmem:[%s5037_s0 + $0x4c] sm:$0x1]  ;;  %v2209_v7 = vshll.u32 %v3202_v21, 16  ;;  %v2134_v42 = vsel %vm3834_vm2, %v2129_v63, %v2133_v29 }
  0x6c   :  { %v2197_v50 = vrot.slane %v2195_v12, 5  ;;  %v2220_v47 = vshrl.u32 %v3204_v54, 16  ;;  %v2223_v62 = vshll.u32 %v3204_v54, 16  ;;  %v2201_v29 = vshll.u32 %v4642_v11, 16  ;;  %v3210_v12 = vld [vmem:[%s5037_s0 + $0x88] sm:$0xf] }
  0x6d   :  { %v2148_v23 = vsel %vm3834_vm2, %v2143_v2, %v2147_v17  ;;  %v2211_v22 = vrot.slane %v2209_v7, 5  ;;  %v4675_v51 = vrot.slane %v2170_v3, 4  ;;  %v4680_v2 = vld [vmem:[%s5036_s1 + $0x40] sm:$0xff]   ;;  %v2215_v3 = vshll.u32 %v4666_v31, 16 }
  0x6e   :  { %3508 = vmatmul.mubr.msk.bf16.gmra.mrb[8].mxu0 %vm318_vm3, %v3720_v20  ;;  %v2120_v20 = vsel %vm3834_vm2, %v4608_v5, %v4566_v43  ;;  %v2206_v43 = vshrl.u32 %v3202_v21, 16  ;;  %v2162_v5 = vsel %vm3834_vm2, %v2157_v60, %v2161_v38  ;;  %v3208_v21 = vld [vmem:[%s5037_s0 + $0x80] sm:$0xf]  ;;  %v2262_v7 = vshrl.u32 %v3210_v12, 16 }
  0x6f   :  { %3511 = vmatprep.mubr.msk.bf16.mxu0 %vm318_vm3, %v3721_v18  ;;  %v2183_v18 = vrot.slane %v2181_v8, 5  ;;  %v3217_v60 = vcombine.low %v2120_v20, %v2134_v42  ;;  %v2222_v20 = vrot.slane %v2220_v47, 4  ;;  %v2248_v54 = vshrl.u32 %v3208_v21, 16  ;;  %v3726_v42 = vld [vmem:[%s5036_s1 + $0x88] sm:$0xff]  }
  0x70   :  { %3420 = vmatmul.mubr.msk.bf16.vlgmr.msra.gmra.mrb[0].mxu1 %vm318_vm3, %v2999_v15  ;;  %v2173_v15 = vshll.u32 %v4616_v49, 16  ;;  %v2208_v4 = vrot.slane %v2206_v43, 4  ;;  %v2225_v43 = vrot.slane %v2223_v62, 5  ;;  %v2264_v47 = vrot.slane %v2262_v7, 4 }
  0x71   :  { %3436 = vmatpush3.bf16.msra.mxu1 %v4360_v46  ;;  %3423 = vmatprep.mubr.msk.bf16.mxu1 %vm318_vm3, %v3000_v27  ;;  %v3206_v46 = vld [vmem:[%s5037_s0 + $0x78] sm:$0xf]  ;;  %v2187_v27 = vshll.u32 %v4637_v45, 16  ;;  %v2184_v63 = vor.u32 %v2183_v18, %v2180_v32  ;;  %v4696_v32 = vld [vmem:[%s5037_s0 + $0x7c] sm:$0x1]  ;;  %v2265_v62 = vshll.u32 %v3210_v12, 16 }
  0x72   :  { %3437 = vmatprep.subr.bf16.mxu1 %v3723_v35  ;;  %v4668_v40 = vrot.slane %v2173_v15, 5  ;;  %v2234_v8 = vshrl.u32 %v3206_v46, 16  ;;  %v2237_v17 = vshll.u32 %v3206_v46, 16  ;;  %v2212_v38 = vor.u32 %v2211_v22, %v2208_v4  ;;  %v4691_v15 = vld [vmem:[%s5037_s0 + $0x74] sm:$0x1] }
  0x73   :  { %v2185_v55 = vrot.slane %v2184_v63, 4  ;;  %v2203_v46 = vrot.slane %v2201_v29, 5  ;;  %v4721_v4 = vld [vmem:[%s5037_s0 + $0x84] sm:$0x1]  ;;  %v2226_v29 = vor.u32 %v2225_v43, %v2222_v20  ;;  %v2279_v63 = vshll.u32 %v3212_v39, 16 }
  0x74   :  { %v2236_v18 = vrot.slane %v2234_v8, 4  ;;  %v2176_v44 = vsel %vm3834_vm2, %v4675_v51, %v4668_v40  ;;  %v2213_v10 = vrot.slane %v2212_v38, 4  ;;  %v3214_v40 = vld [vmem:[%s5037_s0 + $0x98] sm:$0xf]  ;;  %v2276_v51 = vshrl.u32 %v3212_v39, 16 }
  0x75   :  { %3438 = vmatpush3.bf16.msra.mxu1 %v3723_v35  ;;  %v2198_v35 = vor.u32 %v2197_v50, %v2194_v0  ;;  %v2239_v0 = vrot.slane %v2237_v17, 5  ;;  %v2251_v50 = vshll.u32 %v3208_v21, 16  ;;  %v4729_v21 = vld [vmem:[%s5037_s0 + $0x8c] sm:$0x1]  ;;  %v2267_v12 = vrot.slane %v2265_v62, 5 }
  0x76   :  { %3512 = vmatmul.mubr.msk.bf16.gmra.mrb[12].mxu0 %vm318_vm3, %v3722_v37  ;;  %3555 = vmatprep.subr.bf16.mxu1 %v4680_v2  ;;  %v3218_v37 = vcombine.low %v2148_v23, %v2162_v5  ;;  %v2229_v23 = vshll.u32 %v4691_v15, 16  ;;  %v2250_v5 = vrot.slane %v2248_v54, 4  ;;  %v2290_v38 = vshrl.u32 %v3214_v40, 16  ;;  %v4759_v39 = vld [vmem:[%s5037_s0 + $0x9c] sm:$0x1] }
  0x77   :  { %3519 = vmatprep.mubr.msk.bf16.mxu0 %vm318_vm3, %v3216_v14  ;;  %v2189_v14 = vrot.slane %v2187_v27, 5  ;;  %v2243_v27 = vshll.u32 %v4696_v32, 16  ;;  %v2253_v22 = vrot.slane %v2251_v50, 5  ;;  %v2240_v8 = vor.u32 %v2239_v0, %v2236_v18 }
  0x78   :  { %3424 = vmatmul.mubr.msk.bf16.gmra.mrb[4].mxu1 %vm318_vm3, %v3001_v16  ;;  %v2199_v16 = vrot.slane %v2198_v35, 4  ;;  %v2231_v20 = vrot.slane %v2229_v23, 5  ;;  %v2257_v54 = vshll.u32 %v4721_v4, 16  ;;  %v2271_v18 = vshll.u32 %v4729_v21, 16 }
  0x79   :  { %3427 = vmatprep.mubr.msk.bf16.mxu1 %vm318_vm3, %v3002_v19  ;;  %v2217_v19 = vrot.slane %v2215_v3, 5  ;;  %v2190_v35 = vsel %vm3834_vm2, %v2185_v55, %v2189_v14  ;;  %v2245_v43 = vrot.slane %v2243_v27, 5  ;;  %v2268_v14 = vor.u32 %v2267_v12, %v2264_v47  ;;  %v3235_v47 = vld [vmem:[%s5037_s0 + $0x18] sm:$0xe] }
  0x7a   :  { %v2204_v17 = vsel %vm3834_vm2, %v2199_v16, %v2203_v46  ;;  %v2227_v0 = vrot.slane %v2226_v29, 4  ;;  %v2241_v53 = vrot.slane %v2240_v8, 4  ;;  %v2278_v61 = vrot.slane %v2276_v51, 4  ;;  %v3236_v51 = vld [vmem:[%s5037_s0 + $0x20] sm:$0xe] }
  0x7b   :  { %v2218_v3 = vsel %vm3834_vm2, %v2213_v10, %v2217_v19  ;;  %v3219_v50 = vcombine.low %v2176_v44, %v2190_v35  ;;  %v2292_v7 = vrot.slane %v2290_v38, 4  ;;  %v1297_v16 = vshll.u32 %v4240_v56, 16  ;;  %v3725_v44 = vld [vmem:[%s5037_s0 + $0x8] ss:$8 sps:$4 sm:$0xff]  }
  0x7c   :  { %v3220_v46 = vcombine.low %v2204_v17, %v2218_v3  ;;  %v2269_v10 = vrot.slane %v2268_v14, 4  ;;  %v2273_v19 = vrot.slane %v2271_v18, 5  ;;  %v2232_v56 = vsel %vm3834_vm2, %v2227_v0, %v2231_v20  ;;  %v3238_v18 = vld [vmem:[%s5037_s0 + $0x30] sm:$0xe] }
  0x7d   :  { %v4777_v62 = vrot.slane %v1297_v16, 5  ;;  %v2530_v8 = vrot.slane %v4437_v34, 5  ;;  %v3237_v34 = vld [vmem:[%s5037_s0 + $0x28] sm:$0xe]  ;;  %v3251_v38 = vrot.slane %v3235_v47, 9  ;;  %v2534_v24 = vrot.slane %v4448_v30, 5 }
  0x7e   :  { %3520 = vmatmul.mubr.msk.bf16.vlgmr.msra.gmra.mrb[0].mxu0 %vm318_vm3, %v3217_v60  ;;  %v2254_v60 = vor.u32 %v2253_v22, %v2250_v5  ;;  %v2299_v5 = vshll.u32 %v4759_v39, 16  ;;  %v3234_v22 = vld [vmem:[%s5037_s0 + $0x10] sm:$0xe]  ;;  %v3252_v3 = vrot.slane %v3236_v51, 9  ;;  %v2538_v20 = vrot.slane %v4506_v1, 5  ;;  %v3735_v47 = vld [vmem:[%s5036_s1 + $0x48] sm:$0xff]  }
  0x7f   :  { %3536 = vmatpush3.bf16.msra.mxu0 %v4499_v36  ;;  %3523 = vmatprep.mubr.msk.bf16.mxu0 %vm318_vm3, %v3218_v37  ;;  %v4749_v36 = vld [vmem:[%s5037_s0 + $0x94] sm:$0x1]  ;;  %v2293_v37 = vshll.u32 %v3214_v40, 16  ;;  %v1311_v40 = vshll.u32 %v4256_v33, 16  ;;  %v2274_v33 = vsel %vm3834_vm2, %v2269_v10, %v2273_v19  ;;  %v3250_v12 = vrot.slane %v3234_v22, 9 }
  0x80   :  { %3428 = vmatmul.mubr.msk.bf16.gmra.mrb[8].mxu1 %vm318_vm3, %v3003_v59  ;;  %3537 = vmatprep.subr.bf16.mxu0 %v3726_v42  ;;  %v2281_v59 = vrot.slane %v2279_v63, 5  ;;  %v2285_v13 = vshll.u32 %v4749_v36, 16  ;;  %v2255_v41 = vrot.slane %v2254_v60, 4  ;;  %v3253_v60 = vrot.slane %v3237_v34, 9  ;;  %v3728_v30 = vld [vmem:[%s5037_s0 + $0x28] ss:$8 sps:$4 sm:$0xff]  }
  0x81   :  { %3431 = vmatprep.mubr.msk.bf16.mxu1 %vm318_vm3, %v3004_v26  ;;  %v2295_v55 = vrot.slane %v2293_v37, 5  ;;  %v2259_v26 = vrot.slane %v2257_v54, 5  ;;  %v2542_v14 = vrot.slane %v4534_v48, 5  ;;  %v3727_v37 = vld [vmem:[%s5037_s0 + $0x18] ss:$8 sps:$4 sm:$0xff]   ;;  %v2531_v48 = vsel %vm4073_vm6, %v3250_v12, %v2530_v8 }
  0x82   :  { %v2282_v23 = vor.u32 %v2281_v59, %v2278_v61  ;;  %v2287_v29 = vrot.slane %v2285_v13, 5  ;;  %v3066_v1 = vld [vmem:[%s5037_s0 + $0x58] sm:$0xf]  ;;  %v3068_v59 = vld [vmem:[%s5037_s0 + $0x60] sm:$0xf]  ;;  %v3254_v16 = vrot.slane %v3238_v18, 9 }
  0x83   :  { %3538 = vmatpush3.bf16.msra.mxu0 %v3726_v42  ;;  %v2246_v42 = vsel %vm3834_vm2, %v2241_v53, %v2245_v43  ;;  %v2296_v27 = vor.u32 %v2295_v55, %v2292_v7  ;;  %v2260_v35 = vsel %vm3834_vm2, %v2255_v41, %v2259_v26  ;;  %v4799_v43 = vrot.slane %v1311_v40, 5  ;;  %v3239_v61 = vld [vmem:[%s5037_s0 + $0x38] sm:$0xe]  ;;  %v3072_v13 = vld [vmem:[%s5037_s0 + $0x70] sm:$0xf] }
  0x84   :  { %v3221_v63 = vcombine.low %v2232_v56, %v2246_v42  ;;  %v2283_v17 = vrot.slane %v2282_v23, 4  ;;  %v3222_v54 = vcombine.low %v2260_v35, %v2274_v33  ;;  %v2535_v53 = vsel %vm4073_vm6, %v3251_v38, %v2534_v24  ;;  %v3241_v8 = vld [vmem:[%s5037_s0 + $0x48] sm:$0xe]  ;;  %v3730_v35 = vld [vmem:[%s5037_s0 + $0x58] ss:$8 sps:$4 sm:$0xff]  }
  0x85   :  { %v2297_v25 = vrot.slane %v2296_v27, 4  ;;  %v4834_v55 = vsel %vm4073_vm6, %v3252_v3, %v2538_v20  ;;  %v4843_v41 = vsel %vm4073_vm6, %v3253_v60, %v2542_v14  ;;  %v2550_v26 = vrot.slane %v4578_v6, 5  ;;  %v3729_v6 = vld [vmem:[%s5037_s0 + $0x38] ss:$8 sps:$4 sm:$0xff]   ;;  %v3243_v14 = vld [vmem:[%s5037_s0 + $0x68] sm:$0xe] }
  0x86   :  { %3524 = vmatmul.mubr.msk.bf16.gmra.mrb[4].mxu0 %vm318_vm3, %v3219_v50  ;;  %v2288_v0 = vsel %vm3834_vm2, %v2283_v17, %v2287_v29  ;;  %v3070_v50 = vld [vmem:[%s5037_s0 + $0x68] sm:$0xf]  ;;  %v1260_v10 = vshrl.u32 %v3066_v1, 16  ;;  %v1263_v19 = vshll.u32 %v3066_v1, 16  ;;  %v1274_v56 = vshrl.u32 %v3068_v59, 16 }
  0x87   :  { %3527 = vmatprep.mubr.msk.bf16.mxu0 %vm318_vm3, %v3220_v46  ;;  %v2546_v46 = vrot.slane %v4547_v9, 5  ;;  %v1277_v42 = vshll.u32 %v3068_v59, 16  ;;  %v1288_v9 = vshrl.u32 %v3070_v50, 16  ;;  %v3266_v27 = vcombine.low %v2531_v48, %v2535_v53  ;;  %v3240_v29 = vld [vmem:[%s5037_s0 + $0x40] sm:$0xe] }
  0x88   :  { %3432 = vmatmul.mubr.msk.bf16.gmra.mrb[12].mxu1 %vm318_vm3, %v3005_v52  ;;  %v2301_v52 = vrot.slane %v2299_v5, 5  ;;  %v1291_v5 = vshll.u32 %v3070_v50, 16  ;;  %v1302_v22 = vshrl.u32 %v3072_v13, 16  ;;  %v3267_v40 = vcombine.low %v4834_v55, %v4843_v41 }
  0x89   :  { %3439 = vmatprep.mubr.msk.bf16.mxu1 %vm318_vm3, %v3725_v44  ;;  %v3255_v44 = vrot.slane %v3239_v61, 9  ;;  %v1290_v51 = vrot.slane %v1288_v9, 4  ;;  %v1262_v33 = vrot.slane %v1260_v10, 4  ;;  %v1265_v34 = vrot.slane %v1263_v19, 5 }
  0x8a   :  { %v2302_v7 = vsel %vm3834_vm2, %v2297_v25, %v2301_v52  ;;  %v1293_v17 = vrot.slane %v1291_v5, 5  ;;  %v1304_v12 = vrot.slane %v1302_v22, 4  ;;  %v1276_v24 = vrot.slane %v1274_v56, 4  ;;  %v3242_v52 = vld [vmem:[%s5037_s0 + $0x60] sm:$0xe] }
  0x8b   :  { %v3223_v23 = vcombine.low %v2288_v0, %v2302_v7  ;;  %v2551_v38 = vsel %vm4073_vm6, %v3255_v44, %v2550_v26  ;;  %v1279_v25 = vrot.slane %v1277_v42, 5  ;;  %v3256_v20 = vrot.slane %v3240_v29, 9  ;;  %v3244_v22 = vld [vmem:[%s5037_s0 + $0x70] sm:$0xe] }
  0x8c   :  { %v3257_v60 = vrot.slane %v3241_v8, 9  ;;  %v1294_v18 = vor.u32 %v1293_v17, %v1290_v51  ;;  %v1283_v0 = vshll.u32 %v4230_v57, 16  ;;  %v1266_v53 = vor.u32 %v1265_v34, %v1262_v33 }
  0x8d   :  { %v3258_v61 = vrot.slane %v3242_v52, 9  ;;  %v2562_v59 = vrot.slane %v4642_v11, 5  ;;  %v1280_v7 = vor.u32 %v1279_v25, %v1276_v24  ;;  %v3259_v57 = vrot.slane %v3243_v14, 9 }
  0x8e   :  { %3528 = vmatmul.mubr.msk.bf16.gmra.mrb[8].mxu0 %vm318_vm3, %v3221_v63  ;;  %v1305_v63 = vshll.u32 %v3072_v13, 16  ;;  %v1295_v50 = vrot.slane %v1294_v18, 4  ;;  %v2566_v55 = vrot.slane %v4666_v31, 5  ;;  %v1267_v56 = vrot.slane %v1266_v53, 4 }
  0x8f   :  { %3531 = vmatprep.mubr.msk.bf16.mxu0 %vm318_vm3, %v3222_v54  ;;  %v2554_v54 = vrot.slane %v4616_v49, 5  ;;  %v3074_v49 = vld [vmem:[%s5037_s0 + $0x78] sm:$0xf]  ;;  %v2563_v5 = vsel %vm4073_vm6, %v3258_v61, %v2562_v59  ;;  %v2570_v24 = vrot.slane %v4691_v15, 5  ;;  %v2574_v52 = vrot.slane %v4696_v32, 5 }
  0x90   :  { %3440 = vmatmul.mubr.msk.bf16.vlgmr.msra.gmra.mrb[0].mxu1 %vm318_vm3, %v3727_v37  ;;  %v1307_v3 = vrot.slane %v1305_v63, 5  ;;  %v2558_v37 = vrot.slane %v4637_v45, 5  ;;  %v3076_v45 = vld [vmem:[%s5037_s0 + $0x80] sm:$0xf]  ;;  %v1300_v11 = vsel %vm3834_vm2, %v1295_v50, %v4777_v62  ;;  %v1316_v41 = vshrl.u32 %v3074_v49, 16 }
  0x91   :  { %3557 = vmatpush3.bf16.msra.mxu1 %v4680_v2  ;;  %3443 = vmatprep.mubr.msk.bf16.mxu1 %vm318_vm3, %v3728_v30  ;;  %v4859_v2 = vsel %vm4073_vm6, %v3254_v16, %v2546_v46  ;;  %v3736_v30 = vld [vmem:[%s5037_s0 + $0x5c] sm:$0x1]  ;;  %v2555_v13 = vsel %vm4073_vm6, %v3256_v20, %v2554_v54  ;;  %v1319_v10 = vshll.u32 %v3074_v49, 16  ;;  %v1330_v19 = vshrl.u32 %v3076_v45, 16  ;;  %v3738_v32 = vld [vmem:[%s5037_s0 + $0x84] sm:$0x1] }
  0x92   :  { %3556 = vmatprep.subr.bf16.mxu1 %v3735_v47  ;;  %v1269_v1 = vshll.u32 %v3736_v30, 16  ;;  %v1308_v48 = vor.u32 %v1307_v3, %v1304_v12  ;;  %v3268_v46 = vcombine.low %v4859_v2, %v2551_v38  ;;  %v1333_v31 = vshll.u32 %v3076_v45, 16  ;;  %v3078_v2 = vld [vmem:[%s5037_s0 + $0x88] sm:$0xf] }
  0x93   :  { %v2559_v44 = vsel %vm4073_vm6, %v3257_v60, %v2558_v37  ;;  %v1281_v62 = vrot.slane %v1280_v7, 4  ;;  %v1318_v29 = vrot.slane %v1316_v41, 4  ;;  %v1321_v8 = vrot.slane %v1319_v10, 5  ;;  %v3247_v3 = vld [vmem:[%s5037_s0 + $0x88] sm:$0xe] }
  0x94   :  { %v1309_v16 = vrot.slane %v1308_v48, 4  ;;  %v1271_v42 = vrot.slane %v1269_v1, 5  ;;  %v1332_v51 = vrot.slane %v1330_v19, 4  ;;  %v1335_v63 = vrot.slane %v1333_v31, 5  ;;  %v3737_v37 = vld [vmem:[%s5037_s0 + $0x7c] sm:$0x1] }
  0x95   :  { %3558 = vmatpush3.bf16.msra.mxu1 %v3735_v47  ;;  %v3245_v47 = vld [vmem:[%s5037_s0 + $0x78] sm:$0xe]  ;;  %v3269_v33 = vcombine.low %v2555_v13, %v2559_v44  ;;  %v3260_v12 = vrot.slane %v3244_v22, 9  ;;  %v1344_v20 = vshrl.u32 %v3078_v2, 16  ;;  %v1347_v54 = vshll.u32 %v3078_v2, 16 }
  0x96   :  { %3532 = vmatmul.mubr.msk.bf16.gmra.mrb[12].mxu0 %vm318_vm3, %v3223_v23  ;;  %v1314_v26 = vsel %vm3834_vm2, %v1309_v16, %v4799_v43  ;;  %v3731_v23 = vld [vmem:[%s5037_s0 + $0x68] ss:$8 sps:$4 sm:$0xff]   ;;  %v2567_v43 = vsel %vm4073_vm6, %v3259_v57, %v2566_v55  ;;  %v1272_v34 = vsel %vm3834_vm2, %v1267_v56, %v1271_v42  ;;  %v3261_v25 = vrot.slane %v3245_v47, 9  ;;  %v3249_v31 = vld [vmem:[%s5037_s0 + $0x98] sm:$0xe] }
  0x97   :  { %3539 = vmatprep.mubr.msk.bf16.mxu0 %vm318_vm3, %v3266_v27  ;;  %v4907_v9 = vcombine.low %v1300_v11, %v1314_v26  ;;  %v1285_v27 = vrot.slane %v1283_v0, 5  ;;  %v3270_v17 = vcombine.low %v2563_v5, %v2567_v43  ;;  %v1322_v18 = vor.u32 %v1321_v8, %v1318_v29  ;;  %v3733_v61 = vld [vmem:[%s5037_s0 + $0x88] ss:$8 sps:$4 sm:$0xff]   ;;  %v3739_v26 = vld [vmem:[%s5037_s0 + $0x8c] sm:$0x1] }
  0x98   :  { %3444 = vmatmul.mubr.msk.bf16.gmra.mrb[4].mxu1 %vm318_vm3, %v3729_v6  ;;  %v3732_v6 = vld [vmem:[%s5037_s0 + $0x78] ss:$8 sps:$4 sm:$0xff]   ;;  %v1325_v30 = vshll.u32 %v3737_v37, 16  ;;  %v1336_v15 = vor.u32 %v1335_v63, %v1332_v51  ;;  %v1339_v1 = vshll.u32 %v3738_v32, 16  ;;  %v2578_v48 = vrot.slane %v4721_v4, 5 }
  0x99   :  { %3447 = vmatprep.mubr.msk.bf16.mxu1 %vm318_vm3, %v3730_v35  ;;  %v3080_v35 = vld [vmem:[%s5037_s0 + $0x90] sm:$0xf]  ;;  %v1286_v38 = vsel %vm3834_vm2, %v1281_v62, %v1285_v27  ;;  %v3263_v49 = vrot.slane %v3247_v3, 9  ;;  %v2582_v53 = vrot.slane %v4729_v21, 5  ;;  %v1346_v50 = vrot.slane %v1344_v20, 4 }
  0x9a   :  { %v1358_v60 = vshrl.u32 %v3080_v35, 16  ;;  %v1361_v14 = vshll.u32 %v3080_v35, 16  ;;  %v3086_v59 = vcombine.low %v1272_v34, %v1286_v38  ;;  %v1349_v45 = vrot.slane %v1347_v54, 5  ;;  %v3248_v19 = vld [vmem:[%s5037_s0 + $0x90] sm:$0xe] }
  0x9b   :  { %v1323_v55 = vrot.slane %v1322_v18, 4  ;;  %v1327_v16 = vrot.slane %v1325_v30, 5  ;;  %v1341_v13 = vrot.slane %v1339_v1, 5  ;;  %v2571_v4 = vsel %vm4073_vm6, %v3260_v12, %v2570_v24  ;;  %v3740_v42 = vld [vmem:[%s5037_s0 + $0x94] sm:$0x1] }
  0x9c   :  { %v1360_v7 = vrot.slane %v1358_v60, 4  ;;  %v1363_v57 = vrot.slane %v1361_v14, 5  ;;  %v2575_v21 = vsel %vm4073_vm6, %v3261_v25, %v2574_v52  ;;  %v2583_v41 = vsel %vm4073_vm6, %v3263_v49, %v2582_v53 }
  0x9d   :  { %v1353_v10 = vshll.u32 %v3739_v26, 16  ;;  %v1350_v44 = vor.u32 %v1349_v45, %v1346_v50  ;;  %v3271_v62 = vcombine.low %v2571_v4, %v2575_v21  ;;  %v1328_v27 = vsel %vm3834_vm2, %v1323_v55, %v1327_v16 }
  0x9e   :  { %3540 = vmatmul.mubr.msk.bf16.vlgmr.msra.gmra.mrb[0].mxu0 %vm318_vm3, %v3267_v40  ;;  %v3246_v40 = vld [vmem:[%s5037_s0 + $0x80] sm:$0xe]  ;;  %v1364_v56 = vor.u32 %v1363_v57, %v1360_v7  ;;  %v3264_v22 = vrot.slane %v3248_v19, 9  ;;  %v3265_v47 = vrot.slane %v3249_v31, 9  ;;  %v2590_v2 = vrot.slane %v4759_v39, 5 }
  0x9f   :  { %3543 = vmatprep.mubr.msk.bf16.mxu0 %vm318_vm3, %v3268_v46  ;;  %v3262_v0 = vrot.slane %v3246_v40, 9  ;;  %v1337_v46 = vrot.slane %v1336_v15, 4  ;;  %v1355_v29 = vrot.slane %v1353_v10, 5  ;;  %v1351_v51 = vrot.slane %v1350_v44, 4 }
  0xa0   :  { %3448 = vmatmul.mubr.msk.bf16.gmra.mrb[8].mxu1 %vm318_vm3, %v3731_v23  ;;  %v1367_v23 = vshll.u32 %v3740_v42, 16  ;;  %v1365_v63 = vrot.slane %v1364_v56, 4  ;;  %v2591_v34 = vsel %vm4073_vm6, %v3265_v47, %v2590_v2 }
  0xa1   :  { %3451 = vmatprep.mubr.msk.bf16.mxu1 %vm318_vm3, %v3732_v6  ;;  %v2579_v11 = vsel %vm4073_vm6, %v3262_v0, %v2578_v48  ;;  %v1342_v5 = vsel %vm3834_vm2, %v1337_v46, %v1341_v13  ;;  %v2586_v6 = vrot.slane %v4749_v36, 5  ;;  %v1356_v36 = vsel %vm3834_vm2, %v1351_v51, %v1355_v29 }
  0xa2   :  { %v3272_v43 = vcombine.low %v2579_v11, %v2583_v41  ;;  %v3088_v8 = vcombine.low %v1328_v27, %v1342_v5  ;;  %v1369_v35 = vrot.slane %v1367_v23, 5 }
  0xa4   :  { %v1370_v39 = vsel %vm3834_vm2, %v1365_v63, %v1369_v35 }
  0xa5   :  { %v3089_v12 = vcombine.low %v1356_v36, %v1370_v39 }
  0xa6   :  { %3544 = vmatmul.mubr.msk.bf16.gmra.mrb[4].mxu0 %vm318_vm3, %v3269_v33  ;;  %v2587_v33 = vsel %vm4073_vm6, %v3264_v22, %v2586_v6 }
  0xa7   :  { %3547 = vmatprep.mubr.msk.bf16.mxu0 %vm318_vm3, %v3270_v17  ;;  %v3273_v17 = vcombine.low %v2587_v33, %v2591_v34 }
  0xa8   :  { %3452 = vmatmul.mubr.msk.bf16.gmra.mrb[12].mxu1 %vm318_vm3, %v3733_v61 }
  0xa9   :  { %3467 = vmatprep.mubr.msk.bf16.mxu1 %vm318_vm3, %v3086_v59 }
  0xae   :  { %3548 = vmatmul.mubr.msk.bf16.gmra.mrb[8].mxu0 %vm318_vm3, %v3271_v62 }
  0xaf   :  { %3551 = vmatprep.mubr.msk.bf16.mxu0 %vm318_vm3, %v3272_v43 }
  0xb0   :  { %3468 = vmatmul.mubr.msk.bf16.vlgmr.msra.gmra.mrb[8].mxu1 %vm318_vm3, %v4907_v9 }
  0xb1   :  { %3471 = vmatprep.mubr.msk.bf16.mxu1 %vm318_vm3, %v3088_v8 }
  0xb6   :  { %3552 = vmatmul.mubr.msk.bf16.gmra.mrb[12].mxu0 %vm318_vm3, %v3273_v17 }
  0xb8   :  { %3472 = vmatmul.mubr.msk.bf16.gmra.mrb[12].mxu1 %vm318_vm3, %v3089_v12 }
 0x163   :  { %v3441_v40 = vpop.f32.mrb[0].mxu1 }
 0x164   :  { %v1036_v58 = vpop.f32.mrb[1].mxu1 }
 0x165   :  { %v3442_v38 = vpop.f32.mrb[2].mxu1 }
 0x166   :  { %v1039_v24 = vpop.f32.mrb[3].mxu1 }
 0x16b   :  { %v3445_v25 = vpop.f32.mrb[4].mxu1 }
 0x16c   :  { %v1052_v9 = vpop.f32.mrb[5].mxu1 }
 0x16d   :  { %v3446_v52 = vpop.f32.mrb[6].mxu1 }
 0x16e   :  { %v1055_v3 = vpop.f32.mrb[7].mxu1 }
 0x171   :  { %v3541_v20 = vpop.f32.mrb[0].mxu0 }
 0x172   :  { %v3559_v54 = vadd.f32 %v3541_v20, %v3441_v40  ;;  %v2690_v60 = vpop.f32.mrb[1].mxu0 }
 0x173   :  { %v3560_v14 = vadd.f32 %v2690_v60, %v1036_v58  ;;  %v3542_v18 = vpop.f32.mrb[2].mxu0 }
 0x174   :  { %v3561_v37 = vadd.f32 %v3542_v18, %v3442_v38  ;;  %v2693_v30 = vpop.f32.mrb[3].mxu0  ;;  %v2778_v32 = vadd.f32 %v3559_v54, %v5006_v28 }
 0x175   :  { %v3562_v15 = vadd.f32 %v2693_v30, %v1039_v24  ;;  %v2776_v0 = vadd.f32 %v3560_v14, %v5006_v28 }
 0x176   :  { %v2779_v1 = vadd.f32 %v3561_v37, %v5006_v28 }
 0x177   :  { %v2777_v48 = vadd.f32 %v3562_v15, %v5006_v28 }
 0x178   :  { %v2793_v49 = vmax.f32 %v2778_v32, %v2779_v1 }
 0x179   :  { %v2792_v53 = vmax.f32 %v2776_v0, %v2777_v48  ;;  %v3545_v61 = vpop.f32.mrb[4].mxu0  ;;  %v2859_v0 = vlaneseq }
 0x17a   :  { %2801 = vst.msk [vmem:[#allocation2 + $0x8] sm:$0xff] %vm318_vm3, %v2793_v49  ;;  %v3563_v59 = vadd.f32 %v3545_v61, %v3445_v25  ;;  %v2706_v50 = vpop.f32.mrb[5].mxu0  ;;  %v3741_v49 = vmov 1983009808  }
 0x17b   :  { %2800 = vst.msk [vmem:[#allocation2] sm:$0xff] %vm318_vm3, %v2792_v53  ;;  %v3564_v45 = vadd.f32 %v2706_v50, %v1052_v9  ;;  %v3546_v7 = vpop.f32.mrb[6].mxu0  ;;  %v2857_v53 = vunpack.c.l.s4 %v3741_v49 }
 0x17c   :  { %v3565_v57 = vadd.f32 %v3546_v7, %v3446_v52  ;;  %v2709_v55 = vpop.f32.mrb[7].mxu0  ;;  %v2782_v46 = vadd.f32 %v3563_v59, %v5006_v28 }
 0x17d   :  { %v3566_v16 = vadd.f32 %v2709_v55, %v1055_v3  ;;  %v2780_v4 = vadd.f32 %v3564_v45, %v5006_v28  ;;  %v2858_v55 = vunpack.c.0.s8 %v2857_v53 }
 0x17e   :  { %v2783_v13 = vadd.f32 %v3565_v57, %v5006_v28 }
 0x17f   :  { %v2781_v21 = vadd.f32 %v3566_v16, %v5006_v28 }
 0x180   :  { %v2795_v11 = vmax.f32 %v2782_v46, %v2783_v13 }
 0x181   :  { %v2794_v41 = vmax.f32 %v2780_v4, %v2781_v21  ;;  %v3549_v26 = vpop.f32.mrb[8].mxu0  ;;  %v2810_v18 = vld [vmem:[#allocation2 + $0x8] ss:$2 sm:$0xf] }
 0x182   :  { %2803 = vst.msk [vmem:[#allocation2 + $0x18] sm:$0xff] %vm318_vm3, %v2795_v11  ;;  %v2722_v10 = vpop.f32.mrb[9].mxu0  ;;  %v2808_v14 = vld [vmem:[#allocation2] ss:$2 sm:$0xf] }
 0x183   :  { %2802 = vst.msk [vmem:[#allocation2 + $0x10] sm:$0xff] %vm318_vm3, %v2794_v41  ;;  %v3469_v19 = vpop.f32.mrb[8].mxu1  ;;  %v3550_v31 = vpop.f32.mrb[10].mxu0  ;;  %v2824_v30 = vld [vmem:[#allocation2 + $0x1] ss:$2 sm:$0xf] }
 0x184   :  { %v3567_v44 = vadd.f32 %v3549_v26, %v3469_v19  ;;  %v1501_v56 = vpop.f32.mrb[9].mxu1  ;;  %v2725_v42 = vpop.f32.mrb[11].mxu0  ;;  %v2826_v15 = vld [vmem:[#allocation2 + $0x9] ss:$2 sm:$0xf]  ;;  %v2839_v61 = vmax.f32 %v2808_v14, %v2824_v30 }
 0x185   :  { %v3568_v23 = vadd.f32 %v2722_v10, %v1501_v56  ;;  %v3470_v62 = vpop.f32.mrb[10].mxu1  ;;  %v2840_v59 = vmax.f32 %v2810_v18, %v2826_v15  ;;  %v3742_v11 = vmov 1934713408  }
 0x186   :  { %v3569_v27 = vadd.f32 %v3550_v31, %v3470_v62  ;;  %v1504_v5 = vpop.f32.mrb[11].mxu1  ;;  %v2786_v22 = vadd.f32 %v3567_v44, %v5006_v28  ;;  %v2847_v13 = vmax.f32 %v2839_v61, 0.0  ;;  %v2890_v41 = vunpack.c.l.s4 %v3742_v11 }
 0x187   :  { %v3570_v43 = vadd.f32 %v2725_v42, %v1504_v5  ;;  %v2784_v47 = vadd.f32 %v3568_v23, %v5006_v28  ;;  %v2848_v4 = vmax.f32 %v2840_v59, 0.0 }
 0x188   :  { %v2787_v6 = vadd.f32 %v3569_v27, %v5006_v28 }
 0x189   :  { %v2785_v2 = vadd.f32 %v3570_v43, %v5006_v28  ;;  %v3553_v29 = vpop.f32.mrb[12].mxu0  ;;  %v2814_v40 = vld [vmem:[#allocation2 + $0x18] ss:$2 sm:$0xf] }
 0x18a   :  { %v2797_v8 = vmax.f32 %v2786_v22, %v2787_v6  ;;  %v2738_v51 = vpop.f32.mrb[13].mxu0  ;;  %v2812_v24 = vld [vmem:[#allocation2 + $0x10] ss:$2 sm:$0xf]  ;;  %v2891_v22 = vunpack.c.0.s8 %v2890_v41 }
 0x18b   :  { %v2796_v63 = vmax.f32 %v2784_v47, %v2785_v2  ;;  %v3473_v35 = vpop.f32.mrb[12].mxu1  ;;  %v3554_v33 = vpop.f32.mrb[14].mxu0  ;;  %v2828_v9 = vld [vmem:[#allocation2 + $0x11] ss:$2 sm:$0xf] }
 0x18c   :  { %2805 = vst.msk [vmem:[#allocation2 + $0x28] sm:$0xff] %vm318_vm3, %v2797_v8  ;;  %v3571_v34 = vadd.f32 %v3553_v29, %v3473_v35  ;;  %v1517_v36 = vpop.f32.mrb[13].mxu1  ;;  %v2741_v39 = vpop.f32.mrb[15].mxu0  ;;  %v2830_v52 = vld [vmem:[#allocation2 + $0x19] ss:$2 sm:$0xf]  ;;  %v2841_v32 = vmax.f32 %v2812_v24, %v2828_v9 }
 0x18d   :  { %2804 = vst.msk [vmem:[#allocation2 + $0x20] sm:$0xff] %vm318_vm3, %v2796_v63  ;;  %v3572_v17 = vadd.f32 %v2738_v51, %v1517_v36  ;;  %v3474_v12 = vpop.f32.mrb[14].mxu1  ;;  %v2842_v1 = vmax.f32 %v2814_v40, %v2830_v52 }
 0x18e   :  { %v3573_v58 = vadd.f32 %v3554_v33, %v3474_v12  ;;  %v1520_v38 = vpop.f32.mrb[15].mxu1  ;;  %v2790_v3 = vadd.f32 %v3571_v34, %v5006_v28  ;;  %v2849_v50 = vmax.f32 %v2841_v32, 0.0 }
 0x18f   :  { %v3574_v25 = vadd.f32 %v2741_v39, %v1520_v38  ;;  %v2788_v54 = vadd.f32 %v3572_v17, %v5006_v28  ;;  %v2850_v45 = vmax.f32 %v2842_v1, 0.0 }
 0x190   :  { %v2791_v20 = vadd.f32 %v3573_v58, %v5006_v28  ;;  %v2855_v31 = vcombine.low %v2847_v13, %v2849_v50 }
 0x191   :  { %v2789_v60 = vadd.f32 %v3574_v25, %v5006_v28  ;;  %v2860_v28 = vshrl.u32 %v2859_v0, 7  ;;  %v2863_v56 = vcombine.low %v2848_v4, %v2850_v45 }
 0x192   :  { %v2799_v37 = vmax.f32 %v2790_v3, %v2791_v20 }
 0x193   :  { %v2798_v48 = vmax.f32 %v2788_v54, %v2789_v60  ;;  %v2818_v7 = vld [vmem:[#allocation2 + $0x28] ss:$2 sm:$0xf]  ;;  %v2834_v57 = vld [vmem:[#allocation2 + $0x29] ss:$2 sm:$0xf]  ;;  %v2861_v44 = vsub.s32 %v2858_v55, %v2860_v28  ;;  %v2894_v34 = vsub.s32 %v2891_v22, %v2860_v28 }
 0x194   :  { %2807 = vst.msk [vmem:[#allocation2 + $0x38] sm:$0xff] %vm318_vm3, %v2799_v37  ;;  %v2816_v16 = vld [vmem:[#allocation2 + $0x20] ss:$2 sm:$0xf]  ;;  %v2844_v21 = vmax.f32 %v2818_v7, %v2834_v57 }
 0x195   :  { %2806 = vst.msk [vmem:[#allocation2 + $0x30] sm:$0xff] %vm318_vm3, %v2798_v48  ;;  %v2832_v46 = vld [vmem:[#allocation2 + $0x21] ss:$2 sm:$0xf]  ;;  %v2862_v2 = vrot.slane %v2855_v31, %v2861_v44  ;;  %v2870_v29 = vrot.slane %v2863_v56, %v2861_v44 }
 0x196   :  { %v2843_v19 = vmax.f32 %v2816_v16, %v2832_v46  ;;  %v2852_v5 = vmax.f32 %v2844_v21, 0.0 }
 0x197   :  { %v2888_v33 = vcombine.high %v2862_v2, %v2870_v29  ;;  %v2887_v36 = vcombine.low %v2862_v2, %v2870_v29 }
 0x198   :  { %v2851_v6 = vmax.f32 %v2843_v19, 0.0 }
 0x199   :  { %v2902_v12 = vrot.slane %v2888_v33, %v2894_v34  ;;  %v2895_v58 = vrot.slane %v2887_v36, %v2894_v34 }
 0x19b   :  { %v2822_v26 = vld [vmem:[#allocation2 + $0x38] ss:$2 sm:$0xf]  ;;  %v2838_v10 = vld [vmem:[#allocation2 + $0x39] ss:$2 sm:$0xf] }
 0x19c   :  { %v2820_v42 = vld [vmem:[#allocation2 + $0x30] ss:$2 sm:$0xf]  ;;  %v2836_v23 = vld [vmem:[#allocation2 + $0x31] ss:$2 sm:$0xf]  ;;  %v2846_v62 = vmax.f32 %v2822_v26, %v2838_v10 }
 0x19d   :  { %v2845_v27 = vmax.f32 %v2820_v42, %v2836_v23 }
 0x19e   :  { %v2854_v43 = vmax.f32 %v2846_v62, 0.0 }
 0x19f   :  { %v2853_v47 = vmax.f32 %v2845_v27, 0.0 }
 0x1a0   :  { %v2879_v8 = vcombine.low %v2852_v5, %v2854_v43 }
 0x1a1   :  { %v2871_v51 = vcombine.low %v2851_v6, %v2853_v47 }
 0x1a2   :  { %v2886_v63 = vrot.slane %v2879_v8, %v2861_v44 }
 0x1a3   :  { %v2878_v35 = vrot.slane %v2871_v51, %v2861_v44 }
 0x1a5   :  { %v2904_v39 = vcombine.high %v2878_v35, %v2886_v63  ;;  %v2903_v17 = vcombine.low %v2878_v35, %v2886_v63 }
 0x1a7   :  { %v2918_v40 = vrot.slane %v2904_v39, %v2894_v34  ;;  %v2911_v38 = vrot.slane %v2903_v17, %v2894_v34 }
 0x1a9   :  { %v2922_v24 = vcombine.high %v2902_v12, %v2918_v40  ;;  %v2920_v25 = vcombine.high %v2895_v58, %v2911_v38  ;;  %v2919_v9 = vcombine.low %v2895_v58, %v2911_v38  ;;  %v2921_v52 = vcombine.low %v2902_v12, %v2918_v40 }
 0x1ab   :  { %2932 = vrot.lane.b32.xlu1 %v2922_v24, %s3743_s2  ;;  %2924 = vrot.lane.b32.xlu0 %v2920_v25, %s3744_s30 }
 0x1af   :  { %2928 = vrot.lane.b32.xlu0 %v2921_v52, %s3745_s4 }
 0x21d   :  { %v2925_v3 = vpop.permute.xlu0 %2924  ;;  %v2933_v60 = vpop.permute.xlu1 %2932 }
 0x21e   :  { %v2935_v20 = vsel %vm318_vm3, %v2919_v9, %v2925_v3 }
 0x221   :  { %v2929_v54 = vpop.permute.xlu0 %2928 }
 0x222   :  { %v2937_v14 = vsel %vm2936_vm7, %v2935_v20, %v2929_v54 }
 0x223   :  { %v2939_v18 = vsel %vm2938_vm8, %v2937_v14, %v2933_v60 }
 0x224   :  { %v2940_v37 = vpack.c.bf16 %v2939_v18, %v2939_v18 }
 0x226   :  { %2941 = vst [vmem:[%s5039_s3] sm:$0xf] %v2940_v37 }

// kernel: cnn_celeba_forward.4
= control target key start
LH: loop header
LB: loop body
LE: loop exit
PB: predicated region body
PF: predicated region fallthrough
CT: control target
= control target key end

     0   :  { %vm1077_vm0 = vcmask 1043456   ;;  %vm112_vm1 = vsmask.f32 3328  ;;  %vm113_vm2 = vsmask.f32 7440  ;;  %vm980_vm4 = vcmask 64512   ;;  %s16648_s1 = inlined_call_operand.vmem [shape: bf16[72,32], index: 1, kind: input, shape index: {}]   ;;  %s16649_s0 = inlined_call_operand.vmem [shape: bf16[2,18,18,8], index: 0, kind: input, shape index: {}]   ;;  %s16650_s2 = inlined_call_operand.vmem [shape: f32[1,32], index: 2, kind: input, shape index: {}]   ;;  %s16651_s3 = inlined_call_operand.vmem [shape: bf16[16,256], index: 3, kind: output, shape index: {}]  }
   0x1   :  { %v883_v0 = vld [vmem:[%s16648_s1 + $0x4] sm:$0xf]  ;;  %v4332_v1 = vld [vmem:[%s16648_s1 + $0x10] sm:$0xf]  ;;  %v15_v2 = vld [vmem:[%s16649_s0] sm:$0xf] }
   0x2   :  { %11823 = vmatprep.subr.msk.bf16.mxu1 %vm1077_vm0, %v883_v0  ;;  %11827 = vmatprep.subr.msk.bf16.mxu0 %vm1077_vm0, %v4332_v1  ;;  %v1079_v3 = vsel %vm1077_vm0, %v883_v0, 0  ;;  %v12219_v4 = vsel %vm1077_vm0, %v4332_v1, 0  ;;  %v16_v5 = vld [vmem:[%s16649_s0 + $0x4] sm:$0xf]  ;;  %v80_v6 = vld [vmem:[%s16649_s0 + $0x8] sm:$0x1]  ;;  %vm12260_vm3 = vmor %vm112_vm1, %vm113_vm2 }
   0x3   :  { %16664 = vst [vmem:[#allocation3_spill] sm:$0xff] %v12219_v4  ;;  %10716 = vmatpush3.bf16.msra.mxu1 %v1079_v3  ;;  %10980 = vmatpush3.bf16.msra.mxu0 %v12219_v4  ;;  %v116_v7 = vshrl.u32 %v15_v2, 16  ;;  %v119_v8 = vshll.u32 %v15_v2, 16  ;;  %v125_v9 = vshll.u32 %v16_v5, 16  ;;  %v129_v10 = vshrl.u32 %v16_v5, 16  ;;  %s12184_s15 = smov 32  }
   0x4   :  { %v79_v11 = vld [vmem:[%s16648_s1] sm:$0xf]  ;;  %v135_v12 = vshll.u32 %v80_v6, 16  ;;  %v9709_v13 = vld [vmem:[%s16649_s0 + $0xc] sm:$0xf]  ;;  %vm2014_vm5 = vcmask 1042432  }
   0x5   :  { %11824 = vmatprep.subr.msk.bf16.mxu1 %vm1077_vm0, %v79_v11  ;;  %v12238_v14 = vld [vmem:[%s16649_s0 + $0x10] sm:$0xf]  ;;  %v118_v15 = vrot.slane %v116_v7, 4  ;;  %v121_v16 = vrot.slane %v119_v8, 5  ;;  %v127_v17 = vrot.slane %v125_v9, 5  ;;  %v131_v18 = vrot.slane %v129_v10, 4 }
   0x6   :  { %v12243_v19 = vld [vmem:[%s16649_s0 + $0x14] sm:$0x1]  ;;  %v137_v20 = vrot.slane %v135_v12, 5  ;;  %v3565_v21 = vshrl.u32 %v9709_v13, 16  ;;  %v3568_v22 = vshll.u32 %v9709_v13, 16  ;;  %v3574_v23 = vshll.u32 %v12238_v14, 16 }
   0x7   :  { %v12249_v24 = vld [vmem:[%s16648_s1 + $0x14] sm:$0xf]  ;;  %v122_v25 = vor.u32 %v121_v16, %v118_v15  ;;  %v132_v26 = vor.u32 %v131_v18, %v127_v17  ;;  %v3578_v27 = vshrl.u32 %v12238_v14, 16  ;;  %v3584_v28 = vshll.u32 %v12243_v19, 16  ;;  %v17_v29 = vld [vmem:[%s16649_s0 + $0xc] sm:$0xf] }
   0x8   :  { %11829 = vmatprep.subr.msk.bf16.mxu0 %vm1077_vm0, %v12249_v24  ;;  %v3567_v31 = vrot.slane %v3565_v21, 4  ;;  %v3570_v32 = vrot.slane %v3568_v22, 5  ;;  %v3576_v33 = vrot.slane %v3574_v23, 5  ;;  %v18_v34 = vld [vmem:[%s16649_s0 + $0x10] sm:$0xf]  ;;  %v140_v41 = vshrl.u32 %v17_v29, 16 }
   0x9   :  { %v123_v35 = vrot.slane %v122_v25, 4  ;;  %v133_v36 = vrot.slane %v132_v26, 4  ;;  %v3580_v37 = vrot.slane %v3578_v27, 4  ;;  %v3586_v39 = vrot.slane %v3584_v28, 5  ;;  %v81_v40 = vld [vmem:[%s16649_s0 + $0x14] sm:$0x1] }
   0xa   :  { %v3571_v38 = vor.u32 %v3570_v32, %v3567_v31  ;;  %v143_v42 = vshll.u32 %v17_v29, 16  ;;  %v149_v46 = vshll.u32 %v18_v34, 16  ;;  %v142_v49 = vrot.slane %v140_v41, 4  ;;  %v9712_v55 = vld [vmem:[%s16649_s0 + $0x18] sm:$0xf]  ;;  %s12185_s16 = smov 96  }
   0xb   :  { %v128_v43 = vsel %vm12260_vm3, %v123_v35, %v127_v17  ;;  %v138_v44 = vsel %vm12260_vm3, %v133_v36, %v137_v20  ;;  %v3581_v45 = vor.u32 %v3580_v37, %v3576_v33  ;;  %v153_v53 = vshrl.u32 %v18_v34, 16  ;;  %v12285_v60 = vld [vmem:[%s16649_s0 + $0x1c] sm:$0xf]  ;;  %v12290_v61 = vld [vmem:[%s16649_s0 + $0x20] sm:$0x1] }
   0xc   :  { %v9357_v47 = vcombine.low %v128_v43, %v138_v44  ;;  %v3572_v48 = vrot.slane %v3571_v38, 4  ;;  %v145_v50 = vrot.slane %v143_v42, 5  ;;  %v151_v52 = vrot.slane %v149_v46, 5  ;;  %v19_v16 = vld [vmem:[%s16649_s0 + $0x18] sm:$0xf] }
   0xd   :  { %v3582_v51 = vrot.slane %v3581_v45, 4  ;;  %v159_v54 = vshll.u32 %v81_v40, 16  ;;  %v5011_v57 = vrot.slane %v12238_v14, 5  ;;  %v5014_v58 = vrot.slane %v12243_v19, 5  ;;  %v20_v22 = vld [vmem:[%s16649_s0 + $0x1c] sm:$0xf] }
   0xe   :  { %10717 = vmatprep.mubr.msk.bf16.mxu1 %vm980_vm4, %v9357_v47  ;;  %v3577_v56 = vsel %vm12260_vm3, %v3572_v48, %v3576_v33  ;;  %v146_v59 = vor.u32 %v145_v50, %v142_v49  ;;  %v155_v63 = vrot.slane %v153_v53, 4  ;;  %v1627_v1 = vsel %vm1077_vm0, %v79_v11, 0  ;;  %v82_v28 = vld [vmem:[%s16649_s0 + $0x20] sm:$0x1]  ;;  %v9715_v34 = vld [vmem:[%s16649_s0 + $0x24] sm:$0xf] }
   0xf   :  { %v3587_v62 = vsel %vm12260_vm3, %v3582_v51, %v3586_v39  ;;  %v161_v0 = vrot.slane %v159_v54, 5  ;;  %v3589_v5 = vshrl.u32 %v9712_v55, 16  ;;  %v3592_v6 = vshll.u32 %v9712_v55, 16  ;;  %v9716_v42 = vld [vmem:[%s16649_s0 + $0x28] sm:$0xf] }
  0x10   :  { %v9805_v2 = vcombine.low %v3577_v56, %v3587_v62  ;;  %v147_v3 = vrot.slane %v146_v59, 4  ;;  %v156_v7 = vor.u32 %v155_v63, %v151_v52  ;;  %v3598_v8 = vshll.u32 %v12285_v60, 16  ;;  %v9717_v46 = vld [vmem:[%s16649_s0 + $0x2c] sm:$0x1]  ;;  %v52_v19 = vld [vmem:[%s16649_s0 + $0xf4] sm:$0xf] }
  0x11   :  { %v3602_v9 = vshrl.u32 %v12285_v60, 16  ;;  %v3608_v10 = vshll.u32 %v12290_v61, 16  ;;  %v3591_v13 = vrot.slane %v3589_v5, 4  ;;  %v3594_v15 = vrot.slane %v3592_v6, 5 }
  0x12   :  { %10981 = vmatprep.mubr.msk.bf16.mxu0 %vm980_vm4, %v9805_v2  ;;  %v152_v12 = vsel %vm12260_vm3, %v147_v3, %v151_v52  ;;  %v5018_v11 = vrot.slane %v12285_v60, 5  ;;  %v157_v17 = vrot.slane %v156_v7, 4  ;;  %v3600_v18 = vrot.slane %v3598_v8, 5  ;;  %v21_v52 = vld [vmem:[%s16649_s0 + $0x24] sm:$0xf] }
  0x13   :  { %v3604_v20 = vrot.slane %v3602_v9, 4  ;;  %v3610_v21 = vrot.slane %v3608_v10, 5  ;;  %v3595_v23 = vor.u32 %v3594_v15, %v3591_v13  ;;  %v5021_v26 = vrot.slane %v12290_v61, 5  ;;  %v9718_v13 = vld [vmem:[%s16649_s0 + $0x30] sm:$0xf] }
  0x14   :  { %v12310_v25 = vrot.slane %v5018_v11, 4  ;;  %v5427_v27 = vsel %vm1077_vm0, %v12249_v24, 0  ;;  %v162_v29 = vsel %vm12260_vm3, %v157_v17, %v161_v0  ;;  %v164_v32 = vshrl.u32 %v19_v16, 16 }
  0x15   :  { %v3605_v31 = vor.u32 %v3604_v20, %v3600_v18  ;;  %v167_v33 = vshll.u32 %v19_v16, 16  ;;  %v9358_v35 = vcombine.low %v152_v12, %v162_v29  ;;  %v3596_v36 = vrot.slane %v3595_v23, 4  ;;  %v83_v12 = vld [vmem:[%s16649_s0 + $0x2c] sm:$0x1] }
  0x16   :  { %v173_v37 = vshll.u32 %v20_v22, 16  ;;  %v177_v38 = vshrl.u32 %v20_v22, 16  ;;  %v166_v24 = vrot.slane %v164_v32, 4  ;;  %v183_v41 = vshll.u32 %v82_v28, 16 }
  0x17   :  { %v3606_v39 = vrot.slane %v3605_v31, 4  ;;  %v169_v40 = vrot.slane %v167_v33, 5  ;;  %10718 = vmatmul.mubr.msk.bf16.vlgmr.msra.gmra.mrb[0].mxu1 %vm980_vm4, %v9358_v35  ;;  %v3601_v43 = vsel %vm12260_vm3, %v3596_v36, %v3600_v18  ;;  %v3613_v47 = vshrl.u32 %v9715_v34, 16  ;;  %v9720_v36 = vld [vmem:[%s16649_s0 + $0x38] sm:$0x1] }
  0x18   :  { %v175_v44 = vrot.slane %v173_v37, 5  ;;  %v179_v45 = vrot.slane %v177_v38, 4  ;;  %10782 = vmatpush3.bf16.msra.mxu1 %v1627_v1  ;;  %v185_v50 = vrot.slane %v183_v41, 5  ;;  %v3616_v51 = vshll.u32 %v9715_v34, 16  ;;  %v22_v1 = vld [vmem:[%s16649_s0 + $0x28] sm:$0xf] }
  0x19   :  { %v3611_v48 = vsel %vm12260_vm3, %v3606_v39, %v3610_v21  ;;  %v170_v49 = vor.u32 %v169_v40, %v166_v24  ;;  %v3615_v55 = vrot.slane %v3613_v47, 4  ;;  %v3622_v56 = vshll.u32 %v9716_v42, 16  ;;  %v23_v41 = vld [vmem:[%s16649_s0 + $0x30] sm:$0xf] }
  0x1a   :  { %v9806_v53 = vcombine.low %v3601_v43, %v3611_v48  ;;  %v180_v54 = vor.u32 %v179_v45, %v175_v44  ;;  %v3618_v62 = vrot.slane %v3616_v51, 5  ;;  %v3626_v63 = vshrl.u32 %v9716_v42, 16 }
  0x1b   :  { %v171_v59 = vrot.slane %v170_v49, 4  ;;  %v3632_v0 = vshll.u32 %v9717_v46, 16  ;;  %v3624_v3 = vrot.slane %v3622_v56, 5  ;;  %v188_v5 = vshrl.u32 %v21_v52, 16  ;;  %v24_v46 = vld [vmem:[%s16649_s0 + $0x34] sm:$0xf] }
  0x1c   :  { %10982 = vmatmul.mubr.msk.bf16.vlgmr.msra.gmra.mrb[0].mxu0 %vm980_vm4, %v9806_v53  ;;  %v181_v2 = vrot.slane %v180_v54, 4  ;;  %v191_v6 = vshll.u32 %v21_v52, 16  ;;  %v3619_v8 = vor.u32 %v3618_v62, %v3615_v55  ;;  %v3628_v9 = vrot.slane %v3626_v63, 4  ;;  %v84_v54 = vld [vmem:[%s16649_s0 + $0x38] sm:$0x1] }
  0x1d   :  { %11046 = vmatpush3.bf16.msra.mxu0 %v5427_v27  ;;  %v176_v7 = vsel %vm12260_vm3, %v171_v59, %v175_v44  ;;  %v3634_v10 = vrot.slane %v3632_v0, 5  ;;  %v190_v16 = vrot.slane %v188_v5, 4  ;;  %v197_v18 = vshll.u32 %v22_v1, 16  ;;  %v9719_v27 = vld [vmem:[%s16649_s0 + $0x34] sm:$0xf] }
  0x1e   :  { %v186_v15 = vsel %vm12260_vm3, %v181_v2, %v185_v50  ;;  %v193_v17 = vrot.slane %v191_v6, 5  ;;  %v3620_v21 = vrot.slane %v3619_v8, 4  ;;  %v3629_v22 = vor.u32 %v3628_v9, %v3624_v3  ;;  %v9721_v0 = vld [vmem:[%s16649_s0 + $0x3c] sm:$0xf]  ;;  %v9722_v6 = vld [vmem:[%s16649_s0 + $0x40] sm:$0xf] }
  0x1f   :  { %v9359_v20 = vcombine.low %v176_v7, %v186_v15  ;;  %v201_v23 = vshrl.u32 %v22_v1, 16  ;;  %v199_v29 = vrot.slane %v197_v18, 5  ;;  %v207_v31 = vshll.u32 %v83_v12, 16 }
  0x20   :  { %v194_v28 = vor.u32 %v193_v17, %v190_v16  ;;  %v3637_v32 = vshrl.u32 %v9718_v13, 16  ;;  %v3625_v33 = vsel %vm12260_vm3, %v3620_v21, %v3624_v3  ;;  %v3630_v34 = vrot.slane %v3629_v22, 4 }
  0x21   :  { %10721 = vmatprep.mubr.msk.bf16.mxu1 %vm980_vm4, %v9359_v20  ;;  %v203_v35 = vrot.slane %v201_v23, 4  ;;  %v3640_v37 = vshll.u32 %v9718_v13, 16  ;;  %v209_v39 = vrot.slane %v207_v31, 5  ;;  %v3646_v40 = vshll.u32 %v9719_v27, 16  ;;  %v9723_v20 = vld [vmem:[%s16649_s0 + $0x44] sm:$0x1] }
  0x22   :  { %v195_v38 = vrot.slane %v194_v28, 4  ;;  %v3639_v24 = vrot.slane %v3637_v32, 4  ;;  %v3635_v42 = vsel %vm12260_vm3, %v3630_v34, %v3634_v10  ;;  %v3650_v45 = vshrl.u32 %v9719_v27, 16  ;;  %v25_v23 = vld [vmem:[%s16649_s0 + $0x3c] sm:$0xf] }
  0x23   :  { %v204_v43 = vor.u32 %v203_v35, %v199_v29  ;;  %v3642_v44 = vrot.slane %v3640_v37, 5  ;;  %v9807_v47 = vcombine.low %v3625_v33, %v3635_v42  ;;  %v3648_v49 = vrot.slane %v3646_v40, 5 }
  0x24   :  { %v200_v48 = vsel %vm12260_vm3, %v195_v38, %v199_v29  ;;  %v3656_v50 = vshll.u32 %v9720_v36, 16  ;;  %v3652_v53 = vrot.slane %v3650_v45, 4  ;;  %v212_v55 = vshrl.u32 %v23_v41, 16  ;;  %v9724_v45 = vld [vmem:[%s16649_s0 + $0x48] sm:$0xf] }
  0x25   :  { %v205_v51 = vrot.slane %v204_v43, 4  ;;  %v3643_v52 = vor.u32 %v3642_v44, %v3639_v24  ;;  %10985 = vmatprep.mubr.msk.bf16.mxu0 %vm980_vm4, %v9807_v47  ;;  %v215_v59 = vshll.u32 %v23_v41, 16  ;;  %v221_v62 = vshll.u32 %v24_v46, 16  ;;  %v85_v43 = vld [vmem:[%s16649_s0 + $0x44] sm:$0x1] }
  0x26   :  { %v3658_v56 = vrot.slane %v3656_v50, 5  ;;  %v225_v63 = vshrl.u32 %v24_v46, 16  ;;  %v3653_v3 = vor.u32 %v3652_v53, %v3648_v49  ;;  %v214_v5 = vrot.slane %v212_v55, 4 }
  0x27   :  { %v210_v1 = vsel %vm12260_vm3, %v205_v51, %v209_v39  ;;  %v3644_v2 = vrot.slane %v3643_v52, 4  ;;  %v217_v8 = vrot.slane %v215_v59, 5  ;;  %v223_v9 = vrot.slane %v221_v62, 5  ;;  %v26_v39 = vld [vmem:[%s16649_s0 + $0x40] sm:$0xf] }
  0x28   :  { %v9360_v7 = vcombine.low %v200_v48, %v210_v1  ;;  %v227_v10 = vrot.slane %v225_v63, 4  ;;  %v3654_v13 = vrot.slane %v3653_v3, 4  ;;  %v231_v15 = vshll.u32 %v84_v54, 16  ;;  %v9726_v3 = vld [vmem:[%s16649_s0 + $0x50] sm:$0x1] }
  0x29   :  { %v3649_v12 = vsel %vm12260_vm3, %v3644_v2, %v3648_v49  ;;  %v3661_v16 = vshrl.u32 %v9721_v0, 16  ;;  %v218_v17 = vor.u32 %v217_v8, %v214_v5  ;;  %v3664_v21 = vshll.u32 %v9721_v0, 16  ;;  %v27_v5 = vld [vmem:[%s16649_s0 + $0x48] sm:$0xf] }
  0x2a   :  { %10722 = vmatmul.mubr.msk.bf16.gmra.mrb[4].mxu1 %vm980_vm4, %v9360_v7  ;;  %v228_v18 = vor.u32 %v227_v10, %v223_v9  ;;  %v3670_v22 = vshll.u32 %v9722_v6, 16  ;;  %v3659_v27 = vsel %vm12260_vm3, %v3654_v13, %v3658_v56  ;;  %v233_v28 = vrot.slane %v231_v15, 5  ;;  %v9725_v56 = vld [vmem:[%s16649_s0 + $0x4c] sm:$0xf] }
  0x2b   :  { %v3663_v29 = vrot.slane %v3661_v16, 4  ;;  %v3674_v31 = vshrl.u32 %v9722_v6, 16  ;;  %v9808_v32 = vcombine.low %v3649_v12, %v3659_v27  ;;  %v219_v33 = vrot.slane %v218_v17, 4 }
  0x2c   :  { %v229_v34 = vrot.slane %v228_v18, 4  ;;  %v3666_v35 = vrot.slane %v3664_v21, 5  ;;  %v3672_v36 = vrot.slane %v3670_v22, 5  ;;  %v3680_v38 = vshll.u32 %v9723_v20, 16  ;;  %v28_v20 = vld [vmem:[%s16649_s0 + $0x4c] sm:$0xf] }
  0x2d   :  { %v3676_v37 = vrot.slane %v3674_v31, 4  ;;  %v236_v24 = vshrl.u32 %v25_v23, 16  ;;  %10986 = vmatmul.mubr.msk.bf16.gmra.mrb[4].mxu0 %vm980_vm4, %v9808_v32  ;;  %v224_v40 = vsel %vm12260_vm3, %v219_v33, %v223_v9  ;;  %v239_v44 = vshll.u32 %v25_v23, 16 }
  0x2e   :  { %v234_v41 = vsel %vm12260_vm3, %v229_v34, %v233_v28  ;;  %v3667_v42 = vor.u32 %v3666_v35, %v3663_v29  ;;  %v3682_v48 = vrot.slane %v3680_v38, 5  ;;  %v245_v52 = vshll.u32 %v26_v39, 16  ;;  %v86_v28 = vld [vmem:[%s16649_s0 + $0x50] sm:$0x1]  ;;  %v9727_v35 = vld [vmem:[%s16649_s0 + $0x54] sm:$0xf] }
  0x2f   :  { %v9361_v46 = vcombine.low %v224_v40, %v234_v41  ;;  %v3677_v47 = vor.u32 %v3676_v37, %v3672_v36  ;;  %v238_v49 = vrot.slane %v236_v24, 4  ;;  %v241_v51 = vrot.slane %v239_v44, 5  ;;  %v9728_v24 = vld [vmem:[%s16649_s0 + $0x58] sm:$0xf] }
  0x30   :  { %v3668_v50 = vrot.slane %v3667_v42, 4  ;;  %v249_v53 = vshrl.u32 %v26_v39, 16  ;;  %v255_v55 = vshll.u32 %v85_v43, 16  ;;  %v3685_v59 = vshrl.u32 %v9724_v45, 16 }
  0x31   :  { %10725 = vmatprep.mubr.msk.bf16.mxu1 %vm980_vm4, %v9361_v46  ;;  %v3678_v54 = vrot.slane %v3677_v47, 4  ;;  %v3688_v62 = vshll.u32 %v9724_v45, 16  ;;  %v242_v0 = vor.u32 %v241_v51, %v238_v49  ;;  %v247_v1 = vrot.slane %v245_v52, 5  ;;  %v9729_v47 = vld [vmem:[%s16649_s0 + $0x5c] sm:$0x1] }
  0x32   :  { %v3673_v63 = vsel %vm12260_vm3, %v3668_v50, %v3672_v36  ;;  %v251_v2 = vrot.slane %v249_v53, 4  ;;  %v257_v7 = vrot.slane %v255_v55, 5  ;;  %v3687_v8 = vrot.slane %v3685_v59, 4  ;;  %v29_v59 = vld [vmem:[%s16649_s0 + $0x54] sm:$0xf] }
  0x33   :  { %v3683_v6 = vsel %vm12260_vm3, %v3678_v54, %v3682_v48  ;;  %v3690_v9 = vrot.slane %v3688_v62, 5  ;;  %v243_v12 = vrot.slane %v242_v0, 4  ;;  %v3694_v15 = vshll.u32 %v9725_v56, 16 }
  0x34   :  { %v9809_v10 = vcombine.low %v3673_v63, %v3683_v6  ;;  %v252_v13 = vor.u32 %v251_v2, %v247_v1  ;;  %v3698_v17 = vshrl.u32 %v9725_v56, 16  ;;  %v3704_v18 = vshll.u32 %v9726_v3, 16  ;;  %v30_v2 = vld [vmem:[%s16649_s0 + $0x58] sm:$0xf] }
  0x35   :  { %v3691_v16 = vor.u32 %v3690_v9, %v3687_v8  ;;  %v260_v21 = vshrl.u32 %v27_v5, 16  ;;  %v248_v22 = vsel %vm12260_vm3, %v243_v12, %v247_v1  ;;  %v3696_v27 = vrot.slane %v3694_v15, 5 }
  0x36   :  { %10989 = vmatprep.mubr.msk.bf16.mxu0 %vm980_vm4, %v9809_v10  ;;  %v253_v23 = vrot.slane %v252_v13, 4  ;;  %v263_v29 = vshll.u32 %v27_v5, 16  ;;  %v3700_v32 = vrot.slane %v3698_v17, 4  ;;  %v3706_v33 = vrot.slane %v3704_v18, 5  ;;  %v87_v10 = vld [vmem:[%s16649_s0 + $0x5c] sm:$0x1] }
  0x37   :  { %v3692_v31 = vrot.slane %v3691_v16, 4  ;;  %v262_v34 = vrot.slane %v260_v21, 4  ;;  %v269_v38 = vshll.u32 %v28_v20, 16  ;;  %v273_v39 = vshrl.u32 %v28_v20, 16  ;;  %v9730_v20 = vld [vmem:[%s16649_s0 + $0x60] sm:$0xf] }
  0x38   :  { %v258_v36 = vsel %vm12260_vm3, %v253_v23, %v257_v7  ;;  %v265_v37 = vrot.slane %v263_v29, 5  ;;  %v3701_v42 = vor.u32 %v3700_v32, %v3696_v27  ;;  %v279_v43 = vshll.u32 %v86_v28, 16  ;;  %v9731_v28 = vld [vmem:[%s16649_s0 + $0x64] sm:$0xf] }
  0x39   :  { %v9362_v40 = vcombine.low %v248_v22, %v258_v36  ;;  %v3697_v41 = vsel %vm12260_vm3, %v3692_v31, %v3696_v27  ;;  %v271_v45 = vrot.slane %v269_v38, 5  ;;  %v275_v46 = vrot.slane %v273_v39, 4  ;;  %v9732_v36 = vld [vmem:[%s16649_s0 + $0x68] sm:$0x1] }
  0x3a   :  { %v266_v44 = vor.u32 %v265_v37, %v262_v34  ;;  %v3709_v48 = vshrl.u32 %v9727_v35, 16  ;;  %v3702_v49 = vrot.slane %v3701_v42, 4  ;;  %v281_v50 = vrot.slane %v279_v43, 5  ;;  %v31_v42 = vld [vmem:[%s16649_s0 + $0x60] sm:$0xf] }
  0x3b   :  { %10726 = vmatmul.mubr.msk.bf16.gmra.mrb[8].mxu1 %vm980_vm4, %v9362_v40  ;;  %v3712_v51 = vshll.u32 %v9727_v35, 16  ;;  %v3718_v52 = vshll.u32 %v9728_v24, 16  ;;  %v276_v54 = vor.u32 %v275_v46, %v271_v45  ;;  %v3722_v56 = vshrl.u32 %v9728_v24, 16 }
  0x3c   :  { %v267_v53 = vrot.slane %v266_v44, 4  ;;  %v3711_v55 = vrot.slane %v3709_v48, 4  ;;  %v3707_v62 = vsel %vm12260_vm3, %v3702_v49, %v3706_v33  ;;  %v3728_v1 = vshll.u32 %v9729_v47, 16  ;;  %v32_v47 = vld [vmem:[%s16649_s0 + $0x64] sm:$0xf] }
  0x3d   :  { %v3714_v63 = vrot.slane %v3712_v51, 5  ;;  %v3720_v0 = vrot.slane %v3718_v52, 5  ;;  %v9810_v3 = vcombine.low %v3697_v41, %v3707_v62  ;;  %v277_v6 = vrot.slane %v276_v54, 4  ;;  %v88_v54 = vld [vmem:[%s16649_s0 + $0x68] sm:$0x1] }
  0x3e   :  { %v272_v5 = vsel %vm12260_vm3, %v267_v53, %v271_v45  ;;  %v3724_v7 = vrot.slane %v3722_v56, 4  ;;  %v3730_v9 = vrot.slane %v3728_v1, 5  ;;  %v284_v12 = vshrl.u32 %v29_v59, 16  ;;  %v9733_v1 = vld [vmem:[%s16649_s0 + $0x6c] sm:$0xf] }
  0x3f   :  { %v3715_v8 = vor.u32 %v3714_v63, %v3711_v55  ;;  %v287_v13 = vshll.u32 %v29_v59, 16  ;;  %10990 = vmatmul.mubr.msk.bf16.gmra.mrb[8].mxu0 %vm980_vm4, %v9810_v3  ;;  %v282_v15 = vsel %vm12260_vm3, %v277_v6, %v281_v50  ;;  %v293_v17 = vshll.u32 %v30_v2, 16 }
  0x40   :  { %v3725_v16 = vor.u32 %v3724_v7, %v3720_v0  ;;  %v297_v18 = vshrl.u32 %v30_v2, 16  ;;  %v9363_v21 = vcombine.low %v272_v5, %v282_v15  ;;  %v286_v23 = vrot.slane %v284_v12, 4  ;;  %v9734_v7 = vld [vmem:[%s16649_s0 + $0x70] sm:$0xf] }
  0x41   :  { %v3716_v22 = vrot.slane %v3715_v8, 4  ;;  %v289_v27 = vrot.slane %v287_v13, 5  ;;  %v295_v31 = vrot.slane %v293_v17, 5  ;;  %v303_v33 = vshll.u32 %v87_v10, 16 }
  0x42   :  { %v3726_v29 = vrot.slane %v3725_v16, 4  ;;  %v299_v32 = vrot.slane %v297_v18, 4  ;;  %10729 = vmatprep.mubr.msk.bf16.mxu1 %vm980_vm4, %v9363_v21  ;;  %v3733_v37 = vshrl.u32 %v9730_v20, 16  ;;  %v3736_v38 = vshll.u32 %v9730_v20, 16  ;;  %v9735_v16 = vld [vmem:[%s16649_s0 + $0x74] sm:$0x1] }
  0x43   :  { %v3721_v34 = vsel %vm12260_vm3, %v3716_v22, %v3720_v0  ;;  %v290_v35 = vor.u32 %v289_v27, %v286_v23  ;;  %v305_v40 = vrot.slane %v303_v33, 5  ;;  %v3742_v41 = vshll.u32 %v9731_v28, 16 }
  0x44   :  { %v3731_v39 = vsel %vm12260_vm3, %v3726_v29, %v3730_v9  ;;  %v300_v24 = vor.u32 %v299_v32, %v295_v31  ;;  %v3735_v45 = vrot.slane %v3733_v37, 4  ;;  %v3738_v46 = vrot.slane %v3736_v38, 5  ;;  %v33_v32 = vld [vmem:[%s16649_s0 + $0x6c] sm:$0xf]  ;;  %v34_v37 = vld [vmem:[%s16649_s0 + $0x70] sm:$0xf] }
  0x45   :  { %v9811_v43 = vcombine.low %v3721_v34, %v3731_v39  ;;  %v291_v44 = vrot.slane %v290_v35, 4  ;;  %v3744_v49 = vrot.slane %v3742_v41, 5  ;;  %v3746_v50 = vshrl.u32 %v9731_v28, 16  ;;  %v12511_v38 = vld [vmem:[%s16648_s1 + $0x18] sm:$0xf] }
  0x46   :  { %v301_v48 = vrot.slane %v300_v24, 4  ;;  %v3752_v51 = vshll.u32 %v9732_v36, 16  ;;  %v3739_v53 = vor.u32 %v3738_v46, %v3735_v45  ;;  %v308_v55 = vshrl.u32 %v31_v42, 16  ;;  %11830 = vmatprep.subr.msk.bf16.mxu0 %vm1077_vm0, %v12511_v38 }
  0x47   :  { %10993 = vmatprep.mubr.msk.bf16.mxu0 %vm980_vm4, %v9811_v43  ;;  %v296_v52 = vsel %vm12260_vm3, %v291_v44, %v295_v31  ;;  %v311_v56 = vshll.u32 %v31_v42, 16  ;;  %v3748_v62 = vrot.slane %v3746_v50, 4  ;;  %v317_v0 = vshll.u32 %v32_v47, 16  ;;  %v89_v42 = vld [vmem:[%s16649_s0 + $0x74] sm:$0x1] }
  0x48   :  { %v306_v59 = vsel %vm12260_vm3, %v301_v48, %v305_v40  ;;  %v3754_v63 = vrot.slane %v3752_v51, 5  ;;  %v3740_v3 = vrot.slane %v3739_v53, 4  ;;  %v310_v5 = vrot.slane %v308_v55, 4  ;;  %v9736_v51 = vld [vmem:[%s16649_s0 + $0x78] sm:$0xf] }
  0x49   :  { %v9364_v2 = vcombine.low %v296_v52, %v306_v59  ;;  %v313_v6 = vrot.slane %v311_v56, 5  ;;  %v3749_v8 = vor.u32 %v3748_v62, %v3744_v49  ;;  %v319_v9 = vrot.slane %v317_v0, 5  ;;  %v9737_v56 = vld [vmem:[%s16649_s0 + $0x7c] sm:$0xf] }
  0x4a   :  { %v321_v10 = vshrl.u32 %v32_v47, 16  ;;  %v327_v12 = vshll.u32 %v88_v54, 16  ;;  %v3745_v13 = vsel %vm12260_vm3, %v3740_v3, %v3744_v49  ;;  %v3757_v17 = vshrl.u32 %v9733_v1, 16 }
  0x4b   :  { %10730 = vmatmul.mubr.msk.bf16.gmra.mrb[12].mxu1 %vm980_vm4, %v9364_v2  ;;  %v314_v15 = vor.u32 %v313_v6, %v310_v5  ;;  %v3760_v18 = vshll.u32 %v9733_v1, 16  ;;  %v3750_v20 = vrot.slane %v3749_v8, 4  ;;  %v3766_v23 = vshll.u32 %v9734_v7, 16  ;;  %v9738_v5 = vld [vmem:[%s16649_s0 + $0x80] sm:$0x1] }
  0x4c   :  { %v323_v21 = vrot.slane %v321_v10, 4  ;;  %v329_v22 = vrot.slane %v327_v12, 5  ;;  %v3759_v28 = vrot.slane %v3757_v17, 4  ;;  %v3770_v31 = vshrl.u32 %v9734_v7, 16  ;;  %v35_v12 = vld [vmem:[%s16649_s0 + $0x78] sm:$0xf] }
  0x4d   :  { %v315_v27 = vrot.slane %v314_v15, 4  ;;  %v3762_v29 = vrot.slane %v3760_v18, 5  ;;  %v3755_v33 = vsel %vm12260_vm3, %v3750_v20, %v3754_v63  ;;  %v3768_v35 = vrot.slane %v3766_v23, 5  ;;  %v36_v18 = vld [vmem:[%s16649_s0 + $0x7c] sm:$0xf] }
  0x4e   :  { %v324_v34 = vor.u32 %v323_v21, %v319_v9  ;;  %v3776_v36 = vshll.u32 %v9735_v16, 16  ;;  %v9812_v39 = vcombine.low %v3745_v13, %v3755_v33  ;;  %v3772_v41 = vrot.slane %v3770_v31, 4 }
  0x4f   :  { %v320_v24 = vsel %vm12260_vm3, %v315_v27, %v319_v9  ;;  %v3763_v40 = vor.u32 %v3762_v29, %v3759_v28  ;;  %v332_v45 = vshrl.u32 %v33_v32, 16  ;;  %v335_v46 = vshll.u32 %v33_v32, 16 }
  0x50   :  { %v325_v43 = vrot.slane %v324_v34, 4  ;;  %v3778_v44 = vrot.slane %v3776_v36, 5  ;;  %10994 = vmatmul.mubr.msk.bf16.gmra.mrb[12].mxu0 %vm980_vm4, %v9812_v39  ;;  %v3773_v48 = vor.u32 %v3772_v41, %v3768_v35  ;;  %v341_v49 = vshll.u32 %v34_v37, 16 }
  0x51   :  { %v3764_v47 = vrot.slane %v3763_v40, 4  ;;  %v345_v50 = vshrl.u32 %v34_v37, 16  ;;  %v334_v53 = vrot.slane %v332_v45, 4  ;;  %v337_v54 = vrot.slane %v335_v46, 5  ;;  %v9739_v37 = vld [vmem:[%s16649_s0 + $0x84] sm:$0xf] }
  0x52   :  { %v330_v52 = vsel %vm12260_vm3, %v325_v43, %v329_v22  ;;  %v351_v55 = vshll.u32 %v89_v42, 16  ;;  %v3774_v63 = vrot.slane %v3773_v48, 4  ;;  %v343_v0 = vrot.slane %v341_v49, 5  ;;  %v9740_v42 = vld [vmem:[%s16649_s0 + $0x88] sm:$0xf] }
  0x53   :  { %v9365_v59 = vcombine.low %v320_v24, %v330_v52  ;;  %v3769_v62 = vsel %vm12260_vm3, %v3764_v47, %v3768_v35  ;;  %v338_v1 = vor.u32 %v337_v54, %v334_v53  ;;  %v347_v2 = vrot.slane %v345_v50, 4  ;;  %v90_v35 = vld [vmem:[%s16649_s0 + $0x80] sm:$0x1]  ;;  %v9741_v53 = vld [vmem:[%s16649_s0 + $0x8c] sm:$0x1] }
  0x54   :  { %v353_v3 = vrot.slane %v351_v55, 5  ;;  %v3781_v6 = vshrl.u32 %v9736_v51, 16  ;;  %v3779_v7 = vsel %vm12260_vm3, %v3774_v63, %v3778_v44  ;;  %v3784_v8 = vshll.u32 %v9736_v51, 16 }
  0x55   :  { %10733 = vmatprep.mubr.msk.bf16.mxu1 %vm980_vm4, %v9365_v59  ;;  %v3790_v9 = vshll.u32 %v9737_v56, 16  ;;  %v3794_v10 = vshrl.u32 %v9737_v56, 16  ;;  %v9813_v13 = vcombine.low %v3769_v62, %v3779_v7  ;;  %v339_v15 = vrot.slane %v338_v1, 4  ;;  %v37_v56 = vld [vmem:[%s16649_s0 + $0x84] sm:$0xf] }
  0x56   :  { %v348_v16 = vor.u32 %v347_v2, %v343_v0  ;;  %v3783_v17 = vrot.slane %v3781_v6, 4  ;;  %v3786_v20 = vrot.slane %v3784_v8, 5  ;;  %v3800_v23 = vshll.u32 %v9738_v5, 16  ;;  %v38_v1 = vld [vmem:[%s16649_s0 + $0x88] sm:$0xf] }
  0x57   :  { %v3792_v21 = vrot.slane %v3790_v9, 5  ;;  %v3796_v22 = vrot.slane %v3794_v10, 4  ;;  %10997 = vmatprep.mubr.msk.bf16.mxu0 %vm980_vm4, %v9813_v13  ;;  %v344_v27 = vsel %vm12260_vm3, %v339_v15, %v343_v0  ;;  %v356_v29 = vshrl.u32 %v35_v12, 16  ;;  %v91_v10 = vld [vmem:[%s16649_s0 + $0x8c] sm:$0x1] }
  0x58   :  { %v349_v28 = vrot.slane %v348_v16, 4  ;;  %v359_v31 = vshll.u32 %v35_v12, 16  ;;  %v3787_v32 = vor.u32 %v3786_v20, %v3783_v17  ;;  %v3802_v34 = vrot.slane %v3800_v23, 5 }
  0x59   :  { %v3797_v33 = vor.u32 %v3796_v22, %v3792_v21  ;;  %v365_v36 = vshll.u32 %v36_v18, 16  ;;  %v358_v24 = vrot.slane %v356_v29, 4  ;;  %v369_v41 = vshrl.u32 %v36_v18, 16  ;;  %v9742_v18 = vld [vmem:[%s16649_s0 + $0x90] sm:$0xf] }
  0x5a   :  { %v354_v39 = vsel %vm12260_vm3, %v349_v28, %v353_v3  ;;  %v361_v40 = vrot.slane %v359_v31, 5  ;;  %v3788_v44 = vrot.slane %v3787_v32, 4  ;;  %v375_v49 = vshll.u32 %v90_v35, 16  ;;  %v9743_v32 = vld [vmem:[%s16649_s0 + $0x94] sm:$0xf] }
  0x5b   :  { %v9366_v43 = vcombine.low %v344_v27, %v354_v39  ;;  %v3798_v45 = vrot.slane %v3797_v33, 4  ;;  %v367_v46 = vrot.slane %v365_v36, 5  ;;  %v371_v48 = vrot.slane %v369_v41, 4 }
  0x5c   :  { %v362_v47 = vor.u32 %v361_v40, %v358_v24  ;;  %v3805_v50 = vshrl.u32 %v9739_v37, 16  ;;  %v3793_v51 = vsel %vm12260_vm3, %v3788_v44, %v3792_v21  ;;  %v3808_v54 = vshll.u32 %v9739_v37, 16  ;;  %v9744_v40 = vld [vmem:[%s16649_s0 + $0x98] sm:$0x1] }
  0x5d   :  { %10734 = vmatmul.mubr.msk.bf16.gmra.mrb[16].mxu1 %vm980_vm4, %v9366_v43  ;;  %v3803_v52 = vsel %vm12260_vm3, %v3798_v45, %v3802_v34  ;;  %v3814_v55 = vshll.u32 %v9740_v42, 16  ;;  %v372_v63 = vor.u32 %v371_v48, %v367_v46  ;;  %v377_v0 = vrot.slane %v375_v49, 5 }
  0x5e   :  { %v9814_v59 = vcombine.low %v3793_v51, %v3803_v52  ;;  %v363_v62 = vrot.slane %v362_v47, 4  ;;  %v3807_v2 = vrot.slane %v3805_v50, 4  ;;  %v3810_v3 = vrot.slane %v3808_v54, 5  ;;  %v40_v51 = vld [vmem:[%s16649_s0 + $0x94] sm:$0xf] }
  0x5f   :  { %v3816_v5 = vrot.slane %v3814_v55, 5  ;;  %v3818_v6 = vshrl.u32 %v9740_v42, 16  ;;  %v373_v8 = vrot.slane %v372_v63, 4  ;;  %v3824_v9 = vshll.u32 %v9741_v53, 16  ;;  %v92_v63 = vld [vmem:[%s16649_s0 + $0x98] sm:$0x1] }
  0x60   :  { %10998 = vmatmul.mubr.msk.bf16.gmra.mrb[16].mxu0 %vm980_vm4, %v9814_v59  ;;  %v368_v7 = vsel %vm12260_vm3, %v363_v62, %v367_v46  ;;  %v380_v12 = vshrl.u32 %v37_v56, 16  ;;  %v3811_v13 = vor.u32 %v3810_v3, %v3807_v2  ;;  %v383_v16 = vshll.u32 %v37_v56, 16  ;;  %v39_v46 = vld [vmem:[%s16649_s0 + $0x90] sm:$0xf] }
  0x61   :  { %v3820_v15 = vrot.slane %v3818_v6, 4  ;;  %v389_v17 = vshll.u32 %v38_v1, 16  ;;  %v378_v20 = vsel %vm12260_vm3, %v373_v8, %v377_v0  ;;  %v3826_v21 = vrot.slane %v3824_v9, 5  ;;  %v9745_v6 = vld [vmem:[%s16649_s0 + $0x9c] sm:$0xf] }
  0x62   :  { %v382_v22 = vrot.slane %v380_v12, 4  ;;  %v393_v23 = vshrl.u32 %v38_v1, 16  ;;  %v9367_v27 = vcombine.low %v368_v7, %v378_v20  ;;  %v3812_v28 = vrot.slane %v3811_v13, 4  ;;  %v9746_v12 = vld [vmem:[%s16649_s0 + $0xa0] sm:$0xf] }
  0x63   :  { %v3821_v29 = vor.u32 %v3820_v15, %v3816_v5  ;;  %v385_v31 = vrot.slane %v383_v16, 5  ;;  %v391_v33 = vrot.slane %v389_v17, 5  ;;  %v399_v35 = vshll.u32 %v91_v10, 16 }
  0x64   :  { %v395_v34 = vrot.slane %v393_v23, 4  ;;  %v3829_v36 = vshrl.u32 %v9742_v18, 16  ;;  %10737 = vmatprep.mubr.msk.bf16.mxu1 %vm980_vm4, %v9367_v27  ;;  %v3817_v37 = vsel %vm12260_vm3, %v3812_v28, %v3816_v5  ;;  %v3832_v41 = vshll.u32 %v9742_v18, 16 }
  0x65   :  { %v3822_v39 = vrot.slane %v3821_v29, 4  ;;  %v386_v24 = vor.u32 %v385_v31, %v382_v22  ;;  %v401_v43 = vrot.slane %v399_v35, 5  ;;  %v3838_v45 = vshll.u32 %v9743_v32, 16 }
  0x66   :  { %v396_v42 = vor.u32 %v395_v34, %v391_v33  ;;  %v3831_v44 = vrot.slane %v3829_v36, 4  ;;  %v3834_v49 = vrot.slane %v3832_v41, 5  ;;  %v3842_v50 = vshrl.u32 %v9743_v32, 16  ;;  %v41_v32 = vld [vmem:[%s16649_s0 + $0x9c] sm:$0xf] }
  0x67   :  { %v3827_v47 = vsel %vm12260_vm3, %v3822_v39, %v3826_v21  ;;  %v387_v48 = vrot.slane %v386_v24, 4  ;;  %v3840_v54 = vrot.slane %v3838_v45, 5  ;;  %v3848_v55 = vshll.u32 %v9744_v40, 16  ;;  %v9747_v21 = vld [vmem:[%s16649_s0 + $0xa4] sm:$0x1] }
  0x68   :  { %v9815_v52 = vcombine.low %v3817_v37, %v3827_v47  ;;  %v397_v53 = vrot.slane %v396_v42, 4  ;;  %v3835_v59 = vor.u32 %v3834_v49, %v3831_v44  ;;  %v3844_v62 = vrot.slane %v3842_v50, 4  ;;  %v42_v37 = vld [vmem:[%s16649_s0 + $0xa0] sm:$0xf] }
  0x69   :  { %v392_v56 = vsel %vm12260_vm3, %v387_v48, %v391_v33  ;;  %v404_v0 = vshrl.u32 %v39_v46, 16  ;;  %v3850_v2 = vrot.slane %v3848_v55, 5  ;;  %v407_v3 = vshll.u32 %v39_v46, 16  ;;  %v93_v48 = vld [vmem:[%s16649_s0 + $0xa4] sm:$0x1] }
  0x6a   :  { %11001 = vmatprep.mubr.msk.bf16.mxu0 %vm980_vm4, %v9815_v52  ;;  %v402_v1 = vsel %vm12260_vm3, %v397_v53, %v401_v43  ;;  %v413_v5 = vshll.u32 %v40_v51, 16  ;;  %v3836_v8 = vrot.slane %v3835_v59, 4  ;;  %v3845_v9 = vor.u32 %v3844_v62, %v3840_v54  ;;  %v9748_v55 = vld [vmem:[%s16649_s0 + $0xa8] sm:$0xf] }
  0x6b   :  { %v9368_v7 = vcombine.low %v392_v56, %v402_v1  ;;  %v406_v10 = vrot.slane %v404_v0, 4  ;;  %v409_v13 = vrot.slane %v407_v3, 5  ;;  %v417_v16 = vshrl.u32 %v40_v51, 16  ;;  %v9749_v0 = vld [vmem:[%s16649_s0 + $0xac] sm:$0xf] }
  0x6c   :  { %v415_v15 = vrot.slane %v413_v5, 5  ;;  %v423_v17 = vshll.u32 %v92_v63, 16  ;;  %v3841_v18 = vsel %vm12260_vm3, %v3836_v8, %v3840_v54  ;;  %v3846_v20 = vrot.slane %v3845_v9, 4  ;;  %v9750_v8 = vld [vmem:[%s16649_s0 + $0xb0] sm:$0x1] }
  0x6d   :  { %10738 = vmatmul.mubr.msk.bf16.gmra.mrb[20].mxu1 %vm980_vm4, %v9368_v7  ;;  %v3853_v22 = vshrl.u32 %v9745_v6, 16  ;;  %v3856_v23 = vshll.u32 %v9745_v6, 16  ;;  %v410_v27 = vor.u32 %v409_v13, %v406_v10  ;;  %v419_v28 = vrot.slane %v417_v16, 4 }
  0x6e   :  { %v425_v29 = vrot.slane %v423_v17, 5  ;;  %v3862_v31 = vshll.u32 %v9746_v12, 16  ;;  %v3851_v33 = vsel %vm12260_vm3, %v3846_v20, %v3850_v2  ;;  %v3866_v36 = vshrl.u32 %v9746_v12, 16  ;;  %v43_v17 = vld [vmem:[%s16649_s0 + $0xa8] sm:$0xf] }
  0x6f   :  { %v3855_v34 = vrot.slane %v3853_v22, 4  ;;  %v3858_v35 = vrot.slane %v3856_v23, 5  ;;  %v9816_v39 = vcombine.low %v3841_v18, %v3851_v33  ;;  %v411_v24 = vrot.slane %v410_v27, 4  ;;  %v44_v23 = vld [vmem:[%s16649_s0 + $0xac] sm:$0xf] }
  0x70   :  { %v420_v40 = vor.u32 %v419_v28, %v415_v15  ;;  %v3864_v41 = vrot.slane %v3862_v31, 5  ;;  %v3868_v43 = vrot.slane %v3866_v36, 4  ;;  %v3872_v44 = vshll.u32 %v9747_v21, 16 }
  0x71   :  { %v3859_v42 = vor.u32 %v3858_v35, %v3855_v34  ;;  %v428_v45 = vshrl.u32 %v41_v32, 16  ;;  %11002 = vmatmul.mubr.msk.bf16.gmra.mrb[20].mxu0 %vm980_vm4, %v9816_v39  ;;  %v416_v46 = vsel %vm12260_vm3, %v411_v24, %v415_v15  ;;  %v431_v49 = vshll.u32 %v41_v32, 16  ;;  %v94_v34 = vld [vmem:[%s16649_s0 + $0xb0] sm:$0x1] }
  0x72   :  { %v421_v47 = vrot.slane %v420_v40, 4  ;;  %v437_v50 = vshll.u32 %v42_v37, 16  ;;  %v3869_v52 = vor.u32 %v3868_v43, %v3864_v41  ;;  %v3874_v53 = vrot.slane %v3872_v44, 5 }
  0x73   :  { %v3860_v51 = vrot.slane %v3859_v42, 4  ;;  %v430_v54 = vrot.slane %v428_v45, 4  ;;  %v433_v59 = vrot.slane %v431_v49, 5  ;;  %v441_v63 = vshrl.u32 %v42_v37, 16  ;;  %v9752_v42 = vld [vmem:[%s16649_s0 + $0xb8] sm:$0xf] }
  0x74   :  { %v426_v56 = vsel %vm12260_vm3, %v421_v47, %v425_v29  ;;  %v439_v62 = vrot.slane %v437_v50, 5  ;;  %v3870_v3 = vrot.slane %v3869_v52, 4  ;;  %v447_v5 = vshll.u32 %v93_v48, 16  ;;  %v2241_v47 = vld [vmem:[%s16648_s1 + $0x8] sm:$0xf] }
  0x75   :  { %v9369_v1 = vcombine.low %v416_v46, %v426_v56  ;;  %v3865_v2 = vsel %vm12260_vm3, %v3860_v51, %v3864_v41  ;;  %v434_v6 = vor.u32 %v433_v59, %v430_v54  ;;  %v443_v7 = vrot.slane %v441_v63, 4  ;;  %v9751_v41 = vld [vmem:[%s16649_s0 + $0xb4] sm:$0xf]  ;;  %11825 = vmatprep.subr.msk.bf16.mxu1 %vm1077_vm0, %v2241_v47 }
  0x76   :  { %v3877_v9 = vshrl.u32 %v9748_v55, 16  ;;  %v3880_v10 = vshll.u32 %v9748_v55, 16  ;;  %v3875_v12 = vsel %vm12260_vm3, %v3870_v3, %v3874_v53  ;;  %v449_v13 = vrot.slane %v447_v5, 5 }
  0x77   :  { %10741 = vmatprep.mubr.msk.bf16.mxu1 %vm980_vm4, %v9369_v1  ;;  %v3886_v15 = vshll.u32 %v9749_v0, 16  ;;  %v3890_v16 = vshrl.u32 %v9749_v0, 16  ;;  %v9817_v18 = vcombine.low %v3865_v2, %v3875_v12  ;;  %v435_v20 = vrot.slane %v434_v6, 4  ;;  %v45_v1 = vld [vmem:[%s16649_s0 + $0xb4] sm:$0xf] }
  0x78   :  { %v444_v21 = vor.u32 %v443_v7, %v439_v62  ;;  %v3879_v22 = vrot.slane %v3877_v9, 4  ;;  %v3882_v27 = vrot.slane %v3880_v10, 5  ;;  %v3896_v31 = vshll.u32 %v9750_v8, 16  ;;  %v46_v7 = vld [vmem:[%s16649_s0 + $0xb8] sm:$0xf] }
  0x79   :  { %v3888_v28 = vrot.slane %v3886_v15, 5  ;;  %v3892_v29 = vrot.slane %v3890_v16, 4  ;;  %11005 = vmatprep.mubr.msk.bf16.mxu0 %vm980_vm4, %v9817_v18  ;;  %v440_v32 = vsel %vm12260_vm3, %v435_v20, %v439_v62  ;;  %v452_v35 = vshrl.u32 %v43_v17, 16  ;;  %v9753_v62 = vld [vmem:[%s16649_s0 + $0xbc] sm:$0x1] }
  0x7a   :  { %v445_v33 = vrot.slane %v444_v21, 4  ;;  %v455_v36 = vshll.u32 %v43_v17, 16  ;;  %v3883_v37 = vor.u32 %v3882_v27, %v3879_v22  ;;  %v3898_v24 = vrot.slane %v3896_v31, 5  ;;  %v95_v17 = vld [vmem:[%s16649_s0 + $0xbc] sm:$0x1] }
  0x7b   :  { %v3893_v39 = vor.u32 %v3892_v29, %v3888_v28  ;;  %v461_v40 = vshll.u32 %v44_v23, 16  ;;  %v454_v44 = vrot.slane %v452_v35, 4  ;;  %v465_v46 = vshrl.u32 %v44_v23, 16  ;;  %v9754_v27 = vld [vmem:[%s16649_s0 + $0xc0] sm:$0xf] }
  0x7c   :  { %v450_v43 = vsel %vm12260_vm3, %v445_v33, %v449_v13  ;;  %v457_v45 = vrot.slane %v455_v36, 5  ;;  %v3884_v49 = vrot.slane %v3883_v37, 4  ;;  %v471_v54 = vshll.u32 %v94_v34, 16  ;;  %v9755_v37 = vld [vmem:[%s16649_s0 + $0xc4] sm:$0xf] }
  0x7d   :  { %v9370_v48 = vcombine.low %v440_v32, %v450_v43  ;;  %v3894_v50 = vrot.slane %v3893_v39, 4  ;;  %v463_v51 = vrot.slane %v461_v40, 5  ;;  %v467_v53 = vrot.slane %v465_v46, 4 }
  0x7e   :  { %v458_v52 = vor.u32 %v457_v45, %v454_v44  ;;  %v3901_v55 = vshrl.u32 %v9751_v41, 16  ;;  %v3889_v56 = vsel %vm12260_vm3, %v3884_v49, %v3888_v28  ;;  %v3904_v63 = vshll.u32 %v9751_v41, 16  ;;  %v9756_v45 = vld [vmem:[%s16649_s0 + $0xc8] sm:$0x1] }
  0x7f   :  { %10742 = vmatmul.mubr.msk.bf16.gmra.mrb[24].mxu1 %vm980_vm4, %v9370_v48  ;;  %v3899_v59 = vsel %vm12260_vm3, %v3894_v50, %v3898_v24  ;;  %v3910_v0 = vshll.u32 %v9752_v42, 16  ;;  %v468_v5 = vor.u32 %v467_v53, %v463_v51  ;;  %v473_v6 = vrot.slane %v471_v54, 5 }
  0x80   :  { %v9818_v2 = vcombine.low %v3889_v56, %v3899_v59  ;;  %v459_v3 = vrot.slane %v458_v52, 4  ;;  %v3903_v8 = vrot.slane %v3901_v55, 4  ;;  %v3906_v9 = vrot.slane %v3904_v63, 5  ;;  %v48_v56 = vld [vmem:[%s16649_s0 + $0xdc] sm:$0xf] }
  0x81   :  { %v3912_v10 = vrot.slane %v3910_v0, 5  ;;  %v3914_v12 = vshrl.u32 %v9752_v42, 16  ;;  %v469_v15 = vrot.slane %v468_v5, 4  ;;  %v3920_v16 = vshll.u32 %v9753_v62, 16  ;;  %v96_v5 = vld [vmem:[%s16649_s0 + $0xe0] sm:$0x1] }
  0x82   :  { %11006 = vmatmul.mubr.msk.bf16.gmra.mrb[24].mxu0 %vm980_vm4, %v9818_v2  ;;  %v464_v13 = vsel %vm12260_vm3, %v459_v3, %v463_v51  ;;  %v476_v18 = vshrl.u32 %v45_v1, 16  ;;  %v3907_v20 = vor.u32 %v3906_v9, %v3903_v8  ;;  %v479_v22 = vshll.u32 %v45_v1, 16  ;;  %v47_v51 = vld [vmem:[%s16649_s0 + $0xd8] sm:$0xf] }
  0x83   :  { %v3916_v21 = vrot.slane %v3914_v12, 4  ;;  %v485_v23 = vshll.u32 %v46_v7, 16  ;;  %v474_v28 = vsel %vm12260_vm3, %v469_v15, %v473_v6  ;;  %v3922_v29 = vrot.slane %v3920_v16, 5 }
  0x84   :  { %v478_v31 = vrot.slane %v476_v18, 4  ;;  %v489_v32 = vshrl.u32 %v46_v7, 16  ;;  %v9371_v33 = vcombine.low %v464_v13, %v474_v28  ;;  %v3908_v34 = vrot.slane %v3907_v20, 4  ;;  %v49_v18 = vld [vmem:[%s16649_s0 + $0xe4] sm:$0xf] }
  0x85   :  { %v3917_v35 = vor.u32 %v3916_v21, %v3912_v10  ;;  %v481_v36 = vrot.slane %v479_v22, 5  ;;  %v487_v39 = vrot.slane %v485_v23, 5  ;;  %v495_v40 = vshll.u32 %v95_v17, 16  ;;  %v9869_v17 = vld [vmem:[%s16649_s0 + $0xc] sm:$0xe] }
  0x86   :  { %v491_v24 = vrot.slane %v489_v32, 4  ;;  %v3925_v41 = vshrl.u32 %v9754_v27, 16  ;;  %10745 = vmatprep.mubr.msk.bf16.mxu1 %vm980_vm4, %v9371_v33  ;;  %v3913_v42 = vsel %vm12260_vm3, %v3908_v34, %v3912_v10  ;;  %v3928_v46 = vshll.u32 %v9754_v27, 16  ;;  %v50_v27 = vld [vmem:[%s16649_s0 + $0xe8] sm:$0xf] }
  0x87   :  { %v3918_v43 = vrot.slane %v3917_v35, 4  ;;  %v482_v44 = vor.u32 %v481_v36, %v478_v31  ;;  %v497_v48 = vrot.slane %v495_v40, 5  ;;  %v3934_v50 = vshll.u32 %v9755_v37, 16 }
  0x88   :  { %v492_v47 = vor.u32 %v491_v24, %v487_v39  ;;  %v3927_v49 = vrot.slane %v3925_v41, 4  ;;  %v3930_v54 = vrot.slane %v3928_v46, 5  ;;  %v3938_v55 = vshrl.u32 %v9755_v37, 16 }
  0x89   :  { %v3923_v52 = vsel %vm12260_vm3, %v3918_v43, %v3922_v29  ;;  %v483_v53 = vrot.slane %v482_v44, 4  ;;  %v3936_v63 = vrot.slane %v3934_v50, 5  ;;  %v3944_v0 = vshll.u32 %v9756_v45, 16  ;;  %v9870_v45 = vld [vmem:[%s16649_s0 + $0x18] sm:$0xe] }
  0x8a   :  { %v9819_v59 = vcombine.low %v3913_v42, %v3923_v52  ;;  %v493_v62 = vrot.slane %v492_v47, 4  ;;  %v3931_v2 = vor.u32 %v3930_v54, %v3927_v49  ;;  %v3940_v3 = vrot.slane %v3938_v55, 4  ;;  %v51_v50 = vld [vmem:[%s16649_s0 + $0xf0] sm:$0xf] }
  0x8b   :  { %v488_v1 = vsel %vm12260_vm3, %v483_v53, %v487_v39  ;;  %v500_v6 = vshrl.u32 %v47_v51, 16  ;;  %v3946_v8 = vrot.slane %v3944_v0, 5  ;;  %v503_v9 = vshll.u32 %v47_v51, 16  ;;  %v97_v39 = vld [vmem:[%s16649_s0 + $0xec] sm:$0x1] }
  0x8c   :  { %11009 = vmatprep.mubr.msk.bf16.mxu0 %vm980_vm4, %v9819_v59  ;;  %v498_v7 = vsel %vm12260_vm3, %v493_v62, %v497_v48  ;;  %v509_v10 = vshll.u32 %v48_v56, 16  ;;  %v3932_v13 = vrot.slane %v3931_v2, 4  ;;  %v3941_v15 = vor.u32 %v3940_v3, %v3936_v63  ;;  %v9871_v59 = vld [vmem:[%s16649_s0 + $0x24] sm:$0xe] }
  0x8d   :  { %v9372_v12 = vcombine.low %v488_v1, %v498_v7  ;;  %v502_v16 = vrot.slane %v500_v6, 4  ;;  %v505_v20 = vrot.slane %v503_v9, 5  ;;  %v513_v22 = vshrl.u32 %v48_v56, 16 }
  0x8e   :  { %v511_v21 = vrot.slane %v509_v10, 5  ;;  %v519_v23 = vshll.u32 %v96_v5, 16  ;;  %v3937_v28 = vsel %vm12260_vm3, %v3932_v13, %v3936_v63  ;;  %v3942_v29 = vrot.slane %v3941_v15, 4 }
  0x8f   :  { %10746 = vmatmul.mubr.msk.bf16.gmra.mrb[28].mxu1 %vm980_vm4, %v9372_v12  ;;  %vm2015_vm6 = vcmask 1046532   ;;  %v506_v31 = vor.u32 %v505_v20, %v502_v16  ;;  %v515_v32 = vrot.slane %v513_v22, 4  ;;  %v9901_v35 = vrot.slane %v9869_v17, 9  ;;  %v53_v12 = vld [vmem:[%s16649_s0 + $0xfc] sm:$0xf] }
  0x90   :  { %v521_v33 = vrot.slane %v519_v23, 5  ;;  %vm12735_vm7 = vmor %vm2014_vm5, %vm2015_vm6  ;;  %v3947_v36 = vsel %vm12260_vm3, %v3942_v29, %v3946_v8  ;;  %v5013_v37 = vrot.slane %v5011_v57, 4  ;;  %v524_v24 = vshrl.u32 %v49_v18, 16  ;;  %v11964_v20 = vld [vmem:[%s16649_s0 + $0x28] sm:$0xf] }
  0x91   :  { %v527_v40 = vshll.u32 %v49_v18, 16  ;;  %v9820_v41 = vcombine.low %v3937_v28, %v3947_v36  ;;  %v507_v42 = vrot.slane %v506_v31, 4  ;;  %v516_v43 = vor.u32 %v515_v32, %v511_v21  ;;  %v54_v22 = vld [vmem:[%s16649_s0 + $0x100] sm:$0xf]  ;;  %v11965_v28 = vld [vmem:[%s16649_s0 + $0x2c] sm:$0x1] }
  0x92   :  { %v5012_v44 = vsel %vm12735_vm7, %v9901_v35, %v5011_v57  ;;  %v5015_v46 = vsel %vm12735_vm7, %v5013_v37, %v5014_v58  ;;  %v526_v47 = vrot.slane %v524_v24, 4  ;;  %v533_v49 = vshll.u32 %v50_v27, 16  ;;  %v98_v58 = vld [vmem:[%s16649_s0 + $0xf8] sm:$0x1]  ;;  %v99_v31 = vld [vmem:[%s16649_s0 + $0x104] sm:$0x1] }
  0x93   :  { %v529_v48 = vrot.slane %v527_v40, 5  ;;  %11010 = vmatmul.mubr.msk.bf16.gmra.mrb[28].mxu0 %vm980_vm4, %v9820_v41  ;;  %v512_v14 = vsel %vm12260_vm3, %v507_v42, %v511_v21  ;;  %v517_v57 = vrot.slane %v516_v43, 4  ;;  %v9933_v51 = vcombine.low %v5012_v44, %v5015_v46  ;;  %v55_v43 = vld [vmem:[%s16649_s0 + $0x108] sm:$0xf]  ;;  %v56_v44 = vld [vmem:[%s16649_s0 + $0x10c] sm:$0xf] }
  0x94   :  { %v537_v52 = vshrl.u32 %v50_v27, 16  ;;  %v535_v54 = vrot.slane %v533_v49, 5  ;;  %v543_v55 = vshll.u32 %v97_v39, 16  ;;  %v9902_v56 = vrot.slane %v9870_v45, 9  ;;  %v9872_v39 = vld [vmem:[%s16649_s0 + $0x30] sm:$0xe] }
  0x95   :  { %v530_v53 = vor.u32 %v529_v48, %v526_v47  ;;  %v522_v62 = vsel %vm12260_vm3, %v517_v57, %v521_v33  ;;  %11047 = vmatprep.mubr.msk.bf16.mxu0 %vm980_vm4, %v9933_v51  ;;  %v5022_v0 = vsel %vm12735_vm7, %v12310_v25, %v5021_v26  ;;  %v6105_v1 = vsel %vm1077_vm0, %v12511_v38, 0 }
  0x96   :  { %v539_v63 = vrot.slane %v537_v52, 4  ;;  %v9373_v2 = vcombine.low %v512_v14, %v522_v62  ;;  %v545_v5 = vrot.slane %v543_v55, 5  ;;  %v5019_v6 = vsel %vm12735_vm7, %v9902_v56, %v5018_v11  ;;  %v11966_v55 = vld [vmem:[%s16649_s0 + $0x34] sm:$0xf] }
  0x97   :  { %v531_v3 = vrot.slane %v530_v53, 4  ;;  %v9934_v8 = vcombine.low %v5019_v6, %v5022_v0  ;;  %v548_v9 = vshrl.u32 %v51_v50, 16  ;;  %v551_v10 = vshll.u32 %v51_v50, 16  ;;  %v100_v0 = vld [vmem:[%s16649_s0 + $0x110] sm:$0x1] }
  0x98   :  { %v540_v7 = vor.u32 %v539_v63, %v535_v54  ;;  %10749 = vmatprep.mubr.msk.bf16.mxu1 %vm980_vm4, %v9373_v2  ;;  %v557_v25 = vshll.u32 %v52_v19, 16  ;;  %v561_v26 = vshrl.u32 %v52_v19, 16  ;;  %v567_v38 = vshll.u32 %v98_v58, 16 }
  0x99   :  { %v536_v61 = vsel %vm12260_vm3, %v531_v3, %v535_v54  ;;  %v550_v13 = vrot.slane %v548_v9, 4  ;;  %v553_v15 = vrot.slane %v551_v10, 5  ;;  %v9903_v11 = vrot.slane %v9871_v59, 9  ;;  %v11967_v59 = vld [vmem:[%s16649_s0 + $0x38] sm:$0x1] }
  0x9a   :  { %v541_v60 = vrot.slane %v540_v7, 4  ;;  %v559_v16 = vrot.slane %v557_v25, 5  ;;  %v563_v17 = vrot.slane %v561_v26, 4  ;;  %v569_v18 = vrot.slane %v567_v38, 5  ;;  %v9873_v9 = vld [vmem:[%s16649_s0 + $0x3c] sm:$0xe] }
  0x9b   :  { %v5025_v21 = vrot.slane %v11964_v20, 5  ;;  %11048 = vmatmul.mubr.msk.bf16.vlgmr.msra.gmra.mrb[0].mxu0 %vm980_vm4, %v9934_v8  ;;  %v554_v27 = vor.u32 %v553_v15, %v550_v13  ;;  %v5028_v29 = vrot.slane %v11965_v28, 5  ;;  %v572_v32 = vshrl.u32 %v53_v12, 16  ;;  %v57_v38 = vld [vmem:[%s16649_s0 + $0x114] sm:$0xf] }
  0x9c   :  { %v546_v23 = vsel %vm12260_vm3, %v541_v60, %v545_v5  ;;  %11112 = vmatpush3.bf16.msra.mxu0 %v6105_v1  ;;  %v564_v35 = vor.u32 %v563_v17, %v559_v16  ;;  %v575_v41 = vshll.u32 %v53_v12, 16  ;;  %v581_v42 = vshll.u32 %v54_v22, 16 }
  0x9d   :  { %v9374_v33 = vcombine.low %v536_v61, %v546_v23  ;;  %v5026_v36 = vsel %vm12735_vm7, %v9903_v11, %v5025_v21  ;;  %v5027_v37 = vrot.slane %v5025_v21, 4  ;;  %v555_v24 = vrot.slane %v554_v27, 4  ;;  %v58_v11 = vld [vmem:[%s16649_s0 + $0x118] sm:$0xf]  ;;  %v11968_v27 = vld [vmem:[%s16649_s0 + $0x40] sm:$0xf] }
  0x9e   :  { %v574_v40 = vrot.slane %v572_v32, 4  ;;  %v565_v45 = vrot.slane %v564_v35, 4  ;;  %v585_v47 = vshrl.u32 %v54_v22, 16  ;;  %v591_v48 = vshll.u32 %v99_v31, 16  ;;  %v11969_v31 = vld [vmem:[%s16649_s0 + $0x44] sm:$0x1] }
  0x9f   :  { %10750 = vmatmul.mubr.msk.bf16.gmra.mrb[32].mxu1 %vm980_vm4, %v9374_v33  ;;  %v5029_v46 = vsel %vm12735_vm7, %v5027_v37, %v5028_v29  ;;  %v560_v49 = vsel %vm12260_vm3, %v555_v24, %v559_v16  ;;  %v577_v14 = vrot.slane %v575_v41, 5  ;;  %v583_v57 = vrot.slane %v581_v42, 5  ;;  %v101_v33 = vld [vmem:[%s16649_s0 + $0x11c] sm:$0x1] }
  0xa0   :  { %v9935_v50 = vcombine.low %v5026_v36, %v5029_v46  ;;  %v570_v51 = vsel %vm12260_vm3, %v565_v45, %v569_v18  ;;  %v587_v52 = vrot.slane %v585_v47, 4  ;;  %v593_v19 = vrot.slane %v591_v48, 5  ;;  %v9874_v45 = vld [vmem:[%s16649_s0 + $0x48] sm:$0xe] }
  0xa1   :  { %v9904_v58 = vrot.slane %v9872_v39, 9  ;;  %v9375_v53 = vcombine.low %v560_v49, %v570_v51  ;;  %v578_v54 = vor.u32 %v577_v14, %v574_v40  ;;  %v5032_v56 = vrot.slane %v11966_v55, 5  ;;  %v60_v14 = vld [vmem:[%s16649_s0 + $0x124] sm:$0xf]  ;;  %v11970_v55 = vld [vmem:[%s16649_s0 + $0x4c] sm:$0xf] }
  0xa2   :  { %11051 = vmatprep.mubr.msk.bf16.mxu0 %vm980_vm4, %v9935_v50  ;;  %v5035_v62 = vrot.slane %v11967_v59, 5  ;;  %v588_v63 = vor.u32 %v587_v52, %v583_v57  ;;  %v596_v1 = vshrl.u32 %v55_v43, 16  ;;  %v599_v2 = vshll.u32 %v55_v43, 16  ;;  %v59_v50 = vld [vmem:[%s16649_s0 + $0x120] sm:$0xf] }
  0xa3   :  { %v605_v3 = vshll.u32 %v56_v44, 16  ;;  %10753 = vmatprep.mubr.msk.bf16.mxu1 %vm980_vm4, %v9375_v53  ;;  %v579_v5 = vrot.slane %v578_v54, 4  ;;  %v5033_v6 = vsel %vm12735_vm7, %v9904_v58, %v5032_v56  ;;  %v5034_v7 = vrot.slane %v5032_v56, 4  ;;  %v102_v58 = vld [vmem:[%s16649_s0 + $0x128] sm:$0x1] }
  0xa4   :  { %v609_v8 = vshrl.u32 %v56_v44, 16  ;;  %v589_v10 = vrot.slane %v588_v63, 4  ;;  %v598_v61 = vrot.slane %v596_v1, 4  ;;  %v601_v25 = vrot.slane %v599_v2, 5  ;;  %v11971_v59 = vld [vmem:[%s16649_s0 + $0x50] sm:$0x1] }
  0xa5   :  { %v607_v26 = vrot.slane %v605_v3, 5  ;;  %v584_v12 = vsel %vm12260_vm3, %v579_v5, %v583_v57  ;;  %v5036_v60 = vsel %vm12735_vm7, %v5034_v7, %v5035_v62  ;;  %v615_v15 = vshll.u32 %v100_v0, 16  ;;  %v9875_v63 = vld [vmem:[%s16649_s0 + $0x54] sm:$0xe] }
  0xa6   :  { %v611_v13 = vrot.slane %v609_v8, 4  ;;  %v594_v16 = vsel %vm12260_vm3, %v589_v10, %v593_v19  ;;  %v9936_v17 = vcombine.low %v5033_v6, %v5036_v60  ;;  %v602_v18 = vor.u32 %v601_v25, %v598_v61 }
  0xa7   :  { %v9905_v20 = vrot.slane %v9873_v9, 9  ;;  %v9376_v21 = vcombine.low %v584_v12, %v594_v16  ;;  %v617_v23 = vrot.slane %v615_v15, 5  ;;  %v5039_v28 = vrot.slane %v11968_v27, 5  ;;  %v61_v9 = vld [vmem:[%s16649_s0 + $0x12c] sm:$0xf] }
  0xa8   :  { %v612_v22 = vor.u32 %v611_v13, %v607_v26  ;;  %11052 = vmatmul.mubr.msk.bf16.gmra.mrb[4].mxu0 %vm980_vm4, %v9936_v17  ;;  %v603_v29 = vrot.slane %v602_v18, 4  ;;  %v5042_v32 = vrot.slane %v11969_v31, 5  ;;  %v620_v35 = vshrl.u32 %v57_v38, 16 }
  0xa9   :  { %v623_v36 = vshll.u32 %v57_v38, 16  ;;  %10754 = vmatmul.mubr.msk.bf16.gmra.mrb[36].mxu1 %vm980_vm4, %v9376_v21  ;;  %v5040_v39 = vsel %vm12735_vm7, %v9905_v20, %v5039_v28  ;;  %v5041_v24 = vrot.slane %v5039_v28, 4  ;;  %v629_v40 = vshll.u32 %v58_v11, 16  ;;  %v62_v38 = vld [vmem:[%s16649_s0 + $0x130] sm:$0xf] }
  0xaa   :  { %v613_v37 = vrot.slane %v612_v22, 4  ;;  %v608_v41 = vsel %vm12260_vm3, %v603_v29, %v607_v26  ;;  %v622_v42 = vrot.slane %v620_v35, 4  ;;  %v633_v44 = vshrl.u32 %v58_v11, 16  ;;  %v103_v20 = vld [vmem:[%s16649_s0 + $0x134] sm:$0x1] }
  0xab   :  { %v625_v43 = vrot.slane %v623_v36, 5  ;;  %v5043_v47 = vsel %vm12735_vm7, %v5041_v24, %v5042_v32  ;;  %v631_v48 = vrot.slane %v629_v40, 5  ;;  %v639_v49 = vshll.u32 %v101_v33, 16  ;;  %v7324_v21 = vld [vmem:[%s16648_s1 + $0x1c] sm:$0xf] }
  0xac   :  { %v618_v46 = vsel %vm12260_vm3, %v613_v37, %v617_v23  ;;  %v9937_v51 = vcombine.low %v5040_v39, %v5043_v47  ;;  %v635_v19 = vrot.slane %v633_v44, 4  ;;  %v9906_v54 = vrot.slane %v9874_v45, 9  ;;  %v11972_v28 = vld [vmem:[%s16649_s0 + $0x58] sm:$0xf]  ;;  %11831 = vmatprep.subr.msk.bf16.mxu0 %vm1077_vm0, %v7324_v21  ;;  %v11973_v32 = vld [vmem:[%s16649_s0 + $0x5c] sm:$0x1] }
  0xad   :  { %v9377_v57 = vcombine.low %v608_v41, %v618_v46  ;;  %v626_v52 = vor.u32 %v625_v43, %v622_v42  ;;  %v641_v53 = vrot.slane %v639_v49, 5  ;;  %v5046_v56 = vrot.slane %v11970_v55, 5  ;;  %v9876_v37 = vld [vmem:[%s16649_s0 + $0x60] sm:$0xe]  ;;  %v63_v42 = vld [vmem:[%s16649_s0 + $0x138] sm:$0xf] }
  0xae   :  { %v5049_v62 = vrot.slane %v11971_v59, 5  ;;  %11055 = vmatprep.mubr.msk.bf16.mxu0 %vm980_vm4, %v9937_v51  ;;  %v636_v1 = vor.u32 %v635_v19, %v631_v48  ;;  %v644_v2 = vshrl.u32 %v59_v50, 16  ;;  %v647_v3 = vshll.u32 %v59_v50, 16  ;;  %v11974_v55 = vld [vmem:[%s16649_s0 + $0x64] sm:$0xf] }
  0xaf   :  { %10757 = vmatprep.mubr.msk.bf16.mxu1 %vm980_vm4, %v9377_v57  ;;  %v627_v0 = vrot.slane %v626_v52, 4  ;;  %v5047_v5 = vsel %vm12735_vm7, %v9906_v54, %v5046_v56  ;;  %v5048_v6 = vrot.slane %v5046_v56, 4  ;;  %v653_v7 = vshll.u32 %v60_v14, 16  ;;  %v11975_v59 = vld [vmem:[%s16649_s0 + $0x68] sm:$0x1] }
  0xb0   :  { %v657_v8 = vshrl.u32 %v60_v14, 16  ;;  %v637_v61 = vrot.slane %v636_v1, 4  ;;  %v646_v25 = vrot.slane %v644_v2, 4  ;;  %v649_v26 = vrot.slane %v647_v3, 5  ;;  %v64_v14 = vld [vmem:[%s16649_s0 + $0x13c] sm:$0xf] }
  0xb1   :  { %v632_v10 = vsel %vm12260_vm3, %v627_v0, %v631_v48  ;;  %v5050_v12 = vsel %vm12735_vm7, %v5048_v6, %v5049_v62  ;;  %v655_v60 = vrot.slane %v653_v7, 5  ;;  %v663_v15 = vshll.u32 %v102_v58, 16  ;;  %v104_v58 = vld [vmem:[%s16649_s0 + $0x140] sm:$0x1] }
  0xb2   :  { %v659_v13 = vrot.slane %v657_v8, 4  ;;  %v642_v11 = vsel %vm12260_vm3, %v637_v61, %v641_v53  ;;  %v9938_v16 = vcombine.low %v5047_v5, %v5050_v12  ;;  %v650_v17 = vor.u32 %v649_v26, %v646_v25 }
  0xb3   :  { %v9907_v18 = vrot.slane %v9875_v63, 9  ;;  %v9378_v22 = vcombine.low %v632_v10, %v642_v11  ;;  %v665_v27 = vrot.slane %v663_v15, 5  ;;  %v5053_v29 = vrot.slane %v11972_v28, 5  ;;  %v9877_v63 = vld [vmem:[%s16649_s0 + $0x6c] sm:$0xe] }
  0xb4   :  { %v660_v23 = vor.u32 %v659_v13, %v655_v60  ;;  %11056 = vmatmul.mubr.msk.bf16.gmra.mrb[8].mxu0 %vm980_vm4, %v9938_v16  ;;  %v651_v31 = vrot.slane %v650_v17, 4  ;;  %v5056_v33 = vrot.slane %v11973_v32, 5  ;;  %v668_v35 = vshrl.u32 %v61_v9, 16  ;;  %v105_v28 = vld [vmem:[%s16649_s0 + $0x14c] sm:$0x1] }
  0xb5   :  { %v671_v36 = vshll.u32 %v61_v9, 16  ;;  %10758 = vmatmul.mubr.msk.bf16.gmra.mrb[40].mxu1 %vm980_vm4, %v9378_v22  ;;  %v5054_v24 = vsel %vm12735_vm7, %v9907_v18, %v5053_v29  ;;  %v5055_v40 = vrot.slane %v5053_v29, 4  ;;  %v677_v41 = vshll.u32 %v62_v38, 16  ;;  %v65_v9 = vld [vmem:[%s16649_s0 + $0x144] sm:$0xf] }
  0xb6   :  { %v661_v39 = vrot.slane %v660_v23, 4  ;;  %v656_v43 = vsel %vm12260_vm3, %v651_v31, %v655_v60  ;;  %v670_v44 = vrot.slane %v668_v35, 4  ;;  %v681_v46 = vshrl.u32 %v62_v38, 16  ;;  %v66_v38 = vld [vmem:[%s16649_s0 + $0x148] sm:$0xf] }
  0xb7   :  { %v673_v45 = vrot.slane %v671_v36, 5  ;;  %v5057_v48 = vsel %vm12735_vm7, %v5055_v40, %v5056_v33  ;;  %v679_v49 = vrot.slane %v677_v41, 5  ;;  %v687_v50 = vshll.u32 %v103_v20, 16  ;;  %v11976_v23 = vld [vmem:[%s16649_s0 + $0x70] sm:$0xf] }
  0xb8   :  { %v666_v47 = vsel %vm12260_vm3, %v661_v39, %v665_v27  ;;  %v9939_v51 = vcombine.low %v5054_v24, %v5057_v48  ;;  %v683_v19 = vrot.slane %v681_v46, 4  ;;  %v9908_v54 = vrot.slane %v9876_v37, 9  ;;  %v11977_v31 = vld [vmem:[%s16649_s0 + $0x74] sm:$0x1]  ;;  %v9878_v36 = vld [vmem:[%s16649_s0 + $0x78] sm:$0xe] }
  0xb9   :  { %v9379_v57 = vcombine.low %v656_v43, %v666_v47  ;;  %v674_v52 = vor.u32 %v673_v45, %v670_v44  ;;  %v689_v53 = vrot.slane %v687_v50, 5  ;;  %v5060_v56 = vrot.slane %v11974_v55, 5  ;;  %v67_v41 = vld [vmem:[%s16649_s0 + $0x150] sm:$0xf]  ;;  %v68_v46 = vld [vmem:[%s16649_s0 + $0x154] sm:$0xf] }
  0xba   :  { %v5063_v62 = vrot.slane %v11975_v59, 5  ;;  %11059 = vmatprep.mubr.msk.bf16.mxu0 %vm980_vm4, %v9939_v51  ;;  %v684_v1 = vor.u32 %v683_v19, %v679_v49  ;;  %v692_v2 = vshrl.u32 %v63_v42, 16  ;;  %v695_v3 = vshll.u32 %v63_v42, 16  ;;  %v106_v19 = vld [vmem:[%s16649_s0 + $0x158] sm:$0x1] }
  0xbb   :  { %10761 = vmatprep.mubr.msk.bf16.mxu1 %vm980_vm4, %v9379_v57  ;;  %v675_v0 = vrot.slane %v674_v52, 4  ;;  %v5061_v5 = vsel %vm12735_vm7, %v9908_v54, %v5060_v56  ;;  %v5062_v6 = vrot.slane %v5060_v56, 4  ;;  %v701_v7 = vshll.u32 %v64_v14, 16  ;;  %v11978_v54 = vld [vmem:[%s16649_s0 + $0x7c] sm:$0xf] }
  0xbc   :  { %v705_v8 = vshrl.u32 %v64_v14, 16  ;;  %v685_v61 = vrot.slane %v684_v1, 4  ;;  %v694_v25 = vrot.slane %v692_v2, 4  ;;  %v697_v26 = vrot.slane %v695_v3, 5  ;;  %v11979_v56 = vld [vmem:[%s16649_s0 + $0x80] sm:$0x1] }
  0xbd   :  { %v680_v10 = vsel %vm12260_vm3, %v675_v0, %v679_v49  ;;  %v5064_v12 = vsel %vm12735_vm7, %v5062_v6, %v5063_v62  ;;  %v703_v60 = vrot.slane %v701_v7, 5  ;;  %v711_v15 = vshll.u32 %v104_v58, 16  ;;  %v9879_v62 = vld [vmem:[%s16649_s0 + $0x84] sm:$0xe] }
  0xbe   :  { %v707_v13 = vrot.slane %v705_v8, 4  ;;  %v690_v11 = vsel %vm12260_vm3, %v685_v61, %v689_v53  ;;  %v9940_v16 = vcombine.low %v5061_v5, %v5064_v12  ;;  %v698_v17 = vor.u32 %v697_v26, %v694_v25  ;;  %v69_v8 = vld [vmem:[%s16649_s0 + $0x15c] sm:$0xf]  ;;  %v70_v26 = vld [vmem:[%s16649_s0 + $0x160] sm:$0xf] }
  0xbf   :  { %v9909_v18 = vrot.slane %v9877_v63, 9  ;;  %v9380_v20 = vcombine.low %v680_v10, %v690_v11  ;;  %v713_v22 = vrot.slane %v711_v15, 5  ;;  %v5067_v27 = vrot.slane %v11976_v23, 5  ;;  %v11980_v23 = vld [vmem:[%s16649_s0 + $0x88] sm:$0xf] }
  0xc0   :  { %v708_v21 = vor.u32 %v707_v13, %v703_v60  ;;  %11060 = vmatmul.mubr.msk.bf16.gmra.mrb[12].mxu0 %vm980_vm4, %v9940_v16  ;;  %v699_v29 = vrot.slane %v698_v17, 4  ;;  %v5070_v32 = vrot.slane %v11977_v31, 5  ;;  %v716_v33 = vshrl.u32 %v65_v9, 16 }
  0xc1   :  { %v719_v35 = vshll.u32 %v65_v9, 16  ;;  %10762 = vmatmul.mubr.msk.bf16.gmra.mrb[44].mxu1 %vm980_vm4, %v9380_v20  ;;  %v5068_v39 = vsel %vm12735_vm7, %v9909_v18, %v5067_v27  ;;  %v5069_v24 = vrot.slane %v5067_v27, 4  ;;  %v725_v40 = vshll.u32 %v66_v38, 16  ;;  %v107_v18 = vld [vmem:[%s16649_s0 + $0x164] sm:$0x1] }
  0xc2   :  { %v709_v37 = vrot.slane %v708_v21, 4  ;;  %v704_v42 = vsel %vm12260_vm3, %v699_v29, %v703_v60  ;;  %v718_v43 = vrot.slane %v716_v33, 4  ;;  %v729_v45 = vshrl.u32 %v66_v38, 16  ;;  %v11981_v29 = vld [vmem:[%s16649_s0 + $0x8c] sm:$0x1] }
  0xc3   :  { %v721_v44 = vrot.slane %v719_v35, 5  ;;  %v5071_v48 = vsel %vm12735_vm7, %v5069_v24, %v5070_v32  ;;  %v727_v49 = vrot.slane %v725_v40, 5  ;;  %v735_v50 = vshll.u32 %v105_v28, 16  ;;  %v9880_v35 = vld [vmem:[%s16649_s0 + $0x90] sm:$0xe] }
  0xc4   :  { %v714_v47 = vsel %vm12260_vm3, %v709_v37, %v713_v22  ;;  %v9941_v57 = vcombine.low %v5068_v39, %v5071_v48  ;;  %v731_v52 = vrot.slane %v729_v45, 4  ;;  %v9910_v53 = vrot.slane %v9878_v36, 9  ;;  %v13044_v40 = vld [vmem:[%s16649_s0 + $0x168] sm:$0xf] }
  0xc5   :  { %v9381_v14 = vcombine.low %v704_v42, %v714_v47  ;;  %v722_v51 = vor.u32 %v721_v44, %v718_v43  ;;  %v737_v58 = vrot.slane %v735_v50, 5  ;;  %v5074_v55 = vrot.slane %v11978_v54, 5 }
  0xc6   :  { %v5077_v59 = vrot.slane %v11979_v56, 5  ;;  %11063 = vmatprep.mubr.msk.bf16.mxu0 %vm980_vm4, %v9941_v57  ;;  %v732_v0 = vor.u32 %v731_v52, %v727_v49  ;;  %v740_v1 = vshrl.u32 %v67_v41, 16  ;;  %v743_v2 = vshll.u32 %v67_v41, 16  ;;  %v108_v52 = vld [vmem:[%s16649_s0 + $0x170] sm:$0x1] }
  0xc7   :  { %10765 = vmatprep.mubr.msk.bf16.mxu1 %vm980_vm4, %v9381_v14  ;;  %v723_v63 = vrot.slane %v722_v51, 4  ;;  %v5075_v3 = vsel %vm12735_vm7, %v9910_v53, %v5074_v55  ;;  %v5076_v5 = vrot.slane %v5074_v55, 4  ;;  %v749_v6 = vshll.u32 %v68_v46, 16  ;;  %v11982_v53 = vld [vmem:[%s16649_s0 + $0x94] sm:$0xf] }
  0xc8   :  { %v753_v7 = vshrl.u32 %v68_v46, 16  ;;  %v733_v10 = vrot.slane %v732_v0, 4  ;;  %v742_v61 = vrot.slane %v740_v1, 4  ;;  %v745_v25 = vrot.slane %v743_v2, 5  ;;  %v11983_v55 = vld [vmem:[%s16649_s0 + $0x98] sm:$0x1] }
  0xc9   :  { %v728_v9 = vsel %vm12260_vm3, %v723_v63, %v727_v49  ;;  %v5078_v38 = vsel %vm12735_vm7, %v5076_v5, %v5077_v59  ;;  %v751_v12 = vrot.slane %v749_v6, 5  ;;  %v759_v13 = vshll.u32 %v106_v19, 16  ;;  %v13055_v49 = vld [vmem:[%s16649_s0 + $0x16c] sm:$0xf]  ;;  %v9881_v59 = vld [vmem:[%s16649_s0 + $0x9c] sm:$0xe] }
  0xca   :  { %v755_v60 = vrot.slane %v753_v7, 4  ;;  %v738_v15 = vsel %vm12260_vm3, %v733_v10, %v737_v58  ;;  %v9942_v11 = vcombine.low %v5075_v3, %v5078_v38  ;;  %v746_v16 = vor.u32 %v745_v25, %v742_v61  ;;  %v13080_v7 = vld [vmem:[%s16649_s0 + $0x174] sm:$0xf]  ;;  %v13087_v25 = vld [vmem:[%s16649_s0 + $0x178] sm:$0xf] }
  0xcb   :  { %v9911_v17 = vrot.slane %v9879_v62, 9  ;;  %v9382_v20 = vcombine.low %v728_v9, %v738_v15  ;;  %v761_v22 = vrot.slane %v759_v13, 5  ;;  %v5081_v27 = vrot.slane %v11980_v23, 5  ;;  %v109_v23 = vld [vmem:[%s16649_s0 + $0x17c] sm:$0x1] }
  0xcc   :  { %v756_v21 = vor.u32 %v755_v60, %v751_v12  ;;  %11064 = vmatmul.mubr.msk.bf16.gmra.mrb[16].mxu0 %vm980_vm4, %v9942_v11  ;;  %v747_v28 = vrot.slane %v746_v16, 4  ;;  %v5084_v31 = vrot.slane %v11981_v29, 5  ;;  %v764_v32 = vshrl.u32 %v69_v8, 16 }
  0xcd   :  { %v767_v33 = vshll.u32 %v69_v8, 16  ;;  %10766 = vmatmul.mubr.msk.bf16.gmra.mrb[48].mxu1 %vm980_vm4, %v9382_v20  ;;  %v5082_v37 = vsel %vm12735_vm7, %v9911_v17, %v5081_v27  ;;  %v5083_v39 = vrot.slane %v5081_v27, 4  ;;  %v773_v24 = vshll.u32 %v70_v26, 16 }
  0xce   :  { %v757_v36 = vrot.slane %v756_v21, 4  ;;  %v752_v41 = vsel %vm12260_vm3, %v747_v28, %v751_v12  ;;  %v766_v42 = vrot.slane %v764_v32, 4  ;;  %v777_v44 = vshrl.u32 %v70_v26, 16  ;;  %v11984_v21 = vld [vmem:[%s16649_s0 + $0xa0] sm:$0xf] }
  0xcf   :  { %v769_v43 = vrot.slane %v767_v33, 5  ;;  %v5085_v46 = vsel %vm12735_vm7, %v5083_v39, %v5084_v31  ;;  %v775_v47 = vrot.slane %v773_v24, 5  ;;  %v783_v48 = vshll.u32 %v107_v18, 16  ;;  %v11985_v28 = vld [vmem:[%s16649_s0 + $0xa4] sm:$0x1] }
  0xd0   :  { %v762_v45 = vsel %vm12260_vm3, %v757_v36, %v761_v22  ;;  %v9943_v14 = vcombine.low %v5082_v37, %v5085_v46  ;;  %v779_v51 = vrot.slane %v777_v44, 4  ;;  %v9912_v58 = vrot.slane %v9880_v35, 9  ;;  %v9882_v33 = vld [vmem:[%s16649_s0 + $0xa8] sm:$0xe]  ;;  %v13115_v24 = vld [vmem:[%s16649_s0 + $0x180] sm:$0xf] }
  0xd1   :  { %v9383_v50 = vcombine.low %v752_v41, %v762_v45  ;;  %v770_v57 = vor.u32 %v769_v43, %v766_v42  ;;  %v785_v19 = vrot.slane %v783_v48, 5  ;;  %v5088_v54 = vrot.slane %v11982_v53, 5  ;;  %v13123_v45 = vld [vmem:[%s16649_s0 + $0x184] sm:$0xf] }
  0xd2   :  { %v5091_v56 = vrot.slane %v11983_v55, 5  ;;  %11067 = vmatprep.mubr.msk.bf16.mxu0 %vm980_vm4, %v9943_v14  ;;  %v780_v63 = vor.u32 %v779_v51, %v775_v47  ;;  %v788_v0 = vshrl.u32 %v13044_v40, 16  ;;  %v791_v1 = vshll.u32 %v13044_v40, 16 }
  0xd3   :  { %10769 = vmatprep.mubr.msk.bf16.mxu1 %vm980_vm4, %v9383_v50  ;;  %v771_v62 = vrot.slane %v770_v57, 4  ;;  %v5089_v2 = vsel %vm12735_vm7, %v9912_v58, %v5088_v54  ;;  %v5090_v3 = vrot.slane %v5088_v54, 4  ;;  %v797_v5 = vshll.u32 %v13055_v49, 16  ;;  %v11986_v54 = vld [vmem:[%s16649_s0 + $0xac] sm:$0xf] }
  0xd4   :  { %v801_v6 = vshrl.u32 %v13055_v49, 16  ;;  %v781_v9 = vrot.slane %v780_v63, 4  ;;  %v790_v10 = vrot.slane %v788_v0, 4  ;;  %v793_v61 = vrot.slane %v791_v1, 5 }
  0xd5   :  { %v776_v8 = vsel %vm12260_vm3, %v771_v62, %v775_v47  ;;  %v5092_v26 = vsel %vm12735_vm7, %v5090_v3, %v5091_v56  ;;  %v799_v38 = vrot.slane %v797_v5, 5  ;;  %v807_v60 = vshll.u32 %v108_v52, 16  ;;  %v11987_v56 = vld [vmem:[%s16649_s0 + $0xb0] sm:$0x1]  ;;  %v9883_v62 = vld [vmem:[%s16649_s0 + $0xb4] sm:$0xe] }
  0xd6   :  { %v803_v12 = vrot.slane %v801_v6, 4  ;;  %v786_v13 = vsel %vm12260_vm3, %v781_v9, %v785_v19  ;;  %v9944_v15 = vcombine.low %v5089_v2, %v5092_v26  ;;  %v794_v11 = vor.u32 %v793_v61, %v790_v10  ;;  %v110_v19 = vld [vmem:[%s16649_s0 + $0x188] sm:$0x1]  ;;  %v13152_v9 = vld [vmem:[%s16649_s0 + $0x18c] sm:$0xf] }
  0xd7   :  { %v9913_v16 = vrot.slane %v9881_v59, 9  ;;  %v9384_v17 = vcombine.low %v776_v8, %v786_v13  ;;  %v809_v20 = vrot.slane %v807_v60, 5  ;;  %v5095_v22 = vrot.slane %v11984_v21, 5  ;;  %v111_v21 = vld [vmem:[%s16649_s0 + $0x194] sm:$0x1] }
  0xd8   :  { %v804_v18 = vor.u32 %v803_v12, %v799_v38  ;;  %11068 = vmatmul.mubr.msk.bf16.gmra.mrb[20].mxu0 %vm980_vm4, %v9944_v15  ;;  %v795_v27 = vrot.slane %v794_v11, 4  ;;  %v5098_v29 = vrot.slane %v11985_v28, 5  ;;  %v812_v31 = vshrl.u32 %v13080_v7, 16  ;;  %v13159_v12 = vld [vmem:[%s16649_s0 + $0x190] sm:$0xf] }
  0xd9   :  { %v815_v32 = vshll.u32 %v13080_v7, 16  ;;  %10770 = vmatmul.mubr.msk.bf16.gmra.mrb[52].mxu1 %vm980_vm4, %v9384_v17  ;;  %v5096_v36 = vsel %vm12735_vm7, %v9913_v16, %v5095_v22  ;;  %v5097_v37 = vrot.slane %v5095_v22, 4  ;;  %v821_v39 = vshll.u32 %v13087_v25, 16  ;;  %v11988_v28 = vld [vmem:[%s16649_s0 + $0xb8] sm:$0xf] }
  0xda   :  { %v805_v35 = vrot.slane %v804_v18, 4  ;;  %v800_v41 = vsel %vm12260_vm3, %v795_v27, %v799_v38  ;;  %v814_v42 = vrot.slane %v812_v31, 4  ;;  %v825_v44 = vshrl.u32 %v13087_v25, 16 }
  0xdb   :  { %v817_v43 = vrot.slane %v815_v32, 5  ;;  %v5099_v47 = vsel %vm12735_vm7, %v5097_v37, %v5098_v29  ;;  %v823_v48 = vrot.slane %v821_v39, 5  ;;  %v831_v50 = vshll.u32 %v109_v23, 16  ;;  %v11989_v32 = vld [vmem:[%s16649_s0 + $0xbc] sm:$0x1] }
  0xdc   :  { %v810_v46 = vsel %vm12260_vm3, %v805_v35, %v809_v20  ;;  %v9945_v57 = vcombine.low %v5096_v36, %v5099_v47  ;;  %v827_v52 = vrot.slane %v825_v44, 4  ;;  %v9914_v53 = vrot.slane %v9882_v33, 9  ;;  %v9884_v37 = vld [vmem:[%s16649_s0 + $0xc0] sm:$0xe] }
  0xdd   :  { %v9385_v14 = vcombine.low %v800_v41, %v810_v46  ;;  %v818_v51 = vor.u32 %v817_v43, %v814_v42  ;;  %v833_v58 = vrot.slane %v831_v50, 5  ;;  %v5102_v55 = vrot.slane %v11986_v54, 5  ;;  %v9758_v50 = vld [vmem:[%s16649_s0 + $0xe8] sm:$0xf] }
  0xde   :  { %v5105_v59 = vrot.slane %v11987_v56, 5  ;;  %11071 = vmatprep.mubr.msk.bf16.mxu0 %vm980_vm4, %v9945_v57  ;;  %v828_v0 = vor.u32 %v827_v52, %v823_v48  ;;  %v836_v1 = vshrl.u32 %v13115_v24, 16  ;;  %v839_v2 = vshll.u32 %v13115_v24, 16 }
  0xdf   :  { %10773 = vmatprep.mubr.msk.bf16.mxu1 %vm980_vm4, %v9385_v14  ;;  %v819_v63 = vrot.slane %v818_v51, 4  ;;  %v5103_v3 = vsel %vm12735_vm7, %v9914_v53, %v5102_v55  ;;  %v5104_v5 = vrot.slane %v5102_v55, 4  ;;  %v845_v6 = vshll.u32 %v13123_v45, 16  ;;  %v9759_v14 = vld [vmem:[%s16649_s0 + $0xec] sm:$0x1] }
  0xe0   :  { %v849_v8 = vshrl.u32 %v13123_v45, 16  ;;  %v829_v61 = vrot.slane %v828_v0, 4  ;;  %v838_v26 = vrot.slane %v836_v1, 4  ;;  %v841_v38 = vrot.slane %v839_v2, 5  ;;  %v11991_v0 = vld [vmem:[%s16649_s0 + $0xc8] sm:$0x1] }
  0xe1   :  { %v824_v10 = vsel %vm12260_vm3, %v819_v63, %v823_v48  ;;  %v5106_v60 = vsel %vm12735_vm7, %v5104_v5, %v5105_v59  ;;  %v847_v13 = vrot.slane %v845_v6, 5  ;;  %v855_v11 = vshll.u32 %v110_v19, 16 }
  0xe2   :  { %v851_v15 = vrot.slane %v849_v8, 4  ;;  %v834_v16 = vsel %vm12260_vm3, %v829_v61, %v833_v58  ;;  %v9946_v17 = vcombine.low %v5103_v3, %v5106_v60  ;;  %v842_v18 = vor.u32 %v841_v38, %v838_v26  ;;  %v9885_v58 = vld [vmem:[%s16649_s0 + $0xe4] sm:$0xe]  ;;  %v9886_v8 = vld [vmem:[%s16649_s0 + $0xf0] sm:$0xe] }
  0xe3   :  { %v9915_v20 = vrot.slane %v9883_v62, 9  ;;  %v9386_v22 = vcombine.low %v824_v10, %v834_v16  ;;  %v857_v27 = vrot.slane %v855_v11, 5  ;;  %v5109_v29 = vrot.slane %v11988_v28, 5  ;;  %v11990_v62 = vld [vmem:[%s16649_s0 + $0xc4] sm:$0xf] }
  0xe4   :  { %v852_v23 = vor.u32 %v851_v15, %v847_v13  ;;  %11072 = vmatmul.mubr.msk.bf16.gmra.mrb[24].mxu0 %vm980_vm4, %v9946_v17  ;;  %v843_v31 = vrot.slane %v842_v18, 4  ;;  %v5112_v33 = vrot.slane %v11989_v32, 5  ;;  %v860_v35 = vshrl.u32 %v13152_v9, 16  ;;  %v13216_v60 = vld [vmem:[%s16649_s0 + $0xf4] sm:$0xf] }
  0xe5   :  { %v863_v36 = vshll.u32 %v13152_v9, 16  ;;  %10774 = vmatmul.mubr.msk.bf16.gmra.mrb[56].mxu1 %vm980_vm4, %v9386_v22  ;;  %v5110_v41 = vsel %vm12735_vm7, %v9915_v20, %v5109_v29  ;;  %v5111_v42 = vrot.slane %v5109_v29, 4  ;;  %v869_v43 = vshll.u32 %v13159_v12, 16  ;;  %v13223_v11 = vld [vmem:[%s16649_s0 + $0xf8] sm:$0x1] }
  0xe6   :  { %v853_v39 = vrot.slane %v852_v23, 4  ;;  %v848_v44 = vsel %vm12260_vm3, %v843_v31, %v847_v13  ;;  %v862_v46 = vrot.slane %v860_v35, 4  ;;  %v873_v48 = vshrl.u32 %v13159_v12, 16  ;;  %v9764_v16 = vld [vmem:[%s16649_s0 + $0x100] sm:$0xf] }
  0xe7   :  { %v865_v47 = vrot.slane %v863_v36, 5  ;;  %v5113_v51 = vsel %vm12735_vm7, %v5111_v42, %v5112_v33  ;;  %v871_v52 = vrot.slane %v869_v43, 5  ;;  %v879_v19 = vshll.u32 %v111_v21, 16  ;;  %v9765_v21 = vld [vmem:[%s16649_s0 + $0x104] sm:$0x1] }
  0xe8   :  { %v858_v57 = vsel %vm12260_vm3, %v853_v39, %v857_v27  ;;  %v9947_v54 = vcombine.low %v5110_v41, %v5113_v51  ;;  %v875_v56 = vrot.slane %v873_v48, 4  ;;  %v9916_v59 = vrot.slane %v9884_v37, 9  ;;  %v11992_v27 = vld [vmem:[%s16649_s0] sm:$0xf]  ;;  %v13243_v28 = vld [vmem:[%s16649_s0 + $0x4] sm:$0xf] }
  0xe9   :  { %v9387_v53 = vcombine.low %v848_v44, %v858_v57  ;;  %v866_v55 = vor.u32 %v865_v47, %v862_v46  ;;  %v5116_v63 = vrot.slane %v11990_v62, 5  ;;  %v5119_v1 = vrot.slane %v11991_v0, 5  ;;  %v9887_v31 = vld [vmem:[%s16649_s0 + $0xfc] sm:$0xe]  ;;  %v9767_v36 = vld [vmem:[%s16649_s0 + $0x10c] sm:$0xf] }
  0xea   :  { %11075 = vmatprep.mubr.msk.bf16.mxu0 %vm980_vm4, %v9947_v54  ;;  %v876_v3 = vor.u32 %v875_v56, %v871_v52  ;;  %v881_v5 = vrot.slane %v879_v19, 5  ;;  %v9917_v6 = vrot.slane %v9885_v58, 9  ;;  %v5123_v26 = vrot.slane %v9758_v50, 5  ;;  %v9768_v41 = vld [vmem:[%s16649_s0 + $0x110] sm:$0x1] }
  0xeb   :  { %10777 = vmatprep.mubr.msk.bf16.mxu1 %vm980_vm4, %v9387_v53  ;;  %v867_v2 = vrot.slane %v866_v55, 4  ;;  %v5117_v10 = vsel %vm12735_vm7, %v9916_v59, %v5116_v63  ;;  %v5118_v61 = vrot.slane %v5116_v63, 4  ;;  %v5126_v38 = vrot.slane %v9759_v14, 5  ;;  %v9888_v46 = vld [vmem:[%s16649_s0 + $0x108] sm:$0xe] }
  0xec   :  { %v877_v15 = vrot.slane %v876_v3, 4  ;;  %v5124_v18 = vsel %vm12735_vm7, %v9917_v6, %v5123_v26  ;;  %v5125_v20 = vrot.slane %v5123_v26, 4  ;;  %v9421_v29 = vcombine.low %v11992_v27, %v13243_v28  ;;  %v9770_v14 = vld [vmem:[%s16649_s0 + $0x118] sm:$0xf]  ;;  %v9889_v57 = vld [vmem:[%s16649_s0 + $0x114] sm:$0xe] }
  0xed   :  { %v872_v13 = vsel %vm12260_vm3, %v867_v2, %v871_v52  ;;  %v5120_v17 = vsel %vm12735_vm7, %v5118_v61, %v5119_v1  ;;  %v9918_v35 = vrot.slane %v9886_v8, 9  ;;  %v5130_v39 = vrot.slane %v13216_v60, 5  ;;  %v9771_v19 = vld [vmem:[%s16649_s0 + $0x11c] sm:$0x1]  ;;  %v11994_v58 = vld [vmem:[%s16649_s0 + $0xc] sm:$0xf] }
  0xee   :  { %v882_v22 = vsel %vm12260_vm3, %v877_v15, %v881_v5  ;;  %v9948_v23 = vcombine.low %v5117_v10, %v5120_v17  ;;  %v5127_v33 = vsel %vm12735_vm7, %v5125_v20, %v5126_v38  ;;  %v5133_v42 = vrot.slane %v13223_v11, 5  ;;  %v13285_v53 = vld [vmem:[%s16649_s0 + $0x10] sm:$0xf]  ;;  %v9773_v62 = vld [vmem:[%s16649_s0 + $0x124] sm:$0xf] }
  0xef   :  { %v9388_v32 = vcombine.low %v872_v13, %v882_v22  ;;  %v9949_v37 = vcombine.low %v5124_v18, %v5127_v33  ;;  %v9919_v43 = vrot.slane %v9887_v31, 9  ;;  %v5137_v44 = vrot.slane %v9764_v16, 5  ;;  %v9776_v3 = vld [vmem:[%s16649_s0 + $0x130] sm:$0xf]  ;;  %v11996_v5 = vld [vmem:[%s16649_s0 + $0x18] sm:$0xf] }
  0xf0   :  { %11076 = vmatmul.mubr.msk.bf16.gmra.mrb[28].mxu0 %vm980_vm4, %v9948_v23  ;;  %v5131_v47 = vsel %vm12735_vm7, %v9918_v35, %v5130_v39  ;;  %v5132_v48 = vrot.slane %v5130_v39, 4  ;;  %v5140_v50 = vrot.slane %v9765_v21, 5  ;;  %v9422_v54 = vcombine.low %v11994_v58, %v13285_v53  ;;  %v13304_v6 = vld [vmem:[%s16649_s0 + $0x1c] sm:$0xf]  ;;  %v11998_v38 = vld [vmem:[%s16648_s1 + $0x8] sm:$0xf] }
  0xf1   :  { %10778 = vmatmul.mubr.msk.bf16.gmra.mrb[60].mxu1 %vm980_vm4, %v9388_v32  ;;  %11079 = vmatprep.mubr.msk.bf16.mxu0 %vm980_vm4, %v9949_v37  ;;  %v5138_v51 = vsel %vm12735_vm7, %v9919_v43, %v5137_v44  ;;  %v5139_v52 = vrot.slane %v5137_v44, 4  ;;  %v9920_v56 = vrot.slane %v9888_v46, 9  ;;  %v5144_v59 = vrot.slane %v9767_v36, 5  ;;  %v9890_v16 = vld [vmem:[%s16649_s0 + $0x120] sm:$0xe] }
  0xf2   :  { %10783 = vmatprep.mubr.msk.bf16.mxu1 %vm980_vm4, %v9421_v29  ;;  %v5134_v55 = vsel %vm12735_vm7, %v5132_v48, %v5133_v42  ;;  %v5147_v1 = vrot.slane %v9768_v41, 5  ;;  %v9921_v2 = vrot.slane %v9889_v57, 9  ;;  %v9423_v8 = vcombine.low %v11996_v5, %v13304_v6  ;;  %v13317_v17 = vld [vmem:[%s16648_s1 + $0xc] sm:$0xf]  ;;  %v9774_v29 = vld [vmem:[%s16649_s0 + $0x128] sm:$0x1] }
  0xf3   :  { %v9950_v63 = vcombine.low %v5131_v47, %v5134_v55  ;;  %v5141_v0 = vsel %vm12735_vm7, %v5139_v52, %v5140_v50  ;;  %v5146_v61 = vrot.slane %v5144_v59, 4  ;;  %v5151_v26 = vrot.slane %v9770_v14, 5  ;;  %v9891_v31 = vld [vmem:[%s16649_s0 + $0x12c] sm:$0xe]  ;;  %v9777_v33 = vld [vmem:[%s16649_s0 + $0x134] sm:$0x1] }
  0xf4   :  { %v9951_v10 = vcombine.low %v5138_v51, %v5141_v0  ;;  %v2435_v13 = vsel %vm1077_vm0, %v11998_v38, 0  ;;  %v5154_v15 = vrot.slane %v9771_v19, 5  ;;  %v5145_v20 = vsel %vm12735_vm7, %v9920_v56, %v5144_v59  ;;  %v11999_v35 = vld [vmem:[%s16649_s0 + $0x24] sm:$0xf]  ;;  %v13348_v36 = vld [vmem:[%s16649_s0 + $0x28] sm:$0xf] }
  0xf5   :  { %v5153_v18 = vrot.slane %v5151_v26, 4  ;;  %v5148_v21 = vsel %vm12735_vm7, %v5146_v61, %v5147_v1  ;;  %v5158_v22 = vrot.slane %v9773_v62, 5  ;;  %v5152_v23 = vsel %vm12735_vm7, %v9921_v2, %v5151_v26  ;;  %v9779_v42 = vld [vmem:[%s16649_s0 + $0x13c] sm:$0xf]  ;;  %v12001_v48 = vld [vmem:[%s16649_s0 + $0x30] sm:$0xf] }
  0xf6   :  { %v5165_v32 = vrot.slane %v9776_v3, 5  ;;  %v9424_v37 = vcombine.low %v11999_v35, %v13348_v36  ;;  %v9952_v39 = vcombine.low %v5145_v20, %v5148_v21  ;;  %v9922_v41 = vrot.slane %v9890_v16, 9  ;;  %v13360_v50 = vld [vmem:[%s16649_s0 + $0x34] sm:$0xf]  ;;  %v9782_v52 = vld [vmem:[%s16649_s0 + $0x148] sm:$0xf] }
  0xf7   :  { %v5155_v27 = vsel %vm12735_vm7, %v5153_v18, %v5154_v15  ;;  %v5160_v44 = vrot.slane %v5158_v22, 4  ;;  %v5161_v46 = vrot.slane %v9774_v29, 5  ;;  %v9923_v47 = vrot.slane %v9891_v31, 9  ;;  %v9780_v59 = vld [vmem:[%s16649_s0 + $0x140] sm:$0x1] }
  0xf8   :  { %11080 = vmatmul.mubr.msk.bf16.gmra.mrb[32].mxu0 %vm980_vm4, %v9950_v63  ;;  %v9953_v43 = vcombine.low %v5152_v23, %v5155_v27  ;;  %v9425_v14 = vcombine.low %v12001_v48, %v13360_v50  ;;  %v5167_v57 = vrot.slane %v5165_v32, 4  ;;  %v5168_v51 = vrot.slane %v9777_v33, 5  ;;  %v9892_v62 = vld [vmem:[%s16649_s0 + $0x138] sm:$0xe]  ;;  %v9783_v0 = vld [vmem:[%s16649_s0 + $0x14c] sm:$0x1] }
  0xf9   :  { %10784 = vmatmul.mubr.msk.bf16.vlgmr.msra.gmra.mrb[0].mxu1 %vm980_vm4, %v9422_v54  ;;  %11083 = vmatprep.mubr.msk.bf16.mxu0 %vm980_vm4, %v9951_v10  ;;  %v5159_v19 = vsel %vm12735_vm7, %v9922_v41, %v5158_v22  ;;  %v5162_v58 = vsel %vm12735_vm7, %v5160_v44, %v5161_v46  ;;  %v5172_v54 = vrot.slane %v9779_v42, 5  ;;  %v5166_v55 = vsel %vm12735_vm7, %v9923_v47, %v5165_v32  ;;  %v9893_v1 = vld [vmem:[%s16649_s0 + $0x144] sm:$0xe]  ;;  %v12003_v2 = vld [vmem:[%s16649_s0 + $0x3c] sm:$0xf] }
  0xfa   :  { %10848 = vmatpush3.bf16.msra.mxu1 %v2435_v13  ;;  %10787 = vmatprep.mubr.msk.bf16.mxu1 %vm980_vm4, %v9423_v8  ;;  %v5169_v56 = vsel %vm12735_vm7, %v5167_v57, %v5168_v51  ;;  %v5179_v63 = vrot.slane %v9782_v52, 5  ;;  %v13396_v3 = vld [vmem:[%s16649_s0 + $0x40] sm:$0xf]  ;;  %v9954_v8 = vcombine.low %v5159_v19, %v5162_v58  ;;  %v9924_v61 = vrot.slane %v9892_v62, 9  ;;  %v12005_v13 = vld [vmem:[%s16649_s0 + $0x48] sm:$0xf] }
  0xfb   :  { %11826 = vmatprep.subr.msk.bf16.mxu1 %vm1077_vm0, %v13317_v17  ;;  %v9426_v5 = vcombine.low %v12003_v2, %v13396_v3  ;;  %v9955_v10 = vcombine.low %v5166_v55, %v5169_v56  ;;  %v5174_v26 = vrot.slane %v5172_v54, 4  ;;  %v5175_v38 = vrot.slane %v9780_v59, 5  ;;  %v13405_v15 = vld [vmem:[%s16649_s0 + $0x4c] sm:$0xf]  ;;  %v9785_v22 = vld [vmem:[%s16649_s0 + $0x154] sm:$0xf] }
  0xfc   :  { %v9427_v16 = vcombine.low %v12005_v13, %v13405_v15  ;;  %v9925_v18 = vrot.slane %v9893_v1, 9  ;;  %v5181_v20 = vrot.slane %v5179_v63, 4  ;;  %v5182_v21 = vrot.slane %v9783_v0, 5  ;;  %v9788_v23 = vld [vmem:[%s16649_s0 + $0x160] sm:$0xf] }
  0xfd   :  { %v5173_v27 = vsel %vm12735_vm7, %v9924_v61, %v5172_v54  ;;  %v5176_v29 = vsel %vm12735_vm7, %v5174_v26, %v5175_v38  ;;  %v5186_v31 = vrot.slane %v9785_v22, 5  ;;  %v9786_v35 = vld [vmem:[%s16649_s0 + $0x158] sm:$0x1]  ;;  %v9789_v41 = vld [vmem:[%s16649_s0 + $0x164] sm:$0x1]  ;;  %vm8877_vm8 = vcmask 261120  }
  0xfe   :  { %v5180_v32 = vsel %vm12735_vm7, %v9925_v18, %v5179_v63  ;;  %v5183_v33 = vsel %vm12735_vm7, %v5181_v20, %v5182_v21  ;;  %v9895_v42 = vld [vmem:[%s16649_s0 + $0x15c] sm:$0xe]  ;;  %v13444_v44 = vld [vmem:[%s16649_s0 + $0x58] sm:$0xf]  ;;  %v9956_v47 = vcombine.low %v5173_v27, %v5176_v29  ;;  %v5189_v51 = vrot.slane %v9786_v35, 5 }
  0xff   :  { %v9957_v48 = vcombine.low %v5180_v32, %v5183_v33  ;;  %v5188_v57 = vrot.slane %v5186_v31, 4  ;;  %v12009_v52 = vld [vmem:[%s16649_s0 + $0x60] sm:$0xf]  ;;  %v13453_v19 = vld [vmem:[%s16649_s0 + $0x64] sm:$0xf]  ;;  %v9927_v54 = vrot.slane %v9895_v42, 9 }
 0x100   :  { %11084 = vmatmul.mubr.msk.bf16.gmra.mrb[36].mxu0 %vm980_vm4, %v9952_v39  ;;  %v5193_v39 = vrot.slane %v9788_v23, 5  ;;  %v9429_v58 = vcombine.low %v12009_v52, %v13453_v19  ;;  %v5196_v56 = vrot.slane %v9789_v41, 5  ;;  %v9791_v59 = vld [vmem:[%s16649_s0 + $0x16c] sm:$0xf]  ;;  %v9794_v62 = vld [vmem:[%s16649_s0 + $0x178] sm:$0xf] }
 0x101   :  { %10788 = vmatmul.mubr.msk.bf16.gmra.mrb[4].mxu1 %vm980_vm4, %v9424_v37  ;;  %11087 = vmatprep.mubr.msk.bf16.mxu0 %vm980_vm4, %v9953_v43  ;;  %v9894_v37 = vld [vmem:[%s16649_s0 + $0x150] sm:$0xe]  ;;  %v12007_v43 = vld [vmem:[%s16649_s0 + $0x54] sm:$0xf]  ;;  %v5190_v0 = vsel %vm12735_vm7, %v5188_v57, %v5189_v51  ;;  %v5200_v1 = vrot.slane %v9791_v59, 5  ;;  %v5207_v61 = vrot.slane %v9794_v62, 5 }
 0x102   :  { %10791 = vmatprep.mubr.msk.bf16.mxu1 %vm980_vm4, %v9425_v14  ;;  %v9428_v46 = vcombine.low %v12007_v43, %v13444_v44  ;;  %v9926_v14 = vrot.slane %v9894_v37, 9  ;;  %v5195_v55 = vrot.slane %v5193_v39, 4  ;;  %v5194_v2 = vsel %vm12735_vm7, %v9927_v54, %v5193_v39  ;;  %v9795_v26 = vld [vmem:[%s16649_s0 + $0x17c] sm:$0x1]  ;;  %v9897_v38 = vld [vmem:[%s16649_s0 + $0x174] sm:$0xe] }
 0x103   :  { %v12011_v13 = vld [vmem:[%s16649_s0 + $0x6c] sm:$0xf]  ;;  %v5202_v23 = vrot.slane %v5200_v1, 4  ;;  %v12013_v29 = vld [vmem:[%s16649_s0 + $0x78] sm:$0xf]  ;;  %v9929_v33 = vrot.slane %v9897_v38, 9 }
 0x104   :  { %v5187_v63 = vsel %vm12735_vm7, %v9926_v14, %v5186_v31  ;;  %v13501_v31 = vld [vmem:[%s16649_s0 + $0x7c] sm:$0xf]  ;;  %v5209_v35 = vrot.slane %v5207_v61, 4  ;;  %v5210_v37 = vrot.slane %v9795_v26, 5  ;;  %v9797_v39 = vld [vmem:[%s16649_s0 + $0x184] sm:$0xf] }
 0x105   :  { %v9958_v20 = vcombine.low %v5187_v63, %v5190_v0  ;;  %v9431_v32 = vcombine.low %v12013_v29, %v13501_v31  ;;  %v9800_v41 = vld [vmem:[%s16649_s0 + $0x190] sm:$0xf]  ;;  %v9798_v14 = vld [vmem:[%s16649_s0 + $0x188] sm:$0x1]  ;;  %v9898_v57 = vld [vmem:[%s16649_s0 + $0x180] sm:$0xe] }
 0x106   :  { %v5221_v51 = vrot.slane %v9800_v41, 5  ;;  %v9801_v52 = vld [vmem:[%s16649_s0 + $0x194] sm:$0x1]  ;;  %v12015_v54 = vld [vmem:[%s16649_s0 + $0x84] sm:$0xf]  ;;  %v9930_v63 = vrot.slane %v9898_v57, 9 }
 0x107   :  { %v5224_v26 = vrot.slane %v9801_v52, 5  ;;  %v9803_v38 = vld [vmem:[%s16649_s0 + $0x19c] sm:$0xf]  ;;  %v13605_v52 = vld [vmem:[%s16649_s0 + $0xb8] sm:$0xf]  ;;  %vm9327_vm9 = vcmask 523264  }
 0x108   :  { %11088 = vmatmul.mubr.msk.bf16.gmra.mrb[40].mxu0 %vm980_vm4, %v9954_v8  ;;  %v9792_v8 = vld [vmem:[%s16649_s0 + $0x170] sm:$0x1]  ;;  %v12019_v29 = vld [vmem:[%s16649_s0 + $0x9c] sm:$0xf]  ;;  %vm9330_vm10 = vcmask 785408  }
 0x109   :  { %10792 = vmatmul.mubr.msk.bf16.gmra.mrb[8].mxu1 %vm980_vm4, %v9426_v5  ;;  %11091 = vmatprep.mubr.msk.bf16.mxu0 %vm980_vm4, %v9955_v10  ;;  %v5197_v5 = vsel %vm12735_vm7, %v5195_v55, %v5196_v56  ;;  %v9896_v10 = vld [vmem:[%s16649_s0 + $0x168] sm:$0xe]  ;;  %v5203_v27 = vrot.slane %v9792_v8, 5 }
 0x10a   :  { %10795 = vmatprep.mubr.msk.bf16.mxu1 %vm980_vm4, %v9427_v16  ;;  %v13492_v16 = vld [vmem:[%s16649_s0 + $0x70] sm:$0xf]  ;;  %v9959_v21 = vcombine.low %v5194_v2, %v5197_v5  ;;  %v9928_v22 = vrot.slane %v9896_v10, 9  ;;  %v13540_v55 = vld [vmem:[%s16649_s0 + $0x88] sm:$0xf] }
 0x10b   :  { %v9430_v18 = vcombine.low %v12011_v13, %v13492_v16  ;;  %v5204_v43 = vsel %vm12735_vm7, %v5202_v23, %v5203_v27  ;;  %v9432_v56 = vcombine.low %v12015_v54, %v13540_v55  ;;  %v12017_v2 = vld [vmem:[%s16649_s0 + $0x90] sm:$0xf]  ;;  %v13549_v5 = vld [vmem:[%s16649_s0 + $0x94] sm:$0xf]  ;;  %v9804_v23 = vld [vmem:[%s16649_s0 + $0x1a0] sm:$0x1] }
 0x10c   :  { %v5201_v42 = vsel %vm12735_vm7, %v9928_v22, %v5200_v1  ;;  %v5217_v1 = vrot.slane %v9798_v14, 5  ;;  %v9433_v8 = vcombine.low %v12017_v2, %v13549_v5  ;;  %v9900_v27 = vld [vmem:[%s16649_s0 + $0x198] sm:$0xe] }
 0x10d   :  { %v9960_v59 = vcombine.low %v5201_v42, %v5204_v43  ;;  %v5231_v42 = vrot.slane %v9804_v23, 5  ;;  %v12021_v43 = vld [vmem:[%s16649_s0 + $0xa8] sm:$0xf]  ;;  %v11885_v54 = vld [vmem:[%s16649_s0 + $0x18] sm:$0xff]  }
 0x110   :  { %11092 = vmatmul.mubr.msk.bf16.gmra.mrb[44].mxu0 %vm980_vm4, %v9956_v47  ;;  %v5208_v47 = vsel %vm12735_vm7, %v9929_v33, %v5207_v61  ;;  %v5223_v61 = vrot.slane %v5221_v51, 4 }
 0x111   :  { %10796 = vmatmul.mubr.msk.bf16.gmra.mrb[12].mxu1 %vm980_vm4, %v9428_v46  ;;  %11095 = vmatprep.mubr.msk.bf16.mxu0 %vm980_vm4, %v9957_v48  ;;  %v5214_v46 = vrot.slane %v9797_v39, 5  ;;  %v5211_v48 = vsel %vm12735_vm7, %v5209_v35, %v5210_v37  ;;  %v9932_v39 = vrot.slane %v9900_v27, 9  ;;  %v11893_v27 = vld [vmem:[%s16649_s0 + $0x48] sm:$0xff]  }
 0x112   :  { %10799 = vmatprep.mubr.msk.bf16.mxu1 %vm980_vm4, %v9429_v58  ;;  %v9899_v58 = vld [vmem:[%s16649_s0 + $0x18c] sm:$0xe]  ;;  %v9961_v62 = vcombine.low %v5208_v47, %v5211_v48  ;;  %v5225_v22 = vsel %vm12735_vm7, %v5223_v61, %v5224_v26  ;;  %v12030_v61 = vld [vmem:[%s16649_s0 + $0xf0] sm:$0xf]  ;;  %v13646_v26 = vld [vmem:[%s16649_s0 + $0xf4] sm:$0xf] }
 0x113   :  { %v5216_v0 = vrot.slane %v5214_v46, 4  ;;  %v9931_v10 = vrot.slane %v9899_v58, 9  ;;  %v5215_v13 = vsel %vm12735_vm7, %v9930_v63, %v5214_v46  ;;  %v13588_v46 = vld [vmem:[%s16649_s0 + $0xac] sm:$0xf]  ;;  %v11887_v63 = vld [vmem:[%s16649_s0 + $0x24] sm:$0xff]  }
 0x114   :  { %v9435_v47 = vcombine.low %v12021_v43, %v13588_v46  ;;  %v11897_v43 = vld [vmem:[%s16649_s0 + $0x60] sm:$0xff]  }
 0x118   :  { %11096 = vmatmul.mubr.msk.bf16.gmra.mrb[48].mxu0 %vm980_vm4, %v9958_v20  ;;  %v5228_v20 = vrot.slane %v9803_v38, 5  ;;  %v9439_v38 = vcombine.low %v12030_v61, %v13646_v26 }
 0x119   :  { %10800 = vmatmul.mubr.msk.bf16.gmra.mrb[16].mxu1 %vm980_vm4, %v9430_v18  ;;  %11099 = vmatprep.mubr.msk.bf16.mxu0 %vm980_vm4, %v9959_v21  ;;  %v5218_v18 = vsel %vm12735_vm7, %v5216_v0, %v5217_v1  ;;  %v5222_v21 = vsel %vm12735_vm7, %v9931_v10, %v5221_v51  ;;  %v12023_v51 = vld [vmem:[%s16649_s0 + $0xb4] sm:$0xf]  ;;  %v12027_v0 = vld [vmem:[%s16649_s0 + $0xe4] sm:$0xf]  ;;  %v13633_v1 = vld [vmem:[%s16649_s0 + $0xe8] sm:$0xf] }
 0x11a   :  { %10803 = vmatprep.mubr.msk.bf16.mxu1 %vm980_vm4, %v9431_v32  ;;  %v13579_v32 = vld [vmem:[%s16649_s0 + $0xa0] sm:$0xf]  ;;  %v9962_v35 = vcombine.low %v5215_v13, %v5218_v18  ;;  %v9963_v37 = vcombine.low %v5222_v21, %v5225_v22  ;;  %v5230_v41 = vrot.slane %v5228_v20, 4  ;;  %v5229_v48 = vsel %vm12735_vm7, %v9932_v39, %v5228_v20  ;;  %v11889_v13 = vld [vmem:[%s16649_s0 + $0x30] sm:$0xff]   ;;  %v12032_v21 = vld [vmem:[%s16649_s0 + $0xfc] sm:$0xf] }
 0x11b   :  { %v9434_v33 = vcombine.low %v12019_v29, %v13579_v32  ;;  %v9436_v58 = vcombine.low %v12023_v51, %v13605_v52  ;;  %v9438_v2 = vcombine.low %v12027_v0, %v13633_v1  ;;  %v13656_v18 = vld [vmem:[%s16648_s1 + $0x20] sm:$0xf]  ;;  %v12034_v29 = vld [vmem:[%s16649_s0 + $0x108] sm:$0xf]  ;;  %v12036_v39 = vld [vmem:[%s16649_s0 + $0x114] sm:$0xf] }
 0x11c   :  { %v5232_v14 = vsel %vm12735_vm7, %v5230_v41, %v5231_v42  ;;  %v11891_v20 = vld [vmem:[%s16649_s0 + $0x3c] sm:$0xff]   ;;  %v13700_v41 = vld [vmem:[%s16649_s0 + $0x118] sm:$0xf]  ;;  %v12040_v51 = vld [vmem:[%s16649_s0 + $0x12c] sm:$0xf]  ;;  %v2110_v4 = vrot.slane %v13579_v32, 5 }
 0x11d   :  { %v9964_v57 = vcombine.low %v5229_v48, %v5232_v14  ;;  %v13672_v22 = vld [vmem:[%s16649_s0 + $0x100] sm:$0xf]  ;;  %v9442_v42 = vcombine.low %v12036_v39, %v13700_v41  ;;  %v13712_v48 = vld [vmem:[%s16649_s0 + $0x124] sm:$0xf]  ;;  %v12061_v32 = vld [vmem:[%s16649_s0 + $0x8c] sm:$0x1] }
 0x11e   :  { %v9440_v23 = vcombine.low %v12032_v21, %v13672_v22  ;;  %v11905_v21 = vld [vmem:[%s16649_s0 + $0x90] sm:$0xff]  }
 0x120   :  { %11100 = vmatmul.mubr.msk.bf16.gmra.mrb[52].mxu0 %vm980_vm4, %v9960_v59  ;;  %v13617_v59 = vld [vmem:[%s16649_s0 + $0xdc] sm:$0xf] }
 0x121   :  { %10804 = vmatmul.mubr.msk.bf16.gmra.mrb[20].mxu1 %vm980_vm4, %v9432_v56  ;;  %11103 = vmatprep.mubr.msk.bf16.mxu0 %vm980_vm4, %v9961_v62  ;;  %v12025_v56 = vld [vmem:[%s16649_s0 + $0xd8] sm:$0xf] }
 0x122   :  { %10807 = vmatprep.mubr.msk.bf16.mxu1 %vm980_vm4, %v9433_v8  ;;  %v9437_v62 = vcombine.low %v12025_v56, %v13617_v59  ;;  %v12029_v8 = vld [vmem:[%s16648_s1 + $0x1c] sm:$0xf] }
 0x123   :  { %v7518_v10 = vsel %vm1077_vm0, %v12029_v8, 0  ;;  %v11901_v56 = vld [vmem:[%s16649_s0 + $0x78] sm:$0xff]   ;;  %v3986_v8 = vshrl.u32 %v13216_v60, 16 }
 0x125   :  { %v3988_v61 = vrot.slane %v3986_v8, 4 }
 0x128   :  { %11104 = vmatmul.mubr.msk.bf16.gmra.mrb[56].mxu0 %vm980_vm4, %v9962_v35 }
 0x129   :  { %10808 = vmatmul.mubr.msk.bf16.gmra.mrb[24].mxu1 %vm980_vm4, %v9434_v33  ;;  %11107 = vmatprep.mubr.msk.bf16.mxu0 %vm980_vm4, %v9963_v37  ;;  %v13684_v33 = vld [vmem:[%s16649_s0 + $0x10c] sm:$0xf]  ;;  %v11895_v37 = vld [vmem:[%s16649_s0 + $0x54] sm:$0xff]  }
 0x12a   :  { %10811 = vmatprep.mubr.msk.bf16.mxu1 %vm980_vm4, %v9435_v47  ;;  %v9441_v35 = vcombine.low %v12034_v29, %v13684_v33  ;;  %v12038_v47 = vld [vmem:[%s16649_s0 + $0x120] sm:$0xf] }
 0x12b   :  { %v9443_v14 = vcombine.low %v12038_v47, %v13712_v48  ;;  %v12048_v47 = vld [vmem:[%s16649_s0 + $0x8] sm:$0x1] }
 0x130   :  { %11108 = vmatmul.mubr.msk.bf16.gmra.mrb[60].mxu0 %vm980_vm4, %v9964_v57  ;;  %v11899_v57 = vld [vmem:[%s16649_s0 + $0x6c] sm:$0xff]  }
 0x131   :  { %10812 = vmatmul.mubr.msk.bf16.gmra.mrb[28].mxu1 %vm980_vm4, %v9436_v58  ;;  %11113 = vmatprep.mubr.msk.bf16.mxu0 %vm980_vm4, %v11885_v54  ;;  %v13728_v58 = vld [vmem:[%s16649_s0 + $0x130] sm:$0xf] }
 0x132   :  { %10815 = vmatprep.mubr.msk.bf16.mxu1 %vm980_vm4, %v9437_v62  ;;  %v9444_v54 = vcombine.low %v12040_v51, %v13728_v58  ;;  %v12042_v62 = vld [vmem:[%s16649_s0 + $0x138] sm:$0xf] }
 0x138   :  { %11114 = vmatmul.mubr.msk.bf16.vlgmr.msra.gmra.mrb[0].mxu0 %vm980_vm4, %v11887_v63  ;;  %v13740_v63 = vld [vmem:[%s16649_s0 + $0x13c] sm:$0xf] }
 0x139   :  { %10816 = vmatmul.mubr.msk.bf16.gmra.mrb[32].mxu1 %vm980_vm4, %v9438_v2  ;;  %11178 = vmatpush3.bf16.msra.mxu0 %v7518_v10  ;;  %v9445_v0 = vcombine.low %v12042_v62, %v13740_v63  ;;  %v3982_v2 = vshll.u32 %v13216_v60, 16  ;;  %v13760_v60 = vld [vmem:[%s16649_s0 + $0x148] sm:$0xf] }
 0x13a   :  { %10819 = vmatprep.mubr.msk.bf16.mxu1 %vm980_vm4, %v9439_v38  ;;  %11117 = vmatprep.mubr.msk.bf16.mxu0 %vm980_vm4, %v11889_v13  ;;  %v11903_v38 = vld [vmem:[%s16649_s0 + $0x84] sm:$0xff]   ;;  %16670 = vst [vmem:[#allocation5_spill] sm:$0xff] %v13760_v60 }
 0x13b   :  { %11832 = vmatprep.subr.msk.bf16.mxu0 %vm1077_vm0, %v13656_v18  ;;  %v13749_v10 = vrot.slane %v3982_v2, 5  ;;  %v12044_v13 = vld [vmem:[%s16649_s0 + $0x144] sm:$0xf] }
 0x13d   :  { %16669 = vst [vmem:[#allocation4_spill] sm:$0xff] %v13749_v10  ;;  %v3989_v39 = vor.u32 %v3988_v61, %v13749_v10  ;;  %v12050_v61 = vld [vmem:[%s16649_s0 + $0x15c] sm:$0xf] }
 0x13f   :  { %v13801_v62 = vrot.slane %v3989_v39, 4 }
 0x140   :  { %11118 = vmatmul.mubr.msk.bf16.gmra.mrb[4].mxu0 %vm980_vm4, %v11891_v20  ;;  %v9446_v20 = vcombine.low %v12044_v13, %v13760_v60  ;;  %v14182_v60 = vld [vmem:[%s16649_s0 + $0xe4] sm:$0xe] }
 0x141   :  { %10820 = vmatmul.mubr.msk.bf16.gmra.mrb[36].mxu1 %vm980_vm4, %v9440_v23  ;;  %11121 = vmatprep.mubr.msk.bf16.mxu0 %vm980_vm4, %v11893_v27  ;;  %v12046_v23 = vld [vmem:[%s16649_s0 + $0x150] sm:$0xf]  ;;  %v13772_v27 = vld [vmem:[%s16649_s0 + $0x154] sm:$0xf]  ;;  %16673 = vst [vmem:[#allocation8_spill] sm:$0xff] %v13801_v62 }
 0x142   :  { %10823 = vmatprep.mubr.msk.bf16.mxu1 %vm980_vm4, %v9441_v35  ;;  %16671 = vst [vmem:[#allocation6_spill] sm:$0xff] %v13772_v27  ;;  %v9447_v29 = vcombine.low %v12046_v23, %v13772_v27  ;;  %v3992_v35 = vshll.u32 %v13223_v11, 16  ;;  %v2019_v11 = vrot.slane %v13243_v28, 5  ;;  %v11907_v28 = vld [vmem:[%s16649_s0 + $0x9c] sm:$0xff]   ;;  %v2040_v23 = vrot.slane %v13348_v36, 5 }
 0x143   :  { %v9451_v36 = vcombine.low %v13115_v24, %v13123_v45  ;;  %v12059_v24 = vld [vmem:[%s16649_s0 + $0x74] sm:$0x1] }
 0x144   :  { %v2021_v39 = vrot.slane %v2019_v11, 4  ;;  %v2085_v45 = vrot.slane %v12059_v24, 5  ;;  %v1930_v24 = vld [vmem:[%s16649_s0 + $0x90] sm:$0xe] }
 0x148   :  { %11122 = vmatmul.mubr.msk.bf16.gmra.mrb[8].mxu0 %vm980_vm4, %v11895_v37  ;;  %v2026_v37 = vrot.slane %v13285_v53, 5  ;;  %v2033_v53 = vrot.slane %v13304_v6, 5  ;;  %v11909_v6 = vld [vmem:[%s16649_s0 + $0xa8] sm:$0xff]  }
 0x149   :  { %10824 = vmatmul.mubr.msk.bf16.gmra.mrb[40].mxu1 %vm980_vm4, %v9442_v42  ;;  %11125 = vmatprep.mubr.msk.bf16.mxu0 %vm980_vm4, %v11897_v43  ;;  %v1918_v42 = vld [vmem:[%s16649_s0] sm:$0xe]  ;;  %v1919_v43 = vld [vmem:[%s16649_s0 + $0xc] sm:$0xe] }
 0x14a   :  { %10827 = vmatprep.mubr.msk.bf16.mxu1 %vm980_vm4, %v9443_v14  ;;  %v2022_v14 = vrot.slane %v12048_v47, 5  ;;  %v9486_v2 = vrot.slane %v1919_v43, 9  ;;  %v2028_v8 = vrot.slane %v2026_v37, 4  ;;  %v2035_v43 = vrot.slane %v2033_v53, 4  ;;  %v12052_v47 = vld [vmem:[%s16649_s0 + $0x20] sm:$0x1] }
 0x150   :  { %11126 = vmatmul.mubr.msk.bf16.gmra.mrb[12].mxu0 %vm980_vm4, %v11899_v57  ;;  %v12049_v57 = vld [vmem:[%s16649_s0 + $0x14] sm:$0x1] }
 0x151   :  { %10828 = vmatmul.mubr.msk.bf16.gmra.mrb[44].mxu1 %vm980_vm4, %v9444_v54  ;;  %11129 = vmatprep.mubr.msk.bf16.mxu0 %vm980_vm4, %v11901_v56  ;;  %v2029_v51 = vrot.slane %v12049_v57, 5  ;;  %v13796_v54 = vrot.slane %v3992_v35, 5  ;;  %v1920_v56 = vld [vmem:[%s16649_s0 + $0x18] sm:$0xe]  ;;  %v2047_v35 = vrot.slane %v13360_v50, 5  ;;  %v13841_v50 = vsel %vm12735_vm7, %v9486_v2, %v2026_v37  ;;  %v11916_v57 = vld [vmem:[%s16649_s0 + $0xf0] sm:$0xff]  }
 0x152   :  { %10831 = vmatprep.mubr.msk.bf16.mxu1 %vm980_vm4, %v9445_v0  ;;  %v9485_v0 = vrot.slane %v1918_v42, 9  ;;  %v9487_v42 = vrot.slane %v1920_v56, 9  ;;  %v12053_v37 = vld [vmem:[%s16649_s0 + $0x2c] sm:$0x1] }
 0x153   :  { %16672 = vst [vmem:[#allocation7_spill] sm:$0xff] %v13796_v54  ;;  %v13845_v56 = vsel %vm12735_vm7, %v2028_v8, %v2029_v51  ;;  %v2049_v2 = vrot.slane %v2047_v35, 4  ;;  %v12054_v51 = vld [vmem:[%s16649_s0 + $0x38] sm:$0x1]  ;;  %v11918_v54 = vld [vmem:[%s16649_s0 + $0x108] sm:$0xff]  }
 0x154   :  { %v2050_v8 = vrot.slane %v12054_v51, 5 }
 0x158   :  { %11130 = vmatmul.mubr.msk.bf16.gmra.mrb[16].mxu0 %vm980_vm4, %v11903_v38  ;;  %v13815_v38 = vld [vmem:[%s16649_s0 + $0x160] sm:$0xf] }
 0x159   :  { %10832 = vmatmul.mubr.msk.bf16.gmra.mrb[48].mxu1 %vm980_vm4, %v9446_v20  ;;  %11133 = vmatprep.mubr.msk.bf16.mxu0 %vm980_vm4, %v11905_v21  ;;  %16674 = vst [vmem:[#allocation9_spill] sm:$0xff] %v13815_v38  ;;  %v9448_v13 = vcombine.low %v12050_v61, %v13815_v38  ;;  %v9449_v20 = vcombine.low %v13044_v40, %v13055_v49  ;;  %v1921_v21 = vld [vmem:[%s16649_s0 + $0x24] sm:$0xe]  ;;  %v2036_v40 = vrot.slane %v12052_v47, 5  ;;  %v2054_v61 = vrot.slane %v13396_v3, 5 }
 0x15a   :  { %10835 = vmatprep.mubr.msk.bf16.mxu1 %vm980_vm4, %v9447_v29  ;;  %v1922_v29 = vld [vmem:[%s16649_s0 + $0x30] sm:$0xe]  ;;  %v9450_v49 = vcombine.low %v13080_v7, %v13087_v25  ;;  %v9488_v47 = vrot.slane %v1921_v21, 9  ;;  %v1923_v25 = vld [vmem:[%s16649_s0 + $0x3c] sm:$0xe]  ;;  %v2042_v3 = vrot.slane %v2040_v23, 4  ;;  %v13861_v21 = vsel %vm12735_vm7, %v9485_v0, %v2019_v11 }
 0x15b   :  { %v9489_v7 = vrot.slane %v1922_v29, 9  ;;  %v13873_v29 = vsel %vm12735_vm7, %v2035_v43, %v2036_v40  ;;  %v2056_v51 = vrot.slane %v2054_v61, 4  ;;  %v12055_v11 = vld [vmem:[%s16649_s0 + $0x44] sm:$0x1]  ;;  %v2061_v0 = vrot.slane %v13405_v15, 5 }
 0x15c   :  { %v13893_v43 = vsel %vm12735_vm7, %v9488_v47, %v2040_v23  ;;  %v11913_v15 = vld [vmem:[%s16649_s0 + $0xc0] sm:$0xff]   ;;  %v1925_v23 = vld [vmem:[%s16649_s0 + $0x54] sm:$0xe] }
 0x15d   :  { %v13897_v40 = vsel %vm12735_vm7, %v9489_v7, %v2047_v35  ;;  %v2068_v35 = vrot.slane %v13444_v44, 5  ;;  %v2063_v7 = vrot.slane %v2061_v0, 4 }
 0x160   :  { %11134 = vmatmul.mubr.msk.bf16.gmra.mrb[20].mxu0 %vm980_vm4, %v11907_v28  ;;  %v2043_v28 = vrot.slane %v12053_v37, 5  ;;  %v9490_v37 = vrot.slane %v1923_v25, 9 }
 0x161   :  { %10836 = vmatmul.mubr.msk.bf16.gmra.mrb[52].mxu1 %vm980_vm4, %v9448_v13  ;;  %11137 = vmatprep.mubr.msk.bf16.mxu0 %vm980_vm4, %v11909_v6  ;;  %v13865_v6 = vsel %vm12735_vm7, %v2021_v39, %v2022_v14  ;;  %v13869_v13 = vsel %vm12735_vm7, %v9487_v42, %v2033_v53  ;;  %v2057_v14 = vrot.slane %v12055_v11, 5  ;;  %v11911_v53 = vld [vmem:[%s16649_s0 + $0xb4] sm:$0xff]   ;;  %v13889_v42 = vsel %vm1077_vm0, %v13317_v17, 0  ;;  %v1927_v39 = vld [vmem:[%s16649_s0 + $0x6c] sm:$0xe] }
 0x162   :  { %10839 = vmatprep.mubr.msk.bf16.mxu1 %vm980_vm4, %v9449_v20  ;;  %v1924_v20 = vld [vmem:[%s16649_s0 + $0x48] sm:$0xe]  ;;  %v13904_v25 = vsel %vm12735_vm7, %v2042_v3, %v2043_v28  ;;  %v13908_v17 = vsel %vm12735_vm7, %v2049_v2, %v2050_v8  ;;  %v12056_v3 = vld [vmem:[%s16649_s0 + $0x50] sm:$0x1]  ;;  %v1926_v2 = vld [vmem:[%s16649_s0 + $0x60] sm:$0xe]  ;;  %v13927_v44 = vsel %vm12735_vm7, %v9490_v37, %v2054_v61 }
 0x163   :  { %v9491_v11 = vrot.slane %v1924_v20, 9  ;;  %v2064_v28 = vrot.slane %v12056_v3, 5  ;;  %v2075_v8 = vrot.slane %v13453_v19, 5  ;;  %v13931_v20 = vsel %vm12735_vm7, %v2056_v51, %v2057_v14  ;;  %v1928_v51 = vld [vmem:[%s16649_s0 + $0x78] sm:$0xe] }
 0x164   :  { %v2082_v3 = vrot.slane %v13492_v16, 5  ;;  %v9492_v37 = vrot.slane %v1925_v23, 9  ;;  %v2089_v14 = vrot.slane %v13501_v31, 5  ;;  %v12057_v61 = vld [vmem:[%s16649_s0 + $0x5c] sm:$0x1]  ;;  %v9493_v19 = vrot.slane %v1926_v2, 9 }
 0x165   :  { %v13950_v16 = vsel %vm12735_vm7, %v9491_v11, %v2061_v0  ;;  %v2071_v23 = vrot.slane %v12057_v61, 5  ;;  %v12058_v0 = vld [vmem:[%s16649_s0 + $0x68] sm:$0x1]  ;;  %v9494_v11 = vrot.slane %v1927_v39, 9  ;;  %v13966_v47 = vsel %vm12735_vm7, %v2063_v7, %v2064_v28  ;;  %v1929_v61 = vld [vmem:[%s16649_s0 + $0x84] sm:$0xe] }
 0x166   :  { %v2084_v2 = vrot.slane %v2082_v3, 4  ;;  %v13979_v39 = vsel %vm12735_vm7, %v9492_v37, %v2068_v35  ;;  %v2091_v7 = vrot.slane %v2089_v14, 4  ;;  %v12060_v28 = vld [vmem:[%s16649_s0 + $0x80] sm:$0x1]  ;;  %v13997_v37 = vsel %vm12735_vm7, %v9493_v19, %v2075_v8 }
 0x167   :  { %v2092_v31 = vrot.slane %v12060_v28, 5  ;;  %v2103_v28 = vrot.slane %v13549_v5, 5 }
 0x168   :  { %11138 = vmatmul.mubr.msk.bf16.gmra.mrb[24].mxu0 %vm980_vm4, %v11911_v53  ;;  %v2070_v53 = vrot.slane %v2068_v35, 4  ;;  %v14015_v5 = vsel %vm12735_vm7, %v2084_v2, %v2085_v45  ;;  %v12062_v2 = vld [vmem:[%s16649_s0 + $0x98] sm:$0x1] }
 0x169   :  { %10840 = vmatmul.mubr.msk.bf16.gmra.mrb[56].mxu1 %vm980_vm4, %v9450_v49  ;;  %11141 = vmatprep.mubr.msk.bf16.mxu0 %vm980_vm4, %v11913_v15  ;;  %v2077_v49 = vrot.slane %v2075_v8, 4  ;;  %v2078_v15 = vrot.slane %v12058_v0, 5  ;;  %v11915_v0 = vld [vmem:[%s16649_s0 + $0xcc] sm:$0xff]   ;;  %v2117_v8 = vrot.slane %v13588_v46, 5  ;;  %v10125_v46 = vld [vmem:[%s16649_s0 + $0x18] sm:$0xf] }
 0x16a   :  { %10843 = vmatprep.mubr.msk.bf16.mxu1 %vm980_vm4, %v9451_v36  ;;  %v9495_v36 = vrot.slane %v1928_v51, 9  ;;  %v2096_v51 = vrot.slane %v13540_v55, 5  ;;  %v13993_v35 = vsel %vm12735_vm7, %v2070_v53, %v2071_v23  ;;  %v1931_v55 = vld [vmem:[%s16649_s0 + $0x9c] sm:$0xe]  ;;  %v14010_v53 = vsel %vm12735_vm7, %v9494_v11, %v2082_v3  ;;  %v1932_v3 = vld [vmem:[%s16649_s0 + $0xa8] sm:$0xe] }
 0x16b   :  { %v14006_v10 = vsel %vm12735_vm7, %v2077_v49, %v2078_v15  ;;  %v9496_v23 = vrot.slane %v1929_v61, 9  ;;  %v2099_v49 = vrot.slane %v12061_v32, 5  ;;  %v9497_v15 = vrot.slane %v1930_v24, 9  ;;  %v12064_v32 = vld [vmem:[%s16649_s0 + $0xb0] sm:$0x1] }
 0x16c   :  { %v14019_v19 = vsel %vm12735_vm7, %v9495_v36, %v2089_v14  ;;  %v14033_v14 = vsel %vm12735_vm7, %v2091_v7, %v2092_v31  ;;  %v2098_v11 = vrot.slane %v2096_v51, 4  ;;  %v2106_v45 = vrot.slane %v12062_v2, 5  ;;  %v12063_v31 = vld [vmem:[%s16649_s0 + $0xa4] sm:$0x1] }
 0x16d   :  { %v9498_v36 = vrot.slane %v1931_v55, 9  ;;  %v16675_v61 = vcombine.low %v13152_v9, %v13159_v12  ;;  %v2105_v24 = vrot.slane %v2103_v28, 4  ;;  %v2113_v7 = vrot.slane %v12063_v31, 5 }
 0x16e   :  { %v2120_v2 = vrot.slane %v12064_v32, 5  ;;  %v16676_v55 = vcombine.low %v13861_v21, %v13865_v6  ;;  %v9499_v9 = vrot.slane %v1932_v3, 9  ;;  %v2119_v12 = vrot.slane %v2117_v8, 4  ;;  %v11917_v21 = vld [vmem:[%s16649_s0 + $0xfc] sm:$0xff]  }
 0x16f   :  { %v14068_v3 = vsel %vm12735_vm7, %v9496_v23, %v2096_v51  ;;  %v10126_v32 = vld [vmem:[%s16649_s0 + $0x1c] sm:$0xf]  ;;  %v14083_v6 = vsel %vm12735_vm7, %v9497_v15, %v2103_v28  ;;  %v14087_v51 = vsel %vm12735_vm7, %v2105_v24, %v2106_v45  ;;  %v14091_v23 = vsel %vm12735_vm7, %v9498_v36, %v2110_v4  ;;  %v10129_v36 = vld [vmem:[%s16649_s0 + $0x28] sm:$0xf] }
 0x170   :  { %11142 = vmatmul.mubr.msk.bf16.gmra.mrb[28].mxu0 %vm980_vm4, %v11915_v0  ;;  %v2112_v0 = vrot.slane %v2110_v4, 4  ;;  %v14102_v28 = vsel %vm12735_vm7, %v9499_v9, %v2117_v8  ;;  %v14106_v15 = vsel %vm12735_vm7, %v2119_v12, %v2120_v2  ;;  %v10128_v4 = vld [vmem:[%s16649_s0 + $0x24] sm:$0xf]  ;;  %v1934_v8 = vld [vmem:[%s16649_s0 + $0xd8] sm:$0xe]  ;;  %v6570_v2 = vshrl.u32 %v10126_v32, 16 }
 0x171   :  { %10844 = vmatmul.mubr.msk.bf16.gmra.mrb[60].mxu1 %vm980_vm4, %v16675_v61  ;;  %11145 = vmatprep.mubr.msk.bf16.mxu0 %vm980_vm4, %v11916_v57  ;;  %v6557_v57 = vshrl.u32 %v10125_v46, 16  ;;  %v6560_v61 = vshll.u32 %v10125_v46, 16  ;;  %v14072_v46 = vsel %vm12735_vm7, %v2098_v11, %v2099_v49  ;;  %v1933_v49 = vld [vmem:[%s16649_s0 + $0xb4] sm:$0xe]  ;;  %16678 = vst [vmem:[#allocation11_spill] sm:$0xff] %v14102_v28  ;;  %16679 = vst [vmem:[#allocation12_spill] sm:$0xff] %v14106_v15 }
 0x172   :  { %10849 = vmatprep.mubr.msk.bf16.mxu1 %vm980_vm4, %v16676_v55  ;;  %v2124_v55 = vrot.slane %v13605_v52, 5  ;;  %v14095_v52 = vsel %vm12735_vm7, %v2112_v0, %v2113_v7  ;;  %v2131_v0 = vrot.slane %v13617_v59, 5  ;;  %v6566_v7 = vshll.u32 %v10126_v32, 16  ;;  %v10131_v9 = vld [vmem:[%s16649_s0 + $0x30] sm:$0xf] }
 0x173   :  { %16677 = vst [vmem:[#allocation10_spill] sm:$0xff] %v14095_v52  ;;  %v6559_v11 = vrot.slane %v6557_v57, 4  ;;  %v6562_v45 = vrot.slane %v6560_v61, 5  ;;  %v9500_v12 = vrot.slane %v1933_v49, 9  ;;  %v12065_v61 = vld [vmem:[%s16649_s0 + $0xbc] sm:$0x1]  ;;  %v16680_v31 = vcombine.low %v13841_v50, %v13845_v56 }
 0x174   :  { %v2126_v57 = vrot.slane %v2124_v55, 4  ;;  %v2127_v24 = vrot.slane %v12065_v61, 5  ;;  %v6584_v49 = vshll.u32 %v10128_v4, 16  ;;  %v10132_v50 = vld [vmem:[%s16649_s0 + $0x34] sm:$0xf]  ;;  %v9501_v56 = vrot.slane %v1934_v8, 9 }
 0x175   :  { %v10127_v61 = vld [vmem:[%s16649_s0 + $0x20] sm:$0x1]  ;;  %v6563_v32 = vor.u32 %v6562_v45, %v6559_v11  ;;  %v6590_v59 = vshll.u32 %v10129_v36, 16  ;;  %v2133_v62 = vrot.slane %v2131_v0, 4  ;;  %v14152_v38 = vrot.slane %v6566_v7, 5 }
 0x176   :  { %v6594_v27 = vshrl.u32 %v10129_v36, 16  ;;  %v6605_v8 = vshrl.u32 %v10131_v9, 16  ;;  %v6618_v11 = vshrl.u32 %v10132_v50, 16  ;;  %v11920_v45 = vld [vmem:[%s16649_s0 + $0x120] sm:$0xff]   ;;  %v14166_v36 = vsel %vm12735_vm7, %v9500_v12, %v2124_v55 }
 0x177   :  { %16682 = vst [vmem:[#allocation13_spill] sm:$0xff] %v14166_v36  ;;  %v14170_v7 = vsel %vm12735_vm7, %v2126_v57, %v2127_v24  ;;  %v6586_v12 = vrot.slane %v6584_v49, 5 }
 0x178   :  { %11146 = vmatmul.mubr.msk.bf16.gmra.mrb[32].mxu0 %vm980_vm4, %v11917_v21  ;;  %v6581_v21 = vshrl.u32 %v10128_v4, 16  ;;  %16683 = vst [vmem:[#allocation14_spill] sm:$0xff] %v14170_v7  ;;  %v6607_v49 = vrot.slane %v6605_v8, 4 }
 0x179   :  { %10850 = vmatmul.mubr.msk.bf16.vlgmr.msra.gmra.mrb[0].mxu1 %vm980_vm4, %v16680_v31  ;;  %11149 = vmatprep.mubr.msk.bf16.mxu0 %vm980_vm4, %v11918_v54  ;;  %v16681_v54 = vcombine.low %v13869_v13, %v13873_v29  ;;  %v12066_v31 = vld [vmem:[%s16649_s0 + $0xe0] sm:$0x1]  ;;  %v12067_v13 = vld [vmem:[%s16648_s1 + $0x10] sm:$0xf]  ;;  %v11919_v29 = vld [vmem:[%s16649_s0 + $0x114] sm:$0xff]  }
 0x17a   :  { %10914 = vmatpush3.bf16.msra.mxu1 %v13889_v42  ;;  %v2134_v4 = vrot.slane %v12066_v31, 5  ;;  %v6572_v42 = vrot.slane %v6570_v2, 4  ;;  %v6614_v31 = vshll.u32 %v10132_v50, 16  ;;  %v6576_v2 = vshll.u32 %v10127_v61, 16 }
 0x17b   :  { %10853 = vmatprep.mubr.msk.bf16.mxu1 %vm980_vm4, %v16681_v54  ;;  %11828 = vmatprep.subr.msk.bf16.mxu1 %vm1077_vm0, %v12067_v13  ;;  %v6608_v54 = vshll.u32 %v10131_v9, 16  ;;  %v14175_v9 = vsel %vm12735_vm7, %v9501_v56, %v2131_v0  ;;  %v14177_v50 = vrot.slane %v6563_v32, 4  ;;  %v6583_v55 = vrot.slane %v6581_v21, 4  ;;  %v10130_v0 = vld [vmem:[%s16649_s0 + $0x2c] sm:$0x1] }
 0x17c   :  { %16684 = vst [vmem:[#allocation15_spill] sm:$0xff] %v14175_v9  ;;  %v14186_v24 = vsel %vm12735_vm7, %v2133_v62, %v2134_v4  ;;  %v6573_v57 = vor.u32 %v6572_v42, %v14152_v38  ;;  %v14192_v56 = vrot.slane %v6590_v59, 5  ;;  %v6596_v32 = vrot.slane %v6594_v27, 4  ;;  %v10133_v21 = vld [vmem:[%s16649_s0 + $0x38] sm:$0x1] }
 0x17d   :  { %16685 = vst [vmem:[#allocation16_spill] sm:$0xff] %v14186_v24  ;;  %v6610_v61 = vrot.slane %v6608_v54, 5  ;;  %v14198_v13 = vrot.slane %v6614_v31, 5  ;;  %v6620_v62 = vrot.slane %v6618_v11, 4  ;;  %v16686_v4 = vcombine.low %v13893_v43, %v13904_v25 }
 0x17e   :  { %v14207_v59 = vrot.slane %v6576_v2, 5  ;;  %v9502_v42 = vrot.slane %v14182_v60, 9  ;;  %v16687_v54 = vcombine.low %v13897_v40, %v13908_v17  ;;  %v16688_v25 = vrot.slane %v13633_v1, 5  ;;  %v10134_v60 = vld [vmem:[%s16649_s0 + $0x3c] sm:$0xf] }
 0x17f   :  { %v6587_v11 = vor.u32 %v6586_v12, %v6583_v55  ;;  %v10135_v2 = vld [vmem:[%s16649_s0 + $0x40] sm:$0xf]  ;;  %v6569_v40 = vsel %vm12260_vm3, %v14177_v50, %v14152_v38  ;;  %v6597_v17 = vor.u32 %v6596_v32, %v14192_v56  ;;  %v1936_v55 = vld [vmem:[%s16649_s0 + $0xf0] sm:$0xe]  ;;  %v2145_v12 = vrot.slane %v13646_v26, 5  ;;  %v11922_v32 = vld [vmem:[%s16649_s0 + $0x138] sm:$0xff]  }
 0x180   :  { %11150 = vmatmul.mubr.msk.bf16.gmra.mrb[36].mxu0 %vm980_vm4, %v11919_v29  ;;  %v12068_v29 = vld [vmem:[%s16649_s0 + $0xec] sm:$0x1]  ;;  %v2140_v31 = vrot.slane %v16688_v25, 4  ;;  %v6621_v25 = vor.u32 %v6620_v62, %v14198_v13  ;;  %v1937_v38 = vld [vmem:[%s16649_s0 + $0xfc] sm:$0xe]  ;;  %v2152_v50 = vrot.slane %v13672_v22, 5 }
 0x181   :  { %10854 = vmatmul.mubr.msk.bf16.gmra.mrb[4].mxu1 %vm980_vm4, %v16686_v4  ;;  %11153 = vmatprep.mubr.msk.bf16.mxu0 %vm980_vm4, %v11920_v45  ;;  %v2141_v8 = vrot.slane %v12068_v29, 5  ;;  %v6600_v45 = vshll.u32 %v10130_v0, 16  ;;  %v6624_v0 = vshll.u32 %v10133_v21, 16  ;;  %v11921_v4 = vld [vmem:[%s16649_s0 + $0x12c] sm:$0xff]   ;;  %v6574_v29 = vrot.slane %v6573_v57, 4 }
 0x182   :  { %10857 = vmatprep.mubr.msk.bf16.mxu1 %vm980_vm4, %v16687_v54  ;;  %v6611_v54 = vor.u32 %v6610_v61, %v6607_v49  ;;  %v6629_v26 = vshrl.u32 %v10134_v60, 16  ;;  %v6632_v21 = vshll.u32 %v10134_v60, 16  ;;  %v6638_v43 = vshll.u32 %v10135_v2, 16  ;;  %v12069_v49 = vld [vmem:[%s16649_s0 + $0xf8] sm:$0x1] }
 0x183   :  { %v6642_v27 = vshrl.u32 %v10135_v2, 16  ;;  %v6588_v24 = vrot.slane %v6587_v11, 4  ;;  %v6602_v9 = vrot.slane %v6600_v45, 5  ;;  %v9503_v57 = vrot.slane %v1936_v55, 9  ;;  %v12070_v11 = vld [vmem:[%s16649_s0 + $0x104] sm:$0x1] }
 0x184   :  { %v2148_v61 = vrot.slane %v12069_v49, 5  ;;  %v6598_v62 = vrot.slane %v6597_v17, 4  ;;  %v2147_v7 = vrot.slane %v2145_v12, 4  ;;  %v6626_v36 = vrot.slane %v6624_v0, 5  ;;  %v10136_v2 = vld [vmem:[%s16649_s0 + $0x44] sm:$0x1] }
 0x185   :  { %v9504_v22 = vrot.slane %v1937_v38, 9  ;;  %v6612_v15 = vrot.slane %v6611_v54, 4  ;;  %v6622_v28 = vrot.slane %v6621_v25, 4  ;;  %v2154_v52 = vrot.slane %v2152_v50, 4 }
 0x186   :  { %v2155_v45 = vrot.slane %v12070_v11, 5  ;;  %v16689_v60 = vcombine.low %v13927_v44, %v13931_v20  ;;  %v6631_v17 = vrot.slane %v6629_v26, 4  ;;  %v6634_v55 = vrot.slane %v6632_v21, 5 }
 0x187   :  { %v14262_v0 = vrot.slane %v6638_v43, 5  ;;  %v16690_v54 = vcombine.low %v13950_v16, %v13966_v47  ;;  %v6579_v44 = vsel %vm12260_vm3, %v6574_v29, %v14207_v59  ;;  %v16691_v20 = vrot.slane %v13633_v1, 5  ;;  %v10137_v16 = vld [vmem:[%s16649_s0 + $0x48] sm:$0xf]  ;;  %v11924_v29 = vld [vmem:[%s16649_s0 + $0x150] sm:$0xff]  }
 0x188   :  { %11154 = vmatmul.mubr.msk.bf16.gmra.mrb[40].mxu0 %vm980_vm4, %v11921_v4  ;;  %v6644_v4 = vrot.slane %v6642_v27, 4  ;;  %v14279_v43 = vsel %vm12735_vm7, %v2140_v31, %v2141_v8  ;;  %v6593_v47 = vsel %vm12260_vm3, %v6588_v24, %v14192_v56  ;;  %v6603_v27 = vsel %vm12260_vm3, %v6598_v62, %v6602_v9  ;;  %v10138_v24 = vld [vmem:[%s16649_s0 + $0x4c] sm:$0xf]  ;;  %v11923_v9 = vld [vmem:[%s16649_s0 + $0x144] sm:$0xff]  }
 0x189   :  { %10858 = vmatmul.mubr.msk.bf16.gmra.mrb[8].mxu1 %vm980_vm4, %v16689_v60  ;;  %11157 = vmatprep.mubr.msk.bf16.mxu0 %vm980_vm4, %v11922_v32  ;;  %v14275_v25 = vsel %vm12735_vm7, %v9502_v42, %v16691_v20  ;;  %v14291_v1 = vsel %vm12735_vm7, %v9503_v57, %v2145_v12  ;;  %v14295_v59 = vsel %vm12735_vm7, %v2147_v7, %v2148_v61  ;;  %v6648_v31 = vshll.u32 %v10136_v2, 16  ;;  %v1938_v12 = vld [vmem:[%s16649_s0 + $0x108] sm:$0xe] }
 0x18a   :  { %10861 = vmatprep.mubr.msk.bf16.mxu1 %vm980_vm4, %v16690_v54  ;;  %v14299_v42 = vsel %vm12735_vm7, %v9504_v22, %v2152_v50  ;;  %v6617_v56 = vsel %vm12260_vm3, %v6612_v15, %v14198_v13  ;;  %v6627_v7 = vsel %vm12260_vm3, %v6622_v28, %v6626_v36  ;;  %v14314_v8 = vsel %vm12735_vm7, %v2154_v52, %v2155_v45  ;;  %v10143_v45 = vld [vmem:[%s16649_s0 + $0x60] sm:$0xf] }
 0x18b   :  { %v6635_v38 = vor.u32 %v6634_v55, %v6631_v17  ;;  %v6645_v50 = vor.u32 %v6644_v4, %v14262_v0  ;;  %v6653_v15 = vshrl.u32 %v10137_v16, 16  ;;  %v6656_v13 = vshll.u32 %v10137_v16, 16  ;;  %v11925_v16 = vld [vmem:[%s16649_s0 + $0x15c] sm:$0xff]  }
 0x18c   :  { %v14323_v32 = vcombine.low %v6569_v40, %v6579_v44  ;;  %v9534_v52 = vcombine.low %v14275_v25, %v14279_v43  ;;  %v6662_v28 = vshll.u32 %v10138_v24, 16  ;;  %v6666_v36 = vshrl.u32 %v10138_v24, 16  ;;  %v10140_v40 = vld [vmem:[%s16649_s0 + $0x54] sm:$0xf] }
 0x18d   :  { %v14327_v26 = vcombine.low %v6593_v47, %v6603_v27  ;;  %v14331_v21 = vsel %vm1077_vm0, %v13656_v18, 0  ;;  %v9535_v57 = vcombine.low %v14291_v1, %v14295_v59  ;;  %v9505_v49 = vrot.slane %v1938_v12, 9  ;;  %v10141_v18 = vld [vmem:[%s16649_s0 + $0x58] sm:$0xf] }
 0x18e   :  { %v14339_v61 = vcombine.low %v6617_v56, %v6627_v7  ;;  %v9536_v62 = vcombine.low %v14299_v42, %v14314_v8  ;;  %v6650_v22 = vrot.slane %v6648_v31, 5  ;;  %v2159_v11 = vrot.slane %v13684_v33, 5  ;;  %v10144_v33 = vld [vmem:[%s16649_s0 + $0x64] sm:$0xf]  ;;  %v1939_v56 = vld [vmem:[%s16649_s0 + $0x114] sm:$0xe] }
 0x18f   :  { %v16692_v60 = vcombine.low %v13979_v39, %v13993_v35  ;;  %v6636_v2 = vrot.slane %v6635_v38, 4  ;;  %v6646_v17 = vrot.slane %v6645_v50, 4  ;;  %v6655_v55 = vrot.slane %v6653_v15, 4  ;;  %v10139_v39 = vld [vmem:[%s16649_s0 + $0x50] sm:$0x1]  ;;  %v11926_v38 = vld [vmem:[%s16649_s0 + $0x168] sm:$0xff]  }
 0x190   :  { %11158 = vmatmul.mubr.msk.bf16.gmra.mrb[44].mxu0 %vm980_vm4, %v11923_v9  ;;  %v6658_v4 = vrot.slane %v6656_v13, 5  ;;  %v16693_v54 = vcombine.low %v13997_v37, %v14006_v10  ;;  %v14365_v35 = vrot.slane %v6662_v28, 5  ;;  %v6668_v44 = vrot.slane %v6666_v36, 4  ;;  %v12071_v10 = vld [vmem:[%s16649_s0 + $0x110] sm:$0x1] }
 0x191   :  { %10862 = vmatmul.mubr.msk.bf16.gmra.mrb[12].mxu1 %vm980_vm4, %v16692_v60  ;;  %11161 = vmatprep.mubr.msk.bf16.mxu0 %vm980_vm4, %v11924_v29  ;;  %v6677_v20 = vshrl.u32 %v10140_v40, 16  ;;  %v6680_v47 = vshll.u32 %v10140_v40, 16  ;;  %v14372_v27 = vsel %vm12735_vm7, %v9505_v49, %v2159_v11  ;;  %v2162_v37 = vrot.slane %v12071_v10, 5  ;;  %v10163_v8 = vld [vmem:[%s16649_s0 + $0xb0] sm:$0x1] }
 0x192   :  { %10865 = vmatprep.mubr.msk.bf16.mxu1 %vm980_vm4, %v16693_v54  ;;  %v6686_v24 = vshll.u32 %v10141_v18, 16  ;;  %v6690_v9 = vshrl.u32 %v10141_v18, 16  ;;  %v6701_v7 = vshrl.u32 %v10143_v45, 16  ;;  %v6704_v31 = vshll.u32 %v10143_v45, 16 }
 0x193   :  { %v6710_v12 = vshll.u32 %v10144_v33, 16  ;;  %v6714_v29 = vshrl.u32 %v10144_v33, 16  ;;  %v6641_v50 = vsel %vm12260_vm3, %v6636_v2, %v14262_v0  ;;  %v6651_v15 = vsel %vm12260_vm3, %v6646_v17, %v6650_v22  ;;  %v10142_v33 = vld [vmem:[%s16649_s0 + $0x5c] sm:$0x1]  ;;  %v10145_v22 = vld [vmem:[%s16649_s0 + $0x68] sm:$0x1] }
 0x194   :  { %v2161_v13 = vrot.slane %v2159_v11, 4  ;;  %v6672_v28 = vshll.u32 %v10139_v39, 16  ;;  %v6659_v36 = vor.u32 %v6658_v4, %v6655_v55  ;;  %v6669_v49 = vor.u32 %v6668_v44, %v14365_v35 }
 0x195   :  { %v6679_v40 = vrot.slane %v6677_v20, 4  ;;  %v6682_v18 = vrot.slane %v6680_v47, 5  ;;  %v9506_v45 = vrot.slane %v1939_v56, 9  ;;  %v2166_v60 = vrot.slane %v13700_v41, 5  ;;  %v12072_v20 = vld [vmem:[%s16649_s0 + $0x11c] sm:$0x1] }
 0x196   :  { %v14393_v54 = vrot.slane %v6686_v24, 5  ;;  %v6692_v0 = vrot.slane %v6690_v9, 4  ;;  %v6703_v11 = vrot.slane %v6701_v7, 4  ;;  %v6706_v2 = vrot.slane %v6704_v31, 5  ;;  %v10147_v9 = vld [vmem:[%s16649_s0 + $0x70] sm:$0xf] }
 0x197   :  { %v14399_v17 = vrot.slane %v6710_v12, 5  ;;  %v6716_v55 = vrot.slane %v6714_v29, 4  ;;  %v16694_v41 = vcombine.low %v14010_v53, %v14015_v5  ;;  %v14406_v4 = vcombine.low %v6641_v50, %v6651_v15  ;;  %v10146_v53 = vld [vmem:[%s16649_s0 + $0x6c] sm:$0xf]  ;;  %v11927_v12 = vld [vmem:[%s16649_s0 + $0x174] sm:$0xff]  }
 0x198   :  { %11162 = vmatmul.mubr.msk.bf16.gmra.mrb[48].mxu0 %vm980_vm4, %v11925_v16  ;;  %v14410_v39 = vsel %vm12735_vm7, %v2161_v13, %v2162_v37  ;;  %v14412_v44 = vrot.slane %v6672_v28, 5  ;;  %v2169_v47 = vrot.slane %v12072_v20, 5  ;;  %v16695_v5 = vcombine.low %v14019_v19, %v14033_v14  ;;  %v1940_v19 = vld [vmem:[%s16649_s0 + $0x120] sm:$0xe]  ;;  %v1941_v15 = vld [vmem:[%s16649_s0 + $0x12c] sm:$0xe] }
 0x199   :  { %10866 = vmatmul.mubr.msk.bf16.gmra.mrb[16].mxu1 %vm980_vm4, %v16694_v41  ;;  %11165 = vmatprep.mubr.msk.bf16.mxu0 %vm980_vm4, %v11926_v38  ;;  %v14424_v16 = vrot.slane %v6659_v36, 4  ;;  %v14426_v10 = vrot.slane %v6669_v49, 4  ;;  %v6683_v37 = vor.u32 %v6682_v18, %v6679_v40  ;;  %v6696_v24 = vshll.u32 %v10142_v33, 16  ;;  %v11928_v28 = vld [vmem:[%s16649_s0 + $0x180] sm:$0xff]   ;;  %v12073_v33 = vld [vmem:[%s16649_s0 + $0x128] sm:$0x1] }
 0x19a   :  { %10869 = vmatprep.mubr.msk.bf16.mxu1 %vm980_vm4, %v16695_v5  ;;  %v14433_v56 = vsel %vm12735_vm7, %v9506_v45, %v2166_v60  ;;  %v6693_v7 = vor.u32 %v6692_v0, %v14393_v54  ;;  %v2173_v14 = vrot.slane %v13712_v48, 5  ;;  %v6720_v31 = vshll.u32 %v10145_v22, 16 }
 0x19b   :  { %v2168_v29 = vrot.slane %v2166_v60, 4  ;;  %v6707_v38 = vor.u32 %v6706_v2, %v6703_v11  ;;  %v6717_v50 = vor.u32 %v6716_v55, %v14399_v17  ;;  %v2180_v13 = vrot.slane %v13728_v58, 5 }
 0x19c   :  { %v6725_v48 = vshrl.u32 %v10146_v53, 16  ;;  %v6728_v36 = vshll.u32 %v10146_v53, 16  ;;  %v6734_v49 = vshll.u32 %v10147_v9, 16  ;;  %v6738_v40 = vshrl.u32 %v10147_v9, 16  ;;  %v12074_v53 = vld [vmem:[%s16649_s0 + $0x134] sm:$0x1] }
 0x19d   :  { %v6684_v18 = vrot.slane %v6683_v37, 4  ;;  %v6698_v45 = vrot.slane %v6696_v24, 5  ;;  %v9507_v60 = vrot.slane %v1940_v19, 9  ;;  %v2176_v0 = vrot.slane %v12073_v33, 5  ;;  %v10148_v24 = vld [vmem:[%s16649_s0 + $0x74] sm:$0x1] }
 0x19e   :  { %v6694_v22 = vrot.slane %v6693_v7, 4  ;;  %v2175_v11 = vrot.slane %v2173_v14, 4  ;;  %v6722_v2 = vrot.slane %v6720_v31, 5  ;;  %v9508_v58 = vrot.slane %v1941_v15, 9  ;;  %v10150_v15 = vld [vmem:[%s16649_s0 + $0x7c] sm:$0xf] }
 0x19f   :  { %v6708_v55 = vrot.slane %v6707_v38, 4  ;;  %v6718_v41 = vrot.slane %v6717_v50, 4  ;;  %v2182_v20 = vrot.slane %v2180_v13, 4  ;;  %v2183_v5 = vrot.slane %v12074_v53, 5  ;;  %v10152_v33 = vld [vmem:[%s16649_s0 + $0x84] sm:$0xf] }
 0x1a0   :  { %11166 = vmatmul.mubr.msk.bf16.gmra.mrb[52].mxu0 %vm980_vm4, %v11927_v12  ;;  %v16696_v37 = vcombine.low %v14068_v3, %v14072_v46  ;;  %v6727_v9 = vrot.slane %v6725_v48, 4  ;;  %v6730_v7 = vrot.slane %v6728_v36, 5  ;;  %v14466_v19 = vrot.slane %v6734_v49, 5 }
 0x1a1   :  { %11169 = vmatprep.mubr.msk.bf16.mxu0 %vm980_vm4, %v11928_v28  ;;  %v6740_v31 = vrot.slane %v6738_v40, 4  ;;  %v16697_v12 = vcombine.low %v14083_v6, %v14087_v51  ;;  %v6665_v3 = vsel %vm12260_vm3, %v14424_v16, %v14365_v35  ;;  %v6675_v46 = vsel %vm12260_vm3, %v14426_v10, %v14412_v44  ;;  %v10149_v6 = vld [vmem:[%s16649_s0 + $0x78] sm:$0xf]  ;;  %v11929_v16 = vld [vmem:[%s16649_s0 + $0x18c] sm:$0xff]  }
 0x1a2   :  { %10870 = vmatmul.mubr.msk.bf16.gmra.mrb[20].mxu1 %vm980_vm4, %v16696_v37  ;;  %v14482_v38 = vsel %vm12735_vm7, %v2168_v29, %v2169_v47  ;;  %v14486_v50 = vsel %vm12735_vm7, %v9507_v60, %v2173_v14  ;;  %v6689_v51 = vsel %vm12260_vm3, %v6684_v18, %v14393_v54  ;;  %v6699_v35 = vsel %vm12260_vm3, %v6694_v22, %v6698_v45 }
 0x1a3   :  { %10873 = vmatprep.mubr.msk.bf16.mxu1 %vm980_vm4, %v16697_v12  ;;  %v14498_v44 = vsel %vm12735_vm7, %v2175_v11, %v2176_v0  ;;  %v14502_v47 = vsel %vm12735_vm7, %v9508_v58, %v2180_v13  ;;  %v6713_v10 = vsel %vm12260_vm3, %v6708_v55, %v14399_v17  ;;  %v6723_v54 = vsel %vm12260_vm3, %v6718_v41, %v6722_v2  ;;  %v11930_v13 = vld [vmem:[%s16649_s0 + $0x198] sm:$0xff]   ;;  %v10153_v58 = vld [vmem:[%s16649_s0 + $0x88] sm:$0xf]  ;;  %v10156_v12 = vld [vmem:[%s16649_s0 + $0x94] sm:$0xf] }
 0x1a4   :  { %v14514_v14 = vsel %vm12735_vm7, %v2182_v20, %v2183_v5  ;;  %v6744_v29 = vshll.u32 %v10148_v24, 16  ;;  %v6731_v28 = vor.u32 %v6730_v7, %v6727_v9  ;;  %v6741_v48 = vor.u32 %v6740_v31, %v14466_v19  ;;  %v1942_v17 = vld [vmem:[%s16649_s0 + $0x138] sm:$0xe]  ;;  %v10155_v5 = vld [vmem:[%s16649_s0 + $0x90] sm:$0xf] }
 0x1a5   :  { %v6749_v36 = vshrl.u32 %v10149_v6, 16  ;;  %v6752_v49 = vshll.u32 %v10149_v6, 16  ;;  %v9537_v40 = vcombine.low %v14372_v27, %v14410_v39  ;;  %v14528_v18 = vcombine.low %v6665_v3, %v6675_v46  ;;  %v16700_v3 = vld [vmem:[#allocation11_spill] sm:$0xff]  ;;  %v16701_v46 = vld [vmem:[#allocation12_spill] sm:$0xff]  ;;  %v16703_v41 = vld [vmem:[#allocation5_spill] sm:$0xff] }
 0x1a6   :  { %v9538_v45 = vcombine.low %v14433_v56, %v14482_v38  ;;  %v14537_v0 = vcombine.low %v6689_v51, %v6699_v35  ;;  %v2187_v22 = vrot.slane %v13740_v63, 5  ;;  %v6758_v11 = vshll.u32 %v10150_v15, 16  ;;  %v16698_v63 = vld [vmem:[#allocation10_spill] sm:$0xff]  ;;  %v10169_v56 = vld [vmem:[%s16649_s0 + $0xc8] sm:$0x1] }
 0x1a7   :  { %v6762_v2 = vshrl.u32 %v10150_v15, 16  ;;  %v14544_v55 = vcombine.low %v6713_v10, %v6723_v54  ;;  %v6746_v20 = vrot.slane %v6744_v29, 5  ;;  %v9509_v53 = vrot.slane %v1942_v17, 9  ;;  %v11931_v54 = vld [vmem:[%s16649_s0 + $0x1a4] sm:$0xff]   ;;  %v12075_v15 = vld [vmem:[%s16649_s0 + $0x140] sm:$0x1] }
 0x1a8   :  { %11170 = vmatmul.mubr.msk.bf16.gmra.mrb[56].mxu0 %vm980_vm4, %v11929_v16  ;;  %v16699_v37 = vcombine.low %v14091_v23, %v16698_v63  ;;  %v6732_v24 = vrot.slane %v6731_v28, 4  ;;  %v6742_v9 = vrot.slane %v6741_v48, 4  ;;  %v6751_v7 = vrot.slane %v6749_v36, 4  ;;  %v10151_v23 = vld [vmem:[%s16649_s0 + $0x80] sm:$0x1] }
 0x1a9   :  { %11173 = vmatprep.mubr.msk.bf16.mxu0 %vm980_vm4, %v11930_v13  ;;  %v6754_v31 = vrot.slane %v6752_v49, 5  ;;  %v16702_v6 = vcombine.low %v16700_v3, %v16701_v46  ;;  %v6773_v51 = vshrl.u32 %v10152_v33, 16  ;;  %v6776_v35 = vshll.u32 %v10152_v33, 16  ;;  %v1943_v17 = vld [vmem:[%s16649_s0 + $0x144] sm:$0xe] }
 0x1aa   :  { %10874 = vmatmul.mubr.msk.bf16.gmra.mrb[24].mxu1 %vm980_vm4, %v16699_v37  ;;  %v6782_v16 = vshll.u32 %v10153_v58, 16  ;;  %v6786_v10 = vshrl.u32 %v10153_v58, 16  ;;  %v2189_v29 = vrot.slane %v2187_v22, 4  ;;  %v2190_v13 = vrot.slane %v12075_v15, 5  ;;  %v10170_v38 = vld [vmem:[%s16649_s0 + $0xcc] sm:$0xf] }
 0x1ab   :  { %10877 = vmatprep.mubr.msk.bf16.mxu1 %vm980_vm4, %v16702_v6  ;;  %v14572_v28 = vrot.slane %v6758_v11, 5  ;;  %v6764_v48 = vrot.slane %v6762_v2, 4  ;;  %v6797_v36 = vshrl.u32 %v10155_v5, 16  ;;  %v6800_v49 = vshll.u32 %v10155_v5, 16  ;;  %v10154_v11 = vld [vmem:[%s16649_s0 + $0x8c] sm:$0x1] }
 0x1ac   :  { %v6806_v33 = vshll.u32 %v10156_v12, 16  ;;  %v6810_v58 = vshrl.u32 %v10156_v12, 16  ;;  %v6737_v63 = vsel %vm12260_vm3, %v6732_v24, %v14466_v19  ;;  %v6747_v37 = vsel %vm12260_vm3, %v6742_v9, %v6746_v20  ;;  %v10157_v9 = vld [vmem:[%s16649_s0 + $0x98] sm:$0x1] }
 0x1ad   :  { %v6755_v3 = vor.u32 %v6754_v31, %v6751_v7  ;;  %v6768_v46 = vshll.u32 %v10151_v23, 16  ;;  %v6775_v2 = vrot.slane %v6773_v51, 4  ;;  %v6778_v6 = vrot.slane %v6776_v35, 5  ;;  %v16704_v35 = vld [vmem:[#allocation13_spill] sm:$0xff] }
 0x1ae   :  { %v14585_v15 = vrot.slane %v6782_v16, 5  ;;  %v6788_v5 = vrot.slane %v6786_v10, 4  ;;  %v14589_v12 = vsel %vm12735_vm7, %v9509_v53, %v2187_v22  ;;  %v6765_v19 = vor.u32 %v6764_v48, %v14572_v28  ;;  %v16705_v16 = vld [vmem:[#allocation14_spill] sm:$0xff]  ;;  %v16707_v48 = vld [vmem:[#allocation15_spill] sm:$0xff] }
 0x1af   :  { %v9510_v24 = vrot.slane %v1943_v17, 9  ;;  %v2194_v20 = vrot.slane %v16703_v41, 5  ;;  %v6799_v7 = vrot.slane %v6797_v36, 4  ;;  %v6802_v31 = vrot.slane %v6800_v49, 5  ;;  %v16708_v17 = vld [vmem:[#allocation16_spill] sm:$0xff] }
 0x1b0   :  { %11174 = vmatmul.mubr.msk.bf16.gmra.mrb[60].mxu0 %vm980_vm4, %v11931_v54  ;;  %v14597_v23 = vrot.slane %v6806_v33, 5  ;;  %v6812_v51 = vrot.slane %v6810_v58, 4  ;;  %v16706_v22 = vcombine.low %v16704_v35, %v16705_v16  ;;  %v14605_v41 = vcombine.low %v6737_v63, %v6747_v37 }
 0x1b1   :  { %11179 = vmatprep.mubr.msk.bf16.mxu0 %vm980_vm4, %v14323_v32  ;;  %v14609_v53 = vsel %vm12735_vm7, %v2189_v29, %v2190_v13  ;;  %v14611_v10 = vrot.slane %v6755_v3, 4  ;;  %v6792_v54 = vshll.u32 %v10154_v11, 16  ;;  %v16709_v36 = vcombine.low %v16707_v48, %v16708_v17  ;;  %v12076_v32 = vld [vmem:[%s16649_s0 + $0x14c] sm:$0x1]  ;;  %v10158_v29 = vld [vmem:[%s16649_s0 + $0x9c] sm:$0xf] }
 0x1b2   :  { %10878 = vmatmul.mubr.msk.bf16.gmra.mrb[28].mxu1 %vm980_vm4, %v16706_v22  ;;  %v14617_v49 = vrot.slane %v6768_v46, 5  ;;  %v2197_v33 = vrot.slane %v12076_v32, 5  ;;  %v6779_v58 = vor.u32 %v6778_v6, %v6775_v2  ;;  %v6789_v63 = vor.u32 %v6788_v5, %v14585_v15  ;;  %v1944_v3 = vld [vmem:[%s16649_s0 + $0x150] sm:$0xe]  ;;  %v16710_v46 = vld [vmem:[#allocation6_spill] sm:$0xff] }
 0x1b3   :  { %10881 = vmatprep.mubr.msk.bf16.mxu1 %vm980_vm4, %v16709_v36  ;;  %v14628_v13 = vsel %vm12735_vm7, %v9510_v24, %v2194_v20  ;;  %v2196_v37 = vrot.slane %v2194_v20, 4  ;;  %v2201_v11 = vrot.slane %v16710_v46, 5  ;;  %v6816_v35 = vshll.u32 %v10157_v9, 16  ;;  %v1945_v5 = vld [vmem:[%s16649_s0 + $0x15c] sm:$0xe]  ;;  %v16711_v22 = vld [vmem:[#allocation9_spill] sm:$0xff] }
 0x1b4   :  { %v6766_v16 = vrot.slane %v6765_v19, 4  ;;  %v6803_v2 = vor.u32 %v6802_v31, %v6799_v7  ;;  %v6813_v6 = vor.u32 %v6812_v51, %v14597_v23  ;;  %v2208_v48 = vrot.slane %v16711_v22, 5  ;;  %v10159_v9 = vld [vmem:[%s16649_s0 + $0xa0] sm:$0xf]  ;;  %v12077_v36 = vld [vmem:[%s16649_s0 + $0x158] sm:$0x1] }
 0x1b5   :  { %v6761_v24 = vsel %vm12260_vm3, %v14611_v10, %v14572_v28  ;;  %v6794_v20 = vrot.slane %v6792_v54, 5  ;;  %v6821_v19 = vshrl.u32 %v10158_v29, 16  ;;  %v6824_v7 = vshll.u32 %v10158_v29, 16  ;;  %v12078_v28 = vld [vmem:[%s16649_s0 + $0x164] sm:$0x1] }
 0x1b6   :  { %v6780_v31 = vrot.slane %v6779_v58, 4  ;;  %v6790_v51 = vrot.slane %v6789_v63, 4  ;;  %v9511_v17 = vrot.slane %v1944_v3, 9  ;;  %v2204_v32 = vrot.slane %v12077_v36, 5  ;;  %v10161_v54 = vld [vmem:[%s16649_s0 + $0xa8] sm:$0xf] }
 0x1b7   :  { %v2203_v46 = vrot.slane %v2201_v11, 4  ;;  %v6818_v22 = vrot.slane %v6816_v35, 5  ;;  %v9512_v60 = vrot.slane %v1945_v5, 9  ;;  %v2211_v10 = vrot.slane %v12078_v28, 5 }
 0x1b8   :  { %11180 = vmatmul.mubr.msk.bf16.vlgmr.msra.gmra.mrb[0].mxu0 %vm980_vm4, %v14327_v26  ;;  %v6804_v58 = vrot.slane %v6803_v2, 4  ;;  %v6814_v63 = vrot.slane %v6813_v6, 4  ;;  %v2210_v29 = vrot.slane %v2208_v48, 4  ;;  %v6830_v3 = vshll.u32 %v10159_v9, 16  ;;  %v1946_v6 = vld [vmem:[%s16649_s0 + $0x168] sm:$0xe] }
 0x1b9   :  { %11244 = vmatpush3.bf16.msra.mxu0 %v14331_v21  ;;  %v14664_v35 = vsel %vm12735_vm7, %v2196_v37, %v2197_v33  ;;  %v6823_v5 = vrot.slane %v6821_v19, 4  ;;  %v6826_v36 = vrot.slane %v6824_v7, 5  ;;  %v6834_v28 = vshrl.u32 %v10159_v9, 16  ;;  %11183 = vmatprep.mubr.msk.bf16.mxu0 %vm980_vm4, %v14339_v61 }
 0x1ba   :  { %10882 = vmatmul.mubr.msk.bf16.gmra.mrb[32].mxu1 %vm980_vm4, %v9534_v52  ;;  %v6771_v25 = vsel %vm12260_vm3, %v6766_v16, %v14617_v49  ;;  %v14677_v43 = vsel %vm12735_vm7, %v9511_v17, %v2201_v11  ;;  %v10160_v52 = vld [vmem:[%s16649_s0 + $0xa4] sm:$0x1]  ;;  %v6845_v26 = vshrl.u32 %v10161_v54, 16  ;;  %v6848_v21 = vshll.u32 %v10161_v54, 16  ;;  %v10162_v49 = vld [vmem:[%s16649_s0 + $0xac] sm:$0xf] }
 0x1bb   :  { %10885 = vmatprep.mubr.msk.bf16.mxu1 %vm980_vm4, %v9535_v57  ;;  %v6785_v1 = vsel %vm12260_vm3, %v6780_v31, %v14585_v15  ;;  %v6795_v59 = vsel %vm12260_vm3, %v6790_v51, %v6794_v20  ;;  %v14689_v57 = vsel %vm12735_vm7, %v2203_v46, %v2204_v32  ;;  %v14693_v61 = vsel %vm12735_vm7, %v9512_v60, %v2208_v48  ;;  %v10164_v46 = vld [vmem:[%s16649_s0 + $0xb4] sm:$0xf] }
 0x1bc   :  { %v6809_v33 = vsel %vm12260_vm3, %v6804_v58, %v14597_v23  ;;  %v6819_v15 = vsel %vm12260_vm3, %v6814_v63, %v6818_v22  ;;  %v14705_v37 = vsel %vm12735_vm7, %v2210_v29, %v2211_v10  ;;  %v14707_v11 = vrot.slane %v6830_v3, 5  ;;  %v12079_v23 = vld [vmem:[%s16649_s0 + $0x16c] sm:$0xf]  ;;  %v10165_v58 = vld [vmem:[%s16649_s0 + $0xb8] sm:$0xf] }
 0x1bd   :  { %v6827_v16 = vor.u32 %v6826_v36, %v6823_v5  ;;  %v6836_v60 = vrot.slane %v6834_v28, 4  ;;  %v6840_v2 = vshll.u32 %v10160_v52, 16  ;;  %v2215_v48 = vrot.slane %v12079_v23, 5  ;;  %v10167_v63 = vld [vmem:[%s16649_s0 + $0xc0] sm:$0xf] }
 0x1be   :  { %v6847_v20 = vrot.slane %v6845_v26, 4  ;;  %v6850_v9 = vrot.slane %v6848_v21, 5  ;;  %v6854_v19 = vshll.u32 %v10162_v49, 16  ;;  %v6858_v7 = vshrl.u32 %v10162_v49, 16  ;;  %v12080_v5 = vld [vmem:[%s16649_s0 + $0x170] sm:$0x1] }
 0x1bf   :  { %v9541_v31 = vcombine.low %v14589_v12, %v14609_v53  ;;  %v14717_v51 = vcombine.low %v6761_v24, %v6771_v25  ;;  %v9542_v17 = vcombine.low %v14628_v13, %v14664_v35  ;;  %v14721_v32 = vcombine.low %v6785_v1, %v6795_v59  ;;  %v10168_v28 = vld [vmem:[%s16649_s0 + $0xc4] sm:$0xf]  ;;  %v1947_v52 = vld [vmem:[%s16649_s0 + $0x174] sm:$0xe]  ;;  %v10173_v12 = vld [vmem:[%s16649_s0 + $0xf0] sm:$0xf] }
 0x1c0   :  { %11184 = vmatmul.mubr.msk.bf16.gmra.mrb[4].mxu0 %vm980_vm4, %v14406_v4  ;;  %v9543_v22 = vcombine.low %v14677_v43, %v14689_v57  ;;  %v14730_v10 = vcombine.low %v6809_v33, %v6819_v15  ;;  %v9544_v24 = vcombine.low %v14693_v61, %v14705_v37  ;;  %v9513_v54 = vrot.slane %v1946_v6, 9  ;;  %v10178_v43 = vld [vmem:[%s16649_s0 + $0x104] sm:$0x1] }
 0x1c1   :  { %11187 = vmatprep.mubr.msk.bf16.mxu0 %vm980_vm4, %v14528_v18  ;;  %v6837_v4 = vor.u32 %v6836_v60, %v14707_v11  ;;  %v14747_v29 = vrot.slane %v6840_v2, 5  ;;  %v2217_v3 = vrot.slane %v2215_v48, 4  ;;  %v2218_v36 = vrot.slane %v12080_v5, 5 }
 0x1c2   :  { %10886 = vmatmul.mubr.msk.bf16.gmra.mrb[36].mxu1 %vm980_vm4, %v9536_v62  ;;  %v14759_v42 = vrot.slane %v6827_v16, 4  ;;  %v6851_v62 = vor.u32 %v6850_v9, %v6847_v20  ;;  %v14764_v18 = vrot.slane %v6854_v19, 5  ;;  %v6860_v25 = vrot.slane %v6858_v7, 4  ;;  %v12081_v20 = vld [vmem:[%s16649_s0 + $0x178] sm:$0xf] }
 0x1c3   :  { %10889 = vmatprep.mubr.msk.bf16.mxu1 %vm980_vm4, %v9537_v40  ;;  %v6869_v26 = vshrl.u32 %v10164_v46, 16  ;;  %v6872_v21 = vshll.u32 %v10164_v46, 16  ;;  %v6878_v1 = vshll.u32 %v10165_v58, 16  ;;  %v6882_v27 = vshrl.u32 %v10165_v58, 16 }
 0x1c4   :  { %v6893_v39 = vshrl.u32 %v10167_v63, 16  ;;  %v6896_v40 = vshll.u32 %v10167_v63, 16  ;;  %v6902_v59 = vshll.u32 %v10168_v28, 16  ;;  %v6906_v49 = vshrl.u32 %v10168_v28, 16 }
 0x1c5   :  { %v14769_v33 = vrot.slane %v6837_v4, 4  ;;  %v14773_v15 = vsel %vm12735_vm7, %v9513_v54, %v2215_v48  ;;  %v14777_v16 = vsel %vm12735_vm7, %v2217_v3, %v2218_v36  ;;  %v6864_v60 = vshll.u32 %v10163_v8, 16  ;;  %v10166_v48 = vld [vmem:[%s16649_s0 + $0xbc] sm:$0x1] }
 0x1c6   :  { %v14779_v2 = vrot.slane %v6851_v62, 4  ;;  %v6861_v6 = vor.u32 %v6860_v25, %v14764_v18  ;;  %v9514_v23 = vrot.slane %v1947_v52, 9  ;;  %v2222_v9 = vrot.slane %v12081_v20, 5  ;;  %v10171_v62 = vld [vmem:[%s16649_s0 + $0xd0] sm:$0xf] }
 0x1c7   :  { %v6871_v19 = vrot.slane %v6869_v26, 4  ;;  %v6874_v7 = vrot.slane %v6872_v21, 5  ;;  %v14788_v46 = vrot.slane %v6878_v1, 5  ;;  %v6884_v54 = vrot.slane %v6882_v27, 4  ;;  %v12083_v26 = vld [vmem:[%s16649_s0 + $0x184] sm:$0xf] }
 0x1c8   :  { %11188 = vmatmul.mubr.msk.bf16.gmra.mrb[8].mxu0 %vm980_vm4, %v14537_v0  ;;  %v6895_v58 = vrot.slane %v6893_v39, 4  ;;  %v6898_v63 = vrot.slane %v6896_v40, 5  ;;  %v14792_v4 = vrot.slane %v6902_v59, 5  ;;  %v6908_v3 = vrot.slane %v6906_v49, 4 }
 0x1c9   :  { %11191 = vmatprep.mubr.msk.bf16.mxu0 %vm980_vm4, %v14544_v55  ;;  %v6833_v5 = vsel %vm12260_vm3, %v14759_v42, %v14707_v11  ;;  %v6843_v0 = vsel %vm12260_vm3, %v14769_v33, %v14747_v29  ;;  %v9545_v36 = vcombine.low %v14773_v15, %v14777_v16  ;;  %v6866_v28 = vrot.slane %v6864_v60, 5  ;;  %v12082_v29 = vld [vmem:[%s16649_s0 + $0x17c] sm:$0x1] }
 0x1ca   :  { %10890 = vmatmul.mubr.msk.bf16.gmra.mrb[40].mxu1 %vm980_vm4, %v9538_v45  ;;  %v16712_v45 = vcombine.low %v14486_v50, %v14498_v44  ;;  %v6862_v55 = vrot.slane %v6861_v6, 4  ;;  %v2224_v11 = vrot.slane %v2222_v9, 4  ;;  %v2225_v42 = vrot.slane %v12082_v29, 5  ;;  %v1948_v44 = vld [vmem:[%s16649_s0 + $0x180] sm:$0xe] }
 0x1cb   :  { %v6888_v8 = vshll.u32 %v10166_v48, 16  ;;  %v14828_v25 = vsel %vm12735_vm7, %v9514_v23, %v2222_v9  ;;  %v6875_v52 = vor.u32 %v6874_v7, %v6871_v19  ;;  %v6885_v50 = vor.u32 %v6884_v54, %v14788_v46 }
 0x1cc   :  { %10893 = vmatprep.mubr.msk.bf16.mxu1 %vm980_vm4, %v16712_v45  ;;  %v2229_v21 = vrot.slane %v12083_v26, 5  ;;  %v6857_v1 = vsel %vm12260_vm3, %v14779_v2, %v14764_v18  ;;  %v6899_v27 = vor.u32 %v6898_v63, %v6895_v58  ;;  %v6909_v39 = vor.u32 %v6908_v3, %v14792_v4  ;;  %v12084_v2 = vld [vmem:[%s16649_s0 + $0x188] sm:$0x1]  ;;  %v1949_v3 = vld [vmem:[%s16649_s0 + $0x18c] sm:$0xe] }
 0x1cd   :  { %v6912_v40 = vshll.u32 %v10169_v56, 16  ;;  %v6917_v59 = vshrl.u32 %v10170_v38, 16  ;;  %v6920_v49 = vshll.u32 %v10170_v38, 16  ;;  %v6926_v33 = vshll.u32 %v10171_v62, 16  ;;  %v10176_v26 = vld [vmem:[%s16649_s0 + $0xfc] sm:$0xf] }
 0x1ce   :  { %v6930_v60 = vshrl.u32 %v10171_v62, 16  ;;  %v6867_v6 = vsel %vm12260_vm3, %v6862_v55, %v6866_v28  ;;  %v14846_v23 = vsel %vm12735_vm7, %v2224_v11, %v2225_v42  ;;  %v6890_v20 = vrot.slane %v6888_v8, 5  ;;  %v12085_v28 = vld [vmem:[%s16649_s0 + $0x190] sm:$0xf]  ;;  %v10174_v8 = vld [vmem:[%s16649_s0 + $0xf4] sm:$0xf] }
 0x1cf   :  { %v9515_v9 = vrot.slane %v1948_v44, 9  ;;  %v6876_v48 = vrot.slane %v6875_v52, 4  ;;  %v6886_v19 = vrot.slane %v6885_v50, 4  ;;  %v2231_v18 = vrot.slane %v2229_v21, 4  ;;  %v12086_v50 = vld [vmem:[%s16649_s0 + $0x194] sm:$0x1] }
 0x1d0   :  { %v2232_v7 = vrot.slane %v12084_v2, 5  ;;  %11192 = vmatmul.mubr.msk.bf16.gmra.mrb[12].mxu0 %vm980_vm4, %v14605_v41  ;;  %v6900_v54 = vrot.slane %v6899_v27, 4  ;;  %v6910_v58 = vrot.slane %v6909_v39, 4  ;;  %v6914_v63 = vrot.slane %v6912_v40, 5 }
 0x1d1   :  { %v2236_v56 = vrot.slane %v12085_v28, 5  ;;  %v16713_v38 = vcombine.low %v14502_v47, %v14514_v14  ;;  %11195 = vmatprep.mubr.msk.bf16.mxu0 %vm980_vm4, %v14717_v51  ;;  %v6919_v41 = vrot.slane %v6917_v59, 4  ;;  %v6922_v45 = vrot.slane %v6920_v49, 5  ;;  %v10172_v51 = vld [vmem:[%s16649_s0 + $0xd4] sm:$0x1] }
 0x1d2   :  { %v14865_v55 = vrot.slane %v6926_v33, 5  ;;  %v6932_v11 = vrot.slane %v6930_v60, 4  ;;  %v14871_v29 = vcombine.low %v6833_v5, %v6843_v0  ;;  %v14873_v42 = vcombine.low %v6857_v1, %v6867_v6  ;;  %v10180_v28 = vld [vmem:[%s16649_s0 + $0x10c] sm:$0xf] }
 0x1d3   :  { %10894 = vmatmul.mubr.msk.bf16.gmra.mrb[44].mxu1 %vm980_vm4, %v16713_v38  ;;  %v9546_v47 = vcombine.low %v14828_v25, %v14846_v23  ;;  %v14879_v14 = vsel %vm12735_vm7, %v9515_v9, %v2229_v21  ;;  %v6881_v53 = vsel %vm12260_vm3, %v6876_v48, %v14788_v46  ;;  %v14894_v5 = vsel %vm12735_vm7, %v2231_v18, %v2232_v7 }
 0x1d4   :  { %10897 = vmatprep.mubr.msk.bf16.mxu1 %vm980_vm4, %v9541_v31  ;;  %v6891_v31 = vsel %vm12260_vm3, %v6886_v19, %v6890_v20  ;;  %v9516_v0 = vrot.slane %v1949_v3, 9  ;;  %v6905_v62 = vsel %vm12260_vm3, %v6900_v54, %v14792_v4  ;;  %v6915_v52 = vsel %vm12260_vm3, %v6910_v58, %v6914_v63  ;;  %v10177_v4 = vld [vmem:[%s16649_s0 + $0x100] sm:$0xf]  ;;  %v10175_v20 = vld [vmem:[%s16649_s0 + $0xf8] sm:$0x1] }
 0x1d5   :  { %v2238_v46 = vrot.slane %v2236_v56, 4  ;;  %v2239_v44 = vrot.slane %v12086_v50, 5  ;;  %v6923_v21 = vor.u32 %v6922_v45, %v6919_v41  ;;  %v6933_v1 = vor.u32 %v6932_v11, %v14865_v55  ;;  %v10179_v54 = vld [vmem:[%s16649_s0 + $0x108] sm:$0xf] }
 0x1d6   :  { %v6936_v27 = vshll.u32 %v10172_v51, 16  ;;  %v6941_v39 = vshrl.u32 %v10173_v12, 16  ;;  %v9547_v40 = vcombine.low %v14879_v14, %v14894_v5  ;;  %v6944_v59 = vshll.u32 %v10173_v12, 16  ;;  %v10183_v51 = vld [vmem:[%s16649_s0 + $0x118] sm:$0xf] }
 0x1d7   :  { %v6950_v49 = vshll.u32 %v10174_v8, 16  ;;  %v6954_v33 = vshrl.u32 %v10174_v8, 16  ;;  %v14916_v60 = vcombine.low %v6881_v53, %v6891_v31  ;;  %v14920_v6 = vsel %vm12735_vm7, %v9516_v0, %v2236_v56  ;;  %v10182_v56 = vld [vmem:[%s16649_s0 + $0x114] sm:$0xf] }
 0x1d8   :  { %v6965_v9 = vshrl.u32 %v10176_v26, 16  ;;  %v6968_v48 = vshll.u32 %v10176_v26, 16  ;;  %11196 = vmatmul.mubr.msk.bf16.gmra.mrb[16].mxu0 %vm980_vm4, %v14721_v32  ;;  %v14927_v19 = vcombine.low %v6905_v62, %v6915_v52  ;;  %v14931_v18 = vsel %vm12735_vm7, %v2238_v46, %v2239_v44  ;;  %v10185_v26 = vld [vmem:[%s16649_s0 + $0x120] sm:$0xf] }
 0x1d9   :  { %v6974_v2 = vshll.u32 %v10177_v4, 16  ;;  %v6978_v7 = vshrl.u32 %v10177_v4, 16  ;;  %11199 = vmatprep.mubr.msk.bf16.mxu0 %vm980_vm4, %v14730_v10  ;;  %v14942_v32 = vrot.slane %v6923_v21, 4  ;;  %v14944_v58 = vrot.slane %v6933_v1, 4 }
 0x1da   :  { %v14946_v63 = vrot.slane %v6936_v27, 5  ;;  %v6943_v3 = vrot.slane %v6941_v39, 4  ;;  %v6946_v13 = vrot.slane %v6944_v59, 5  ;;  %v14955_v35 = vrot.slane %v6950_v49, 5  ;;  %v10181_v59 = vld [vmem:[%s16649_s0 + $0x110] sm:$0x1] }
 0x1db   :  { %10898 = vmatmul.mubr.msk.bf16.gmra.mrb[48].mxu1 %vm980_vm4, %v9542_v17  ;;  %v6956_v17 = vrot.slane %v6954_v33, 4  ;;  %v6960_v10 = vshll.u32 %v10175_v20, 16  ;;  %v6967_v38 = vrot.slane %v6965_v9, 4  ;;  %v6970_v41 = vrot.slane %v6968_v48, 5  ;;  %v10186_v9 = vld [vmem:[%s16649_s0 + $0x124] sm:$0xf] }
 0x1dc   :  { %10901 = vmatprep.mubr.msk.bf16.mxu1 %vm980_vm4, %v9543_v22  ;;  %v6989_v45 = vshrl.u32 %v10179_v54, 16  ;;  %v6992_v11 = vshll.u32 %v10179_v54, 16  ;;  %v14966_v57 = vrot.slane %v6974_v2, 5  ;;  %v6980_v22 = vrot.slane %v6978_v7, 4 }
 0x1dd   :  { %v6998_v12 = vshll.u32 %v10180_v28, 16  ;;  %v7002_v53 = vshrl.u32 %v10180_v28, 16  ;;  %v6929_v31 = vsel %vm12260_vm3, %v14942_v32, %v14865_v55  ;;  %v6939_v0 = vsel %vm12260_vm3, %v14944_v58, %v14946_v63  ;;  %v10184_v63 = vld [vmem:[%s16649_s0 + $0x11c] sm:$0x1] }
 0x1de   :  { %v7013_v8 = vshrl.u32 %v10182_v56, 16  ;;  %v7016_v62 = vshll.u32 %v10182_v56, 16  ;;  %v6947_v52 = vor.u32 %v6946_v13, %v6943_v3  ;;  %v6957_v46 = vor.u32 %v6956_v17, %v14955_v35 }
 0x1df   :  { %v7022_v50 = vshll.u32 %v10183_v51, 16  ;;  %v7026_v44 = vshrl.u32 %v10183_v51, 16  ;;  %v6971_v21 = vor.u32 %v6970_v41, %v6967_v38  ;;  %v6984_v1 = vshll.u32 %v10178_v43, 16 }
 0x1e0   :  { %v6991_v27 = vrot.slane %v6989_v45, 4  ;;  %v6994_v55 = vrot.slane %v6992_v11, 5  ;;  %11200 = vmatmul.mubr.msk.bf16.gmra.mrb[20].mxu0 %vm980_vm4, %v14871_v29  ;;  %v6962_v39 = vrot.slane %v6960_v10, 5  ;;  %v6981_v4 = vor.u32 %v6980_v22, %v14966_v57  ;;  %v10188_v11 = vld [vmem:[%s16649_s0 + $0x12c] sm:$0xf] }
 0x1e1   :  { %v14986_v49 = vrot.slane %v6998_v12, 5  ;;  %v7004_v33 = vrot.slane %v7002_v53, 4  ;;  %11203 = vmatprep.mubr.msk.bf16.mxu0 %vm980_vm4, %v14873_v42  ;;  %v7015_v20 = vrot.slane %v7013_v8, 4  ;;  %v7018_v29 = vrot.slane %v7016_v62, 5 }
 0x1e2   :  { %v7037_v48 = vshrl.u32 %v10185_v26, 16  ;;  %v7040_v2 = vshll.u32 %v10185_v26, 16  ;;  %v6948_v7 = vrot.slane %v6947_v52, 4  ;;  %v6958_v61 = vrot.slane %v6957_v46, 4 }
 0x1e3   :  { %10902 = vmatmul.mubr.msk.bf16.gmra.mrb[52].mxu1 %vm980_vm4, %v9544_v24  ;;  %v15001_v37 = vrot.slane %v7022_v50, 5  ;;  %v7028_v24 = vrot.slane %v7026_v44, 4  ;;  %v6972_v54 = vrot.slane %v6971_v21, 4  ;;  %v6986_v42 = vrot.slane %v6984_v1, 5 }
 0x1e4   :  { %10905 = vmatprep.mubr.msk.bf16.mxu1 %vm980_vm4, %v9545_v36  ;;  %v6995_v32 = vor.u32 %v6994_v55, %v6991_v27  ;;  %v7008_v58 = vshll.u32 %v10181_v59, 16  ;;  %v6982_v3 = vrot.slane %v6981_v4, 4  ;;  %v7005_v28 = vor.u32 %v7004_v33, %v14986_v49  ;;  %v9760_v59 = vld [vmem:[%s16649_s0 + $0xf0] sm:$0xf] }
 0x1e5   :  { %v7046_v13 = vshll.u32 %v10186_v9, 16  ;;  %v7050_v15 = vshrl.u32 %v10186_v9, 16  ;;  %v9548_v16 = vcombine.low %v14920_v6, %v14931_v18  ;;  %v7019_v36 = vor.u32 %v7018_v29, %v7015_v20  ;;  %v10190_v20 = vld [vmem:[%s16649_s0 + $0x134] sm:$0x1] }
 0x1e6   :  { %v7039_v17 = vrot.slane %v7037_v48, 4  ;;  %v7042_v10 = vrot.slane %v7040_v2, 5  ;;  %v10236_v56 = vcombine.low %v6929_v31, %v6939_v0  ;;  %v6953_v38 = vsel %vm12260_vm3, %v6948_v7, %v14955_v35  ;;  %v10189_v35 = vld [vmem:[%s16649_s0 + $0x130] sm:$0xf]  ;;  %v10187_v0 = vld [vmem:[%s16649_s0 + $0x128] sm:$0x1] }
 0x1e7   :  { %v7029_v41 = vor.u32 %v7028_v24, %v15001_v37  ;;  %v7032_v45 = vshll.u32 %v10184_v63, 16  ;;  %v6963_v51 = vsel %vm12260_vm3, %v6958_v61, %v6962_v39  ;;  %v6977_v6 = vsel %vm12260_vm3, %v6972_v54, %v14966_v57  ;;  %v10191_v57 = vld [vmem:[%s16649_s0 + $0x138] sm:$0xf] }
 0x1e8   :  { %v6996_v18 = vrot.slane %v6995_v32, 4  ;;  %v7010_v43 = vrot.slane %v7008_v58, 5  ;;  %11204 = vmatmul.mubr.msk.bf16.gmra.mrb[24].mxu0 %vm980_vm4, %v14916_v60  ;;  %v6987_v22 = vsel %vm12260_vm3, %v6982_v3, %v6986_v42  ;;  %v7006_v12 = vrot.slane %v7005_v28, 4 }
 0x1e9   :  { %v15028_v53 = vrot.slane %v7046_v13, 5  ;;  %v7052_v31 = vrot.slane %v7050_v15, 4  ;;  %11207 = vmatprep.mubr.msk.bf16.mxu0 %vm980_vm4, %v14927_v19  ;;  %v7020_v60 = vrot.slane %v7019_v36, 4  ;;  %v7043_v8 = vor.u32 %v7042_v10, %v7039_v17  ;;  %v10192_v19 = vld [vmem:[%s16649_s0 + $0x13c] sm:$0xf] }
 0x1ea   :  { %v7061_v62 = vshrl.u32 %v10188_v11, 16  ;;  %v7064_v52 = vshll.u32 %v10188_v11, 16  ;;  %v7030_v46 = vrot.slane %v7029_v41, 4  ;;  %v7034_v25 = vrot.slane %v7032_v45, 5  ;;  %v10195_v15 = vld [vmem:[%s16649_s0 + $0x148] sm:$0xf] }
 0x1eb   :  { %10906 = vmatmul.mubr.msk.bf16.gmra.mrb[56].mxu1 %vm980_vm4, %v9546_v47  ;;  %v7070_v23 = vshll.u32 %v10189_v35, 16  ;;  %v7074_v47 = vshrl.u32 %v10189_v35, 16  ;;  %v10237_v50 = vcombine.low %v6953_v38, %v6963_v51  ;;  %v15046_v44 = vcombine.low %v6977_v6, %v6987_v22  ;;  %v10197_v10 = vld [vmem:[%s16649_s0 + $0x150] sm:$0xf]  ;;  %v10193_v38 = vld [vmem:[%s16649_s0 + $0x140] sm:$0x1] }
 0x1ec   :  { %10909 = vmatprep.mubr.msk.bf16.mxu1 %vm980_vm4, %v9547_v40  ;;  %v7085_v26 = vshrl.u32 %v10191_v57, 16  ;;  %v7088_v21 = vshll.u32 %v10191_v57, 16  ;;  %v7001_v1 = vsel %vm12260_vm3, %v6996_v18, %v14986_v49  ;;  %v7011_v14 = vsel %vm12260_vm3, %v7006_v12, %v7010_v43  ;;  %v11932_v49 = vld [vmem:[%s16649_s0 + $0xc] sm:$0xff]   ;;  %v11933_v6 = vld [vmem:[%s16649_s0 + $0x18] sm:$0xff]   ;;  %v16714_v22 = vld [vmem:[#allocation7_spill] sm:$0xff] }
 0x1ed   :  { %v7053_v5 = vor.u32 %v7052_v31, %v15028_v53  ;;  %v7056_v40 = vshll.u32 %v10187_v0, 16  ;;  %v7025_v27 = vsel %vm12260_vm3, %v7020_v60, %v15001_v37  ;;  %v15060_v55 = vrot.slane %v7043_v8, 4  ;;  %v10194_v37 = vld [vmem:[%s16649_s0 + $0x144] sm:$0xf]  ;;  %v16715_v12 = vld [vmem:[#allocation8_spill] sm:$0xff] }
 0x1ee   :  { %v7063_v39 = vrot.slane %v7061_v62, 4  ;;  %v7066_v4 = vrot.slane %v7064_v52, 5  ;;  %v7035_v33 = vsel %vm12260_vm3, %v7030_v46, %v7034_v25  ;;  %v15073_v29 = vrot.slane %v7070_v23, 5  ;;  %v11934_v31 = vld [vmem:[%s16649_s0 + $0x24] sm:$0xff]   ;;  %v10198_v60 = vld [vmem:[%s16649_s0 + $0x154] sm:$0xf] }
 0x1ef   :  { %v7076_v9 = vrot.slane %v7074_v47, 4  ;;  %v7094_v48 = vshll.u32 %v10192_v19, 16  ;;  %v7087_v2 = vrot.slane %v7085_v26, 4  ;;  %v7090_v7 = vrot.slane %v7088_v21, 5  ;;  %v10200_v47 = vld [vmem:[%s16649_s0 + $0x15c] sm:$0xf] }
 0x1f0   :  { %v7098_v61 = vshrl.u32 %v10192_v19, 16  ;;  %v3973_v24 = vshrl.u32 %v9760_v59, 16  ;;  %11208 = vmatmul.mubr.msk.bf16.gmra.mrb[28].mxu0 %vm980_vm4, %v10236_v56  ;;  %v10239_v54 = vcombine.low %v7001_v1, %v7011_v14  ;;  %v15079_v42 = vrot.slane %v7053_v5, 4  ;;  %v10201_v21 = vld [vmem:[%s16649_s0 + $0x160] sm:$0xf] }
 0x1f1   :  { %v15081_v32 = vrot.slane %v7056_v40, 5  ;;  %v3976_v58 = vshll.u32 %v9760_v59, 16  ;;  %11211 = vmatprep.mubr.msk.bf16.mxu0 %vm980_vm4, %v10237_v50  ;;  %v15085_v63 = vcombine.low %v7025_v27, %v7035_v33  ;;  %v7049_v3 = vsel %vm12260_vm3, %v15060_v55, %v15028_v53  ;;  %v10196_v14 = vld [vmem:[%s16649_s0 + $0x14c] sm:$0x1]  ;;  %v16717_v33 = vld [vmem:[#allocation3_spill] sm:$0xff] }
 0x1f2   :  { %v7067_v28 = vor.u32 %v7066_v4, %v7063_v39  ;;  %v7080_v13 = vshll.u32 %v10190_v20, 16  ;;  %v7077_v36 = vor.u32 %v7076_v9, %v15073_v29  ;;  %v7109_v17 = vshrl.u32 %v10194_v37, 16 }
 0x1f3   :  { %10910 = vmatmul.mubr.msk.bf16.gmra.mrb[60].mxu1 %vm980_vm4, %v9548_v16  ;;  %v15096_v16 = vrot.slane %v7094_v48, 5  ;;  %v3975_v56 = vrot.slane %v3973_v24, 4  ;;  %v7091_v41 = vor.u32 %v7090_v7, %v7087_v2  ;;  %v7100_v45 = vrot.slane %v7098_v61, 4 }
 0x1f4   :  { %10915 = vmatprep.mubr.msk.bf16.mxu1 %vm980_vm4, %v11932_v49  ;;  %v7112_v11 = vshll.u32 %v10194_v37, 16  ;;  %v3978_v51 = vrot.slane %v3976_v58, 5  ;;  %v7059_v18 = vsel %vm12260_vm3, %v15079_v42, %v15081_v32  ;;  %v7118_v43 = vshll.u32 %v10195_v15, 16  ;;  %v16716_v49 = vld [vmem:[#allocation4_spill] sm:$0xff]  ;;  %v10199_v32 = vld [vmem:[%s16649_s0 + $0x158] sm:$0x1] }
 0x1f5   :  { %v7122_v35 = vshrl.u32 %v10195_v15, 16  ;;  %v3995_v53 = vsel %vm12260_vm3, %v16715_v12, %v16714_v22  ;;  %v15118_v57 = vrot.slane %v7080_v13, 5  ;;  %v7133_v0 = vshrl.u32 %v10197_v10, 16  ;;  %v11935_v13 = vld [vmem:[%s16649_s0 + $0x30] sm:$0xff]   ;;  %v11936_v15 = vld [vmem:[%s16649_s0 + $0x3c] sm:$0xff]  }
 0x1f6   :  { %v7136_v8 = vshll.u32 %v10197_v10, 16  ;;  %v3979_v62 = vor.u32 %v3978_v51, %v3975_v56  ;;  %v15123_v52 = vrot.slane %v7067_v28, 4  ;;  %v15125_v46 = vrot.slane %v7077_v36, 4  ;;  %v10203_v56 = vld [vmem:[%s16649_s0 + $0x168] sm:$0xf] }
 0x1f7   :  { %v7104_v25 = vshll.u32 %v10193_v38, 16  ;;  %v7111_v23 = vrot.slane %v7109_v17, 4  ;;  %v15130_v50 = vrot.slane %v7091_v41, 4  ;;  %v7101_v19 = vor.u32 %v7100_v45, %v15096_v16 }
 0x1f8   :  { %v7114_v26 = vrot.slane %v7112_v11, 5  ;;  %v3980_v1 = vrot.slane %v3979_v62, 4  ;;  %11212 = vmatmul.mubr.msk.bf16.gmra.mrb[32].mxu0 %vm980_vm4, %v15046_v44  ;;  %v15141_v5 = vrot.slane %v7118_v43, 5  ;;  %v7124_v40 = vrot.slane %v7122_v35, 4  ;;  %v10204_v11 = vld [vmem:[%s16649_s0 + $0x16c] sm:$0xf] }
 0x1f9   :  { %v7142_v27 = vshll.u32 %v10198_v60, 16  ;;  %v7146_v55 = vshrl.u32 %v10198_v60, 16  ;;  %11215 = vmatprep.mubr.msk.bf16.mxu0 %vm980_vm4, %v10239_v54  ;;  %v7135_v39 = vrot.slane %v7133_v0, 4  ;;  %v7138_v4 = vrot.slane %v7136_v8, 5  ;;  %v10202_v43 = vld [vmem:[%s16649_s0 + $0x164] sm:$0x1] }
 0x1fa   :  { %v7157_v59 = vshrl.u32 %v10200_v47, 16  ;;  %v3985_v44 = vsel %vm12260_vm3, %v3980_v1, %v16716_v49  ;;  %v7160_v20 = vshll.u32 %v10200_v47, 16  ;;  %v7166_v9 = vshll.u32 %v10201_v21, 16  ;;  %v10205_v47 = vld [vmem:[%s16649_s0 + $0x170] sm:$0x1] }
 0x1fb   :  { %10916 = vmatmul.mubr.msk.bf16.vlgmr.msra.gmra.mrb[0].mxu1 %vm980_vm4, %v11933_v6  ;;  %v7170_v48 = vshrl.u32 %v10201_v21, 16  ;;  %v15150_v2 = vcombine.low %v3985_v44, %v3995_v53  ;;  %v7102_v7 = vrot.slane %v7101_v19, 4  ;;  %v7106_v61 = vrot.slane %v7104_v25, 5  ;;  %v11937_v19 = vld [vmem:[%s16649_s0 + $0x48] sm:$0xff]  }
 0x1fc   :  { %11310 = vmatpush3.bf16.msra.mxu1 %v16717_v33  ;;  %10919 = vmatprep.mubr.msk.bf16.mxu1 %vm980_vm4, %v11934_v31  ;;  %v7115_v37 = vor.u32 %v7114_v26, %v7111_v23  ;;  %v7128_v24 = vshll.u32 %v10196_v14, 16  ;;  %v10241_v54 = vcombine.low %v7049_v3, %v7059_v18  ;;  %v7125_v42 = vor.u32 %v7124_v40, %v15141_v5 }
 0x1fd   :  { %v15156_v58 = vrot.slane %v7142_v27, 5  ;;  %v7148_v28 = vrot.slane %v7146_v55, 4  ;;  %v7073_v3 = vsel %vm12260_vm3, %v15123_v52, %v15073_v29  ;;  %v7083_v36 = vsel %vm12260_vm3, %v15125_v46, %v15118_v57 }
 0x1fe   :  { %v7097_v17 = vsel %vm12260_vm3, %v15130_v50, %v15096_v16  ;;  %v7139_v10 = vor.u32 %v7138_v4, %v7135_v39  ;;  %v7159_v38 = vrot.slane %v7157_v59, 4  ;;  %v7162_v41 = vrot.slane %v7160_v20, 5  ;;  %v10207_v50 = vld [vmem:[%s16649_s0 + $0x178] sm:$0xf]  ;;  %v10210_v4 = vld [vmem:[%s16649_s0 + $0x184] sm:$0xf] }
 0x1ff   :  { %v15179_v45 = vrot.slane %v7166_v9, 5  ;;  %v7172_v29 = vrot.slane %v7170_v48, 4  ;;  %v7107_v51 = vsel %vm12260_vm3, %v7102_v7, %v7106_v61  ;;  %v7116_v6 = vrot.slane %v7115_v37, 4  ;;  %v11938_v59 = vld [vmem:[%s16649_s0 + $0x54] sm:$0xff]  }
 0x200   :  { %v7130_v18 = vrot.slane %v7128_v24, 5  ;;  %v7152_v16 = vshll.u32 %v10199_v32, 16  ;;  %11216 = vmatmul.mubr.msk.bf16.gmra.mrb[36].mxu0 %vm980_vm4, %v15085_v63  ;;  %v7126_v35 = vrot.slane %v7125_v42, 4  ;;  %v7149_v22 = vor.u32 %v7148_v28, %v15156_v58  ;;  %v10206_v63 = vld [vmem:[%s16649_s0 + $0x174] sm:$0xf] }
 0x201   :  { %v7181_v12 = vshrl.u32 %v10203_v56, 16  ;;  %v7184_v53 = vshll.u32 %v10203_v56, 16  ;;  %11219 = vmatprep.mubr.msk.bf16.mxu0 %vm980_vm4, %v10241_v54  ;;  %v7190_v31 = vshll.u32 %v10204_v11, 16  ;;  %v7194_v57 = vshrl.u32 %v10204_v11, 16 }
 0x202   :  { %v7140_v60 = vrot.slane %v7139_v10, 4  ;;  %v7163_v0 = vor.u32 %v7162_v41, %v7159_v38  ;;  %v7173_v8 = vor.u32 %v7172_v29, %v15179_v45  ;;  %v7176_v62 = vshll.u32 %v10202_v43, 16  ;;  %v10212_v29 = vld [vmem:[%s16649_s0 + $0x18c] sm:$0xf] }
 0x203   :  { %10920 = vmatmul.mubr.msk.bf16.gmra.mrb[4].mxu1 %vm980_vm4, %v11935_v13  ;;  %v10242_v52 = vcombine.low %v7073_v3, %v7083_v36  ;;  %v10243_v46 = vcombine.low %v7097_v17, %v7107_v51  ;;  %v7121_v25 = vsel %vm12260_vm3, %v7116_v6, %v15141_v5  ;;  %v7154_v23 = vrot.slane %v7152_v16, 5  ;;  %v10209_v5 = vld [vmem:[%s16649_s0 + $0x180] sm:$0xf]  ;;  %v10208_v17 = vld [vmem:[%s16649_s0 + $0x17c] sm:$0x1] }
 0x204   :  { %10923 = vmatprep.mubr.msk.bf16.mxu1 %vm980_vm4, %v11936_v15  ;;  %v7131_v26 = vsel %vm12260_vm3, %v7126_v35, %v7130_v18  ;;  %v7150_v21 = vrot.slane %v7149_v22, 4  ;;  %v7183_v1 = vrot.slane %v7181_v12, 4  ;;  %v7186_v14 = vrot.slane %v7184_v53, 5  ;;  %v11939_v16 = vld [vmem:[%s16649_s0 + $0x60] sm:$0xff]   ;;  %v10213_v53 = vld [vmem:[%s16649_s0 + $0x190] sm:$0xf] }
 0x205   :  { %v15216_v40 = vrot.slane %v7190_v31, 5  ;;  %v7196_v27 = vrot.slane %v7194_v57, 4  ;;  %v7205_v55 = vshrl.u32 %v10206_v63, 16  ;;  %v7208_v39 = vshll.u32 %v10206_v63, 16  ;;  %v11940_v31 = vld [vmem:[%s16649_s0 + $0x6c] sm:$0xff]  }
 0x206   :  { %v7145_v49 = vsel %vm12260_vm3, %v7140_v60, %v15156_v58  ;;  %v7164_v44 = vrot.slane %v7163_v0, 4  ;;  %v7174_v33 = vrot.slane %v7173_v8, 4  ;;  %v7178_v20 = vrot.slane %v7176_v62, 5  ;;  %v10215_v63 = vld [vmem:[%s16649_s0 + $0x198] sm:$0xf] }
 0x207   :  { %v7214_v9 = vshll.u32 %v10207_v50, 16  ;;  %v7218_v48 = vshrl.u32 %v10207_v50, 16  ;;  %v7229_v7 = vshrl.u32 %v10209_v5, 16  ;;  %v7232_v61 = vshll.u32 %v10209_v5, 16 }
 0x208   :  { %11220 = vmatmul.mubr.msk.bf16.gmra.mrb[40].mxu0 %vm980_vm4, %v10242_v52  ;;  %v7155_v37 = vsel %vm12260_vm3, %v7150_v21, %v7154_v23  ;;  %v7200_v24 = vshll.u32 %v10205_v47, 16  ;;  %v7238_v54 = vshll.u32 %v10210_v4, 16  ;;  %v7242_v42 = vshrl.u32 %v10210_v4, 16  ;;  %v10216_v52 = vld [vmem:[%s16649_s0 + $0x19c] sm:$0xf] }
 0x209   :  { %11223 = vmatprep.mubr.msk.bf16.mxu0 %vm980_vm4, %v10243_v46  ;;  %v7187_v32 = vor.u32 %v7186_v14, %v7183_v1  ;;  %v7197_v58 = vor.u32 %v7196_v27, %v15216_v40  ;;  %v7207_v28 = vrot.slane %v7205_v55, 4  ;;  %v7210_v13 = vrot.slane %v7208_v39, 5 }
 0x20a   :  { %v10244_v15 = vcombine.low %v7121_v25, %v7131_v26  ;;  %v7169_v3 = vsel %vm12260_vm3, %v7164_v44, %v15179_v45  ;;  %v7179_v36 = vsel %vm12260_vm3, %v7174_v33, %v7178_v20  ;;  %v15242_v10 = vrot.slane %v7214_v9, 5  ;;  %v10211_v45 = vld [vmem:[%s16649_s0 + $0x188] sm:$0x1] }
 0x20b   :  { %10924 = vmatmul.mubr.msk.bf16.gmra.mrb[8].mxu1 %vm980_vm4, %v11937_v19  ;;  %v7220_v56 = vrot.slane %v7218_v48, 4  ;;  %v7231_v38 = vrot.slane %v7229_v7, 4  ;;  %v7234_v41 = vrot.slane %v7232_v61, 5  ;;  %v10245_v11 = vcombine.low %v7145_v49, %v7155_v37  ;;  %v11941_v49 = vld [vmem:[%s16649_s0 + $0x78] sm:$0xff]   ;;  %v11942_v9 = vld [vmem:[%s16649_s0 + $0x84] sm:$0xff]  }
 0x20c   :  { %10927 = vmatprep.mubr.msk.bf16.mxu1 %vm980_vm4, %v11938_v59  ;;  %v7202_v51 = vrot.slane %v7200_v24, 5  ;;  %v15250_v6 = vrot.slane %v7238_v54, 5  ;;  %v7244_v18 = vrot.slane %v7242_v42, 4  ;;  %v7188_v43 = vrot.slane %v7187_v32, 4  ;;  %v10214_v7 = vld [vmem:[%s16649_s0 + $0x194] sm:$0x1] }
 0x20d   :  { %v7198_v35 = vrot.slane %v7197_v58, 4  ;;  %v7211_v22 = vor.u32 %v7210_v13, %v7207_v28  ;;  %v7224_v12 = vshll.u32 %v10208_v17, 16  ;;  %v10246_v57 = vcombine.low %v7169_v3, %v7179_v36  ;;  %v10218_v61 = vld [vmem:[%s16649_s0 + $0x1a4] sm:$0xf]  ;;  %v10219_v32 = vld [vmem:[%s16649_s0 + $0x1a8] sm:$0xf] }
 0x20e   :  { %v7221_v60 = vor.u32 %v7220_v56, %v15242_v10  ;;  %v7235_v0 = vor.u32 %v7234_v41, %v7231_v38  ;;  %v7248_v8 = vshll.u32 %v10211_v45, 16  ;;  %v7253_v62 = vshrl.u32 %v10212_v29, 16 }
 0x20f   :  { %v7245_v46 = vor.u32 %v7244_v18, %v15250_v6  ;;  %v7256_v25 = vshll.u32 %v10212_v29, 16  ;;  %v7262_v23 = vshll.u32 %v10213_v53, 16  ;;  %v7266_v47 = vshrl.u32 %v10213_v53, 16 }
 0x210   :  { %11224 = vmatmul.mubr.msk.bf16.gmra.mrb[44].mxu0 %vm980_vm4, %v10244_v15  ;;  %v7193_v50 = vsel %vm12260_vm3, %v7188_v43, %v15216_v40  ;;  %v7203_v19 = vsel %vm12260_vm3, %v7198_v35, %v7202_v51  ;;  %v7212_v26 = vrot.slane %v7211_v22, 4  ;;  %v7226_v21 = vrot.slane %v7224_v12, 5  ;;  %v10217_v15 = vld [vmem:[%s16649_s0 + $0x1a0] sm:$0x1]  ;;  %v11943_v22 = vld [vmem:[%s16649_s0 + $0x90] sm:$0xff]  }
 0x211   :  { %11227 = vmatprep.mubr.msk.bf16.mxu0 %vm980_vm4, %v10245_v11  ;;  %v7277_v1 = vshrl.u32 %v10215_v63, 16  ;;  %v7280_v14 = vshll.u32 %v10215_v63, 16  ;;  %v7286_v5 = vshll.u32 %v10216_v52, 16  ;;  %v7290_v27 = vshrl.u32 %v10216_v52, 16  ;;  %v10220_v63 = vld [vmem:[%s16649_s0 + $0x1ac] sm:$0x1] }
 0x212   :  { %v7222_v55 = vrot.slane %v7221_v60, 4  ;;  %v7236_v39 = vrot.slane %v7235_v0, 4  ;;  %v7250_v4 = vrot.slane %v7248_v8, 5  ;;  %v7255_v59 = vrot.slane %v7253_v62, 4  ;;  %v11944_v60 = vld [vmem:[%s16649_s0 + $0x9c] sm:$0xff]  }
 0x213   :  { %10928 = vmatmul.mubr.msk.bf16.gmra.mrb[12].mxu1 %vm980_vm4, %v11939_v16  ;;  %v7246_v40 = vrot.slane %v7245_v46, 4  ;;  %v7258_v44 = vrot.slane %v7256_v25, 5  ;;  %v7264_v33 = vrot.slane %v7262_v23, 5  ;;  %v7268_v20 = vrot.slane %v7266_v47, 4 }
 0x214   :  { %10931 = vmatprep.mubr.msk.bf16.mxu1 %vm980_vm4, %v11940_v31  ;;  %v10247_v48 = vcombine.low %v7193_v50, %v7203_v19  ;;  %v7279_v37 = vrot.slane %v7277_v1, 4  ;;  %v7282_v24 = vrot.slane %v7280_v14, 5  ;;  %v7288_v54 = vrot.slane %v7286_v5, 5  ;;  %v10285_v1 = vld [vmem:[%s16649_s0 + $0x18] sm:$0xe]  ;;  %v11945_v5 = vld [vmem:[%s16649_s0 + $0xa8] sm:$0xff]  }
 0x215   :  { %v7292_v42 = vrot.slane %v7290_v27, 4  ;;  %v7217_v58 = vsel %vm12260_vm3, %v7212_v26, %v15242_v10  ;;  %v7227_v28 = vsel %vm12260_vm3, %v7222_v55, %v7226_v21  ;;  %v7241_v13 = vsel %vm12260_vm3, %v7236_v39, %v15250_v6  ;;  %v12087_v26 = vld [vmem:[%s16649_s0 + $0x1c] sm:$0xf] }
 0x216   :  { %v7251_v3 = vsel %vm12260_vm3, %v7246_v40, %v7250_v4  ;;  %v7259_v36 = vor.u32 %v7258_v44, %v7255_v59  ;;  %v7269_v17 = vor.u32 %v7268_v20, %v7264_v33  ;;  %v7272_v56 = vshll.u32 %v10214_v7, 16  ;;  %v11946_v59 = vld [vmem:[%s16649_s0 + $0xb4] sm:$0xff]   ;;  %v12088_v44 = vld [vmem:[%s16649_s0 + $0x20] sm:$0x1]  ;;  %v12089_v20 = vld [vmem:[%s16649_s0 + $0x28] sm:$0xf] }
 0x217   :  { %v7301_v10 = vshrl.u32 %v10218_v61, 16  ;;  %v7304_v38 = vshll.u32 %v10218_v61, 16  ;;  %v7310_v41 = vshll.u32 %v10219_v32, 16  ;;  %v7314_v29 = vshrl.u32 %v10219_v32, 16  ;;  %v10286_v61 = vld [vmem:[%s16649_s0 + $0x24] sm:$0xe] }
 0x218   :  { %11228 = vmatmul.mubr.msk.bf16.gmra.mrb[48].mxu0 %vm980_vm4, %v10246_v57  ;;  %v7283_v11 = vor.u32 %v7282_v24, %v7279_v37  ;;  %v7293_v51 = vor.u32 %v7292_v42, %v7288_v54  ;;  %v7296_v45 = vshll.u32 %v10217_v15, 16  ;;  %v10248_v6 = vcombine.low %v7217_v58, %v7227_v28  ;;  %v10287_v32 = vld [vmem:[%s16649_s0 + $0x30] sm:$0xe]  ;;  %v12091_v15 = vld [vmem:[%s16649_s0 + $0x2c] sm:$0x1] }
 0x219   :  { %11231 = vmatprep.mubr.msk.bf16.mxu0 %vm980_vm4, %v10247_v48  ;;  %v10249_v18 = vcombine.low %v7241_v13, %v7251_v3  ;;  %v7260_v16 = vrot.slane %v7259_v36, 4  ;;  %v7270_v43 = vrot.slane %v7269_v17, 4  ;;  %v7274_v35 = vrot.slane %v7272_v56, 5  ;;  %v11947_v36 = vld [vmem:[%s16649_s0 + $0xc0] sm:$0xff]  }
 0x21a   :  { %v7303_v12 = vrot.slane %v7301_v10, 4  ;;  %v7306_v53 = vrot.slane %v7304_v38, 5  ;;  %v7312_v31 = vrot.slane %v7310_v41, 5  ;;  %v7316_v57 = vrot.slane %v7314_v29, 4  ;;  %v11948_v56 = vld [vmem:[%s16649_s0 + $0xe4] sm:$0xff]  }
 0x21b   :  { %10932 = vmatmul.mubr.msk.bf16.gmra.mrb[16].mxu1 %vm980_vm4, %v11941_v49  ;;  %v7284_v0 = vrot.slane %v7283_v11, 4  ;;  %v7294_v8 = vrot.slane %v7293_v51, 4  ;;  %v7298_v62 = vrot.slane %v7296_v45, 5  ;;  %v7265_v52 = vsel %vm12260_vm3, %v7260_v16, %v7264_v33  ;;  %v12092_v41 = vld [vmem:[%s16649_s0 + $0x38] sm:$0x1] }
 0x21c   :  { %10935 = vmatprep.mubr.msk.bf16.mxu1 %vm980_vm4, %v11942_v9  ;;  %v7275_v46 = vsel %vm12260_vm3, %v7270_v43, %v7274_v35  ;;  %v7307_v25 = vor.u32 %v7306_v53, %v7303_v12  ;;  %v7317_v23 = vor.u32 %v7316_v57, %v7312_v31  ;;  %v7320_v47 = vshll.u32 %v10220_v63, 16  ;;  %v10288_v45 = vld [vmem:[%s16649_s0 + $0x3c] sm:$0xe]  ;;  %v10289_v16 = vld [vmem:[%s16649_s0 + $0x48] sm:$0xe] }
 0x21d   :  { %v7289_v50 = vsel %vm12260_vm3, %v7284_v0, %v7288_v54  ;;  %v7299_v19 = vsel %vm12260_vm3, %v7294_v8, %v7298_v62  ;;  %v8003_v21 = vrot.slane %v12087_v26, 5  ;;  %v10250_v14 = vcombine.low %v7265_v52, %v7275_v46  ;;  %v12090_v54 = vld [vmem:[%s16649_s0 + $0x34] sm:$0xf]  ;;  %v12094_v43 = vld [vmem:[%s16649_s0 + $0x4c] sm:$0xf] }
 0x21e   :  { %v10251_v27 = vcombine.low %v7289_v50, %v7299_v19  ;;  %v7308_v55 = vrot.slane %v7307_v25, 4  ;;  %v7318_v39 = vrot.slane %v7317_v23, 4  ;;  %v7322_v4 = vrot.slane %v7320_v47, 5  ;;  %v12095_v12 = vld [vmem:[%s16649_s0 + $0x58] sm:$0xf] }
 0x21f   :  { %v10317_v49 = vrot.slane %v10285_v1, 9  ;;  %v8005_v40 = vrot.slane %v8003_v21, 4  ;;  %v8006_v33 = vrot.slane %v12088_v44, 5  ;;  %v8010_v9 = vrot.slane %v12089_v20, 5  ;;  %v12096_v0 = vld [vmem:[%s16649_s0 + $0x64] sm:$0xf] }
 0x220   :  { %11232 = vmatmul.mubr.msk.bf16.gmra.mrb[52].mxu0 %vm980_vm4, %v10248_v6  ;;  %v7313_v48 = vsel %vm12260_vm3, %v7308_v55, %v7312_v31  ;;  %v7323_v7 = vsel %vm12260_vm3, %v7318_v39, %v7322_v4  ;;  %v8017_v42 = vrot.slane %v12090_v54, 5  ;;  %v10318_v28 = vrot.slane %v10286_v61, 9  ;;  %v12093_v6 = vld [vmem:[%s16649_s0 + $0x40] sm:$0xf]  ;;  %v12097_v52 = vld [vmem:[%s16649_s0 + $0x44] sm:$0x1] }
 0x221   :  { %11235 = vmatprep.mubr.msk.bf16.mxu0 %vm980_vm4, %v10249_v18  ;;  %v8004_v37 = vsel %vm12735_vm7, %v10317_v49, %v8003_v21  ;;  %v8007_v24 = vsel %vm12735_vm7, %v8005_v40, %v8006_v33  ;;  %v10252_v58 = vcombine.low %v7313_v48, %v7323_v7  ;;  %v8012_v13 = vrot.slane %v8010_v9, 4  ;;  %v12098_v50 = vld [vmem:[%s16649_s0 + $0x50] sm:$0x1]  ;;  %v11950_v39 = vld [vmem:[%s16649_s0 + $0xfc] sm:$0xff]   ;;  %v10292_v40 = vld [vmem:[%s16649_s0 + $0x6c] sm:$0xe] }
 0x222   :  { %v8013_v3 = vrot.slane %v12091_v15, 5  ;;  %v10349_v17 = vcombine.low %v8004_v37, %v8007_v24  ;;  %v10319_v10 = vrot.slane %v10287_v32, 9  ;;  %v8019_v38 = vrot.slane %v8017_v42, 4  ;;  %v11949_v21 = vld [vmem:[%s16649_s0 + $0xf0] sm:$0xff]   ;;  %v10293_v37 = vld [vmem:[%s16649_s0 + $0x78] sm:$0xe] }
 0x223   :  { %10936 = vmatmul.mubr.msk.bf16.gmra.mrb[20].mxu1 %vm980_vm4, %v11943_v22  ;;  %v8020_v29 = vrot.slane %v12092_v41, 5  ;;  %v8011_v11 = vsel %vm12735_vm7, %v10318_v28, %v8010_v9  ;;  %v8024_v18 = vrot.slane %v12093_v6, 5  ;;  %v8031_v35 = vrot.slane %v12094_v43, 5  ;;  %v10290_v22 = vld [vmem:[%s16649_s0 + $0x54] sm:$0xe] }
 0x224   :  { %10939 = vmatprep.mubr.msk.bf16.mxu1 %vm980_vm4, %v11944_v60  ;;  %v8014_v51 = vsel %vm12735_vm7, %v8012_v13, %v8013_v3  ;;  %v8038_v53 = vrot.slane %v12095_v12, 5  ;;  %v8018_v31 = vsel %vm12735_vm7, %v10319_v10, %v8017_v42  ;;  %v10291_v60 = vld [vmem:[%s16649_s0 + $0x60] sm:$0xe]  ;;  %v8045_v8 = vrot.slane %v12096_v0, 5  ;;  %v12101_v44 = vld [vmem:[%s16649_s0 + $0x70] sm:$0xf] }
 0x225   :  { %v8021_v57 = vsel %vm12735_vm7, %v8019_v38, %v8020_v29  ;;  %v10350_v62 = vcombine.low %v8011_v11, %v8014_v51  ;;  %v10320_v63 = vrot.slane %v10288_v45, 9  ;;  %v8027_v46 = vrot.slane %v12097_v52, 5  ;;  %v10294_v24 = vld [vmem:[%s16649_s0 + $0x84] sm:$0xe]  ;;  %v12103_v3 = vld [vmem:[%s16649_s0 + $0x74] sm:$0x1] }
 0x226   :  { %v10321_v25 = vrot.slane %v10289_v16, 9  ;;  %v8026_v23 = vrot.slane %v8024_v18, 4  ;;  %v8033_v47 = vrot.slane %v8031_v35, 4  ;;  %v8034_v19 = vrot.slane %v12098_v50, 5  ;;  %v10295_v51 = vld [vmem:[%s16649_s0 + $0x90] sm:$0xe] }
 0x227   :  { %v10322_v26 = vrot.slane %v10290_v22, 9  ;;  %v10351_v1 = vcombine.low %v8018_v31, %v8021_v57  ;;  %v10323_v55 = vrot.slane %v10291_v60, 9  ;;  %v8047_v4 = vrot.slane %v8045_v8, 4  ;;  %v11951_v45 = vld [vmem:[%s16649_s0 + $0x108] sm:$0xff]   ;;  %v12105_v43 = vld [vmem:[%s16649_s0 + $0x80] sm:$0x1] }
 0x228   :  { %11236 = vmatmul.mubr.msk.bf16.gmra.mrb[56].mxu0 %vm980_vm4, %v10250_v14  ;;  %v8040_v14 = vrot.slane %v8038_v53, 4  ;;  %v8052_v33 = vrot.slane %v12101_v44, 5  ;;  %v8025_v20 = vsel %vm12735_vm7, %v10320_v63, %v8024_v18  ;;  %v8028_v9 = vsel %vm12735_vm7, %v8026_v23, %v8027_v46  ;;  %v9757_v22 = vld [vmem:[%s16649_s0 + $0xe4] sm:$0xf]  ;;  %v11952_v12 = vld [vmem:[%s16649_s0 + $0x114] sm:$0xff]  }
 0x229   :  { %11239 = vmatprep.mubr.msk.bf16.mxu0 %vm980_vm4, %v10251_v27  ;;  %v8032_v48 = vsel %vm12735_vm7, %v10321_v25, %v8031_v35  ;;  %v8035_v7 = vsel %vm12735_vm7, %v8033_v47, %v8034_v19  ;;  %v15453_v61 = vsel %vm12735_vm7, %v10322_v26, %v8038_v53  ;;  %v15469_v42 = vsel %vm12735_vm7, %v10323_v55, %v8045_v8  ;;  %v12106_v57 = vld [vmem:[%s16649_s0 + $0x8c] sm:$0x1]  ;;  %v12107_v0 = vld [vmem:[%s16649_s0 + $0x94] sm:$0xf]  ;;  %v10296_v46 = vld [vmem:[%s16649_s0 + $0x9c] sm:$0xe] }
 0x22a   :  { %v10324_v32 = vrot.slane %v10292_v40, 9  ;;  %v8054_v15 = vrot.slane %v8052_v33, 4  ;;  %v10325_v10 = vrot.slane %v10293_v37, 9  ;;  %v10326_v38 = vrot.slane %v10294_v24, 9  ;;  %v12108_v25 = vld [vmem:[%s16649_s0 + $0xa0] sm:$0xf] }
 0x22b   :  { %10940 = vmatmul.mubr.msk.bf16.gmra.mrb[24].mxu1 %vm980_vm4, %v11945_v5  ;;  %v12099_v5 = vld [vmem:[%s16649_s0 + $0x5c] sm:$0x1]  ;;  %v10352_v41 = vcombine.low %v8025_v20, %v8028_v9  ;;  %v10353_v29 = vcombine.low %v8032_v48, %v8035_v7  ;;  %v8062_v35 = vrot.slane %v12105_v43, 5  ;;  %v8069_v60 = vrot.slane %v12106_v57, 5  ;;  %v10297_v47 = vld [vmem:[%s16649_s0 + $0xa8] sm:$0xe] }
 0x22c   :  { %10943 = vmatprep.mubr.msk.bf16.mxu1 %vm980_vm4, %v11946_v59  ;;  %v8041_v27 = vrot.slane %v12099_v5, 5  ;;  %v12100_v59 = vld [vmem:[%s16649_s0 + $0x68] sm:$0x1]  ;;  %v15497_v18 = vsel %vm12735_vm7, %v10324_v32, %v8052_v33  ;;  %v8073_v8 = vrot.slane %v12107_v0, 5  ;;  %v10327_v52 = vrot.slane %v10295_v51, 9 }
 0x22d   :  { %v8048_v49 = vrot.slane %v12100_v59, 5  ;;  %v8080_v23 = vrot.slane %v12108_v25, 5  ;;  %v10298_v50 = vld [vmem:[%s16649_s0 + $0xb4] sm:$0xe]  ;;  %v3949_v19 = vshrl.u32 %v9757_v22, 16  ;;  %v3952_v26 = vshll.u32 %v9757_v22, 16 }
 0x22e   :  { %v15465_v54 = vsel %vm12735_vm7, %v8040_v14, %v8041_v27  ;;  %v12110_v55 = vld [vmem:[%s16649_s0 + $0x98] sm:$0x1]  ;;  %v8075_v40 = vrot.slane %v8073_v8, 4  ;;  %v10328_v44 = vrot.slane %v10296_v46, 9  ;;  %v12113_v48 = vld [vmem:[%s16649_s0 + $0xa4] sm:$0x1] }
 0x22f   :  { %v15477_v13 = vsel %vm12735_vm7, %v8047_v4, %v8048_v49  ;;  %v10354_v11 = vcombine.low %v15453_v61, %v15465_v54  ;;  %v12111_v4 = vld [vmem:[%s16649_s0 + $0xac] sm:$0xf]  ;;  %v12112_v33 = vld [vmem:[%s16649_s0 + $0xb8] sm:$0xf]  ;;  %v8082_v9 = vrot.slane %v8080_v23, 4  ;;  %v8083_v7 = vrot.slane %v12113_v48, 5 }
 0x230   :  { %11240 = vmatmul.mubr.msk.bf16.gmra.mrb[60].mxu0 %vm980_vm4, %v10252_v58  ;;  %v12102_v58 = vld [vmem:[%s16649_s0 + $0x7c] sm:$0xf]  ;;  %v10355_v6 = vcombine.low %v15469_v42, %v15477_v13  ;;  %v8087_v59 = vrot.slane %v12111_v4, 5  ;;  %v8094_v20 = vrot.slane %v12112_v33, 5  ;;  %v10329_v37 = vrot.slane %v10297_v47, 9 }
 0x231   :  { %11245 = vmatprep.mubr.msk.bf16.mxu0 %vm980_vm4, %v10349_v17  ;;  %v8059_v28 = vrot.slane %v12102_v58, 5  ;;  %v12104_v17 = vld [vmem:[%s16649_s0 + $0x88] sm:$0xf]  ;;  %v10330_v24 = vrot.slane %v10298_v50, 9  ;;  %v3951_v32 = vrot.slane %v3949_v19, 4  ;;  %v3954_v58 = vrot.slane %v3952_v26, 5 }
 0x232   :  { %v12117_v22 = vld [vmem:[%s16649_s0 + $0xd0] sm:$0xf]  ;;  %v15604_v57 = vsel %vm12735_vm7, %v8082_v9, %v8083_v7  ;;  %v10300_v0 = vld [vmem:[%s16649_s0 + $0xcc] sm:$0xe]  ;;  %v12119_v47 = vld [vmem:[%s16649_s0 + $0xec] sm:$0x1] }
 0x233   :  { %10944 = vmatmul.mubr.msk.bf16.gmra.mrb[28].mxu1 %vm980_vm4, %v11947_v36  ;;  %v8055_v36 = vrot.slane %v12103_v3, 5  ;;  %v8061_v16 = vrot.slane %v8059_v28, 4  ;;  %v11953_v3 = vld [vmem:[%s16649_s0 + $0x120] sm:$0xff]   ;;  %v15622_v46 = vsel %vm12735_vm7, %v10330_v24, %v8094_v20  ;;  %v3955_v25 = vor.u32 %v3954_v58, %v3951_v32  ;;  %v10301_v19 = vld [vmem:[%s16649_s0 + $0xf0] sm:$0xe] }
 0x234   :  { %10947 = vmatprep.mubr.msk.bf16.mxu1 %vm980_vm4, %v11948_v56  ;;  %v8066_v56 = vrot.slane %v12104_v17, 5  ;;  %v8089_v17 = vrot.slane %v8087_v59, 4  ;;  %v3968_v50 = vshll.u32 %v12119_v47, 16  ;;  %v12120_v26 = vld [vmem:[%s16649_s0 + $0xc8] sm:$0x1]  ;;  %v10332_v42 = vrot.slane %v10300_v0, 9 }
 0x235   :  { %v15510_v53 = vsel %vm12735_vm7, %v8054_v15, %v8055_v36  ;;  %v15548_v27 = vsel %vm12735_vm7, %v8061_v16, %v8062_v35  ;;  %v15574_v36 = vsel %vm12735_vm7, %v10327_v52, %v8073_v8  ;;  %v12116_v16 = vld [vmem:[%s16649_s0 + $0xbc] sm:$0x1]  ;;  %v10299_v35 = vld [vmem:[%s16649_s0 + $0xc0] sm:$0xe]  ;;  %v12118_v8 = vld [vmem:[%s16649_s0 + $0xf4] sm:$0xf] }
 0x236   :  { %v8068_v31 = vrot.slane %v8066_v56, 4  ;;  %v15524_v63 = vsel %vm12735_vm7, %v10326_v38, %v8066_v56  ;;  %v10356_v5 = vcombine.low %v15497_v18, %v15510_v53  ;;  %v12114_v56 = vld [vmem:[%s16649_s0 + $0xb0] sm:$0x1]  ;;  %v12115_v38 = vld [vmem:[%s16649_s0 + $0xc4] sm:$0xf]  ;;  %v8097_v43 = vrot.slane %v12116_v16, 5 }
 0x237   :  { %v8115_v52 = vrot.slane %v12118_v8, 5  ;;  %v10331_v54 = vrot.slane %v10299_v35, 9  ;;  %v3956_v33 = vrot.slane %v3955_v25, 4  ;;  %v3970_v9 = vrot.slane %v3968_v50, 5  ;;  %v9763_v48 = vld [vmem:[%s16649_s0 + $0xfc] sm:$0xf] }
 0x238   :  { %11246 = vmatmul.mubr.msk.bf16.vlgmr.msra.gmra.mrb[0].mxu0 %vm980_vm4, %v10350_v62  ;;  %v15520_v62 = vsel %vm12735_vm7, %v10325_v10, %v8059_v28  ;;  %v15559_v49 = vsel %vm12735_vm7, %v8068_v31, %v8069_v60  ;;  %v8090_v10 = vrot.slane %v12114_v56, 5  ;;  %v15600_v31 = vsel %vm12735_vm7, %v10328_v44, %v8080_v23  ;;  %v11956_v32 = vld [vmem:[%s16649_s0 + $0x144] sm:$0xff]   ;;  %v12123_v35 = vld [vmem:[%s16649_s0 + $0x100] sm:$0xf] }
 0x239   :  { %11249 = vmatprep.mubr.msk.bf16.mxu0 %vm980_vm4, %v10351_v1  ;;  %v15608_v60 = vsel %vm12735_vm7, %v10329_v37, %v8087_v59  ;;  %v8117_v4 = vrot.slane %v8115_v52, 4  ;;  %v12122_v59 = vld [vmem:[%s16649_s0 + $0xf8] sm:$0x1]  ;;  %v10358_v44 = vcombine.low %v15524_v63, %v15559_v49  ;;  %v10360_v7 = vcombine.low %v15600_v31, %v15604_v57  ;;  %v9766_v56 = vld [vmem:[%s16649_s0 + $0x108] sm:$0xf] }
 0x23a   :  { %v15638_v61 = vsel %vm12735_vm7, %v8089_v17, %v8090_v10  ;;  %v4021_v18 = vshrl.u32 %v9766_v56, 16  ;;  %v4024_v53 = vshll.u32 %v9766_v56, 16  ;;  %v12131_v63 = vld [vmem:[%s16649_s0 + $0x110] sm:$0x1] }
 0x23b   :  { %10948 = vmatmul.mubr.msk.bf16.gmra.mrb[32].mxu1 %vm980_vm4, %v11949_v21  ;;  %v12109_v21 = vld [vmem:[%s16649_s0 + $0xe8] sm:$0xf]  ;;  %v10361_v37 = vcombine.low %v15608_v60, %v15638_v61  ;;  %v8132_v49 = vrot.slane %v12131_v63, 5 }
 0x23c   :  { %10951 = vmatprep.mubr.msk.bf16.mxu1 %vm980_vm4, %v11950_v39  ;;  %v3958_v1 = vshll.u32 %v12109_v21, 16  ;;  %v3962_v14 = vshrl.u32 %v12109_v21, 16  ;;  %v8076_v39 = vrot.slane %v12110_v55, 5  ;;  %v8104_v21 = vrot.slane %v12120_v26, 5 }
 0x23d   :  { %v10357_v55 = vcombine.low %v15520_v62, %v15548_v27  ;;  %v11955_v62 = vld [vmem:[%s16649_s0 + $0x138] sm:$0xff]  }
 0x23e   :  { %v15567_v28 = vrot.slane %v3958_v1, 5  ;;  %v3964_v15 = vrot.slane %v3962_v14, 4  ;;  %v15587_v51 = vsel %vm12735_vm7, %v8075_v40, %v8076_v39  ;;  %v10333_v39 = vrot.slane %v10301_v19, 9  ;;  %v12126_v19 = vld [vmem:[%s16649_s0 + $0x104] sm:$0x1] }
 0x23f   :  { %v8118_v40 = vrot.slane %v12122_v59, 5  ;;  %v10359_v27 = vcombine.low %v15574_v36, %v15587_v51  ;;  %v4023_v59 = vrot.slane %v4021_v18, 4 }
 0x240   :  { %11250 = vmatmul.mubr.msk.bf16.gmra.mrb[4].mxu0 %vm980_vm4, %v10352_v41  ;;  %v8101_v41 = vrot.slane %v12115_v38, 5  ;;  %v3965_v23 = vor.u32 %v3964_v15, %v15567_v28  ;;  %v15696_v10 = vsel %vm12735_vm7, %v10333_v39, %v8115_v52  ;;  %v3961_v16 = vsel %vm12260_vm3, %v3956_v33, %v15567_v28 }
 0x241   :  { %11253 = vmatprep.mubr.msk.bf16.mxu0 %vm980_vm4, %v10353_v29  ;;  %v11954_v29 = vld [vmem:[%s16649_s0 + $0x12c] sm:$0xff]   ;;  %v15700_v38 = vsel %vm12735_vm7, %v8117_v4, %v8118_v40  ;;  %v4026_v40 = vrot.slane %v4024_v53, 5  ;;  %v12130_v53 = vld [vmem:[%s16649_s0 + $0x118] sm:$0xf] }
 0x242   :  { %v15677_v58 = vsel %vm12735_vm7, %v10331_v54, %v8101_v41  ;;  %v10365_v50 = vcombine.low %v15696_v10, %v15700_v38  ;;  %v8125_v54 = vrot.slane %v12126_v19, 5  ;;  %v11957_v4 = vld [vmem:[%s16649_s0 + $0x150] sm:$0xff]  }
 0x243   :  { %10952 = vmatmul.mubr.msk.bf16.gmra.mrb[36].mxu1 %vm980_vm4, %v11951_v45  ;;  %v8096_v45 = vrot.slane %v8094_v20, 4  ;;  %v3966_v20 = vrot.slane %v3965_v23, 4  ;;  %v12125_v23 = vld [vmem:[%s16649_s0 + $0x100] sm:$0xf] }
 0x244   :  { %10955 = vmatprep.mubr.msk.bf16.mxu1 %vm980_vm4, %v11952_v12  ;;  %v8108_v12 = vrot.slane %v12117_v22, 5  ;;  %v4006_v22 = vshll.u32 %v12123_v35, 16  ;;  %v8122_v47 = vrot.slane %v12125_v23, 5  ;;  %v10304_v23 = vld [vmem:[%s16649_s0 + $0x114] sm:$0xe] }
 0x245   :  { %v15646_v1 = vsel %vm12735_vm7, %v8096_v45, %v8097_v43  ;;  %v4000_v45 = vshll.u32 %v9763_v48, 16  ;;  %v3971_v43 = vsel %vm12260_vm3, %v3966_v20, %v3970_v9  ;;  %v11958_v9 = vld [vmem:[%s16649_s0 + $0x15c] sm:$0xff]  }
 0x246   :  { %v8110_v13 = vrot.slane %v8108_v12, 4  ;;  %v10362_v24 = vcombine.low %v15622_v46, %v15646_v1 }
 0x247   :  { %v4002_v26 = vrot.slane %v4000_v45, 5 }
 0x248   :  { %11254 = vmatmul.mubr.msk.bf16.gmra.mrb[8].mxu0 %vm980_vm4, %v10354_v11  ;;  %v8103_v11 = vrot.slane %v8101_v41, 4  ;;  %v10302_v41 = vld [vmem:[%s16649_s0 + $0xfc] sm:$0xe] }
 0x249   :  { %11257 = vmatprep.mubr.msk.bf16.mxu0 %vm980_vm4, %v10355_v6  ;;  %v12121_v6 = vld [vmem:[%s16649_s0 + $0xd4] sm:$0x1]  ;;  %v10334_v25 = vrot.slane %v10302_v41, 9 }
 0x24a   :  { %v8111_v14 = vrot.slane %v12121_v6, 5  ;;  %v15681_v15 = vsel %vm12735_vm7, %v8103_v11, %v8104_v21  ;;  %v9769_v21 = vld [vmem:[%s16649_s0 + $0x114] sm:$0xf] }
 0x24b   :  { %10956 = vmatmul.mubr.msk.bf16.gmra.mrb[40].mxu1 %vm980_vm4, %v11953_v3  ;;  %v15685_v3 = vsel %vm12735_vm7, %v10332_v42, %v8108_v12  ;;  %v4010_v12 = vshrl.u32 %v12123_v35, 16  ;;  %v10363_v8 = vcombine.low %v15677_v58, %v15681_v15  ;;  %v15738_v42 = vcombine.low %v3961_v16, %v3971_v43  ;;  %v12129_v16 = vld [vmem:[%s16649_s0 + $0x118] sm:$0xf]  ;;  %v9781_v15 = vld [vmem:[%s16649_s0 + $0x144] sm:$0xf] }
 0x24c   :  { %10959 = vmatprep.mubr.msk.bf16.mxu1 %vm980_vm4, %v11954_v29  ;;  %v15689_v17 = vsel %vm12735_vm7, %v8110_v13, %v8111_v14  ;;  %v3997_v29 = vshrl.u32 %v9763_v48, 16  ;;  %v15740_v13 = vrot.slane %v4006_v22, 5  ;;  %v10303_v14 = vld [vmem:[%s16649_s0 + $0x108] sm:$0xe]  ;;  %v8124_v48 = vrot.slane %v8122_v47, 4 }
 0x24d   :  { %v10364_v52 = vcombine.low %v15685_v3, %v15689_v17  ;;  %v4012_v6 = vrot.slane %v4010_v12, 4  ;;  %v4045_v56 = vshrl.u32 %v9769_v21, 16  ;;  %v4048_v41 = vshll.u32 %v9769_v21, 16 }
 0x24e   :  { %v3999_v11 = vrot.slane %v3997_v29, 4  ;;  %v10335_v45 = vrot.slane %v10303_v14, 9  ;;  %v4054_v43 = vshll.u32 %v12129_v16, 16  ;;  %v4058_v35 = vshrl.u32 %v12129_v16, 16 }
 0x24f   :  { %v15768_v22 = vsel %vm12735_vm7, %v10334_v25, %v8122_v47  ;;  %v4013_v12 = vor.u32 %v4012_v6, %v15740_v13  ;;  %v15792_v36 = vsel %vm12735_vm7, %v8124_v48, %v8125_v54  ;;  %v4050_v47 = vrot.slane %v4048_v41, 5  ;;  %v9772_v6 = vld [vmem:[%s16649_s0 + $0x120] sm:$0xf]  ;;  %v12133_v54 = vld [vmem:[%s16649_s0 + $0x11c] sm:$0x1] }
 0x250   :  { %11258 = vmatmul.mubr.msk.bf16.gmra.mrb[12].mxu0 %vm980_vm4, %v10356_v5  ;;  %v12124_v5 = vld [vmem:[%s16649_s0 + $0x10c] sm:$0xf]  ;;  %v4003_v29 = vor.u32 %v4002_v26, %v3999_v11  ;;  %v15798_v26 = vrot.slane %v4054_v43, 5  ;;  %v4060_v21 = vrot.slane %v4058_v35, 4  ;;  %v12134_v41 = vld [vmem:[%s16649_s0 + $0x124] sm:$0xf] }
 0x251   :  { %11261 = vmatprep.mubr.msk.bf16.mxu0 %vm980_vm4, %v10357_v55  ;;  %v4030_v28 = vshll.u32 %v12124_v5, 16  ;;  %v4034_v0 = vshrl.u32 %v12124_v5, 16  ;;  %v12127_v55 = vld [vmem:[%s16649_s0 + $0x10c] sm:$0xf]  ;;  %v8136_v5 = vrot.slane %v12130_v53, 5  ;;  %v4014_v14 = vrot.slane %v4013_v12, 4 }
 0x252   :  { %v8129_v39 = vrot.slane %v12127_v55, 5  ;;  %v4004_v19 = vrot.slane %v4003_v29, 4  ;;  %v10336_v55 = vrot.slane %v10304_v23, 9  ;;  %v8143_v29 = vrot.slane %v12134_v41, 5  ;;  %v12135_v35 = vld [vmem:[%s16649_s0 + $0x11c] sm:$0x1] }
 0x253   :  { %10960 = vmatmul.mubr.msk.bf16.gmra.mrb[44].mxu1 %vm980_vm4, %v11955_v62  ;;  %v15751_v33 = vrot.slane %v4030_v28, 5  ;;  %v4036_v20 = vrot.slane %v4034_v0, 4  ;;  %v12128_v62 = vld [vmem:[%s16649_s0 + $0x104] sm:$0x1]  ;;  %v12132_v0 = vld [vmem:[%s16649_s0 + $0x110] sm:$0x1]  ;;  %v4061_v43 = vor.u32 %v4060_v21, %v15798_v26 }
 0x254   :  { %10963 = vmatprep.mubr.msk.bf16.mxu1 %vm980_vm4, %v11956_v32  ;;  %v4016_v32 = vshll.u32 %v12128_v62, 16  ;;  %v8131_v18 = vrot.slane %v8129_v39, 4  ;;  %v4040_v25 = vshll.u32 %v12132_v0, 16  ;;  %v15796_v11 = vsel %vm12735_vm7, %v10335_v45, %v8129_v39  ;;  %v11959_v39 = vld [vmem:[%s16649_s0 + $0x168] sm:$0xff]   ;;  %v11960_v62 = vld [vmem:[%s16649_s0 + $0x174] sm:$0xff]  }
 0x255   :  { %v4037_v28 = vor.u32 %v4036_v20, %v15751_v33  ;;  %v4069_v45 = vshrl.u32 %v9772_v6, 16  ;;  %v4072_v16 = vshll.u32 %v9772_v6, 16  ;;  %v4064_v12 = vshll.u32 %v12135_v35, 16 }
 0x256   :  { %v4018_v51 = vrot.slane %v4016_v32, 5  ;;  %v4042_v48 = vrot.slane %v4040_v25, 5  ;;  %v8145_v23 = vrot.slane %v8143_v29, 4 }
 0x257   :  { %v4071_v60 = vrot.slane %v4069_v45, 4  ;;  %v4074_v61 = vrot.slane %v4072_v16, 5  ;;  %v12139_v16 = vld [vmem:[%s16649_s0 + $0x130] sm:$0xf] }
 0x258   :  { %11262 = vmatmul.mubr.msk.bf16.gmra.mrb[16].mxu0 %vm980_vm4, %v10358_v44  ;;  %v4027_v44 = vor.u32 %v4026_v40, %v4023_v59  ;;  %v8139_v59 = vrot.slane %v12133_v54, 5  ;;  %v15811_v40 = vsel %vm12735_vm7, %v8131_v18, %v8132_v49  ;;  %v12136_v18 = vld [vmem:[%s16649_s0 + $0x124] sm:$0xf]  ;;  %v4009_v49 = vsel %vm12260_vm3, %v4004_v19, %v15740_v13  ;;  %v12137_v13 = vld [vmem:[%s16649_s0 + $0x128] sm:$0x1] }
 0x259   :  { %11265 = vmatprep.mubr.msk.bf16.mxu0 %vm980_vm4, %v10359_v27  ;;  %v4047_v27 = vrot.slane %v4045_v56, 4  ;;  %v10305_v56 = vld [vmem:[%s16649_s0 + $0x120] sm:$0xe]  ;;  %v4078_v53 = vshll.u32 %v12136_v18, 16  ;;  %v4082_v63 = vshrl.u32 %v12136_v18, 16  ;;  %v10366_v19 = vcombine.low %v15768_v22, %v15792_v36 }
 0x25a   :  { %v4028_v20 = vrot.slane %v4027_v44, 4  ;;  %v4019_v44 = vsel %vm12260_vm3, %v4014_v14, %v4018_v51  ;;  %v4066_v51 = vrot.slane %v4064_v12, 5  ;;  %v10367_v6 = vcombine.low %v15796_v11, %v15811_v40  ;;  %v9787_v11 = vld [vmem:[%s16649_s0 + $0x15c] sm:$0xf] }
 0x25b   :  { %10964 = vmatmul.mubr.msk.bf16.gmra.mrb[48].mxu1 %vm980_vm4, %v11957_v4  ;;  %v8138_v4 = vrot.slane %v8136_v5, 4  ;;  %v4051_v32 = vor.u32 %v4050_v47, %v4047_v27  ;;  %v15863_v27 = vrot.slane %v4078_v53, 5  ;;  %v4084_v47 = vrot.slane %v4082_v63, 4  ;;  %v12140_v53 = vld [vmem:[%s16649_s0 + $0x13c] sm:$0xf] }
 0x25c   :  { %10967 = vmatprep.mubr.msk.bf16.mxu1 %vm980_vm4, %v11958_v9  ;;  %v4038_v9 = vrot.slane %v4037_v28, 4  ;;  %v15840_v28 = vsel %vm12735_vm7, %v10336_v55, %v8136_v5  ;;  %v4033_v31 = vsel %vm12260_vm3, %v4028_v20, %v15751_v33  ;;  %v8146_v5 = vrot.slane %v12137_v13, 5  ;;  %v11961_v55 = vld [vmem:[%s16649_s0 + $0x180] sm:$0xff]   ;;  %v9778_v20 = vld [vmem:[%s16649_s0 + $0x138] sm:$0xf] }
 0x25d   :  { %v15844_v0 = vsel %vm12735_vm7, %v8138_v4, %v8139_v59  ;;  %v4052_v25 = vrot.slane %v4051_v32, 4  ;;  %v4062_v33 = vrot.slane %v4061_v43, 4  ;;  %v15867_v21 = vcombine.low %v4009_v49, %v4019_v44  ;;  %v12141_v13 = vld [vmem:[%s16649_s0 + $0x130] sm:$0xf] }
 0x25e   :  { %v4043_v57 = vsel %vm12260_vm3, %v4038_v9, %v4042_v48  ;;  %v10368_v14 = vcombine.low %v15840_v28, %v15844_v0  ;;  %v11962_v9 = vld [vmem:[%s16649_s0 + $0x18c] sm:$0xff]   ;;  %v4075_v32 = vor.u32 %v4074_v61, %v4071_v60  ;;  %v4102_v43 = vshll.u32 %v12139_v16, 16  ;;  %v10307_v61 = vld [vmem:[%s16649_s0 + $0x138] sm:$0xe] }
 0x25f   :  { %v15876_v4 = vcombine.low %v4033_v31, %v4043_v57  ;;  %v4057_v48 = vsel %vm12260_vm3, %v4052_v25, %v15798_v26  ;;  %v4067_v45 = vsel %vm12260_vm3, %v4062_v33, %v4066_v51  ;;  %v4085_v26 = vor.u32 %v4084_v47, %v15863_v27 }
 0x260   :  { %11266 = vmatmul.mubr.msk.bf16.gmra.mrb[20].mxu0 %vm980_vm4, %v10360_v7  ;;  %v10337_v7 = vrot.slane %v10305_v56, 9  ;;  %v12138_v56 = vld [vmem:[%s16649_s0 + $0x128] sm:$0x1]  ;;  %v4106_v35 = vshrl.u32 %v12139_v16, 16  ;;  %v4117_v12 = vshrl.u32 %v9778_v20, 16  ;;  %v4120_v18 = vshll.u32 %v9778_v20, 16 }
 0x261   :  { %11269 = vmatprep.mubr.msk.bf16.mxu0 %vm980_vm4, %v10361_v37  ;;  %v9775_v37 = vld [vmem:[%s16649_s0 + $0x12c] sm:$0xf]  ;;  %v4088_v41 = vshll.u32 %v12138_v56, 16  ;;  %v4126_v63 = vshll.u32 %v12140_v53, 16  ;;  %v4130_v49 = vshrl.u32 %v12140_v53, 16  ;;  %v15925_v31 = vcombine.low %v4057_v48, %v4067_v45 }
 0x262   :  { %v15880_v54 = vsel %vm12735_vm7, %v10337_v7, %v8143_v29  ;;  %v4093_v59 = vshrl.u32 %v9775_v37, 16  ;;  %v15901_v29 = vld [vmem:[%s16649_s0 + $0x12c] sm:$0xe]  ;;  %v4076_v57 = vrot.slane %v4075_v32, 4  ;;  %v8150_v58 = vrot.slane %v12141_v13, 5 }
 0x263   :  { %10968 = vmatmul.mubr.msk.bf16.gmra.mrb[52].mxu1 %vm980_vm4, %v11959_v39  ;;  %v4096_v39 = vshll.u32 %v9775_v37, 16  ;;  %v10338_v1 = vrot.slane %v15901_v29, 9  ;;  %v4090_v7 = vrot.slane %v4088_v41, 5  ;;  %v4108_v60 = vrot.slane %v4106_v35, 4  ;;  %v12144_v41 = vld [vmem:[%s16649_s0 + $0x148] sm:$0xf] }
 0x264   :  { %10971 = vmatprep.mubr.msk.bf16.mxu1 %vm980_vm4, %v11960_v62  ;;  %v15893_v62 = vsel %vm12735_vm7, %v8145_v23, %v8146_v5  ;;  %v12142_v5 = vld [vmem:[%s16649_s0 + $0x134] sm:$0x1]  ;;  %v15936_v23 = vrot.slane %v4102_v43, 5  ;;  %v4119_v37 = vrot.slane %v4117_v12, 4  ;;  %v4122_v33 = vrot.slane %v4120_v18, 5 }
 0x265   :  { %v10369_v46 = vcombine.low %v15880_v54, %v15893_v62  ;;  %v4098_v44 = vrot.slane %v4096_v39, 5  ;;  %v8153_v25 = vrot.slane %v12142_v5, 5  ;;  %v15941_v51 = vrot.slane %v4126_v63, 5  ;;  %v12143_v39 = vld [vmem:[%s16649_s0 + $0x13c] sm:$0xf] }
 0x266   :  { %v4132_v47 = vrot.slane %v4130_v49, 4  ;;  %v8157_v20 = vrot.slane %v12143_v39, 5  ;;  %v4144_v48 = vshll.u32 %v9781_v15, 16  ;;  %v4081_v32 = vsel %vm12260_vm3, %v4076_v57, %v15863_v27  ;;  %v12145_v43 = vld [vmem:[%s16649_s0 + $0x134] sm:$0x1] }
 0x267   :  { %v8152_v56 = vrot.slane %v8150_v58, 4  ;;  %v4150_v29 = vshll.u32 %v12144_v41, 16  ;;  %v4154_v45 = vshrl.u32 %v12144_v41, 16  ;;  %v4109_v16 = vor.u32 %v4108_v60, %v15936_v23  ;;  %v12146_v27 = vld [vmem:[%s16649_s0 + $0x140] sm:$0x1] }
 0x268   :  { %11270 = vmatmul.mubr.msk.bf16.gmra.mrb[24].mxu0 %vm980_vm4, %v10362_v24  ;;  %v4095_v24 = vrot.slane %v4093_v59, 4  ;;  %v4112_v35 = vshll.u32 %v12145_v43, 16  ;;  %v10339_v12 = vrot.slane %v10307_v61, 9  ;;  %v8160_v18 = vrot.slane %v12146_v27, 5  ;;  %v12147_v49 = vld [vmem:[%s16649_s0 + $0x140] sm:$0x1] }
 0x269   :  { %11273 = vmatprep.mubr.msk.bf16.mxu0 %vm980_vm4, %v10363_v8  ;;  %v4086_v8 = vrot.slane %v4085_v26, 4  ;;  %v4123_v53 = vor.u32 %v4122_v33, %v4119_v37  ;;  %v4133_v63 = vor.u32 %v4132_v47, %v15941_v51  ;;  %v8159_v17 = vrot.slane %v8157_v20, 4  ;;  %v10308_v61 = vld [vmem:[%s16649_s0 + $0x144] sm:$0xe] }
 0x26a   :  { %v4099_v59 = vor.u32 %v4098_v44, %v4095_v24  ;;  %v4136_v24 = vshll.u32 %v12147_v49, 16  ;;  %v4146_v44 = vrot.slane %v4144_v48, 5  ;;  %v15981_v57 = vsel %vm12735_vm7, %v10338_v1, %v8150_v58  ;;  %v9784_v1 = vld [vmem:[%s16649_s0 + $0x150] sm:$0xf] }
 0x26b   :  { %10972 = vmatmul.mubr.msk.bf16.gmra.mrb[56].mxu1 %vm980_vm4, %v11961_v55  ;;  %v11963_v55 = vld [vmem:[%s16649_s0 + $0x198] sm:$0xff]   ;;  %v4091_v26 = vsel %vm12260_vm3, %v4086_v8, %v4090_v7  ;;  %v15985_v7 = vsel %vm12735_vm7, %v8152_v56, %v8153_v25  ;;  %v15987_v13 = vrot.slane %v4150_v29, 5  ;;  %v4156_v10 = vrot.slane %v4154_v45, 4  ;;  %v12148_v8 = vld [vmem:[%s16649_s0 + $0x148] sm:$0xf] }
 0x26c   :  { %10975 = vmatprep.mubr.msk.bf16.mxu1 %vm980_vm4, %v11962_v9  ;;  %v4141_v9 = vshrl.u32 %v9781_v15, 16  ;;  %v4100_v3 = vrot.slane %v4099_v59, 4  ;;  %v15989_v38 = vcombine.low %v4081_v32, %v4091_v26  ;;  %v4114_v15 = vrot.slane %v4112_v35, 5  ;;  %v12151_v45 = vld [vmem:[%s16649_s0 + $0x14c] sm:$0x1] }
 0x26d   :  { %v15999_v58 = vsel %vm12735_vm7, %v10339_v12, %v8157_v20  ;;  %v4124_v5 = vrot.slane %v4123_v53, 4  ;;  %v4134_v25 = vrot.slane %v4133_v63, 4  ;;  %v4138_v60 = vrot.slane %v4136_v24, 5  ;;  %v10309_v20 = vld [vmem:[%s16649_s0 + $0x150] sm:$0xe] }
 0x26e   :  { %v4105_v37 = vsel %vm12260_vm3, %v4100_v3, %v15936_v23  ;;  %v16009_v33 = vsel %vm12735_vm7, %v8159_v17, %v8160_v18  ;;  %v4157_v39 = vor.u32 %v4156_v10, %v15987_v13  ;;  %v12150_v23 = vld [vmem:[%s16649_s0 + $0x154] sm:$0xf]  ;;  %v4165_v48 = vshrl.u32 %v9784_v1, 16  ;;  %v9790_v10 = vld [vmem:[%s16649_s0 + $0x168] sm:$0xf] }
 0x26f   :  { %v4168_v32 = vshll.u32 %v9784_v1, 16  ;;  %v10340_v41 = vrot.slane %v10308_v61, 9  ;;  %v8167_v26 = vrot.slane %v12151_v45, 5  ;;  %v4139_v43 = vsel %vm12260_vm3, %v4134_v25, %v4138_v60  ;;  %v12152_v35 = vld [vmem:[%s16649_s0 + $0x154] sm:$0xf] }
 0x270   :  { %11274 = vmatmul.mubr.msk.bf16.gmra.mrb[28].mxu0 %vm980_vm4, %v10364_v52  ;;  %v4143_v52 = vrot.slane %v4141_v9, 4  ;;  %v8171_v9 = vrot.slane %v12150_v23, 5  ;;  %v4174_v12 = vshll.u32 %v12152_v35, 16  ;;  %v4178_v27 = vshrl.u32 %v12152_v35, 16 }
 0x271   :  { %11277 = vmatprep.mubr.msk.bf16.mxu0 %vm980_vm4, %v10365_v50  ;;  %v4110_v50 = vrot.slane %v4109_v16, 4  ;;  %v4129_v16 = vsel %vm12260_vm3, %v4124_v5, %v15941_v51  ;;  %v12153_v51 = vld [vmem:[%s16649_s0 + $0x158] sm:$0x1]  ;;  %v4158_v53 = vrot.slane %v4157_v39, 4  ;;  %v4167_v49 = vrot.slane %v4165_v48, 4 }
 0x272   :  { %v4147_v47 = vor.u32 %v4146_v44, %v4143_v52  ;;  %v8174_v18 = vrot.slane %v12153_v51, 5  ;;  %v8173_v63 = vrot.slane %v8171_v9, 4  ;;  %v10370_v40 = vcombine.low %v15981_v57, %v15985_v7  ;;  %v12156_v48 = vld [vmem:[%s16649_s0 + $0x160] sm:$0xf]  ;;  %v12163_v7 = vld [vmem:[%s16649_s0 + $0x170] sm:$0x1] }
 0x273   :  { %10976 = vmatmul.mubr.msk.bf16.gmra.mrb[60].mxu1 %vm980_vm4, %v11963_v55  ;;  %v12149_v55 = vld [vmem:[%s16649_s0 + $0x14c] sm:$0x1]  ;;  %v4115_v56 = vsel %vm12260_vm3, %v4110_v50, %v4114_v15  ;;  %v10371_v24 = vcombine.low %v15999_v58, %v16009_v33  ;;  %v16068_v52 = vrot.slane %v4174_v12, 5  ;;  %v4180_v44 = vrot.slane %v4178_v27, 4  ;;  %v12158_v12 = vld [vmem:[%s16649_s0 + $0x164] sm:$0x1] }
 0x274   :  { %11013 = vmatprep.mubr.msk.bf16.mxu1 %vm980_vm4, %v15738_v42  ;;  %v8164_v42 = vrot.slane %v12148_v8, 5  ;;  %v4160_v59 = vshll.u32 %v12149_v55, 16  ;;  %v4148_v22 = vrot.slane %v4147_v47, 4  ;;  %v10310_v8 = vld [vmem:[%s16649_s0 + $0x15c] sm:$0xe]  ;;  %v4192_v1 = vshll.u32 %v9787_v11, 16 }
 0x275   :  { %v16087_v25 = vsel %vm12735_vm7, %v8173_v63, %v8174_v18  ;;  %v4216_v39 = vshll.u32 %v9790_v10, 16  ;;  %v4181_v23 = vor.u32 %v4180_v44, %v16068_v52  ;;  %v8181_v27 = vrot.slane %v12158_v12, 5  ;;  %v10311_v18 = vld [vmem:[%s16649_s0 + $0x168] sm:$0xe] }
 0x276   :  { %v8166_v29 = vrot.slane %v8164_v42, 4  ;;  %v4162_v36 = vrot.slane %v4160_v59, 5  ;;  %v16060_v3 = vsel %vm12735_vm7, %v10340_v41, %v8164_v42  ;;  %v4153_v50 = vsel %vm12260_vm3, %v4148_v22, %v15987_v13  ;;  %v12154_v13 = vld [vmem:[%s16649_s0 + $0x158] sm:$0x1]  ;;  %v12159_v22 = vld [vmem:[%s16649_s0 + $0x164] sm:$0x1] }
 0x277   :  { %v4189_v42 = vshrl.u32 %v9787_v11, 16  ;;  %v4184_v61 = vshll.u32 %v12154_v13, 16  ;;  %v4213_v59 = vshrl.u32 %v9790_v10, 16  ;;  %v4194_v0 = vrot.slane %v4192_v1, 5  ;;  %v12160_v11 = vld [vmem:[%s16649_s0 + $0x178] sm:$0xf] }
 0x278   :  { %11278 = vmatmul.mubr.msk.bf16.gmra.mrb[32].mxu0 %vm980_vm4, %v10366_v19  ;;  %v10341_v19 = vrot.slane %v10309_v20, 9  ;;  %v16066_v17 = vsel %vm12735_vm7, %v8166_v29, %v8167_v26  ;;  %v4163_v5 = vsel %vm12260_vm3, %v4158_v53, %v4162_v36  ;;  %v16129_v35 = vrot.slane %v4181_v23, 4 }
 0x279   :  { %11281 = vmatprep.mubr.msk.bf16.mxu0 %vm980_vm4, %v10367_v6  ;;  %v16054_v6 = vcombine.low %v4105_v37, %v4115_v56  ;;  %v12155_v37 = vld [vmem:[%s16649_s0 + $0x160] sm:$0xf]  ;;  %v10372_v20 = vcombine.low %v16060_v3, %v16066_v17  ;;  %v4191_v28 = vrot.slane %v4189_v42, 4  ;;  %v16116_v29 = vcombine.low %v4153_v50, %v4163_v5  ;;  %v12161_v42 = vld [vmem:[%s16649_s0 + $0x16c] sm:$0xf] }
 0x27a   :  { %v16078_v15 = vsel %vm12735_vm7, %v10341_v19, %v8171_v9  ;;  %v4198_v47 = vshll.u32 %v12155_v37, 16  ;;  %v4202_v55 = vshrl.u32 %v12155_v37, 16  ;;  %v10342_v9 = vrot.slane %v10310_v8, 9  ;;  %v12162_v37 = vld [vmem:[%s16649_s0 + $0x170] sm:$0x1] }
 0x27b   :  { %11014 = vmatmul.mubr.msk.bf16.vlgmr.msra.gmra.mrb[32].mxu1 %vm980_vm4, %v15150_v2  ;;  %v4170_v2 = vrot.slane %v4168_v32, 5  ;;  %v8178_v32 = vrot.slane %v12156_v48, 5  ;;  %v16122_v54 = vrot.slane %v4184_v61, 5  ;;  %v4215_v26 = vrot.slane %v4213_v59, 4 }
 0x27c   :  { %11017 = vmatprep.mubr.msk.bf16.mxu1 %vm980_vm4, %v15867_v21  ;;  %v16062_v21 = vcombine.low %v4129_v16, %v4139_v43  ;;  %v16124_v62 = vrot.slane %v4198_v47, 5  ;;  %v4218_v16 = vrot.slane %v4216_v39, 5  ;;  %v9793_v43 = vld [vmem:[%s16649_s0 + $0x174] sm:$0xf]  ;;  %v4208_v36 = vshll.u32 %v12159_v22, 16 }
 0x27d   :  { %v4171_v60 = vor.u32 %v4170_v2, %v4167_v49  ;;  %v16139_v19 = vsel %vm12735_vm7, %v10342_v9, %v8178_v32  ;;  %v4195_v51 = vor.u32 %v4194_v0, %v4191_v28  ;;  %v4237_v49 = vshrl.u32 %v9793_v43, 16  ;;  %v12164_v39 = vld [vmem:[%s16649_s0 + $0x178] sm:$0xf]  ;;  %v10313_v22 = vld [vmem:[%s16649_s0 + $0x180] sm:$0xe] }
 0x27e   :  { %v4240_v2 = vshll.u32 %v9793_v43, 16  ;;  %v4246_v44 = vshll.u32 %v12160_v11, 16  ;;  %v4250_v10 = vshrl.u32 %v12160_v11, 16  ;;  %v8185_v1 = vrot.slane %v12161_v42, 5  ;;  %v12166_v43 = vld [vmem:[%s16649_s0 + $0x17c] sm:$0x1] }
 0x27f   :  { %v16120_v45 = vrot.slane %v4171_v60, 4  ;;  %v4219_v5 = vor.u32 %v4218_v16, %v4215_v26  ;;  %v16165_v13 = vrot.slane %v4208_v36, 5  ;;  %v10343_v61 = vrot.slane %v10311_v18, 9  ;;  %v12165_v26 = vld [vmem:[%s16649_s0 + $0x17c] sm:$0x1] }
 0x280   :  { %11282 = vmatmul.mubr.msk.bf16.gmra.mrb[36].mxu0 %vm980_vm4, %v10368_v14  ;;  %v12157_v14 = vld [vmem:[%s16649_s0 + $0x16c] sm:$0xf]  ;;  %v4232_v47 = vshll.u32 %v12162_v37, 16  ;;  %v16179_v57 = vrot.slane %v4195_v51, 4  ;;  %v8192_v23 = vrot.slane %v12164_v39, 5  ;;  %v4242_v58 = vrot.slane %v4240_v2, 5 }
 0x281   :  { %11285 = vmatprep.mubr.msk.bf16.mxu0 %vm980_vm4, %v10369_v46  ;;  %v4222_v56 = vshll.u32 %v12157_v14, 16  ;;  %v4226_v41 = vshrl.u32 %v12157_v14, 16  ;;  %v4204_v46 = vrot.slane %v4202_v55, 4  ;;  %v4177_v50 = vsel %vm12260_vm3, %v16120_v45, %v16068_v52  ;;  %v10312_v55 = vld [vmem:[%s16649_s0 + $0x174] sm:$0xe] }
 0x282   :  { %v16190_v33 = vrot.slane %v4246_v44, 5  ;;  %v8187_v48 = vrot.slane %v8185_v1, 4  ;;  %v10344_v28 = vrot.slane %v10312_v55, 9  ;;  %v4187_v0 = vsel %vm12260_vm3, %v16129_v35, %v16122_v54  ;;  %v9796_v35 = vld [vmem:[%s16649_s0 + $0x180] sm:$0xf] }
 0x283   :  { %11018 = vmatmul.mubr.msk.bf16.gmra.mrb[36].mxu1 %vm980_vm4, %v15876_v4  ;;  %v10373_v4 = vcombine.low %v16078_v15, %v16087_v25  ;;  %v16144_v53 = vrot.slane %v4222_v56, 5  ;;  %v4228_v63 = vrot.slane %v4226_v41, 4  ;;  %v4205_v8 = vor.u32 %v4204_v46, %v16124_v62  ;;  %v12167_v36 = vld [vmem:[%s16649_s0 + $0x184] sm:$0xf]  ;;  %v12169_v15 = vld [vmem:[%s16649_s0 + $0x188] sm:$0x1] }
 0x284   :  { %11021 = vmatprep.mubr.msk.bf16.mxu1 %vm980_vm4, %v15925_v31  ;;  %v8180_v31 = vrot.slane %v8178_v32, 4  ;;  %v4220_v32 = vrot.slane %v4219_v5, 4  ;;  %v4234_v56 = vrot.slane %v4232_v47, 5  ;;  %v8194_v46 = vrot.slane %v8192_v23, 4  ;;  %v12168_v11 = vld [vmem:[%s16649_s0 + $0x184] sm:$0xf] }
 0x285   :  { %v4229_v59 = vor.u32 %v4228_v63, %v16144_v53  ;;  %v4206_v9 = vrot.slane %v4205_v8, 4  ;;  %v8195_v16 = vrot.slane %v12165_v26, 5  ;;  %v4256_v54 = vshll.u32 %v12166_v43, 16  ;;  %v10314_v52 = vld [vmem:[%s16649_s0 + $0x18c] sm:$0xe] }
 0x286   :  { %v16163_v60 = vsel %vm12735_vm7, %v8180_v31, %v8181_v27  ;;  %v4201_v31 = vsel %vm12260_vm3, %v16179_v57, %v16124_v62  ;;  %v4225_v62 = vsel %vm12260_vm3, %v4220_v32, %v16144_v53  ;;  %v16232_v63 = vsel %vm12735_vm7, %v10344_v28, %v8192_v23  ;;  %v9799_v53 = vld [vmem:[%s16649_s0 + $0x18c] sm:$0xf]  ;;  %v12173_v26 = vld [vmem:[%s16649_s0 + $0x19c] sm:$0xf]  ;;  %v10315_v43 = vld [vmem:[%s16649_s0 + $0x198] sm:$0xe] }
 0x287   :  { %v10374_v14 = vcombine.low %v16139_v19, %v16163_v60  ;;  %v4230_v41 = vrot.slane %v4229_v59, 4  ;;  %v8199_v19 = vrot.slane %v12167_v36, 5  ;;  %v4211_v51 = vsel %vm12260_vm3, %v4206_v9, %v16165_v13  ;;  %v12170_v60 = vld [vmem:[%s16649_s0 + $0x190] sm:$0xf] }
 0x288   :  { %11286 = vmatmul.mubr.msk.bf16.gmra.mrb[40].mxu0 %vm980_vm4, %v10370_v40  ;;  %v8188_v40 = vrot.slane %v12163_v7, 5  ;;  %v4264_v2 = vshll.u32 %v9796_v35, 16  ;;  %v4270_v44 = vshll.u32 %v12168_v11, 16  ;;  %v16254_v17 = vsel %vm12735_vm7, %v8194_v46, %v8195_v16 }
 0x289   :  { %11289 = vmatprep.mubr.msk.bf16.mxu0 %vm980_vm4, %v10371_v24  ;;  %v4252_v24 = vrot.slane %v4250_v10, 4  ;;  %v4274_v10 = vshrl.u32 %v12168_v11, 16  ;;  %v4235_v3 = vsel %vm12260_vm3, %v4230_v41, %v4234_v56  ;;  %v10345_v8 = vrot.slane %v10313_v22, 9 }
 0x28a   :  { %v8189_v18 = vsel %vm12735_vm7, %v8187_v48, %v8188_v40  ;;  %v8202_v25 = vrot.slane %v12169_v15, 5  ;;  %v4288_v5 = vshll.u32 %v9799_v53, 16  ;;  %v4294_v13 = vshll.u32 %v12170_v60, 16  ;;  %v9802_v48 = vld [vmem:[%s16649_s0 + $0x198] sm:$0xf] }
 0x28b   :  { %11022 = vmatmul.mubr.msk.bf16.gmra.mrb[40].mxu1 %vm980_vm4, %v15989_v38  ;;  %v4239_v38 = vrot.slane %v4237_v49, 4  ;;  %v4253_v27 = vor.u32 %v4252_v24, %v16190_v33  ;;  %v4261_v49 = vshrl.u32 %v9796_v35, 16  ;;  %v4266_v47 = vrot.slane %v4264_v2, 5  ;;  %v12176_v2 = vld [vmem:[%s16649_s0 + $0x194] sm:$0x1] }
 0x28c   :  { %11025 = vmatprep.mubr.msk.bf16.mxu1 %vm980_vm4, %v16054_v6  ;;  %v16200_v6 = vsel %vm12735_vm7, %v10343_v61, %v8185_v1  ;;  %v4298_v61 = vshrl.u32 %v12170_v60, 16  ;;  %v16264_v55 = vrot.slane %v4270_v44, 5  ;;  %v9830_v57 = vcombine.low %v4177_v50, %v4187_v0  ;;  %v12171_v0 = vld [vmem:[%s16649_s0 + $0x188] sm:$0x1] }
 0x28d   :  { %v4243_v12 = vor.u32 %v4242_v58, %v4239_v38  ;;  %v4254_v1 = vrot.slane %v4253_v27, 4  ;;  %v4263_v37 = vrot.slane %v4261_v49, 4  ;;  %v9831_v7 = vcombine.low %v4201_v31, %v4211_v51  ;;  %v12174_v31 = vld [vmem:[%s16649_s0 + $0x19c] sm:$0xf]  ;;  %v12175_v51 = vld [vmem:[%s16649_s0 + $0x194] sm:$0x1] }
 0x28e   :  { %v10375_v40 = vcombine.low %v16200_v6, %v8189_v18  ;;  %v9832_v59 = vcombine.low %v4225_v62, %v4235_v3  ;;  %v10376_v39 = vcombine.low %v16232_v63, %v16254_v17  ;;  %v8200_v38 = vsel %vm12735_vm7, %v10345_v8, %v8199_v19  ;;  %v12177_v3 = vld [vmem:[%s16649_s0 + $0x1a0] sm:$0x1] }
 0x28f   :  { %v4244_v42 = vrot.slane %v4243_v12, 4  ;;  %v4290_v50 = vrot.slane %v4288_v5, 5  ;;  %v16284_v24 = vrot.slane %v4294_v13, 5  ;;  %v4300_v9 = vrot.slane %v4298_v61, 4 }
 0x290   :  { %11290 = vmatmul.mubr.msk.bf16.gmra.mrb[44].mxu0 %vm980_vm4, %v10372_v20  ;;  %v4258_v20 = vrot.slane %v4256_v54, 5  ;;  %v4267_v32 = vor.u32 %v4266_v47, %v4263_v37  ;;  %v4280_v6 = vshll.u32 %v12171_v0, 16  ;;  %v10346_v41 = vrot.slane %v10314_v52, 9  ;;  %v12178_v37 = vld [vmem:[%s16649_s0 + $0x1a8] sm:$0xf] }
 0x291   :  { %11293 = vmatprep.mubr.msk.bf16.mxu0 %vm980_vm4, %v10373_v4  ;;  %v4285_v4 = vshrl.u32 %v9799_v53, 16  ;;  %v4249_v23 = vsel %vm12260_vm3, %v4244_v42, %v16190_v33  ;;  %v8213_v16 = vrot.slane %v12173_v26, 5  ;;  %v4309_v54 = vshrl.u32 %v9802_v48, 16 }
 0x292   :  { %v4259_v33 = vsel %vm12260_vm3, %v4254_v1, %v4258_v20  ;;  %v4312_v35 = vshll.u32 %v9802_v48, 16  ;;  %v4318_v12 = vshll.u32 %v12174_v31, 16  ;;  %v4322_v27 = vshrl.u32 %v12174_v31, 16 }
 0x293   :  { %11026 = vmatmul.mubr.msk.bf16.gmra.mrb[44].mxu1 %vm980_vm4, %v16062_v21  ;;  %v8201_v21 = vrot.slane %v8199_v19, 4  ;;  %v4287_v45 = vrot.slane %v4285_v4, 4  ;;  %v9833_v22 = vcombine.low %v4249_v23, %v4259_v33  ;;  %v4301_v19 = vor.u32 %v4300_v9, %v16284_v24  ;;  %v12180_v9 = vld [vmem:[%s16649_s0 + $0x1ac] sm:$0x1] }
 0x294   :  { %11029 = vmatprep.mubr.msk.bf16.mxu1 %vm980_vm4, %v16116_v29  ;;  %v4276_v29 = vrot.slane %v4274_v10, 4  ;;  %v4304_v18 = vshll.u32 %v12175_v51, 16  ;;  %v4268_v62 = vrot.slane %v4267_v32, 4  ;;  %v4282_v49 = vrot.slane %v4280_v6, 5 }
 0x295   :  { %v8203_v58 = vsel %vm12735_vm7, %v8201_v21, %v8202_v25  ;;  %v4291_v36 = vor.u32 %v4290_v50, %v4287_v45  ;;  %v8209_v11 = vrot.slane %v12176_v2, 5  ;;  %v10347_v10 = vrot.slane %v10315_v43, 9 }
 0x296   :  { %v4277_v28 = vor.u32 %v4276_v29, %v16264_v55  ;;  %v10377_v56 = vcombine.low %v8200_v38, %v8203_v58  ;;  %v8215_v53 = vrot.slane %v8213_v16, 4  ;;  %v8216_v17 = vrot.slane %v12177_v3, 5 }
 0x297   :  { %v4311_v20 = vrot.slane %v4309_v54, 4  ;;  %v4314_v8 = vrot.slane %v4312_v35, 5  ;;  %v4320_v42 = vrot.slane %v4318_v12, 5  ;;  %v4324_v1 = vrot.slane %v4322_v27, 4 }
 0x298   :  { %11294 = vmatmul.mubr.msk.bf16.gmra.mrb[48].mxu0 %vm980_vm4, %v10374_v14  ;;  %v12172_v14 = vld [vmem:[%s16649_s0 + $0x190] sm:$0xf]  ;;  %v4278_v63 = vrot.slane %v4277_v28, 4  ;;  %v4292_v21 = vrot.slane %v4291_v36, 4  ;;  %v4302_v15 = vrot.slane %v4301_v19, 4  ;;  %v4306_v25 = vrot.slane %v4304_v18, 5 }
 0x299   :  { %11297 = vmatprep.mubr.msk.bf16.mxu0 %vm980_vm4, %v10375_v40  ;;  %v8206_v46 = vrot.slane %v12172_v14, 5  ;;  %v4273_v4 = vsel %vm12260_vm3, %v4268_v62, %v16264_v55  ;;  %v8214_v61 = vsel %vm12735_vm7, %v10347_v10, %v8213_v16  ;;  %v8220_v47 = vrot.slane %v12178_v37, 5 }
 0x29a   :  { %v4283_v60 = vsel %vm12260_vm3, %v4278_v63, %v4282_v49  ;;  %v8217_v55 = vsel %vm12735_vm7, %v8215_v53, %v8216_v17  ;;  %v4315_v29 = vor.u32 %v4314_v8, %v4311_v20  ;;  %v4307_v23 = vsel %vm12260_vm3, %v4302_v15, %v4306_v25 }
 0x29b   :  { %11030 = vmatmul.mubr.msk.bf16.gmra.mrb[48].mxu1 %vm980_vm4, %v9830_v57  ;;  %v8208_v44 = vrot.slane %v8206_v46, 4  ;;  %v8207_v5 = vsel %vm12735_vm7, %v10346_v41, %v8206_v46  ;;  %v4325_v57 = vor.u32 %v4324_v1, %v4320_v42  ;;  %v9834_v38 = vcombine.low %v4273_v4, %v4283_v60 }
 0x29c   :  { %11033 = vmatprep.mubr.msk.bf16.mxu1 %vm980_vm4, %v9831_v7  ;;  %v12179_v7 = vld [vmem:[%s16649_s0 + $0x1a0] sm:$0x1]  ;;  %v10379_v52 = vcombine.low %v8214_v61, %v8217_v55  ;;  %v8222_v50 = vrot.slane %v8220_v47, 4  ;;  %v8223_v48 = vrot.slane %v12180_v9, 5  ;;  %v4316_v32 = vrot.slane %v4315_v29, 4 }
 0x29d   :  { %v8210_v13 = vsel %vm12735_vm7, %v8208_v44, %v8209_v11  ;;  %v4328_v40 = vshll.u32 %v12179_v7, 16  ;;  %v4326_v28 = vrot.slane %v4325_v57, 4 }
 0x29e   :  { %v10378_v58 = vcombine.low %v8207_v5, %v8210_v13  ;;  %v8224_v6 = vsel %vm12735_vm7, %v8222_v50, %v8223_v48  ;;  %v16416_v5 = vld [vmem:[%s16650_s2] ss:$0 sm:$0xff]  ;;  %s12183_s2 = smov 64  }
 0x29f   :  { %v4330_v0 = vrot.slane %v4328_v40, 5 }
 0x2a0   :  { %11298 = vmatmul.mubr.msk.bf16.gmra.mrb[52].mxu0 %vm980_vm4, %v10376_v39  ;;  %v4297_v39 = vsel %vm12260_vm3, %v4292_v21, %v16284_v24 }
 0x2a1   :  { %11301 = vmatprep.mubr.msk.bf16.mxu0 %vm980_vm4, %v10377_v56  ;;  %v9835_v33 = vcombine.low %v4297_v39, %v4307_v23  ;;  %v4321_v56 = vsel %vm12260_vm3, %v4316_v32, %v4320_v42  ;;  %v4331_v41 = vsel %vm12260_vm3, %v4326_v28, %v4330_v0 }
 0x2a2   :  { %v9836_v46 = vcombine.low %v4321_v56, %v4331_v41 }
 0x2a3   :  { %11034 = vmatmul.mubr.msk.bf16.gmra.mrb[52].mxu1 %vm980_vm4, %v9832_v59  ;;  %v10316_v59 = vld [vmem:[%s16649_s0 + $0x1a4] sm:$0xe] }
 0x2a4   :  { %11037 = vmatprep.mubr.msk.bf16.mxu1 %vm980_vm4, %v9833_v22  ;;  %v10348_v45 = vrot.slane %v10316_v59, 9 }
 0x2a6   :  { %v8221_v24 = vsel %vm12735_vm7, %v10348_v45, %v8220_v47 }
 0x2a7   :  { %v10380_v14 = vcombine.low %v8221_v24, %v8224_v6 }
 0x2a8   :  { %11302 = vmatmul.mubr.msk.bf16.gmra.mrb[56].mxu0 %vm980_vm4, %v10378_v58 }
 0x2a9   :  { %11305 = vmatprep.mubr.msk.bf16.mxu0 %vm980_vm4, %v10379_v52 }
 0x2ab   :  { %11038 = vmatmul.mubr.msk.bf16.gmra.mrb[56].mxu1 %vm980_vm4, %v9834_v38 }
 0x2ac   :  { %11041 = vmatprep.mubr.msk.bf16.mxu1 %vm980_vm4, %v9835_v33 }
 0x2b0   :  { %11306 = vmatmul.mubr.msk.bf16.gmra.mrb[60].mxu0 %vm980_vm4, %v10380_v14 }
 0x2b3   :  { %11042 = vmatmul.mubr.msk.bf16.gmra.mrb[60].mxu1 %vm980_vm4, %v9836_v46 }
 0x2ce   :  { %v10917_v26 = vpop.f32.mrb[0].mxu1 }
 0x2cf   :  { %v3149_v16 = vpop.f32.mrb[1].mxu1 }
 0x2d0   :  { %v10918_v43 = vpop.f32.mrb[2].mxu1 }
 0x2d1   :  { %v3152_v54 = vpop.f32.mrb[3].mxu1 }
 0x2d6   :  { %v10921_v34 = vpop.f32.mrb[4].mxu1 }
 0x2d7   :  { %v3165_v35 = vpop.f32.mrb[5].mxu1 }
 0x2d8   :  { %v10922_v31 = vpop.f32.mrb[6].mxu1 }
 0x2d9   :  { %v3168_v12 = vpop.f32.mrb[7].mxu1 }
 0x2de   :  { %v10925_v27 = vpop.f32.mrb[8].mxu1 }
 0x2df   :  { %v3181_v22 = vpop.f32.mrb[9].mxu1 }
 0x2e0   :  { %v16369_v36 = vpop.f32.mrb[10].mxu1 }
 0x2e1   :  { %v16371_v30 = vpop.f32.mrb[11].mxu1 }
 0x2e6   :  { %v16373_v19 = vpop.f32.mrb[12].mxu1 }
 0x2e7   :  { %v16375_v51 = vpop.f32.mrb[13].mxu1 }
 0x2e8   :  { %v16377_v18 = vpop.f32.mrb[14].mxu1 }
 0x2e9   :  { %v16379_v62 = vpop.f32.mrb[15].mxu1 }
 0x2ee   :  { %v16381_v63 = vpop.f32.mrb[16].mxu1 }
 0x2ef   :  { %v16383_v49 = vpop.f32.mrb[17].mxu1 }
 0x2f0   :  { %v16385_v2 = vpop.f32.mrb[18].mxu1 }
 0x2f1   :  { %v16387_v11 = vpop.f32.mrb[19].mxu1 }
 0x2f6   :  { %v16389_v44 = vpop.f32.mrb[20].mxu1 }
 0x2f7   :  { %v16391_v10 = vpop.f32.mrb[21].mxu1 }
 0x2f8   :  { %v16393_v53 = vpop.f32.mrb[22].mxu1 }
 0x2f9   :  { %v16395_v3 = vpop.f32.mrb[23].mxu1 }
 0x2fe   :  { %v16397_v17 = vpop.f32.mrb[24].mxu1 }
 0x2ff   :  { %v16399_v20 = vpop.f32.mrb[25].mxu1 }
 0x300   :  { %v16401_v8 = vpop.f32.mrb[26].mxu1 }
 0x301   :  { %v16403_v42 = vpop.f32.mrb[27].mxu1 }
 0x306   :  { %v16405_v1 = vpop.f32.mrb[28].mxu1 }
 0x307   :  { %v16407_v21 = vpop.f32.mrb[29].mxu1 }
 0x308   :  { %v16409_v15 = vpop.f32.mrb[30].mxu1 }
 0x309   :  { %v16411_v25 = vpop.f32.mrb[31].mxu1 }
 0x30b   :  { %v11247_v4 = vpop.f32.mrb[0].mxu0 }
 0x30c   :  { %v11311_v60 = vadd.f32 %v11247_v4, %v10917_v26  ;;  %v8455_v13 = vpop.f32.mrb[1].mxu0 }
 0x30d   :  { %v11312_v61 = vadd.f32 %v8455_v13, %v3149_v16  ;;  %v11248_v37 = vpop.f32.mrb[2].mxu0 }
 0x30e   :  { %v8783_v47 = vadd.f32 %v11311_v60, %v16416_v5  ;;  %v11313_v55 = vadd.f32 %v11248_v37, %v10918_v43  ;;  %v8458_v29 = vpop.f32.mrb[3].mxu0 }
 0x30f   :  { %v8781_v57 = vadd.f32 %v11312_v61, %v16416_v5  ;;  %v11314_v7 = vadd.f32 %v8458_v29, %v3152_v54 }
 0x310   :  { %v8784_v40 = vadd.f32 %v11313_v55, %v16416_v5 }
 0x311   :  { %v8845_v59 = vmax.f32 %v8781_v57, %v8783_v47  ;;  %v8782_v39 = vadd.f32 %v11314_v7, %v16416_v5 }
 0x313   :  { %8878 = vst.msk [vmem:[#allocation2] sm:$0xff] %vm8877_vm8, %v8845_v59  ;;  %v8846_v23 = vmax.f32 %v8782_v39, %v8784_v40  ;;  %v11251_v38 = vpop.f32.mrb[4].mxu0 }
 0x314   :  { %v11315_v58 = vadd.f32 %v11251_v38, %v10921_v34  ;;  %v8471_v52 = vpop.f32.mrb[5].mxu0 }
 0x315   :  { %8879 = vst.msk [vmem:[#allocation2 + $0x8] sm:$0xff] %vm8877_vm8, %v8846_v23  ;;  %v11316_v45 = vadd.f32 %v8471_v52, %v3165_v35  ;;  %v11252_v50 = vpop.f32.mrb[6].mxu0 }
 0x316   :  { %v8787_v9 = vadd.f32 %v11315_v58, %v16416_v5  ;;  %v11317_v48 = vadd.f32 %v11252_v50, %v10922_v31  ;;  %v8474_v33 = vpop.f32.mrb[7].mxu0 }
 0x317   :  { %v8785_v32 = vadd.f32 %v11316_v45, %v16416_v5  ;;  %v11318_v28 = vadd.f32 %v8474_v33, %v3168_v12 }
 0x318   :  { %v8788_v0 = vadd.f32 %v11317_v48, %v16416_v5 }
 0x319   :  { %v8847_v24 = vmax.f32 %v8785_v32, %v8787_v9  ;;  %v8786_v6 = vadd.f32 %v11318_v28, %v16416_v5 }
 0x31b   :  { %8880 = vst.msk [vmem:[#allocation2 + $0x10] sm:$0xff] %vm8877_vm8, %v8847_v24  ;;  %v8848_v56 = vmax.f32 %v8786_v6, %v8788_v0  ;;  %v11255_v41 = vpop.f32.mrb[8].mxu0 }
 0x31c   :  { %v11319_v14 = vadd.f32 %v11255_v41, %v10925_v27  ;;  %v8487_v46 = vpop.f32.mrb[9].mxu0 }
 0x31d   :  { %8881 = vst.msk [vmem:[#allocation2 + $0x18] sm:$0xff] %vm8877_vm8, %v8848_v56  ;;  %v11320_v26 = vadd.f32 %v8487_v46, %v3181_v22  ;;  %v11256_v16 = vpop.f32.mrb[10].mxu0 }
 0x31e   :  { %v8791_v43 = vadd.f32 %v11319_v14, %v16416_v5  ;;  %v11321_v54 = vadd.f32 %v11256_v16, %v16369_v36  ;;  %v8490_v34 = vpop.f32.mrb[11].mxu0 }
 0x31f   :  { %v8789_v35 = vadd.f32 %v11320_v26, %v16416_v5  ;;  %v11322_v31 = vadd.f32 %v8490_v34, %v16371_v30 }
 0x320   :  { %v8792_v12 = vadd.f32 %v11321_v54, %v16416_v5 }
 0x321   :  { %v8849_v4 = vmax.f32 %v8789_v35, %v8791_v43  ;;  %v8790_v60 = vadd.f32 %v11322_v31, %v16416_v5 }
 0x323   :  { %8882 = vst.msk [vmem:[#allocation2 + $0x20] sm:$0xff] %vm8877_vm8, %v8849_v4  ;;  %v8850_v27 = vmax.f32 %v8790_v60, %v8792_v12  ;;  %v11259_v13 = vpop.f32.mrb[12].mxu0 }
 0x324   :  { %v11323_v22 = vadd.f32 %v11259_v13, %v16373_v19  ;;  %v8503_v61 = vpop.f32.mrb[13].mxu0 }
 0x325   :  { %8883 = vst.msk [vmem:[#allocation2 + $0x28] sm:$0xff] %vm8877_vm8, %v8850_v27  ;;  %v11324_v36 = vadd.f32 %v8503_v61, %v16375_v51  ;;  %v11260_v37 = vpop.f32.mrb[14].mxu0 }
 0x326   :  { %v8795_v47 = vadd.f32 %v11323_v22, %v16416_v5  ;;  %v11325_v30 = vadd.f32 %v11260_v37, %v16377_v18  ;;  %v8506_v55 = vpop.f32.mrb[15].mxu0 }
 0x327   :  { %v8793_v29 = vadd.f32 %v11324_v36, %v16416_v5  ;;  %v11326_v57 = vadd.f32 %v8506_v55, %v16379_v62 }
 0x328   :  { %v8796_v7 = vadd.f32 %v11325_v30, %v16416_v5 }
 0x329   :  { %v8851_v40 = vmax.f32 %v8793_v29, %v8795_v47  ;;  %v8794_v19 = vadd.f32 %v11326_v57, %v16416_v5  ;;  %v9010_v57 = vlaneseq }
 0x32b   :  { %8884 = vst.msk [vmem:[#allocation2 + $0x30] sm:$0xff] %vm8877_vm8, %v8851_v40  ;;  %v8852_v59 = vmax.f32 %v8794_v19, %v8796_v7  ;;  %v11263_v39 = vpop.f32.mrb[16].mxu0  ;;  %v8912_v19 = vld [vmem:[#allocation2 + $0x10] ss:$2 sm:$0xff] }
 0x32c   :  { %v11327_v51 = vadd.f32 %v11263_v39, %v16381_v63  ;;  %v8519_v23 = vpop.f32.mrb[17].mxu0  ;;  %v8914_v39 = vld [vmem:[#allocation2 + $0x20] ss:$2 sm:$0xff] }
 0x32d   :  { %8885 = vst.msk [vmem:[#allocation2 + $0x38] sm:$0xff] %vm8877_vm8, %v8852_v59  ;;  %v11328_v18 = vadd.f32 %v8519_v23, %v16383_v49  ;;  %v11264_v38 = vpop.f32.mrb[18].mxu0  ;;  %v12181_v23 = vmov 1983009808  }
 0x32e   :  { %v8799_v58 = vadd.f32 %v11327_v51, %v16416_v5  ;;  %v11329_v62 = vadd.f32 %v11264_v38, %v16385_v2  ;;  %v8522_v52 = vpop.f32.mrb[19].mxu0  ;;  %v8946_v51 = vld [vmem:[#allocation2 + $0x21] ss:$2 sm:$0xff] }
 0x32f   :  { %v8797_v45 = vadd.f32 %v11328_v18, %v16416_v5  ;;  %v11330_v50 = vadd.f32 %v8522_v52, %v16387_v11 }
 0x330   :  { %v8800_v9 = vadd.f32 %v11329_v62, %v16416_v5  ;;  %v8942_v62 = vld [vmem:[#allocation2 + $0x1] ss:$2 sm:$0xff] }
 0x331   :  { %v8853_v48 = vmax.f32 %v8797_v45, %v8799_v58  ;;  %v8798_v63 = vadd.f32 %v11330_v50, %v16416_v5  ;;  %v8910_v58 = vld [vmem:[#allocation2] ss:$2 sm:$0xff] }
 0x333   :  { %8886 = vst.msk [vmem:[#allocation2 + $0x40] sm:$0xff] %vm8877_vm8, %v8853_v48  ;;  %v8854_v33 = vmax.f32 %v8798_v63, %v8800_v9  ;;  %v11267_v32 = vpop.f32.mrb[20].mxu0 }
 0x334   :  { %v11331_v49 = vadd.f32 %v11267_v32, %v16389_v44  ;;  %v8535_v28 = vpop.f32.mrb[21].mxu0  ;;  %v8916_v47 = vld [vmem:[#allocation2 + $0x30] ss:$2 sm:$0xff]  ;;  %v8948_v30 = vld [vmem:[#allocation2 + $0x31] ss:$2 sm:$0xff] }
 0x335   :  { %8887 = vst.msk [vmem:[#allocation2 + $0x48] sm:$0xff] %vm8877_vm8, %v8854_v33  ;;  %v11332_v2 = vadd.f32 %v8535_v28, %v16391_v10  ;;  %v11268_v0 = vpop.f32.mrb[22].mxu0  ;;  %v8976_v59 = vmax.f32 %v8916_v47, %v8948_v30 }
 0x336   :  { %v8803_v24 = vadd.f32 %v11331_v49, %v16416_v5  ;;  %v11333_v11 = vadd.f32 %v11268_v0, %v16393_v53  ;;  %v8538_v6 = vpop.f32.mrb[23].mxu0  ;;  %v8975_v49 = vmax.f32 %v8914_v39, %v8946_v51 }
 0x337   :  { %v8801_v56 = vadd.f32 %v11332_v2, %v16416_v5  ;;  %v11334_v41 = vadd.f32 %v8538_v6, %v16395_v3  ;;  %v16490_v28 = vmax.f32 %v8976_v59, 0.0 }
 0x338   :  { %v8804_v14 = vadd.f32 %v11333_v11, %v16416_v5 }
 0x339   :  { %v8855_v46 = vmax.f32 %v8801_v56, %v8803_v24  ;;  %v8802_v44 = vadd.f32 %v11334_v41, %v16416_v5 }
 0x33b   :  { %8888 = vst.msk [vmem:[#allocation2 + $0x50] sm:$0xff] %vm8877_vm8, %v8855_v46  ;;  %v8856_v26 = vmax.f32 %v8802_v44, %v8804_v14  ;;  %v11271_v16 = vpop.f32.mrb[24].mxu0 }
 0x33c   :  { %v11335_v10 = vadd.f32 %v11271_v16, %v16397_v17  ;;  %v8551_v43 = vpop.f32.mrb[25].mxu0  ;;  %v8918_v11 = vld [vmem:[#allocation2 + $0x40] ss:$2 sm:$0xff]  ;;  %v8950_v6 = vld [vmem:[#allocation2 + $0x41] ss:$2 sm:$0xff]  ;;  %v8973_v16 = vmax.f32 %v8910_v58, %v8942_v62 }
 0x33d   :  { %8889 = vst.msk [vmem:[#allocation2 + $0x58] sm:$0xff] %vm8877_vm8, %v8856_v26  ;;  %v11336_v53 = vadd.f32 %v8551_v43, %v16399_v20  ;;  %v11272_v54 = vpop.f32.mrb[26].mxu0 }
 0x33e   :  { %v8807_v34 = vadd.f32 %v11335_v10, %v16416_v5  ;;  %v11337_v3 = vadd.f32 %v11272_v54, %v16401_v8  ;;  %v8554_v35 = vpop.f32.mrb[27].mxu0 }
 0x33f   :  { %v8805_v31 = vadd.f32 %v11336_v53, %v16416_v5  ;;  %v11338_v12 = vadd.f32 %v8554_v35, %v16403_v42 }
 0x340   :  { %v8808_v4 = vadd.f32 %v11337_v3, %v16416_v5 }
 0x341   :  { %v8857_v60 = vmax.f32 %v8805_v31, %v8807_v34  ;;  %v8806_v17 = vadd.f32 %v11338_v12, %v16416_v5  ;;  %v12182_v34 = vmov 1934713408   ;;  %v8977_v31 = vmax.f32 %v8918_v11, %v8950_v6 }
 0x342   :  { %v9072_v3 = vunpack.c.l.s4 %v12182_v34  ;;  %v8991_v12 = vmax.f32 %v8975_v49, 0.0 }
 0x343   :  { %8890 = vst.msk [vmem:[#allocation2 + $0x60] sm:$0xff] %vm8877_vm8, %v8857_v60  ;;  %v8858_v27 = vmax.f32 %v8806_v17, %v8808_v4  ;;  %v11275_v13 = vpop.f32.mrb[28].mxu0 }
 0x344   :  { %v11339_v20 = vadd.f32 %v11275_v13, %v16405_v1  ;;  %v8567_v22 = vpop.f32.mrb[29].mxu0  ;;  %v8920_v44 = vld [vmem:[#allocation2 + $0x50] ss:$2 sm:$0xff]  ;;  %v8952_v26 = vld [vmem:[#allocation2 + $0x51] ss:$2 sm:$0xff]  ;;  %v9073_v30 = vunpack.c.0.s8 %v9072_v3 }
 0x345   :  { %8891 = vst.msk [vmem:[#allocation2 + $0x68] sm:$0xff] %vm8877_vm8, %v8858_v27  ;;  %v11340_v8 = vadd.f32 %v8567_v22, %v16407_v21  ;;  %v11276_v61 = vpop.f32.mrb[30].mxu0  ;;  %v8944_v21 = vld [vmem:[#allocation2 + $0x11] ss:$2 sm:$0xff]  ;;  %v8978_v17 = vmax.f32 %v8920_v44, %v8952_v26 }
 0x346   :  { %v8811_v36 = vadd.f32 %v11339_v20, %v16416_v5  ;;  %v11341_v42 = vadd.f32 %v11276_v61, %v16409_v15  ;;  %v8570_v37 = vpop.f32.mrb[31].mxu0  ;;  %v9008_v15 = vunpack.c.l.s4 %v12181_v23  ;;  %v8974_v48 = vmax.f32 %v8912_v19, %v8944_v21 }
 0x347   :  { %v8809_v55 = vadd.f32 %v11340_v8, %v16416_v5  ;;  %v11342_v29 = vadd.f32 %v8570_v37, %v16411_v25  ;;  %v16487_v25 = vshrl.u32 %v9010_v57, 7  ;;  %v8989_v20 = vmax.f32 %v8973_v16, 0.0 }
 0x348   :  { %v8812_v1 = vadd.f32 %v11341_v42, %v16416_v5  ;;  %v9009_v56 = vunpack.c.0.s8 %v9008_v15  ;;  %v8990_v54 = vmax.f32 %v8974_v48, 0.0  ;;  %v8994_v39 = vmax.f32 %v8978_v17, 0.0 }
 0x349   :  { %v8859_v7 = vmax.f32 %v8809_v55, %v8811_v36  ;;  %v8810_v40 = vadd.f32 %v11342_v29, %v16416_v5 }
 0x34a   :  { %v9021_v27 = vcombine.low %v8990_v54, %v16490_v28  ;;  %v16499_v47 = vsub.s32 %v9009_v56, %v16487_v25  ;;  %v9022_v23 = vcombine.high %v8990_v54, %v16490_v28 }
 0x34b   :  { %8892 = vst.msk [vmem:[#allocation2 + $0x70] sm:$0xff] %vm8877_vm8, %v8859_v7  ;;  %v8860_v18 = vmax.f32 %v8810_v40, %v8812_v1  ;;  %v11279_v38 = vpop.f32.mrb[32].mxu0  ;;  %v8993_v7 = vmax.f32 %v8977_v31, 0.0  ;;  %v9005_v40 = vcombine.low %v8989_v20, %v8991_v12 }
 0x34c   :  { %v8583_v45 = vpop.f32.mrb[33].mxu0  ;;  %v8922_v50 = vld [vmem:[#allocation2 + $0x60] ss:$2 sm:$0xff]  ;;  %v8954_v9 = vld [vmem:[#allocation2 + $0x61] ss:$2 sm:$0xff]  ;;  %v16503_v51 = vrot.slane %v9021_v27, %v16499_v47 }
 0x34d   :  { %8893 = vst.msk [vmem:[#allocation2 + $0x78] sm:$0xff] %vm8877_vm8, %v8860_v18  ;;  %v11280_v32 = vpop.f32.mrb[34].mxu0  ;;  %v8979_v10 = vmax.f32 %v8922_v50, %v8954_v9  ;;  %v9006_v50 = vcombine.high %v8989_v20, %v8991_v12 }
 0x34e   :  { %v11015_v52 = vpop.f32.mrb[32].mxu1  ;;  %v8586_v24 = vpop.f32.mrb[35].mxu0 }
 0x34f   :  { %v11343_v63 = vadd.f32 %v11279_v38, %v11015_v52  ;;  %v4690_v33 = vpop.f32.mrb[33].mxu1  ;;  %v8995_v22 = vmax.f32 %v8979_v10, 0.0  ;;  %v16532_v44 = vrot.slane %v9006_v50, %v16499_v47 }
 0x350   :  { %v11344_v2 = vadd.f32 %v8583_v45, %v4690_v33  ;;  %v11016_v0 = vpop.f32.mrb[34].mxu1 }
 0x351   :  { %v8815_v41 = vadd.f32 %v11343_v63, %v16416_v5  ;;  %v11345_v14 = vadd.f32 %v11280_v32, %v11016_v0  ;;  %v4693_v46 = vpop.f32.mrb[35].mxu1  ;;  %v9037_v62 = vcombine.low %v8993_v7, %v8995_v22  ;;  %v9038_v9 = vcombine.high %v8993_v7, %v8995_v22 }
 0x352   :  { %v8813_v43 = vadd.f32 %v11344_v2, %v16416_v5  ;;  %v11346_v53 = vadd.f32 %v8586_v24, %v4693_v46  ;;  %v16510_v63 = vrot.slane %v9005_v40, %v16499_v47  ;;  %v16514_v2 = vsub.s32 %v9073_v30, %v16487_v25 }
 0x353   :  { %v8816_v35 = vadd.f32 %v11345_v14, %v16416_v5  ;;  %v11283_v13 = vpop.f32.mrb[36].mxu0  ;;  %v16517_v0 = vrot.slane %v9022_v23, %v16499_v47  ;;  %v16520_v11 = vrot.slane %v9037_v62, %v16499_v47  ;;  %v16535_v26 = vrot.slane %v9038_v9, %v16499_v47 }
 0x354   :  { %v8861_v4 = vmax.f32 %v8813_v43, %v8815_v41  ;;  %v8814_v60 = vadd.f32 %v11346_v53, %v16416_v5  ;;  %v8599_v36 = vpop.f32.mrb[37].mxu0  ;;  %v8924_v42 = vld [vmem:[#allocation2 + $0x70] ss:$2 sm:$0xff]  ;;  %v8956_v37 = vld [vmem:[#allocation2 + $0x71] ss:$2 sm:$0xff]  ;;  %v9069_v56 = vcombine.low %v16510_v63, %v16503_v51 }
 0x355   :  { %v11284_v57 = vpop.f32.mrb[38].mxu0  ;;  %v8980_v1 = vmax.f32 %v8924_v42, %v8956_v37 }
 0x356   :  { %8894 = vst.msk [vmem:[#allocation2 + $0x80] sm:$0xff] %vm8877_vm8, %v8861_v4  ;;  %v8862_v8 = vmax.f32 %v8814_v60, %v8816_v35  ;;  %v11019_v61 = vpop.f32.mrb[36].mxu1  ;;  %v8602_v59 = vpop.f32.mrb[39].mxu0  ;;  %v9085_v35 = vcombine.low %v16532_v44, %v16517_v0  ;;  %v16546_v17 = vrot.slane %v9069_v56, %v16514_v2 }
 0x357   :  { %v11347_v55 = vadd.f32 %v11283_v13, %v11019_v61  ;;  %v4706_v29 = vpop.f32.mrb[37].mxu1  ;;  %v8996_v58 = vmax.f32 %v8980_v1, 0.0 }
 0x358   :  { %8895 = vst.msk [vmem:[#allocation2 + $0x88] sm:$0xff] %vm8877_vm8, %v8862_v8  ;;  %v11348_v19 = vadd.f32 %v8599_v36, %v4706_v29  ;;  %v11020_v21 = vpop.f32.mrb[38].mxu1  ;;  %v16557_v42 = vrot.slane %v9085_v35, %v16514_v2 }
 0x359   :  { %v8819_v15 = vadd.f32 %v11347_v55, %v16416_v5  ;;  %v11349_v18 = vadd.f32 %v11284_v57, %v11020_v21  ;;  %v4709_v38 = vpop.f32.mrb[39].mxu1  ;;  %v9053_v33 = vcombine.low %v8994_v39, %v8996_v58  ;;  %v9054_v32 = vcombine.high %v8994_v39, %v8996_v58 }
 0x35a   :  { %v8817_v52 = vadd.f32 %v11348_v19, %v16416_v5  ;;  %v11350_v45 = vadd.f32 %v8602_v59, %v4709_v38 }
 0x35b   :  { %v8820_v48 = vadd.f32 %v11349_v18, %v16416_v5  ;;  %v11287_v24 = vpop.f32.mrb[40].mxu0  ;;  %v16523_v6 = vrot.slane %v9053_v33, %v16499_v47  ;;  %v16528_v41 = vrot.slane %v9054_v32, %v16499_v47 }
 0x35c   :  { %v8863_v49 = vmax.f32 %v8817_v52, %v8819_v15  ;;  %v8818_v28 = vadd.f32 %v11350_v45, %v16416_v5  ;;  %v8615_v46 = vpop.f32.mrb[41].mxu0 }
 0x35d   :  { %v11288_v43 = vpop.f32.mrb[42].mxu0  ;;  %v9101_v53 = vcombine.low %v16520_v11, %v16523_v6  ;;  %v9117_v31 = vcombine.low %v16535_v26, %v16528_v41 }
 0x35e   :  { %8896 = vst.msk [vmem:[#allocation2 + $0x90] sm:$0xff] %vm8877_vm8, %v8863_v49  ;;  %v8864_v25 = vmax.f32 %v8818_v28, %v8820_v48  ;;  %v11023_v14 = vpop.f32.mrb[40].mxu1  ;;  %v8618_v3 = vpop.f32.mrb[43].mxu0 }
 0x35f   :  { %v11351_v16 = vadd.f32 %v11287_v24, %v11023_v14  ;;  %v4722_v10 = vpop.f32.mrb[41].mxu1  ;;  %v16549_v27 = vrot.slane %v9101_v53, %v16514_v2  ;;  %v16560_v37 = vrot.slane %v9117_v31, %v16514_v2 }
 0x360   :  { %8897 = vst.msk [vmem:[#allocation2 + $0x98] sm:$0xff] %vm8877_vm8, %v8864_v25  ;;  %v11352_v54 = vadd.f32 %v8615_v46, %v4722_v10  ;;  %v11024_v34 = vpop.f32.mrb[42].mxu1 }
 0x361   :  { %v8823_v12 = vadd.f32 %v11351_v16, %v16416_v5  ;;  %v11353_v4 = vadd.f32 %v11288_v43, %v11024_v34  ;;  %v4725_v60 = vpop.f32.mrb[43].mxu1  ;;  %v9133_v8 = vcombine.low %v16546_v17, %v16549_v27  ;;  %v9137_v1 = vcombine.low %v16557_v42, %v16560_v37 }
 0x362   :  { %v8821_v13 = vadd.f32 %v11352_v54, %v16416_v5  ;;  %v11354_v20 = vadd.f32 %v8618_v3, %v4725_v60 }
 0x363   :  { %v8824_v22 = vadd.f32 %v11353_v4, %v16416_v5  ;;  %v11291_v30 = vpop.f32.mrb[44].mxu0 }
 0x364   :  { %v8865_v61 = vmax.f32 %v8821_v13, %v8823_v12  ;;  %v8822_v36 = vadd.f32 %v11354_v20, %v16416_v5  ;;  %v8631_v57 = vpop.f32.mrb[45].mxu0 }
 0x365   :  { %v11292_v19 = vpop.f32.mrb[46].mxu0 }
 0x366   :  { %8898 = vst.msk [vmem:[#allocation2 + $0xa0] sm:$0xff] %vm8877_vm8, %v8865_v61  ;;  %v8866_v55 = vmax.f32 %v8822_v36, %v8824_v22  ;;  %v11027_v29 = vpop.f32.mrb[44].mxu1  ;;  %v8634_v39 = vpop.f32.mrb[47].mxu0 }
 0x367   :  { %v11355_v7 = vadd.f32 %v11291_v30, %v11027_v29  ;;  %v4738_v40 = vpop.f32.mrb[45].mxu1 }
 0x368   :  { %8899 = vst.msk [vmem:[#allocation2 + $0xa8] sm:$0xff] %vm8877_vm8, %v8866_v55  ;;  %v11356_v21 = vadd.f32 %v8631_v57, %v4738_v40  ;;  %v11028_v59 = vpop.f32.mrb[46].mxu1 }
 0x369   :  { %v8827_v23 = vadd.f32 %v11355_v7, %v16416_v5  ;;  %v11357_v15 = vadd.f32 %v11292_v19, %v11028_v59  ;;  %v4741_v18 = vpop.f32.mrb[47].mxu1 }
 0x36a   :  { %v8825_v38 = vadd.f32 %v11356_v21, %v16416_v5  ;;  %v11358_v58 = vadd.f32 %v8634_v39, %v4741_v18 }
 0x36b   :  { %v8828_v62 = vadd.f32 %v11357_v15, %v16416_v5  ;;  %v11295_v50 = vpop.f32.mrb[48].mxu0 }
 0x36c   :  { %v8867_v52 = vmax.f32 %v8825_v38, %v8827_v23  ;;  %v8826_v45 = vadd.f32 %v11358_v58, %v16416_v5  ;;  %v8647_v33 = vpop.f32.mrb[49].mxu0 }
 0x36d   :  { %v11296_v28 = vpop.f32.mrb[50].mxu0 }
 0x36e   :  { %8900 = vst.msk [vmem:[#allocation2 + $0xb0] sm:$0xff] %vm8877_vm8, %v8867_v52  ;;  %v8868_v9 = vmax.f32 %v8826_v45, %v8828_v62  ;;  %v11031_v48 = vpop.f32.mrb[48].mxu1  ;;  %v8650_v25 = vpop.f32.mrb[51].mxu0 }
 0x36f   :  { %v11359_v32 = vadd.f32 %v11295_v50, %v11031_v48  ;;  %v4754_v49 = vpop.f32.mrb[49].mxu1 }
 0x370   :  { %8901 = vst.msk [vmem:[#allocation2 + $0xb8] sm:$0xff] %vm8877_vm8, %v8868_v9  ;;  %v11360_v24 = vadd.f32 %v8647_v33, %v4754_v49  ;;  %v11032_v56 = vpop.f32.mrb[50].mxu1 }
 0x371   :  { %v8831_v14 = vadd.f32 %v11359_v32, %v16416_v5  ;;  %v11361_v46 = vadd.f32 %v11296_v28, %v11032_v56  ;;  %v4757_v16 = vpop.f32.mrb[51].mxu1 }
 0x372   :  { %v8829_v10 = vadd.f32 %v11360_v24, %v16416_v5  ;;  %v11362_v43 = vadd.f32 %v8650_v25, %v4757_v16 }
 0x373   :  { %v8832_v53 = vadd.f32 %v11361_v46, %v16416_v5  ;;  %v11299_v3 = vpop.f32.mrb[52].mxu0 }
 0x374   :  { %v8869_v54 = vmax.f32 %v8829_v10, %v8831_v14  ;;  %v8830_v34 = vadd.f32 %v11362_v43, %v16416_v5  ;;  %v8663_v12 = vpop.f32.mrb[53].mxu0 }
 0x375   :  { %v11300_v13 = vpop.f32.mrb[54].mxu0 }
 0x376   :  { %8902 = vst.msk [vmem:[#allocation2 + $0xc0] sm:$0xff] %vm8877_vm8, %v8869_v54  ;;  %v8870_v35 = vmax.f32 %v8830_v34, %v8832_v53  ;;  %v11035_v31 = vpop.f32.mrb[52].mxu1  ;;  %v8666_v61 = vpop.f32.mrb[55].mxu0 }
 0x377   :  { %v11363_v4 = vadd.f32 %v11299_v3, %v11035_v31  ;;  %v4770_v60 = vpop.f32.mrb[53].mxu1 }
 0x378   :  { %8903 = vst.msk [vmem:[#allocation2 + $0xc8] sm:$0xff] %vm8877_vm8, %v8870_v35  ;;  %v11364_v20 = vadd.f32 %v8663_v12, %v4770_v60  ;;  %v11036_v22 = vpop.f32.mrb[54].mxu1  ;;  %v8964_v60 = vld [vmem:[#allocation2 + $0xb1] ss:$2 sm:$0xff] }
 0x379   :  { %v8835_v36 = vadd.f32 %v11363_v4, %v16416_v5  ;;  %v11365_v30 = vadd.f32 %v11300_v13, %v11036_v22  ;;  %v4773_v55 = vpop.f32.mrb[55].mxu1  ;;  %v8932_v4 = vld [vmem:[#allocation2 + $0xb0] ss:$2 sm:$0xff] }
 0x37a   :  { %v8833_v29 = vadd.f32 %v11364_v20, %v16416_v5  ;;  %v11366_v57 = vadd.f32 %v8666_v61, %v4773_v55  ;;  %v8928_v20 = vld [vmem:[#allocation2 + $0x90] ss:$2 sm:$0xff]  ;;  %v8962_v55 = vld [vmem:[#allocation2 + $0xa1] ss:$2 sm:$0xff] }
 0x37b   :  { %v8836_v7 = vadd.f32 %v11365_v30, %v16416_v5  ;;  %v11303_v21 = vpop.f32.mrb[56].mxu0  ;;  %v8960_v30 = vld [vmem:[#allocation2 + $0x91] ss:$2 sm:$0xff] }
 0x37c   :  { %v8871_v40 = vmax.f32 %v8833_v29, %v8835_v36  ;;  %v8834_v19 = vadd.f32 %v11366_v57, %v16416_v5  ;;  %v8679_v23 = vpop.f32.mrb[57].mxu0  ;;  %v8930_v36 = vld [vmem:[#allocation2 + $0xa0] ss:$2 sm:$0xff]  ;;  %v8984_v29 = vmax.f32 %v8932_v4, %v8964_v60  ;;  %v9070_v4 = vcombine.high %v16510_v63, %v16503_v51 }
 0x37d   :  { %v11304_v38 = vpop.f32.mrb[58].mxu0 }
 0x37e   :  { %8904 = vst.msk [vmem:[#allocation2 + $0xd0] sm:$0xff] %vm8877_vm8, %v8871_v40  ;;  %v8872_v59 = vmax.f32 %v8834_v19, %v8836_v7  ;;  %v11039_v39 = vpop.f32.mrb[56].mxu1  ;;  %v8682_v52 = vpop.f32.mrb[59].mxu0  ;;  %v8926_v7 = vld [vmem:[#allocation2 + $0x80] ss:$2 sm:$0xff] }
 0x37f   :  { %v11367_v15 = vadd.f32 %v11303_v21, %v11039_v39  ;;  %v4786_v18 = vpop.f32.mrb[57].mxu1  ;;  %v8958_v40 = vld [vmem:[#allocation2 + $0x81] ss:$2 sm:$0xff]  ;;  %v8983_v39 = vmax.f32 %v8930_v36, %v8962_v55 }
 0x380   :  { %8905 = vst.msk [vmem:[#allocation2 + $0xd8] sm:$0xff] %vm8877_vm8, %v8872_v59  ;;  %v11368_v58 = vadd.f32 %v8679_v23, %v4786_v18  ;;  %v11040_v62 = vpop.f32.mrb[58].mxu1  ;;  %v8982_v59 = vmax.f32 %v8928_v20, %v8960_v30  ;;  %v8934_v23 = vld [vmem:[#allocation2 + $0xc0] ss:$2 sm:$0xff]  ;;  %v8981_v18 = vmax.f32 %v8926_v7, %v8958_v40  ;;  %v9118_v30 = vcombine.high %v16535_v26, %v16528_v41 }
 0x381   :  { %v8839_v45 = vadd.f32 %v11367_v15, %v16416_v5  ;;  %v11369_v50 = vadd.f32 %v11304_v38, %v11040_v62  ;;  %v4789_v9 = vpop.f32.mrb[59].mxu1  ;;  %v8966_v15 = vld [vmem:[#allocation2 + $0xc1] ss:$2 sm:$0xff]  ;;  %v9000_v38 = vmax.f32 %v8984_v29, 0.0  ;;  %v9084_v40 = vrot.slane %v9070_v4, %v16514_v2 }
 0x382   :  { %v8837_v48 = vadd.f32 %v11368_v58, %v16416_v5  ;;  %v11370_v33 = vadd.f32 %v8682_v52, %v4789_v9  ;;  %v8998_v52 = vmax.f32 %v8982_v59, 0.0  ;;  %v8997_v9 = vmax.f32 %v8981_v18, 0.0 }
 0x383   :  { %v8840_v32 = vadd.f32 %v11369_v50, %v16416_v5  ;;  %v11307_v24 = vpop.f32.mrb[60].mxu0  ;;  %v8985_v50 = vmax.f32 %v8934_v23, %v8966_v15  ;;  %v9134_v15 = vcombine.high %v16546_v17, %v16549_v27  ;;  %v9132_v18 = vrot.slane %v9118_v30, %v16514_v2 }
 0x384   :  { %v8873_v49 = vmax.f32 %v8837_v48, %v8839_v45  ;;  %v8838_v28 = vadd.f32 %v11370_v33, %v16416_v5  ;;  %v8695_v14 = vpop.f32.mrb[61].mxu0  ;;  %v8999_v45 = vmax.f32 %v8983_v39, 0.0  ;;  %v9157_v48 = vcombine.low %v8998_v52, %v9000_v38 }
 0x385   :  { %v11308_v10 = vpop.f32.mrb[62].mxu0 }
 0x386   :  { %8906 = vst.msk [vmem:[#allocation2 + $0xe0] sm:$0xff] %vm8877_vm8, %v8873_v49  ;;  %v8874_v56 = vmax.f32 %v8838_v28, %v8840_v32  ;;  %v11043_v25 = vpop.f32.mrb[60].mxu1  ;;  %v8698_v54 = vpop.f32.mrb[63].mxu0 }
 0x387   :  { %v11371_v46 = vadd.f32 %v11307_v24, %v11043_v25  ;;  %v4802_v16 = vpop.f32.mrb[61].mxu1  ;;  %v8936_v58 = vld [vmem:[#allocation2 + $0xd0] ss:$2 sm:$0xff]  ;;  %v8968_v62 = vld [vmem:[#allocation2 + $0xd1] ss:$2 sm:$0xff]  ;;  %v9141_v24 = vcombine.low %v8997_v9, %v8999_v45 }
 0x388   :  { %8907 = vst.msk [vmem:[#allocation2 + $0xe8] sm:$0xff] %vm8877_vm8, %v8874_v56  ;;  %v11372_v43 = vadd.f32 %v8695_v14, %v4802_v16  ;;  %v11044_v53 = vpop.f32.mrb[62].mxu1  ;;  %v8986_v33 = vmax.f32 %v8936_v58, %v8968_v62  ;;  %v9158_v56 = vcombine.high %v8998_v52, %v9000_v38  ;;  %v9001_v14 = vmax.f32 %v8985_v50, 0.0 }
 0x389   :  { %v8843_v34 = vadd.f32 %v11371_v46, %v16416_v5  ;;  %v11373_v3 = vadd.f32 %v11308_v10, %v11044_v53  ;;  %v4805_v35 = vpop.f32.mrb[63].mxu1  ;;  %v9165_v46 = vrot.slane %v9157_v48, %v16499_v47  ;;  %v9142_v16 = vcombine.high %v8997_v9, %v8999_v45 }
 0x38a   :  { %v8841_v31 = vadd.f32 %v11372_v43, %v16416_v5  ;;  %v11374_v12 = vadd.f32 %v8698_v54, %v4805_v35  ;;  %v9002_v10 = vmax.f32 %v8986_v33, 0.0  ;;  %v9172_v35 = vrot.slane %v9158_v56, %v16499_v47 }
 0x38b   :  { %v8844_v13 = vadd.f32 %v11373_v3, %v16416_v5  ;;  %v9149_v3 = vrot.slane %v9141_v24, %v16499_v47  ;;  %v9156_v20 = vrot.slane %v9142_v16, %v16499_v47 }
 0x38c   :  { %v8875_v22 = vmax.f32 %v8841_v31, %v8843_v34  ;;  %v8842_v61 = vadd.f32 %v11374_v12, %v16416_v5  ;;  %v9102_v34 = vcombine.high %v16520_v11, %v16523_v6 }
 0x38d   :  { %v9206_v60 = vcombine.high %v9149_v3, %v9165_v46  ;;  %v9222_v55 = vcombine.high %v9156_v20, %v9172_v35  ;;  %v9221_v29 = vcombine.low %v9156_v20, %v9172_v35 }
 0x38e   :  { %8908 = vst.msk [vmem:[#allocation2 + $0xf0] sm:$0xff] %vm8877_vm8, %v8875_v22  ;;  %v8876_v57 = vmax.f32 %v8842_v61, %v8844_v13  ;;  %v9205_v13 = vcombine.low %v9149_v3, %v9165_v46  ;;  %v9116_v6 = vrot.slane %v9102_v34, %v16514_v2 }
 0x38f   :  { %v8938_v19 = vld [vmem:[#allocation2 + $0xe0] ss:$2 sm:$0xff]  ;;  %v8970_v21 = vld [vmem:[#allocation2 + $0xe1] ss:$2 sm:$0xff]  ;;  %v9229_v38 = vrot.slane %v9221_v29, %v16514_v2 }
 0x390   :  { %8909 = vst.msk [vmem:[#allocation2 + $0xf8] sm:$0xff] %vm8877_vm8, %v8876_v57  ;;  %v8987_v5 = vmax.f32 %v8938_v19, %v8970_v21  ;;  %v9220_v19 = vrot.slane %v9206_v60, %v16514_v2  ;;  %v9213_v21 = vrot.slane %v9205_v13, %v16514_v2  ;;  %v9135_v23 = vcombine.low %v9084_v40, %v9116_v6 }
 0x392   :  { %v9003_v32 = vmax.f32 %v8987_v5, 0.0 }
 0x394   :  { %v9173_v53 = vcombine.low %v9001_v14, %v9003_v32  ;;  %v9174_v54 = vcombine.high %v9001_v14, %v9003_v32  ;;  %v9138_v32 = vcombine.high %v16557_v42, %v16560_v37 }
 0x396   :  { %v9181_v22 = vrot.slane %v9173_v53, %v16499_v47  ;;  %v9188_v36 = vrot.slane %v9174_v54, %v16499_v47 }
 0x397   :  { %v8940_v49 = vld [vmem:[#allocation2 + $0xf0] ss:$2 sm:$0xff]  ;;  %v8972_v28 = vld [vmem:[#allocation2 + $0xf1] ss:$2 sm:$0xff] }
 0x398   :  { %v8988_v25 = vmax.f32 %v8940_v49, %v8972_v28 }
 0x39a   :  { %v9004_v43 = vmax.f32 %v8988_v25, 0.0  ;;  %v9136_v25 = vcombine.high %v9084_v40, %v9116_v6 }
 0x39c   :  { %v9189_v31 = vcombine.low %v9002_v10, %v9004_v43  ;;  %v9190_v12 = vcombine.high %v9002_v10, %v9004_v43 }
 0x39e   :  { %v9197_v61 = vrot.slane %v9189_v31, %v16499_v47  ;;  %v9204_v11 = vrot.slane %v9190_v12, %v16499_v47  ;;  %v9086_v47 = vcombine.high %v16532_v44, %v16517_v0  ;;  %v9236_v0 = vrot.slane %v9222_v55, %v16514_v2 }
 0x3a0   :  { %v9238_v51 = vcombine.high %v9181_v22, %v9197_v61  ;;  %v9237_v63 = vcombine.low %v9181_v22, %v9197_v61  ;;  %v9254_v57 = vcombine.high %v9188_v36, %v9204_v11  ;;  %v9253_v7 = vcombine.low %v9188_v36, %v9204_v11 }
 0x3a1   :  { %v9100_v44 = vrot.slane %v9086_v47, %v16514_v2 }
 0x3a2   :  { %v9252_v59 = vrot.slane %v9238_v51, %v16514_v2  ;;  %v9245_v39 = vrot.slane %v9237_v63, %v16514_v2  ;;  %v9268_v41 = vrot.slane %v9254_v57, %v16514_v2  ;;  %v9261_v26 = vrot.slane %v9253_v7, %v16514_v2 }
 0x3a3   :  { %v9139_v33 = vcombine.low %v9100_v44, %v9132_v18  ;;  %v9140_v2 = vcombine.high %v9100_v44, %v9132_v18 }
 0x3a4   :  { %v9271_v5 = vcombine.low %v9220_v19, %v9252_v59  ;;  %v9270_v58 = vcombine.high %v9213_v21, %v9245_v39  ;;  %v9269_v62 = vcombine.low %v9213_v21, %v9245_v39  ;;  %v9273_v52 = vcombine.low %v9229_v38, %v9261_v26 }
 0x3a5   :  { %v9275_v9 = vcombine.low %v9236_v0, %v9268_v41  ;;  %v9274_v48 = vcombine.high %v9229_v38, %v9261_v26  ;;  %v9276_v24 = vcombine.high %v9236_v0, %v9268_v41  ;;  %v9272_v56 = vcombine.high %v9220_v19, %v9252_v59 }
 0x3a6   :  { %v11848_v45 = vpack.i.bf16 %v9271_v5, %v9135_v23  ;;  %v11838_v50 = vpack.i.bf16 %v9270_v58, %v9134_v15 }
 0x3a7   :  { %v11853_v49 = vpack.i.bf16 %v9275_v9, %v9139_v33  ;;  %v11843_v28 = vpack.i.bf16 %v9274_v48, %v9138_v32  ;;  %v11863_v14 = vpack.i.bf16 %v9276_v24, %v9140_v2  ;;  %v11858_v46 = vpack.i.bf16 %v9272_v56, %v9136_v25 }
 0x3a8   :  { %11849 = vrot.lane.b32.xlu1 %v11848_v45, %s12183_s2  ;;  %11839 = vrot.lane.b32.xlu0 %v11838_v50, %s12184_s15 }
 0x3ac   :  { %11854 = vrot.lane.b32.xlu1 %v11853_v49, %s12183_s2  ;;  %11844 = vrot.lane.b32.xlu0 %v11843_v28, %s12184_s15 }
 0x3b0   :  { %11864 = vrot.lane.b32.xlu1 %v11863_v14, %s12185_s16  ;;  %11859 = vrot.lane.b32.xlu0 %v11858_v46, %s12185_s16 }
 0x41a   :  { %v11850_v16 = vpop.permute.xlu1 %11849  ;;  %v11840_v10 = vpop.permute.xlu0 %11839 }
 0x41b   :  { %v11842_v43 = vunpack.i.h.bf16 %v11840_v10  ;;  %v11841_v53 = vunpack.i.l.bf16 %v11840_v10  ;;  %v11852_v31 = vunpack.i.h.bf16 %v11850_v16  ;;  %v11851_v12 = vunpack.i.l.bf16 %v11850_v16 }
 0x41d   :  { %v9325_v13 = vsel %vm8877_vm8, %v9133_v8, %v11841_v53  ;;  %v9326_v20 = vsel %vm8877_vm8, %v9269_v62, %v11842_v43 }
 0x41e   :  { %v11855_v54 = vpop.permute.xlu1 %11854  ;;  %v11845_v34 = vpop.permute.xlu0 %11844  ;;  %v9328_v8 = vsel %vm9327_vm9, %v9325_v13, %v11851_v12  ;;  %v9329_v51 = vsel %vm9327_vm9, %v9326_v20, %v11852_v31 }
 0x41f   :  { %v11847_v3 = vunpack.i.h.bf16 %v11845_v34  ;;  %v11846_v35 = vunpack.i.l.bf16 %v11845_v34  ;;  %v11857_v4 = vunpack.i.h.bf16 %v11855_v54  ;;  %v11856_v60 = vunpack.i.l.bf16 %v11855_v54 }
 0x421   :  { %v9334_v22 = vsel %vm8877_vm8, %v9273_v52, %v11847_v3  ;;  %v9333_v61 = vsel %vm8877_vm8, %v9137_v1, %v11846_v35 }
 0x422   :  { %v11865_v36 = vpop.permute.xlu1 %11864  ;;  %v11860_v11 = vpop.permute.xlu0 %11859  ;;  %v9335_v17 = vsel %vm9327_vm9, %v9333_v61, %v11856_v60  ;;  %v9336_v27 = vsel %vm9327_vm9, %v9334_v22, %v11857_v4 }
 0x423   :  { %v11867_v6 = vunpack.i.h.bf16 %v11865_v36  ;;  %v11866_v30 = vunpack.i.l.bf16 %v11865_v36  ;;  %v11862_v55 = vunpack.i.h.bf16 %v11860_v11  ;;  %v11861_v29 = vunpack.i.l.bf16 %v11860_v11 }
 0x425   :  { %v9337_v63 = vsel %vm9330_vm10, %v9335_v17, %v11866_v30  ;;  %v9338_v57 = vsel %vm9330_vm10, %v9336_v27, %v11867_v6  ;;  %v9331_v42 = vsel %vm9330_vm10, %v9328_v8, %v11861_v29  ;;  %v9332_v37 = vsel %vm9330_vm10, %v9329_v51, %v11862_v55 }
 0x426   :  { %v10416_v1 = vpack.c.bf16 %v9337_v63, %v9331_v42  ;;  %v10417_v7 = vpack.c.bf16 %v9338_v57, %v9332_v37 }
 0x428   :  { %9351 = vst [vmem:[%s16651_s3] sm:$0xff] %v10416_v1  ;;  %9352 = vst [vmem:[%s16651_s3 + $0x8] sm:$0xff] %v10417_v7 }

</bundles_post_ra>
